<compile_context>
chip_gen: v7x
topology: tpu7x:2x2x1
jax: 0.10.0
libtpu: 0.0.40
codegen_flags: <defaults>
</compile_context>

<pallas_src>
import jax
import jax.numpy as jnp
from jax.experimental import pallas as pl
from jax.experimental.pallas import tpu as pltpu


def _generator_kernel(z_ref, w1_ref, b1_ref, w2_ref, b2_ref, o_ref):
    # ---- layer 1: h = LeakyReLU(z @ W1 + b1) -------------------------------
    # Tiny (batch x 4096); recomputed every grid step so the N axis stays
    # truly parallel (v7x megacore) with no scratch-carried state.
    zb = z_ref[...].astype(jnp.bfloat16)
    h = jnp.dot(zb, w1_ref[...], preferred_element_type=jnp.float32)
    h = h + b1_ref[...]
    h = jnp.where(h > 0.0, h, 0.01 * h)            # PyTorch LeakyReLU default

    # ---- layer 2: y = ReLU(h @ W2[:, j-block] + b2[j-block]) ---------------
    y = jnp.dot(h.astype(jnp.bfloat16), w2_ref[...],
                preferred_element_type=jnp.float32)
    y = y + b2_ref[...]
    o_ref[...] = jnp.maximum(y, 0.0).astype(o_ref.dtype)


def generator_forward(z, params, *, n_blocks=2):
    """z: (batch, z_dim + attr_dim) -> (batch, 2048), f32 out."""
    w1, b1 = params["w1"], params["b1"]
    w2, b2 = params["w2"], params["b2"]
    B, K1 = z.shape
    K1w, H = w1.shape
    Hw, N = w2.shape
    assert K1 == K1w and H == Hw and b1.shape == (H,) and b2.shape == (N,)

    # N split must stay lane-dense (multiple of 128) for unmasked stores /
    # efficient W2 DMA; otherwise fall back to a single block.
    if N % (n_blocks * 128) != 0:
        n_blocks = 1
    tn = N // n_blocks

    # bf16 weights: halves the dominant HBM traffic (W2: 32 MiB -> 16 MiB).
    w1_bf = w1.astype(jnp.bfloat16)
    w2_bf = w2.astype(jnp.bfloat16)
    b1_2d = b1.reshape(1, H).astype(jnp.float32)
    b2_2d = b2.reshape(1, N).astype(jnp.float32)

    return pl.pallas_call(
        _generator_kernel,
        out_shape=jax.ShapeDtypeStruct((B, N), jnp.float32),
        grid_spec=pltpu.PrefetchScalarGridSpec(
            num_scalar_prefetch=0,
            grid=(n_blocks,),
            in_specs=[
                pl.BlockSpec((B, K1), lambda j: (0, 0)),   # z   (fetched once)
                pl.BlockSpec((K1, H), lambda j: (0, 0)),   # W1  (fetched once)
                pl.BlockSpec((1, H), lambda j: (0, 0)),    # b1  (fetched once)
                pl.BlockSpec((H, tn), lambda j: (0, j)),   # W2  (streamed)
                pl.BlockSpec((1, tn), lambda j: (0, j)),   # b2
            ],
            out_specs=pl.BlockSpec((B, tn), lambda j: (0, j)),
        ),
        compiler_params=pltpu.CompilerParams(
            # One W2 half per TensorCore on v7x; no-op on v5e/v6e (1 TC).
            dimension_semantics=("parallel",),
        ),
    )(z.astype(jnp.float32), w1_bf, b1_2d, w2_bf, b2_2d)


def init_params(key, in_dim, hidden=4096, out_dim=2048, dtype=jnp.float32):
    k1, k2, k3, k4 = jax.random.split(key, 4)
    # Deterministic synthetic init (uniform, PyTorch-Linear-like fan_in scaling).
    lim1 = 1.0 / (in_dim ** 0.5)
    lim2 = 1.0 / (hidden ** 0.5)
    return {
        "w1": jax.random.uniform(k1, (in_dim, hidden), dtype, -lim1, lim1),
        "b1": jax.random.uniform(k2, (hidden,), dtype, -lim1, lim1),
        "w2": jax.random.uniform(k3, (hidden, out_dim), dtype, -lim2, lim2),
        "b2": jax.random.uniform(k4, (out_dim,), dtype, -lim2, lim2),
    }


def _reference(z, p):
    # Mirrors the kernel's quantization (bf16 operands, f32 accumulation) so
    # the comparison only measures accumulation-order differences.
    f32 = jnp.float32
    hi = jax.lax.Precision.HIGHEST
    zq = z.astype(jnp.bfloat16).astype(f32)
    w1q = p["w1"].astype(jnp.bfloat16).astype(f32)
    h = jnp.dot(zq, w1q, precision=hi) + p["b1"]
    h = jnp.where(h > 0, h, 0.01 * h)
    hq = h.astype(jnp.bfloat16).astype(f32)
    w2q = p["w2"].astype(jnp.bfloat16).astype(f32)
    y = jnp.dot(hq, w2q, precision=hi) + p["b2"]
    return jnp.maximum(y, 0.0)


if __name__ == "__main__":
    z_dim, attr_dim = 16, 16
    batch = 8  # sublane-friendly small batch

    key = jax.random.PRNGKey(0)
    kz, kp = jax.random.split(key)
    z = jax.random.normal(kz, (batch, z_dim + attr_dim), jnp.float32)
    params = init_params(kp, z_dim + attr_dim)

    out = jax.block_until_ready(generator_forward(z, params))

    assert out.shape == (batch, 2048) and out.dtype == jnp.float32
    ref = _reference(z, params)
    assert jnp.allclose(out, ref, atol=5e-3, rtol=5e-3), "mismatch vs reference"

    print("KERNEL_OK")
</pallas_src>

<mosaic_0001>
module attributes {stable_mosaic.version = 11 : i64} {
  func.func @_generator_kernel(%arg0: i32, %arg1: memref<8x32xf32, #tpu.memory_space<vmem>>, %arg2: memref<32x4096xbf16, #tpu.memory_space<vmem>>, %arg3: memref<1x4096xf32, #tpu.memory_space<vmem>>, %arg4: memref<4096x1024xbf16, #tpu.memory_space<vmem>>, %arg5: memref<1x1024xf32, #tpu.memory_space<vmem>>, %arg6: memref<8x1024xf32, #tpu.memory_space<vmem>>) attributes {dimension_semantics = [#tpu.dimension_semantics<parallel>], iteration_bounds = array<i64: 2>, scalar_prefetch = 0 : i64, scratch_operands = 0 : i64, tpu.core_type = #tpu.core_type<tc>, window_params = [{pipeline_mode = #tpu.pipeline_mode<synchronous>, transform_indices = @transform_0, window_bounds = array<i64: 8, 32>}, {pipeline_mode = #tpu.pipeline_mode<synchronous>, transform_indices = @transform_1, window_bounds = array<i64: 32, 4096>}, {pipeline_mode = #tpu.pipeline_mode<synchronous>, transform_indices = @transform_2, window_bounds = array<i64: 1, 4096>}, {transform_indices = @transform_3, window_bounds = array<i64: 4096, 1024>}, {transform_indices = @transform_4, window_bounds = array<i64: 1, 1024>}, {transform_indices = @transform_5, window_bounds = array<i64: 8, 1024>}]} {
    %c0 = arith.constant 0 : index
    %c0_0 = arith.constant 0 : index
    %0 = vector.load %arg1[%c0, %c0_0] : memref<8x32xf32, #tpu.memory_space<vmem>>, vector<8x32xf32>
    %1 = arith.truncf %0 : vector<8x32xf32> to vector<8x32xbf16>
    %c0_1 = arith.constant 0 : index
    %c0_2 = arith.constant 0 : index
    %2 = vector.load %arg2[%c0_1, %c0_2] : memref<32x4096xbf16, #tpu.memory_space<vmem>>, vector<32x4096xbf16>
    %cst = arith.constant dense<0.000000e+00> : vector<8x4096xf32>
    %3 = tpu.matmul %1, %2, %cst {dimension_numbers = #tpu.dot_dimension_numbers<[1], [0], [0], [1], [0, 0, 1, 1], [], []>} : vector<8x32xbf16>, vector<32x4096xbf16>, vector<8x4096xf32> -> vector<8x4096xf32>
    %c0_3 = arith.constant 0 : index
    %c0_4 = arith.constant 0 : index
    %4 = vector.load %arg3[%c0_3, %c0_4] : memref<1x4096xf32, #tpu.memory_space<vmem>>, vector<1x4096xf32>
    %5 = vector.broadcast %4 : vector<1x4096xf32> to vector<8x4096xf32>
    %6 = arith.addf %3, %5 : vector<8x4096xf32>
    %cst_5 = arith.constant 0.000000e+00 : f32
    %7 = vector.broadcast %cst_5 : f32 to vector<8x4096xf32>
    %8 = arith.cmpf ogt, %6, %7 : vector<8x4096xf32>
    %cst_6 = arith.constant 0.00999999977 : f32
    %9 = vector.broadcast %cst_6 : f32 to vector<8x4096xf32>
    %10 = arith.mulf %9, %6 : vector<8x4096xf32>
    %11 = arith.select %8, %6, %10 : vector<8x4096xi1>, vector<8x4096xf32>
    %12 = arith.truncf %11 : vector<8x4096xf32> to vector<8x4096xbf16>
    %c0_7 = arith.constant 0 : index
    %c0_8 = arith.constant 0 : index
    %13 = vector.load %arg4[%c0_7, %c0_8] : memref<4096x1024xbf16, #tpu.memory_space<vmem>>, vector<4096x1024xbf16>
    %cst_9 = arith.constant dense<0.000000e+00> : vector<8x1024xf32>
    %14 = tpu.matmul %12, %13, %cst_9 {dimension_numbers = #tpu.dot_dimension_numbers<[1], [0], [0], [1], [0, 0, 1, 1], [], []>} : vector<8x4096xbf16>, vector<4096x1024xbf16>, vector<8x1024xf32> -> vector<8x1024xf32>
    %c0_10 = arith.constant 0 : index
    %c0_11 = arith.constant 0 : index
    %15 = vector.load %arg5[%c0_10, %c0_11] : memref<1x1024xf32, #tpu.memory_space<vmem>>, vector<1x1024xf32>
    %16 = vector.broadcast %15 : vector<1x1024xf32> to vector<8x1024xf32>
    %17 = arith.addf %14, %16 : vector<8x1024xf32>
    %cst_12 = arith.constant 0.000000e+00 : f32
    %18 = vector.broadcast %cst_12 : f32 to vector<8x1024xf32>
    %19 = arith.maximumf %17, %18 : vector<8x1024xf32>
    %c0_13 = arith.constant 0 : index
    %c0_14 = arith.constant 0 : index
    %20 = vector.load %arg6[%c0_13, %c0_14] : memref<8x1024xf32, #tpu.memory_space<vmem>>, vector<8x1024xf32>
    tpu.vector_store %arg6[%c0_13, %c0_14], %19 {strides = array<i32>} : memref<8x1024xf32, #tpu.memory_space<vmem>>, vector<8x1024xf32>,
    return
  }
  func.func @transform_0(%arg0: i32) -> (i32, i32) {
    %c0_i32 = arith.constant 0 : i32
    %c0_i32_0 = arith.constant 0 : i32
    %c0_i32_1 = arith.constant 0 : i32
    return %c0_i32, %c0_i32_0 : i32, i32
  }
  func.func @transform_1(%arg0: i32) -> (i32, i32) {
    %c0_i32 = arith.constant 0 : i32
    %c0_i32_0 = arith.constant 0 : i32
    %c0_i32_1 = arith.constant 0 : i32
    return %c0_i32, %c0_i32_0 : i32, i32
  }
  func.func @transform_2(%arg0: i32) -> (i32, i32) {
    %c0_i32 = arith.constant 0 : i32
    %c0_i32_0 = arith.constant 0 : i32
    %c0_i32_1 = arith.constant 0 : i32
    return %c0_i32, %c0_i32_0 : i32, i32
  }
  func.func @transform_3(%arg0: i32) -> (i32, i32) {
    %c0_i32 = arith.constant 0 : i32
    %c0_i32_0 = arith.constant 0 : i32
    return %c0_i32, %arg0 : i32, i32
  }
  func.func @transform_4(%arg0: i32) -> (i32, i32) {
    %c0_i32 = arith.constant 0 : i32
    %c0_i32_0 = arith.constant 0 : i32
    return %c0_i32, %arg0 : i32, i32
  }
  func.func @transform_5(%arg0: i32) -> (i32, i32) {
    %c0_i32 = arith.constant 0 : i32
    %c0_i32_0 = arith.constant 0 : i32
    return %c0_i32, %arg0 : i32, i32
  }
}

</mosaic_0001>

<bundles_post_ra>
// kernel: tpu_custom_call.1
= control target key start
LH: loop header
LB: loop body
LE: loop exit
PB: predicated region body
PF: predicated region fallthrough
CT: control target
= control target key end

     0   :  { %s22379_s0 = inlined_call_operand.hbm [shape: f32[8,32], index: 0, kind: input, shape index: {}]   ;;  %s22380_s1 = inlined_call_operand.hbm [shape: bf16[32,4096], index: 1, kind: input, shape index: {}]   ;;  %s22381_s2 = inlined_call_operand.hbm [shape: f32[1,4096], index: 2, kind: input, shape index: {}]   ;;  %s22382_s3 = inlined_call_operand.hbm [shape: bf16[4096,2048], index: 3, kind: input, shape index: {}]   ;;  %s22383_s4 = inlined_call_operand.hbm [shape: f32[1,2048], index: 4, kind: input, shape index: {}]   ;;  %s22384_s5 = inlined_call_operand.hbm [shape: f32[8,2048], index: 5, kind: output, shape index: {}]  }
   0x1   :  { %22401 = sst [smem:[#allocation23_spill]] %s22380_s1 }
   0x2   :  { %22402 = sst [smem:[#allocation24_spill]] %s22382_s3 }
   0x3   :  { %10 = vsyncpa [#allocation3], 0 }
   0x4   :  { %11 = vsyncpa [#allocation6], 0 }
   0x5   :  { %12 = vsyncpa [#allocation9], 0 }
   0x6   :  { %14 = vsyncpa [#allocation9 + $0x1], 0 }
   0x7   :  { %15 = vsyncpa [#allocation4], 0 }
   0x8   :  { %17 = vsyncpa [#allocation4 + $0x1], 0  ;;  %s19528_s18 = smov 0   ;;  %s19530_s19 = smov 0  }
   0x9   :  { %s19532_s20 = smov 0   ;;  %s19534_s21 = smov 0  }
   0xa LB: > { %s19549_s22 = sadd.s32 4294967295, %s19484_s21   ;;  %s16770_s23 = sadd.s32 4294967294, %s19484_s21   ;;  %s19484_s21 = sphi %s19534_s21, %s22440_s21   ;;  %s19480_s20 = sphi %s19532_s20, %s22444_s20   ;;  %s19476_s19 = sphi %s19530_s19, %s22443_s19   ;;  %s19472_s18 = sphi %s19528_s18, %s22442_s18  }
   0xb   : > { %s19553_s24 = sadd.s32 1, %s19484_s21   ;;  %s93_s25 = sadd.s32 1, %s19480_s20 }
   0xc   : > { %22403 = sst [smem:[#allocation16_spill]] %s19553_s24  ;;  %s90_s26 = ssub.s32 %s19484_s21, %s19553_s24 }
   0xd   : > { %p100_p0 = scmp.ne.s32.totalorder %s19480_s20, %s19476_s19  ;;  %p91_p1 = scmp.eq.s32.totalorder %s90_s26, 0 }
   0xe   : > { %p101_p2 = scmp.eq.s32.totalorder %s19484_s21, 0  ;;  %p106_p3 = scmp.ne.s32.totalorder %s19476_s19, %s19472_s18 }
   0xf   : > { %p22385_p4 = scmp.eq.s32.totalorder %s19549_s22, 0  ;;  %p156_p7 = scmp.eq.s32.totalorder %s19549_s22, 1 }
  0x10   : > { %s19565_s27 = scalar_select %p91_p1, %s19480_s20, %s93_s25  }
  0x11   : > { %p19567_p5 = por %p101_p2, %p100_p0  ;;  %p19573_p6 = por %p22385_p4, %p106_p3 }
  0x12   : > { %22404 = sst [smem:[#allocation17_spill]] %s19565_s27  ;;  %p162_p8 = scmp.eq.s32.totalorder %s16770_s23, 1 }
  0x13   : > { %s22405_s28 = scalar_select %p19567_p5, 1, 0 }
  0x14   : > { %s22406_s29 = scalar_select %p19573_p6, 1, 0 }
  0x15   : > { %p16771_p9 = scmp.ge.s32.totalorder %s19484_s21, 1  ;;  %p169_p10 = scmp.lt.s32.totalorder %s19484_s21, 3 }
  0x16   : > { %p19580_p11 = por %p156_p7, %p100_p0  ;;  %p19584_p12 = por %p162_p8, %p106_p3 }
  0x17   : > { %p19588_p13 = pnand %p16771_p9, %p169_p10  ;;  %s19486_s8 = smov [#allocation5]  }
  0x18   : > { %s22407_s30 = scalar_select %p19580_p11, 1, 0 }
  0x19   : > { %s22408_s6 = scalar_select %p19584_p12, 1, 0 }
  0x1a   : > { %s22410_s7 = scalar_select %p19588_p13, 1, 0 }
  0x1b   : > { %22409 = sst [smem:[#allocation18_spill]] %s22408_s6  ;;  %p19191_p1 = pneg %p19588_p13 }
  0x1c   : > { %s192_s9 = sshll.u32 %s19486_s8, 4  ;;  %s217_s11 = sand.u32 1, %s19484_s21   ;;  %s193_s9 = int_to_ptr.vmem [resolvable:$true] %s192_s9 }
  0x1d   : > { %p19596_p2 = pnand %p19191_p1, %p22385_p4  ;;  %s22412_s1 = sld [smem:[#allocation23_spill]] }
  0x1f   : > { %s22411_s10 = scalar_select %p19596_p2, 1, 0 }
  0x20   : > { %p19611_p8 = pneg %p19596_p2 }
  0x23   : > { %s19266_s14 = scalar_lea.hbm %s22412_s1, 8192 }
  0x24   : > { %p19267_p7 = scmp.ne.s32.totalorder %s22412_s1, %s19266_s14  ;;  %p19273_p1 = scmp.lt.u32.totalorder %s19266_s14, %s22412_s1 }
  0x26   : > { %p19269_p9 = pnand %p19611_p8, %p19267_p7 }
  0x28   : > { %p19270_p10 = pneg %p19269_p9 }
  0x2a   : > { %p19275_p0 = pnand %p19273_p1, %p19270_p10 }
  0x2c   : > { %19278 = shalt.err (!%p19275_p0)
}
  0x2d   : > { %s19279_s26 = scalar_lea.vmem %s193_s9, 8192  ;;  %p19287_p11 = scmp.lt.s32.totalorder %s193_s9, %s193_s9 }
  0x2e   : > { %p19280_p4 = scmp.ne.s32.totalorder %s193_s9, %s19279_s26  ;;  %p19288_p6 = scmp.lt.s32.totalorder %s19279_s26, %s19279_s26 }
  0x30   : > { %p19282_p3 = pnand %p19280_p4, %p19611_p8  ;;  %p19289_p13 = por %p19288_p6, %p19287_p11 }
  0x32   : > { %p19283_p12 = pneg %p19282_p3 }
  0x34   : > { %p19290_p5 = pnand %p19289_p13, %p19283_p12 }
  0x36   : > { %19293 = shalt.err (!%p19290_p5)
}
  0x37   : > { %s19487_s8 = smov 2048   ;;  %s19488_s12 = smov 128  }
  0x38   : > { %19197 = dma.hbm_to_vmem [thread:$0]  (!%p19596_p2), %s22412_s1, 8192, %s193_s9, [#allocation6], %s19487_s8, %s19487_s8, %s19488_s12  }
  0x39   : > { %p22414_p4 = scmp.ne.s32.totalorder %s22405_s28, 0  ;;  %p22415_p0 = scmp.lt.s32.totalorder %s19484_s21, 2 }
  0x3a   : > { %s22393_s16 = sand.u32 1, %s19480_s20   ;;  %s18922_s25 = sshll.u32 %s19484_s21, 9 }
  0x3b   : > { %p19631_p3 = pnand %p22415_p0, %p22414_p4  ;;  %s16776_s23 = sshll.u32 %s22393_s16, 14 }
  0x3c   : > { %s22417_s3 = sld [smem:[#allocation24_spill]]  ;;  %s221_s28 = scalar_lea.vmem [#allocation8], %s16776_s23 }
  0x3d   : > { %s228_s9 = sshll.u32 %s221_s28, 4  ;;  %s19646_s8 = scalar_lea.sflag [#allocation9], %s217_s11  ;;  %s19644_s9 = int_to_ptr.vmem [resolvable:$true] %s228_s9 }
  0x3e   : > { %p22395_p6 = pneg %p19631_p3 }
  0x42   : > { %s19642_s24 = scalar_lea.hbm %s22417_s3, %s18922_s25  ;;  %s19299_s14 = scalar_lea.hbm %s22417_s3, 524288 }
  0x43   : > { %s19294_s12 = scalar_lea.hbm %s19642_s24, 262144  ;;  %p19300_p13 = scmp.lt.u32.totalorder %s19642_s24, %s22417_s3 }
  0x44   : > { %p19295_p5 = scmp.ne.s32.totalorder %s19642_s24, %s19294_s12  ;;  %p19301_p7 = scmp.lt.u32.totalorder %s19299_s14, %s19294_s12 }
  0x45   : > { %p19303_p10 = scmp.lt.u32.totalorder %s19294_s12, %s19642_s24 }
  0x46   : > { %p19297_p11 = pnand %p22395_p6, %p19295_p5  ;;  %p19302_p9 = por %p19301_p7, %p19300_p13 }
  0x48   : > { %p19298_p12 = pneg %p19297_p11  ;;  %p19304_p1 = por %p19303_p10, %p19302_p9 }
  0x4a   : > { %p19305_p4 = pnand %p19304_p1, %p19298_p12 }
  0x4c   : > { %19308 = shalt.err (!%p19305_p4)
}
  0x4d   : > { %s19309_s11 = scalar_lea.vmem %s19644_s9, 262144  ;;  %s19489_s23 = smov [#allocation8]  }
  0x4e   : > { %p19310_p0 = scmp.ne.s32.totalorder %s19644_s9, %s19309_s11  ;;  %s19314_s28 = sshll.u32 %s19489_s23, 4  ;;  %s19315_s28 = int_to_ptr.vmem [resolvable:$false] %s19314_s28 }
  0x4f   : > { %s19316_s27 = scalar_lea.vmem %s19315_s28, 524288  ;;  %p19317_p2 = scmp.lt.s32.totalorder %s19644_s9, %s19315_s28 }
  0x50   : > { %p19312_p5 = pnand %p19310_p0, %p22395_p6  ;;  %p19318_p13 = scmp.lt.s32.totalorder %s19316_s27, %s19309_s11 }
  0x52   : > { %p19313_p11 = pneg %p19312_p5  ;;  %p19319_p7 = por %p19318_p13, %p19317_p2 }
  0x54   : > { %p19320_p9 = pnand %p19319_p7, %p19313_p11 }
  0x56   : > { %19323 = shalt.err (!%p19320_p9)
}
  0x57   : > { %s19490_s12 = smov 1024   ;;  %s19491_s13 = smov 512  }
  0x58   : > { %s19492_s14 = smov 32   ;;  %s19493_s25 = smov [#allocation2]  }
  0x59   : > { %19204 = dma.hbm_to_vmem [thread:$0]  (!%p19631_p3), %s19642_s24, 262144, %s19644_s9, %s19646_s8, %s19490_s12, %s19491_s13, %s19492_s14  }
  0x5a   : > { %s182_s26 = sshll.u32 %s19493_s25, 4  ;;  %s19494_s23 = smov [#allocation7]   ;;  %s183_s26 = int_to_ptr.vmem [resolvable:$true] %s182_s26 }
  0x5b   : > { %s206_s16 = sshll.u32 %s19494_s23, 4  ;;  %s19324_s27 = scalar_lea.hbm %s22379_s0, 128  ;;  %s19674_s16 = int_to_ptr.vmem [resolvable:$true] %s206_s16 }
  0x5c   : > { %p19325_p2 = scmp.ne.s32.totalorder %s22379_s0, %s19324_s27  ;;  %p19331_p1 = scmp.lt.u32.totalorder %s19324_s27, %s22379_s0 }
  0x5e   : > { %p19327_p12 = pnand %p19325_p2, %p19611_p8 }
  0x60   : > { %p19328_p10 = pneg %p19327_p12 }
  0x62   : > { %p19333_p4 = pnand %p19331_p1, %p19328_p10 }
  0x64   : > { %19336 = shalt.err (!%p19333_p4)
}
  0x65   : > { %s19337_s9 = scalar_lea.vmem %s183_s26, 128  ;;  %p19345_p13 = scmp.lt.s32.totalorder %s183_s26, %s183_s26 }
  0x66   : > { %p19338_p0 = scmp.ne.s32.totalorder %s183_s26, %s19337_s9  ;;  %p19346_p7 = scmp.lt.s32.totalorder %s19337_s9, %s19337_s9 }
  0x68   : > { %p19340_p5 = pnand %p19338_p0, %p19611_p8  ;;  %p19347_p9 = por %p19346_p7, %p19345_p13 }
  0x6a   : > { %p19341_p11 = pneg %p19340_p5 }
  0x6c   : > { %p19348_p6 = pnand %p19347_p9, %p19341_p11 }
  0x6e   : > { %19351 = shalt.err (!%p19348_p6)
}
  0x6f   : > { %p22418_p2 = scmp.ne.s32.totalorder %s22411_s10, 0  ;;  %s19352_s13 = scalar_lea.hbm %s22381_s2, 512 }
  0x70   : > { %p19353_p12 = scmp.ne.s32.totalorder %s22381_s2, %s19352_s13  ;;  %p19359_p6 = scmp.lt.u32.totalorder %s19352_s13, %s22381_s2 }
  0x71   : > { %19194 = dma.hbm_to_vmem [thread:$0]  (!%p22418_p2), %s22379_s0, 128, %s183_s26, [#allocation3]  }
  0x72   : > { %p19355_p10 = pnand %p19353_p12, %p19611_p8 }
  0x74   : > { %p19356_p1 = pneg %p19355_p10 }
  0x76   : > { %p19361_p4 = pnand %p19359_p6, %p19356_p1 }
  0x78   : > { %19364 = shalt.err (!%p19361_p4)
}
  0x79   : > { %s19365_s26 = scalar_lea.vmem %s19674_s16, 512  ;;  %p19373_p13 = scmp.lt.s32.totalorder %s19674_s16, %s19674_s16 }
  0x7a   : > { %p19366_p0 = scmp.ne.s32.totalorder %s19674_s16, %s19365_s26  ;;  %p19374_p7 = scmp.lt.s32.totalorder %s19365_s26, %s19365_s26 }
  0x7c   : > { %p19368_p5 = pnand %p19366_p0, %p19611_p8  ;;  %p19375_p9 = por %p19374_p7, %p19373_p13 }
  0x7e   : > { %p19369_p11 = pneg %p19368_p5 }
  0x80   : > { %p19376_p12 = pnand %p19375_p9, %p19369_p11 }
  0x82   : > { %19379 = shalt.err (!%p19376_p12)
}
  0x83   : > { %19200 = dma.hbm_to_vmem [thread:$0]  (!%p22418_p2), %s22381_s2, 512, %s19674_s16, [#allocation6]  }
  0x84   : > { %s22419_s24 = sand.u32 1, %s19480_s20   ;;  %s18923_s9 = sshll.u32 %s19484_s21, 7 }
  0x85   : > { %s16779_s17 = sshll.u32 %s22419_s24, 3  ;;  %s19723_s6 = scalar_lea.hbm %s22383_s4, %s18923_s9 }
  0x86   : > { %s242_s10 = scalar_lea.vmem [#allocation10], %s16779_s17  ;;  %s19380_s13 = scalar_lea.hbm %s19723_s6, 128 }
  0x87   : > { %s250_s12 = sshll.u32 %s242_s10, 4  ;;  %p19381_p8 = scmp.ne.s32.totalorder %s19723_s6, %s19380_s13  ;;  %s251_s12 = int_to_ptr.vmem [resolvable:$true] %s250_s12 }
  0x88   : > { %p22420_p10 = pneg %p19631_p3  ;;  %s19385_s25 = scalar_lea.hbm %s22383_s4, 256 }
  0x89   : > { %p19386_p6 = scmp.lt.u32.totalorder %s19723_s6, %s22383_s4  ;;  %p19387_p4 = scmp.lt.u32.totalorder %s19385_s25, %s19380_s13 }
  0x8a   : > { %p19383_p2 = pnand %p19381_p8, %p22420_p10  ;;  %p19389_p5 = scmp.lt.u32.totalorder %s19380_s13, %s19723_s6 }
  0x8b   : > { %p19388_p0 = por %p19387_p4, %p19386_p6 }
  0x8c   : > { %p19384_p1 = pneg %p19383_p2 }
  0x8d   : > { %p19390_p11 = por %p19389_p5, %p19388_p0 }
  0x8f   : > { %p19391_p13 = pnand %p19390_p11, %p19384_p1 }
  0x91   : > { %19394 = shalt.err (!%p19391_p13)
}
  0x92   : > { %s19395_s26 = scalar_lea.vmem %s251_s12, 128  ;;  %p22421_p9 = pmov %p22420_p10 }
  0x93   : > { %p19396_p7 = scmp.ne.s32.totalorder %s251_s12, %s19395_s26  ;;  %s19495_s28 = smov [#allocation10]  }
  0x94   : > { %s19400_s27 = sshll.u32 %s19495_s28, 4  ;;  %s19401_s27 = int_to_ptr.vmem [resolvable:$false] %s19400_s27 }
  0x95   : > { %p19398_p12 = pnand %p19396_p7, %p22421_p9  ;;  %s19402_s24 = scalar_lea.vmem %s19401_s27, 256 }
  0x96   : > { %p19403_p10 = scmp.lt.s32.totalorder %s251_s12, %s19401_s27  ;;  %p19404_p2 = scmp.lt.s32.totalorder %s19402_s24, %s19395_s26 }
  0x97   : > { %p19399_p8 = pneg %p19398_p12 }
  0x98   : > { %p19405_p4 = por %p19404_p2, %p19403_p10 }
  0x9a   : > { %p19406_p6 = pnand %p19405_p4, %p19399_p8 }
  0x9c   : > { %19409 = shalt.err (!%p19406_p6)
}
  0x9d   : > { %19207 = dma.hbm_to_vmem [thread:$0]  (!%p19631_p3), %s19723_s6, 128, %s251_s12, %s19646_s8  }
  0x9e   : > { %p22422_p1 = scmp.ne.s32.totalorder %s22410_s7, 0 }
  0xa0   : > { %259 = sbr.rel (%p22422_p1) target bundleno = 2627 (0xa43), region = 40 }
  0xa7   : > { %p22423_p0 = scmp.eq.s32.totalorder %s19549_s22, 0 }
  0xa9   : > { %19455 = dma.done.wait (%p22423_p0), [#allocation3], 128   ;;  %p22424_p5 = pmov %p22423_p0 }
  0xaa   : > { %p22425_p11 = pmov %p22423_p0 }
  0xab   : > { %19457 = vsyncadd (%p22424_p5), [#allocation3], 4294967168 }
  0xac   : > { %19459 = dma.done.wait (%p22425_p11), [#allocation6], 8704   ;;  %p22426_p13 = pmov %p22423_p0 }
  0xad   : > { %s273_s15 = sand.u32 1, %s19549_s22   ;;  %s19757_s8 = sand.u32 1, %s19476_s19  }
  0xae   : > { %19461 = vsyncadd (%p22426_p13), [#allocation6], 4294958592  ;;  %s16786_s7 = sshll.u32 %s19757_s8, 14  ;;  %s274_s17 = scalar_lea.sflag [#allocation9], %s273_s15 }
  0xaf   : > { %s19760_s9 = scalar_lea.vmem [#allocation8], %s16786_s7  ;;  %p22427_p3 = scmp.ne.s32.totalorder %s22406_s29, 0 }
  0xb1   : > { %19463 = dma.done.wait (%p22427_p3), %s274_s17, 262272  }
  0xb2   : > { %19465 = vsyncadd (%p22427_p3), %s274_s17, 4294705024  ;;  %v19496_v0 = vmov 0   ;;  %v324_v1 = vld [vmem:[#allocation5] sm:$0xff]  ;;  %v325_v7 = vld [vmem:[#allocation5 + $0x8] sm:$0xff]  ;;  %vm876_vm0 = vcmask 261120   ;;  %s16787_s29 = sshll.u32 %s19757_s8, 3 }
  0xb3   : > { %912 = vmatprep.mubr.bf16.mxu0 %v19496_v0  ;;  %953 = vmatprep.mubr.bf16.mxu1 %v19496_v0  ;;  %v340_v2 = vld [vmem:[#allocation5 + $0x80] sm:$0xff]  ;;  %v341_v9 = vld [vmem:[#allocation5 + $0x88] sm:$0xff]  ;;  %v326_v15 = vld [vmem:[#allocation5 + $0x10] sm:$0xff]  ;;  %s21447_s1 = scalar_lea.vmem [#allocation10], %s16787_s29  ;;  %s16788_s3 = sshll.u32 %s19757_s8, 6 }
  0xb4   : > { %v356_v3 = vld [vmem:[#allocation5 + $0x100] sm:$0xff]  ;;  %v16790_v4 = vcombine.high %v324_v1, %v340_v2  ;;  %v16789_v5 = vcombine.low %v324_v1, %v340_v2  ;;  %v357_v10 = vld [vmem:[#allocation5 + $0x108] sm:$0xff]  ;;  %v16792_v12 = vcombine.high %v325_v7, %v341_v9  ;;  %v16791_v13 = vcombine.low %v325_v7, %v341_v9  ;;  %v342_v16 = vld [vmem:[#allocation5 + $0x90] sm:$0xff]  ;;  %s21467_s6 = scalar_lea.vmem [#allocation11], %s16788_s3  ;;  %s18924_s10 = sshll.u32 %s19549_s22, 10 }
  0xb5   : > { %v372_v6 = vld [vmem:[#allocation5 + $0x180] sm:$0xff]  ;;  %v373_v11 = vld [vmem:[#allocation5 + $0x188] sm:$0xff]  ;;  %v322_v18 = vld [vmem:[#allocation2] sm:$0xff]  ;;  %v16794_v21 = vcombine.high %v326_v15, %v342_v16  ;;  %v16793_v27 = vcombine.low %v326_v15, %v342_v16  ;;  %s16649_s12 = sshll.u32 %s21467_s6, 4  ;;  %s22332_s14 = scalar_lea.hbm %s22384_s5, %s18924_s10  ;;  %s22334_s12 = int_to_ptr.vmem [resolvable:$true] %s16649_s12 }
  0xb6   : > { %v16822_v8 = vcombine.high %v356_v3, %v372_v6  ;;  %880 = vmatprep.subr.bf16.mxu0 %v16790_v4  ;;  %v16824_v14 = vcombine.high %v357_v10, %v373_v11  ;;  %v16821_v17 = vcombine.low %v356_v3, %v372_v6  ;;  %v327_v19 = vld [vmem:[#allocation5 + $0x18] sm:$0xff]  ;;  %921 = vmatprep.subr.bf16.mxu1 %v16792_v12  ;;  %v358_v23 = vld [vmem:[#allocation5 + $0x110] sm:$0xff]  ;;  %v328_v32 = vld [vmem:[#allocation5 + $0x20] sm:$0xff]  ;;  %s16635_s22 = scalar_lea.sflag [#allocation4], %s19757_s8  ;;  %s19410_s25 = scalar_lea.vmem %s22334_s12, 1024 }
  0xb7   : > { %881 = vmatpush1.bf16.msra.mxu0 %v16789_v5  ;;  %v343_v20 = vld [vmem:[#allocation5 + $0x98] sm:$0xff]  ;;  %922 = vmatpush1.bf16.msra.mxu1 %v16791_v13  ;;  %v16823_v22 = vcombine.low %v357_v10, %v373_v11  ;;  %v374_v24 = vld [vmem:[#allocation5 + $0x190] sm:$0xff]  ;;  %v19768_v25 = vpack.c.bf16 %v322_v18, %v322_v18  ;;  %v344_v33 = vld [vmem:[#allocation5 + $0xa0] sm:$0xff]  ;;  %p19411_p7 = scmp.ne.s32.totalorder %s22334_s12, %s19410_s25  ;;  %p22436_p9 = scmp.ne.s32.totalorder %s22407_s30, 0 }
  0xb8   : > { %882 = vmatprep.subr.bf16.mxu0 %v16822_v8  ;;  %923 = vmatprep.subr.bf16.mxu1 %v16824_v14  ;;  %v16796_v26 = vcombine.high %v327_v19, %v343_v20  ;;  %v359_v28 = vld [vmem:[#allocation5 + $0x118] sm:$0xff]  ;;  %v16826_v30 = vcombine.high %v358_v23, %v374_v24  ;;  %v16795_v31 = vcombine.low %v327_v19, %v343_v20  ;;  %v329_v36 = vld [vmem:[#allocation5 + $0x28] sm:$0xff]  ;;  %v360_v40 = vld [vmem:[#allocation5 + $0x120] sm:$0xff]  ;;  %s19497_s23 = smov [#allocation11]  }
  0xb9   : > { %v375_v29 = vld [vmem:[#allocation5 + $0x198] sm:$0xff]  ;;  %v16825_v35 = vcombine.low %v358_v23, %v374_v24  ;;  %v345_v37 = vld [vmem:[#allocation5 + $0xa8] sm:$0xff]  ;;  %v16798_v38 = vcombine.high %v328_v32, %v344_v33  ;;  %v376_v41 = vld [vmem:[#allocation5 + $0x1a0] sm:$0xff]  ;;  %v16797_v43 = vcombine.low %v328_v32, %v344_v33  ;;  %p19412_p12 = pnand %p19411_p7, %p22436_p9  ;;  %s19414_s11 = sshll.u32 %s19497_s23, 4  ;;  %s19415_s11 = int_to_ptr.vmem [resolvable:$false] %s19414_s11 }
  0xba   : > { %v16828_v34 = vcombine.high %v359_v28, %v375_v29  ;;  %v16827_v39 = vcombine.low %v359_v28, %v375_v29  ;;  %v16800_v42 = vcombine.high %v329_v36, %v345_v37  ;;  %v361_v44 = vld [vmem:[#allocation5 + $0x128] sm:$0xff]  ;;  %v16830_v46 = vcombine.high %v360_v40, %v376_v41  ;;  %v330_v48 = vld [vmem:[#allocation5 + $0x30] sm:$0xff]  ;;  %v331_v52 = vld [vmem:[#allocation5 + $0x38] sm:$0xff]  ;;  %s19416_s26 = scalar_lea.vmem %s19415_s11, 2048  ;;  %p19417_p10 = scmp.lt.s32.totalorder %s22334_s12, %s19415_s11 }
  0xbb   : > { %883 = vmatpush1.bf16.msra.mxu0 %v16821_v17  ;;  %924 = vmatpush1.bf16.msra.mxu1 %v16823_v22  ;;  %v377_v45 = vld [vmem:[#allocation5 + $0x1a8] sm:$0xff]  ;;  %v16799_v47 = vcombine.low %v329_v36, %v345_v37  ;;  %v346_v49 = vld [vmem:[#allocation5 + $0xb0] sm:$0xff]  ;;  %v16829_v51 = vcombine.low %v360_v40, %v376_v41  ;;  %v347_v53 = vld [vmem:[#allocation5 + $0xb8] sm:$0xff]  ;;  %p19413_p8 = pneg %p19412_p12  ;;  %p19418_p2 = scmp.lt.s32.totalorder %s19416_s26, %s19410_s25 }
  0xbc   : > { %962 = vmatprep.subr.bf16.mxu0 %v16794_v21  ;;  %1003 = vmatprep.subr.bf16.mxu1 %v16796_v26  ;;  %v16832_v50 = vcombine.high %v361_v44, %v377_v45  ;;  %v16802_v54 = vcombine.high %v330_v48, %v346_v49  ;;  %v16831_v55 = vcombine.low %v361_v44, %v377_v45  ;;  %v362_v56 = vld [vmem:[#allocation5 + $0x130] sm:$0xff]  ;;  %v363_v60 = vld [vmem:[#allocation5 + $0x138] sm:$0xff]  ;;  %v332_v1 = vld [vmem:[#allocation5 + $0x40] sm:$0xff] }
  0xbd   : > { %v378_v57 = vld [vmem:[#allocation5 + $0x1b0] sm:$0xff]  ;;  %v16804_v58 = vcombine.high %v331_v52, %v347_v53  ;;  %v16801_v59 = vcombine.low %v330_v48, %v346_v49  ;;  %v379_v61 = vld [vmem:[#allocation5 + $0x1b8] sm:$0xff]  ;;  %v16803_v63 = vcombine.low %v331_v52, %v347_v53  ;;  %v348_v2 = vld [vmem:[#allocation5 + $0xc0] sm:$0xff]  ;;  %p19419_p4 = por %p19418_p2, %p19417_p10 }
  0xbe   : > { %16853 = vmatmul.mubr.msk.bf16.vlgmr.msra.gmra.mrb[0].mxu0 %vm876_vm0, %v19768_v25  ;;  %16854 = vmatmul.mubr.msk.bf16.vlgmr.msra.gmra.mrb[0].mxu1 %vm876_vm0, %v19768_v25  ;;  %v16834_v62 = vcombine.high %v362_v56, %v378_v57  ;;  %v16836_v3 = vcombine.high %v363_v60, %v379_v61  ;;  %v16833_v4 = vcombine.low %v362_v56, %v378_v57  ;;  %v333_v5 = vld [vmem:[#allocation5 + $0x48] sm:$0xff]  ;;  %v364_v9 = vld [vmem:[#allocation5 + $0x140] sm:$0xff]  ;;  %v334_v17 = vld [vmem:[#allocation5 + $0x50] sm:$0xff] }
  0xbf   : > { %963 = vmatpush1.bf16.msra.mxu0 %v16793_v27  ;;  %994 = vmatprep.mubr.bf16.mxu0 %v19496_v0  ;;  %v349_v6 = vld [vmem:[#allocation5 + $0xc8] sm:$0xff]  ;;  %v16806_v7 = vcombine.high %v332_v1, %v348_v2  ;;  %v16835_v8 = vcombine.low %v363_v60, %v379_v61  ;;  %v380_v10 = vld [vmem:[#allocation5 + $0x1c0] sm:$0xff]  ;;  %v16805_v12 = vcombine.low %v332_v1, %v348_v2  ;;  %v350_v18 = vld [vmem:[#allocation5 + $0xd0] sm:$0xff]  ;;  %p19420_p6 = pnand %p19419_p4, %p19413_p8 }
  0xc0   : > { %964 = vmatprep.subr.bf16.mxu0 %v16826_v30  ;;  %1004 = vmatpush1.bf16.msra.mxu1 %v16795_v31  ;;  %v16808_v11 = vcombine.high %v333_v5, %v349_v6  ;;  %v365_v13 = vld [vmem:[#allocation5 + $0x148] sm:$0xff]  ;;  %v16838_v15 = vcombine.high %v364_v9, %v380_v10  ;;  %v16807_v16 = vcombine.low %v333_v5, %v349_v6  ;;  %v335_v21 = vld [vmem:[#allocation5 + $0x58] sm:$0xff]  ;;  %v366_v26 = vld [vmem:[#allocation5 + $0x150] sm:$0xff] }
  0xc1   : > { %1035 = vmatprep.mubr.bf16.mxu1 %v19496_v0  ;;  %1005 = vmatprep.subr.bf16.mxu1 %v16828_v34  ;;  %v381_v14 = vld [vmem:[#allocation5 + $0x1c8] sm:$0xff]  ;;  %v16837_v20 = vcombine.low %v364_v9, %v380_v10  ;;  %v351_v22 = vld [vmem:[#allocation5 + $0xd8] sm:$0xff]  ;;  %v16810_v23 = vcombine.high %v334_v17, %v350_v18  ;;  %v382_v27 = vld [vmem:[#allocation5 + $0x1d0] sm:$0xff]  ;;  %v16809_v29 = vcombine.low %v334_v17, %v350_v18 }
  0xc2   : > { %v16840_v19 = vcombine.high %v365_v13, %v381_v14  ;;  %v16839_v24 = vcombine.low %v365_v13, %v381_v14  ;;  %v16812_v28 = vcombine.high %v335_v21, %v351_v22  ;;  %v367_v30 = vld [vmem:[#allocation5 + $0x158] sm:$0xff]  ;;  %v16842_v32 = vcombine.high %v366_v26, %v382_v27  ;;  %v336_v34 = vld [vmem:[#allocation5 + $0x60] sm:$0xff] }
  0xc3   : > { %965 = vmatpush1.bf16.msra.mxu0 %v16825_v35  ;;  %v383_v31 = vld [vmem:[#allocation5 + $0x1d8] sm:$0xff]  ;;  %v16811_v33 = vcombine.low %v335_v21, %v351_v22  ;;  %v352_v35 = vld [vmem:[#allocation5 + $0xe0] sm:$0xff]  ;;  %v16841_v37 = vcombine.low %v366_v26, %v382_v27  ;;  %v1681_v22 = vld [vmem:[%s19760_s9 + $0x88] sm:$0xff] }
  0xc4   : > { %1044 = vmatprep.subr.bf16.mxu0 %v16798_v38  ;;  %1006 = vmatpush1.bf16.msra.mxu1 %v16827_v39  ;;  %v16844_v36 = vcombine.high %v367_v30, %v383_v31  ;;  %v337_v38 = vld [vmem:[#allocation5 + $0x68] sm:$0xff]  ;;  %v16814_v40 = vcombine.high %v336_v34, %v352_v35  ;;  %v16843_v41 = vcombine.low %v367_v30, %v383_v31  ;;  %v1688_v27 = vld [vmem:[%s19760_s9 + $0xc0] sm:$0xff] }
  0xc5   : > { %1085 = vmatprep.subr.bf16.mxu1 %v16800_v42  ;;  %v353_v39 = vld [vmem:[#allocation5 + $0xe8] sm:$0xff]  ;;  %v368_v42 = vld [vmem:[#allocation5 + $0x160] sm:$0xff]  ;;  %v16813_v45 = vcombine.low %v336_v34, %v352_v35 }
  0xc6   : > { %16855 = vmatmul.mubr.msk.bf16.vlgmr.msra.gmra.mrb[4].mxu0 %vm876_vm0, %v19768_v25  ;;  %v16816_v44 = vcombine.high %v337_v38, %v353_v39  ;;  %v16815_v49 = vcombine.low %v337_v38, %v353_v39  ;;  %v1689_v31 = vld [vmem:[%s19760_s9 + $0xc8] sm:$0xff]  ;;  %v1696_v34 = vld [vmem:[%s19760_s9 + $0x100] sm:$0xff] }
  0xc7   : > { %1045 = vmatpush1.bf16.msra.mxu0 %v16797_v43  ;;  %1076 = vmatprep.mubr.bf16.mxu0 %v19496_v0  ;;  %v384_v43 = vld [vmem:[#allocation5 + $0x1e0] sm:$0xff]  ;;  %v1697_v38 = vld [vmem:[%s19760_s9 + $0x108] sm:$0xff] }
  0xc8   : > { %16856 = vmatmul.mubr.msk.bf16.vlgmr.msra.gmra.mrb[4].mxu1 %vm876_vm0, %v19768_v25  ;;  %1046 = vmatprep.subr.bf16.mxu0 %v16830_v46  ;;  %v369_v46 = vld [vmem:[#allocation5 + $0x168] sm:$0xff]  ;;  %v16846_v48 = vcombine.high %v368_v42, %v384_v43  ;;  %v16845_v53 = vcombine.low %v368_v42, %v384_v43  ;;  %v1700_v35 = vld [vmem:[%s19760_s9 + $0x120] sm:$0xff] }
  0xc9   : > { %1086 = vmatpush1.bf16.msra.mxu1 %v16799_v47  ;;  %1117 = vmatprep.mubr.bf16.mxu1 %v19496_v0  ;;  %v385_v47 = vld [vmem:[#allocation5 + $0x1e8] sm:$0xff]  ;;  %v1704_v42 = vld [vmem:[%s19760_s9 + $0x140] sm:$0xff] }
  0xca   : > { %1087 = vmatprep.subr.bf16.mxu1 %v16832_v50  ;;  %v338_v50 = vld [vmem:[#allocation5 + $0x70] sm:$0xff]  ;;  %v16848_v52 = vcombine.high %v369_v46, %v385_v47  ;;  %v16847_v57 = vcombine.low %v369_v46, %v385_v47  ;;  %v1701_v39 = vld [vmem:[%s19760_s9 + $0x128] sm:$0xff]  ;;  %v1708_v43 = vld [vmem:[%s19760_s9 + $0x160] sm:$0xff] }
  0xcb   : > { %1047 = vmatpush1.bf16.msra.mxu0 %v16829_v51  ;;  %v354_v51 = vld [vmem:[#allocation5 + $0xf0] sm:$0xff]  ;;  %v1705_v46 = vld [vmem:[%s19760_s9 + $0x148] sm:$0xff] }
  0xcc   : > { %1126 = vmatprep.subr.bf16.mxu0 %v16802_v54  ;;  %v339_v54 = vld [vmem:[#allocation5 + $0x78] sm:$0xff]  ;;  %v16818_v56 = vcombine.high %v338_v50, %v354_v51  ;;  %v16817_v61 = vcombine.low %v338_v50, %v354_v51  ;;  %v1709_v47 = vld [vmem:[%s19760_s9 + $0x168] sm:$0xff]  ;;  %v1712_v50 = vld [vmem:[%s19760_s9 + $0x180] sm:$0xff] }
  0xcd   : > { %1088 = vmatpush1.bf16.msra.mxu1 %v16831_v55  ;;  %v355_v55 = vld [vmem:[#allocation5 + $0xf8] sm:$0xff]  ;;  %v1716_v51 = vld [vmem:[%s19760_s9 + $0x1a0] sm:$0xff] }
  0xce   : > { %16857 = vmatmul.mubr.msk.bf16.vlgmr.msra.gmra.mrb[8].mxu0 %vm876_vm0, %v19768_v25  ;;  %1167 = vmatprep.subr.bf16.mxu1 %v16804_v58  ;;  %v370_v58 = vld [vmem:[#allocation5 + $0x170] sm:$0xff]  ;;  %v16820_v60 = vcombine.high %v339_v54, %v355_v55  ;;  %v16819_v2 = vcombine.low %v339_v54, %v355_v55  ;;  %v1713_v54 = vld [vmem:[%s19760_s9 + $0x188] sm:$0xff] }
  0xcf   : > { %1127 = vmatpush1.bf16.msra.mxu0 %v16801_v59  ;;  %1158 = vmatprep.mubr.bf16.mxu0 %v19496_v0  ;;  %v386_v59 = vld [vmem:[#allocation5 + $0x1f0] sm:$0xff]  ;;  %v1717_v55 = vld [vmem:[%s19760_s9 + $0x1a8] sm:$0xff] }
  0xd0   : > { %16858 = vmatmul.mubr.msk.bf16.vlgmr.msra.gmra.mrb[8].mxu1 %vm876_vm0, %v19768_v25  ;;  %1128 = vmatprep.subr.bf16.mxu0 %v16834_v62  ;;  %v371_v62 = vld [vmem:[#allocation5 + $0x178] sm:$0xff]  ;;  %v16850_v1 = vcombine.high %v370_v58, %v386_v59  ;;  %v16849_v6 = vcombine.low %v370_v58, %v386_v59  ;;  %v1720_v58 = vld [vmem:[%s19760_s9 + $0x1c0] sm:$0xff] }
  0xd1   : > { %1168 = vmatpush1.bf16.msra.mxu1 %v16803_v63  ;;  %1199 = vmatprep.mubr.bf16.mxu1 %v19496_v0  ;;  %v387_v63 = vld [vmem:[#allocation5 + $0x1f8] sm:$0xff]  ;;  %v1724_v59 = vld [vmem:[%s19760_s9 + $0x1e0] sm:$0xff] }
  0xd2   : > { %1169 = vmatprep.subr.bf16.mxu1 %v16836_v3  ;;  %v1664_v3 = vld [vmem:[%s19760_s9] sm:$0xff]  ;;  %v16852_v5 = vcombine.high %v371_v62, %v387_v63  ;;  %v16851_v10 = vcombine.low %v371_v62, %v387_v63  ;;  %v1721_v62 = vld [vmem:[%s19760_s9 + $0x1c8] sm:$0xff] }
  0xd3   : > { %1129 = vmatpush1.bf16.msra.mxu0 %v16833_v4  ;;  %v1668_v4 = vld [vmem:[%s19760_s9 + $0x20] sm:$0xff]  ;;  %v1725_v63 = vld [vmem:[%s19760_s9 + $0x1e8] sm:$0xff] }
  0xd4   : > { %1208 = vmatprep.subr.bf16.mxu0 %v16806_v7  ;;  %v1665_v7 = vld [vmem:[%s19760_s9 + $0x8] sm:$0xff]  ;;  %v16870_v9 = vcombine.high %v1664_v3, %v1668_v4  ;;  %v16869_v14 = vcombine.low %v1664_v3, %v1668_v4  ;;  %v1728_v3 = vld [vmem:[%s19760_s9 + $0x200] sm:$0xff] }
  0xd5   : > { %1170 = vmatpush1.bf16.msra.mxu1 %v16835_v8  ;;  %v1669_v8 = vld [vmem:[%s19760_s9 + $0x28] sm:$0xff]  ;;  %v1732_v4 = vld [vmem:[%s19760_s9 + $0x220] sm:$0xff] }
  0xd6   : > { %16859 = vmatmul.mubr.msk.bf16.vlgmr.msra.gmra.mrb[12].mxu0 %vm876_vm0, %v19768_v25  ;;  %1249 = vmatprep.subr.bf16.mxu1 %v16808_v11  ;;  %v1672_v11 = vld [vmem:[%s19760_s9 + $0x40] sm:$0xff]  ;;  %v16872_v13 = vcombine.high %v1665_v7, %v1669_v8  ;;  %v16871_v18 = vcombine.low %v1665_v7, %v1669_v8  ;;  %v1729_v7 = vld [vmem:[%s19760_s9 + $0x208] sm:$0xff] }
  0xd7   : > { %1209 = vmatpush1.bf16.msra.mxu0 %v16805_v12  ;;  %1240 = vmatprep.mubr.bf16.mxu0 %v19496_v0  ;;  %v1676_v12 = vld [vmem:[%s19760_s9 + $0x60] sm:$0xff]  ;;  %v1733_v8 = vld [vmem:[%s19760_s9 + $0x228] sm:$0xff] }
  0xd8   : > { %16860 = vmatmul.mubr.msk.bf16.vlgmr.msra.gmra.mrb[12].mxu1 %vm876_vm0, %v19768_v25  ;;  %1210 = vmatprep.subr.bf16.mxu0 %v16838_v15  ;;  %v1673_v15 = vld [vmem:[%s19760_s9 + $0x48] sm:$0xff]  ;;  %v16878_v17 = vcombine.high %v1672_v11, %v1676_v12  ;;  %v16877_v21 = vcombine.low %v1672_v11, %v1676_v12  ;;  %v1736_v11 = vld [vmem:[%s19760_s9 + $0x240] sm:$0xff] }
  0xd9   : > { %1250 = vmatpush1.bf16.msra.mxu1 %v16807_v16  ;;  %1281 = vmatprep.mubr.bf16.mxu1 %v19496_v0  ;;  %v1677_v16 = vld [vmem:[%s19760_s9 + $0x68] sm:$0xff]  ;;  %v1740_v12 = vld [vmem:[%s19760_s9 + $0x260] sm:$0xff] }
  0xda   : > { %1251 = vmatprep.subr.bf16.mxu1 %v16840_v19  ;;  %v1680_v19 = vld [vmem:[%s19760_s9 + $0x80] sm:$0xff]  ;;  %v16879_v26 = vcombine.low %v1673_v15, %v1677_v16 }
  0xdb   : > { %1211 = vmatpush1.bf16.msra.mxu0 %v16837_v20  ;;  %v1684_v20 = vld [vmem:[%s19760_s9 + $0xa0] sm:$0xff] }
  0xdc   : > { %1290 = vmatprep.subr.bf16.mxu0 %v16810_v23  ;;  %v1685_v23 = vld [vmem:[%s19760_s9 + $0xa8] sm:$0xff]  ;;  %v16885_v30 = vcombine.low %v1680_v19, %v1684_v20 }
  0xdd   : > { %1252 = vmatpush1.bf16.msra.mxu1 %v16839_v24  ;;  %v16886_v24 = vcombine.high %v1680_v19, %v1684_v20  ;;  %v1744_v19 = vld [vmem:[%s19760_s9 + $0x280] sm:$0xff] }
  0xde   : > { %16861 = vmatmul.mubr.msk.bf16.vlgmr.msra.gmra.mrb[16].mxu0 %vm876_vm0, %v19768_v25  ;;  %1331 = vmatprep.subr.bf16.mxu1 %v16812_v28  ;;  %v1692_v28 = vld [vmem:[%s19760_s9 + $0xe0] sm:$0xff] }
  0xdf   : > { %1291 = vmatpush1.bf16.msra.mxu0 %v16809_v29  ;;  %1322 = vmatprep.mubr.bf16.mxu0 %v19496_v0  ;;  %v16888_v29 = vcombine.high %v1681_v22, %v1685_v23  ;;  %v1748_v20 = vld [vmem:[%s19760_s9 + $0x2a0] sm:$0xff] }
  0xe0   : > { %16862 = vmatmul.mubr.msk.bf16.vlgmr.msra.gmra.mrb[16].mxu1 %vm876_vm0, %v19768_v25  ;;  %1292 = vmatprep.subr.bf16.mxu0 %v16842_v32  ;;  %v1693_v32 = vld [vmem:[%s19760_s9 + $0xe8] sm:$0xff] }
  0xe1   : > { %1332 = vmatpush1.bf16.msra.mxu1 %v16811_v33  ;;  %1363 = vmatprep.mubr.bf16.mxu1 %v19496_v0  ;;  %v16894_v33 = vcombine.high %v1688_v27, %v1692_v28 }
  0xe2   : > { %1333 = vmatprep.subr.bf16.mxu1 %v16844_v36  ;;  %v16896_v36 = vcombine.high %v1689_v31, %v1693_v32 }
  0xe3   : > { %1293 = vmatpush1.bf16.msra.mxu0 %v16841_v37  ;;  %v16893_v37 = vcombine.low %v1688_v27, %v1692_v28  ;;  %v19867_v27 = vld [vmem:[%s19760_s9 + $0x408] sm:$0xff]  ;;  %v16950_v28 = vcombine.high %v1744_v19, %v1748_v20 }
  0xe4   : > { %1372 = vmatprep.subr.bf16.mxu0 %v16814_v40  ;;  %v16902_v40 = vcombine.high %v1696_v34, %v1700_v35 }
  0xe5   : > { %1334 = vmatpush1.bf16.msra.mxu1 %v16843_v41  ;;  %v16895_v41 = vcombine.low %v1689_v31, %v1693_v32  ;;  %v1752_v31 = vld [vmem:[%s19760_s9 + $0x2c0] sm:$0xff] }
  0xe6   : > { %16863 = vmatmul.mubr.msk.bf16.vlgmr.msra.gmra.mrb[20].mxu0 %vm876_vm0, %v19768_v25  ;;  %1413 = vmatprep.subr.bf16.mxu1 %v16816_v44  ;;  %v16904_v44 = vcombine.high %v1697_v38, %v1701_v39  ;;  %v1756_v32 = vld [vmem:[%s19760_s9 + $0x2e0] sm:$0xff] }
  0xe7   : > { %1373 = vmatpush1.bf16.msra.mxu0 %v16813_v45  ;;  %1404 = vmatprep.mubr.bf16.mxu0 %v19496_v0  ;;  %v16901_v45 = vcombine.low %v1696_v34, %v1700_v35  ;;  %v16949_v35 = vcombine.low %v1744_v19, %v1748_v20 }
  0xe8   : > { %16864 = vmatmul.mubr.msk.bf16.vlgmr.msra.gmra.mrb[20].mxu1 %vm876_vm0, %v19768_v25  ;;  %1374 = vmatprep.subr.bf16.mxu0 %v16846_v48  ;;  %v16910_v48 = vcombine.high %v1704_v42, %v1708_v43 }
  0xe9   : > { %1414 = vmatpush1.bf16.msra.mxu1 %v16815_v49  ;;  %1445 = vmatprep.mubr.bf16.mxu1 %v19496_v0  ;;  %v16903_v49 = vcombine.low %v1697_v38, %v1701_v39  ;;  %v16958_v38 = vcombine.high %v1752_v31, %v1756_v32 }
  0xea   : > { %1415 = vmatprep.subr.bf16.mxu1 %v16848_v52  ;;  %v16912_v52 = vcombine.high %v1705_v46, %v1709_v47 }
  0xeb   : > { %1375 = vmatpush1.bf16.msra.mxu0 %v16845_v53  ;;  %v16909_v53 = vcombine.low %v1704_v42, %v1708_v43  ;;  %v16957_v43 = vcombine.low %v1752_v31, %v1756_v32 }
  0xec   : > { %1454 = vmatprep.subr.bf16.mxu0 %v16818_v56  ;;  %v16918_v56 = vcombine.high %v1712_v50, %v1716_v51 }
  0xed   : > { %1416 = vmatpush1.bf16.msra.mxu1 %v16847_v57  ;;  %v16911_v57 = vcombine.low %v1705_v46, %v1709_v47 }
  0xee   : > { %16865 = vmatmul.mubr.msk.bf16.vlgmr.msra.gmra.mrb[24].mxu0 %vm876_vm0, %v19768_v25  ;;  %1495 = vmatprep.subr.bf16.mxu1 %v16820_v60  ;;  %v16920_v60 = vcombine.high %v1713_v54, %v1717_v55 }
  0xef   : > { %1455 = vmatpush1.bf16.msra.mxu0 %v16817_v61  ;;  %1486 = vmatprep.mubr.bf16.mxu0 %v19496_v0  ;;  %v16917_v61 = vcombine.low %v1712_v50, %v1716_v51 }
  0xf0   : > { %16866 = vmatmul.mubr.msk.bf16.vlgmr.msra.gmra.mrb[24].mxu1 %vm876_vm0, %v19768_v25  ;;  %1456 = vmatprep.subr.bf16.mxu0 %v16850_v1  ;;  %v16926_v1 = vcombine.high %v1720_v58, %v1724_v59 }
  0xf1   : > { %1496 = vmatpush1.bf16.msra.mxu1 %v16819_v2  ;;  %1527 = vmatprep.mubr.bf16.mxu1 %v19496_v0  ;;  %v16880_v0 = vcombine.high %v1673_v15, %v1677_v16  ;;  %v16919_v2 = vcombine.low %v1713_v54, %v1717_v55  ;;  %v1737_v15 = vld [vmem:[%s19760_s9 + $0x248] sm:$0xff] }
  0xf2   : > { %1497 = vmatprep.subr.bf16.mxu1 %v16852_v5  ;;  %v16928_v5 = vcombine.high %v1721_v62, %v1725_v63  ;;  %v1741_v16 = vld [vmem:[%s19760_s9 + $0x268] sm:$0xff] }
  0xf3   : > { %1457 = vmatpush1.bf16.msra.mxu0 %v16849_v6  ;;  %v16925_v6 = vcombine.low %v1720_v58, %v1724_v59 }
  0xf4   : > { %13994 = vmatprep.subr.bf16.mxu0 %v16870_v9  ;;  %v16934_v9 = vcombine.high %v1728_v3, %v1732_v4 }
  0xf5   : > { %1498 = vmatpush1.bf16.msra.mxu1 %v16851_v10  ;;  %v16927_v10 = vcombine.low %v1721_v62, %v1725_v63 }
  0xf6   : > { %16867 = vmatmul.mubr.msk.bf16.vlgmr.msra.gmra.mrb[28].mxu0 %vm876_vm0, %v19768_v25  ;;  %14650 = vmatprep.subr.bf16.mxu1 %v16872_v13  ;;  %v16936_v13 = vcombine.high %v1729_v7, %v1733_v8 }
  0xf7   : > { %13995 = vmatpush1.bf16.msra.mxu0 %v16869_v14  ;;  %v16933_v14 = vcombine.low %v1728_v3, %v1732_v4 }
  0xf8   : > { %16868 = vmatmul.mubr.msk.bf16.vlgmr.msra.gmra.mrb[28].mxu1 %vm876_vm0, %v19768_v25  ;;  %13996 = vmatprep.subr.bf16.mxu0 %v16878_v17  ;;  %v16887_v25 = vcombine.low %v1681_v22, %v1685_v23  ;;  %v16942_v17 = vcombine.high %v1736_v11, %v1740_v12  ;;  %v1749_v22 = vld [vmem:[%s19760_s9 + $0x2a8] sm:$0xff]  ;;  %v16941_v23 = vcombine.low %v1736_v11, %v1740_v12 }
  0xf9   : > { %14651 = vmatpush1.bf16.msra.mxu1 %v16871_v18  ;;  %v16935_v18 = vcombine.low %v1729_v7, %v1733_v8 }
  0xfa   : > { %14652 = vmatprep.subr.bf16.mxu1 %v16880_v0  ;;  %v16944_v0 = vcombine.high %v1737_v15, %v1741_v16 }
  0xfb   : > { %13997 = vmatpush1.bf16.msra.mxu0 %v16877_v21  ;;  %v1745_v21 = vld [vmem:[%s19760_s9 + $0x288] sm:$0xff] }
  0xfc   : > { %13998 = vmatprep.subr.bf16.mxu0 %v16886_v24  ;;  %v19861_v24 = vld [vmem:[%s19760_s9 + $0x400] sm:$0xff]  ;;  %v16952_v34 = vcombine.high %v1745_v21, %v1749_v22  ;;  %v16951_v39 = vcombine.low %v1745_v21, %v1749_v22 }
  0xfd   : > { %14653 = vmatpush1.bf16.msra.mxu1 %v16879_v26  ;;  %v19864_v26 = vld [vmem:[%s19760_s9 + $0x420] sm:$0xff] }
  0xfe   : > { %14654 = vmatprep.subr.bf16.mxu1 %v16888_v29  ;;  %v19870_v29 = vld [vmem:[%s19760_s9 + $0x428] sm:$0xff]  ;;  %v16998_v11 = vcombine.high %v19861_v24, %v19864_v26 }
  0xff   : > { %13999 = vmatpush1.bf16.msra.mxu0 %v16885_v30  ;;  %v16943_v30 = vcombine.low %v1737_v15, %v1741_v16 }
 0x100   : > { %14000 = vmatprep.subr.bf16.mxu0 %v16894_v33  ;;  %v16997_v33 = vcombine.low %v19861_v24, %v19864_v26  ;;  %v1820_v24 = vld [vmem:[%s19760_s9 + $0x4e0] sm:$0xff]  ;;  %v1817_v26 = vld [vmem:[%s19760_s9 + $0x4c8] sm:$0xff] }
 0x101   : > { %14655 = vmatpush1.bf16.msra.mxu1 %v16887_v25  ;;  %v16999_v25 = vcombine.low %v19867_v27, %v19870_v29 }
 0x102   : > { %14656 = vmatprep.subr.bf16.mxu1 %v16896_v36  ;;  %v1753_v36 = vld [vmem:[%s19760_s9 + $0x2c8] sm:$0xff] }
 0x103   : > { %14001 = vmatpush1.bf16.msra.mxu0 %v16893_v37  ;;  %v1757_v37 = vld [vmem:[%s19760_s9 + $0x2e8] sm:$0xff] }
 0x104   : > { %14002 = vmatprep.subr.bf16.mxu0 %v16902_v40  ;;  %v1760_v40 = vld [vmem:[%s19760_s9 + $0x300] sm:$0xff]  ;;  %v16960_v42 = vcombine.high %v1753_v36, %v1757_v37  ;;  %v16959_v47 = vcombine.low %v1753_v36, %v1757_v37 }
 0x105   : > { %14657 = vmatpush1.bf16.msra.mxu1 %v16895_v41  ;;  %v1764_v41 = vld [vmem:[%s19760_s9 + $0x320] sm:$0xff] }
 0x106   : > { %14658 = vmatprep.subr.bf16.mxu1 %v16904_v44  ;;  %v1761_v44 = vld [vmem:[%s19760_s9 + $0x308] sm:$0xff]  ;;  %v16966_v46 = vcombine.high %v1760_v40, %v1764_v41  ;;  %v16965_v51 = vcombine.low %v1760_v40, %v1764_v41 }
 0x107   : > { %14003 = vmatpush1.bf16.msra.mxu0 %v16901_v45  ;;  %v1765_v45 = vld [vmem:[%s19760_s9 + $0x328] sm:$0xff] }
 0x108   : > { %14004 = vmatprep.subr.bf16.mxu0 %v16910_v48  ;;  %v1768_v48 = vld [vmem:[%s19760_s9 + $0x340] sm:$0xff]  ;;  %v16968_v50 = vcombine.high %v1761_v44, %v1765_v45  ;;  %v16967_v55 = vcombine.low %v1761_v44, %v1765_v45  ;;  %v1805_v44 = vld [vmem:[%s19760_s9 + $0x468] sm:$0xff] }
 0x109   : > { %14659 = vmatpush1.bf16.msra.mxu1 %v16903_v49  ;;  %v1772_v49 = vld [vmem:[%s19760_s9 + $0x360] sm:$0xff] }
 0x10a   : > { %14660 = vmatprep.subr.bf16.mxu1 %v16912_v52  ;;  %v1769_v52 = vld [vmem:[%s19760_s9 + $0x348] sm:$0xff]  ;;  %v16974_v54 = vcombine.high %v1768_v48, %v1772_v49  ;;  %v16973_v59 = vcombine.low %v1768_v48, %v1772_v49 }
 0x10b   : > { %14005 = vmatpush1.bf16.msra.mxu0 %v16909_v53  ;;  %v1773_v53 = vld [vmem:[%s19760_s9 + $0x368] sm:$0xff] }
 0x10c   : > { %14006 = vmatprep.subr.bf16.mxu0 %v16918_v56  ;;  %v1776_v56 = vld [vmem:[%s19760_s9 + $0x380] sm:$0xff]  ;;  %v16976_v58 = vcombine.high %v1769_v52, %v1773_v53  ;;  %v16975_v63 = vcombine.low %v1769_v52, %v1773_v53 }
 0x10d   : > { %14661 = vmatpush1.bf16.msra.mxu1 %v16911_v57  ;;  %v1780_v57 = vld [vmem:[%s19760_s9 + $0x3a0] sm:$0xff] }
 0x10e   : > { %14662 = vmatprep.subr.bf16.mxu1 %v16920_v60  ;;  %v1777_v60 = vld [vmem:[%s19760_s9 + $0x388] sm:$0xff]  ;;  %v16982_v62 = vcombine.high %v1776_v56, %v1780_v57  ;;  %v16981_v4 = vcombine.low %v1776_v56, %v1780_v57  ;;  %v1808_v52 = vld [vmem:[%s19760_s9 + $0x480] sm:$0xff] }
 0x10f   : > { %14007 = vmatpush1.bf16.msra.mxu0 %v16917_v61  ;;  %v1781_v61 = vld [vmem:[%s19760_s9 + $0x3a8] sm:$0xff] }
 0x110   : > { %14008 = vmatprep.subr.bf16.mxu0 %v16926_v1  ;;  %v1784_v1 = vld [vmem:[%s19760_s9 + $0x3c0] sm:$0xff]  ;;  %v16984_v3 = vcombine.high %v1777_v60, %v1781_v61  ;;  %v16983_v8 = vcombine.low %v1777_v60, %v1781_v61  ;;  %v1809_v56 = vld [vmem:[%s19760_s9 + $0x488] sm:$0xff] }
 0x111   : > { %14663 = vmatpush1.bf16.msra.mxu1 %v16919_v2  ;;  %v1788_v2 = vld [vmem:[%s19760_s9 + $0x3e0] sm:$0xff]  ;;  %v1813_v57 = vld [vmem:[%s19760_s9 + $0x4a8] sm:$0xff] }
 0x112   : > { %14664 = vmatprep.subr.bf16.mxu1 %v16928_v5  ;;  %v1785_v5 = vld [vmem:[%s19760_s9 + $0x3c8] sm:$0xff]  ;;  %v16990_v7 = vcombine.high %v1784_v1, %v1788_v2 }
 0x113   : > { %14009 = vmatpush1.bf16.msra.mxu0 %v16925_v6  ;;  %v1789_v6 = vld [vmem:[%s19760_s9 + $0x3e8] sm:$0xff] }
 0x114   : > { %14010 = vmatprep.subr.bf16.mxu0 %v16934_v9  ;;  %v16992_v9 = vcombine.high %v1785_v5, %v1789_v6  ;;  %v16991_v12 = vcombine.low %v1785_v5, %v1789_v6  ;;  %v1816_v5 = vld [vmem:[%s19760_s9 + $0x4c0] sm:$0xff] }
 0x115   : > { %14665 = vmatpush1.bf16.msra.mxu1 %v16927_v10  ;;  %v16989_v10 = vcombine.low %v1784_v1, %v1788_v2 }
 0x116   : > { %14666 = vmatprep.subr.bf16.mxu1 %v16936_v13  ;;  %v17000_v13 = vcombine.high %v19867_v27, %v19870_v29 }
 0x117   : > { %14011 = vmatpush1.bf16.msra.mxu0 %v16933_v14  ;;  %v396_v14 = vlaneseq }
 0x118   : > { %14012 = vmatprep.subr.bf16.mxu0 %v16942_v17  ;;  %v19905_v17 = vld [vmem:[#allocation7] sm:$0xff] }
 0x119   : > { %14667 = vmatpush1.bf16.msra.mxu1 %v16935_v18  ;;  %v19900_v15 = vshrl.u32 %v396_v14, 7 }
 0x11a   : > { %14668 = vmatprep.subr.bf16.mxu1 %v16944_v0 }
 0x11b   : > { %14013 = vmatpush1.bf16.msra.mxu0 %v16941_v23  ;;  %v19903_v16 = vsub.s32 0, %v19900_v15  ;;  %v19908_v18 = vsub.s32 1, %v19900_v15  ;;  %v19911_v19 = vsub.s32 3, %v19900_v15  ;;  %v19960_v27 = vsub.s32 2, %v19900_v15 }
 0x11c   : > { %14014 = vmatprep.subr.bf16.mxu0 %v16950_v28 }
 0x11d   : > { %14669 = vmatpush1.bf16.msra.mxu1 %v16943_v30  ;;  %22428 = vst [vmem:[#allocation19_spill] sm:$0xff] %v19911_v19  ;;  %v399_v20 = vrot.slane %v19905_v17, %v19903_v16  ;;  %v403_v0 = vrot.slane %v19905_v17, %v19908_v18  ;;  %v411_v22 = vrot.slane %v19905_v17, %v19911_v19  ;;  %22430 = vst [vmem:[#allocation21_spill] sm:$0xff] %v19960_v27 }
 0x11e   : > { %14670 = vmatprep.subr.bf16.mxu1 %v16952_v34 }
 0x11f   : > { %14015 = vmatpush1.bf16.msra.mxu0 %v16949_v35 }
 0x120   : > { %14016 = vmatprep.subr.bf16.mxu0 %v16958_v38  ;;  %v1800_v38 = vld [vmem:[%s19760_s9 + $0x440] sm:$0xff] }
 0x121   : > { %14671 = vmatpush1.bf16.msra.mxu1 %v16951_v39 }
 0x122   : > { %14672 = vmatprep.subr.bf16.mxu1 %v16960_v42  ;;  %v1804_v42 = vld [vmem:[%s19760_s9 + $0x460] sm:$0xff] }
 0x123   : > { %14017 = vmatpush1.bf16.msra.mxu0 %v16957_v43  ;;  %v1801_v43 = vld [vmem:[%s19760_s9 + $0x448] sm:$0xff] }
 0x124   : > { %14018 = vmatprep.subr.bf16.mxu0 %v16966_v46 }
 0x125   : > { %14673 = vmatpush1.bf16.msra.mxu1 %v16959_v47 }
 0x126   : > { %14674 = vmatprep.subr.bf16.mxu1 %v16968_v50  ;;  %v17006_v50 = vcombine.high %v1800_v38, %v1804_v42 }
 0x127   : > { %14019 = vmatpush1.bf16.msra.mxu0 %v16965_v51  ;;  %v17008_v51 = vcombine.high %v1801_v43, %v1805_v44 }
 0x128   : > { %14020 = vmatprep.subr.bf16.mxu0 %v16974_v54 }
 0x129   : > { %14675 = vmatpush1.bf16.msra.mxu1 %v16967_v55  ;;  %v1812_v55 = vld [vmem:[%s19760_s9 + $0x4a0] sm:$0xff] }
 0x12a   : > { %14676 = vmatprep.subr.bf16.mxu1 %v16976_v58 }
 0x12b   : > { %14021 = vmatpush1.bf16.msra.mxu0 %v16973_v59 }
 0x12c   : > { %14022 = vmatprep.subr.bf16.mxu0 %v16982_v62  ;;  %v17005_v62 = vcombine.low %v1800_v38, %v1804_v42 }
 0x12d   : > { %14677 = vmatpush1.bf16.msra.mxu1 %v16975_v63  ;;  %v17007_v63 = vcombine.low %v1801_v43, %v1805_v44  ;;  %v1836_v44 = vld [vmem:[%s19760_s9 + $0x560] sm:$0xff] }
 0x12e   : > { %14678 = vmatprep.subr.bf16.mxu1 %v16984_v3  ;;  %v17014_v3 = vcombine.high %v1808_v52, %v1812_v55 }
 0x12f   : > { %14023 = vmatpush1.bf16.msra.mxu0 %v16981_v4  ;;  %v17016_v4 = vcombine.high %v1809_v56, %v1813_v57 }
 0x130   : > { %14024 = vmatprep.subr.bf16.mxu0 %v16990_v7  ;;  %v19954_v7 = vld [vmem:[#allocation7 + $0x8] sm:$0xff] }
 0x131   : > { %14679 = vmatpush1.bf16.msra.mxu1 %v16983_v8  ;;  %v17015_v8 = vcombine.low %v1809_v56, %v1813_v57  ;;  %v443_v14 = vrot.slane %v19954_v7, %v19911_v19 }
 0x132   : > { %14680 = vmatprep.subr.bf16.mxu1 %v16992_v9  ;;  %v439_v9 = vrot.slane %v19954_v7, %v19960_v27 }
 0x133   : > { %14025 = vmatpush1.bf16.msra.mxu0 %v16989_v10  ;;  %v17022_v10 = vcombine.high %v1816_v5, %v1820_v24 }
 0x134   : > { %14035 = vmatprep.subr.bf16.mxu0 %v16998_v11 }
 0x135   : > { %14681 = vmatpush1.bf16.msra.mxu1 %v16991_v12  ;;  %v1824_v12 = vld [vmem:[%s19760_s9 + $0x500] sm:$0xff] }
 0x136   : > { %14691 = vmatprep.subr.bf16.mxu1 %v17000_v13 }
 0x191   : > { %v914_v21 = vpop.f32.mrb[0].mxu0  ;;  %v19919_v32 = vpop.f32.mrb[0].mxu1 }
 0x192   : > { %v915_v23 = vadd.f32 %v914_v21, %v399_v20  ;;  %v916_v28 = vpop.f32.mrb[1].mxu0  ;;  %v957_v36 = vpop.f32.mrb[1].mxu1  ;;  %v1828_v20 = vld [vmem:[%s19760_s9 + $0x520] sm:$0xff]  ;;  %v1829_v21 = vld [vmem:[%s19760_s9 + $0x528] sm:$0xff] }
 0x193   : > { %v917_v30 = vadd.f32 %v916_v28, %v403_v0  ;;  %v918_v31 = vpop.f32.mrb[2].mxu0  ;;  %v958_v39 = vadd.f32 %v957_v36, %v411_v22  ;;  %v959_v40 = vpop.f32.mrb[2].mxu1  ;;  %v1825_v0 = vld [vmem:[%s19760_s9 + $0x508] sm:$0xff]  ;;  %v17030_v38 = vcombine.high %v1824_v12, %v1828_v20 }
 0x194   : > { %vm1536_vm1 = vcmp.gt.f32.partialorder %v915_v23, 0.0  ;;  %v1568_v34 = vmul.f32 0.01, %v915_v23  ;;  %v919_v35 = vpop.f32.mrb[3].mxu0  ;;  %v960_v45 = vpop.f32.mrb[3].mxu1  ;;  %v1832_v40 = vld [vmem:[%s19760_s9 + $0x540] sm:$0xff]  ;;  %v17031_v56 = vcombine.low %v1825_v0, %v1829_v21 }
 0x195   : > { %vm1537_vm2 = vcmp.gt.f32.partialorder %v917_v30, 0.0  ;;  %v1569_v37 = vmul.f32 0.01, %v917_v30  ;;  %vm1539_vm3 = vcmp.gt.f32.partialorder %v958_v39, 0.0  ;;  %v1571_v47 = vmul.f32 0.01, %v958_v39 }
 0x196   : > { %v1600_v41 = vsel %vm1536_vm1, %v915_v23, %v1568_v34  ;;  %v19977_v34 = vsub.s32 4, %v19900_v15  ;;  %v1833_v45 = vld [vmem:[%s19760_s9 + $0x548] sm:$0xff] }
 0x197   : > { %v1601_v46 = vsel %vm1537_vm2, %v917_v30, %v1569_v37  ;;  %v19927_v49 = vpack.c.bf16 %v1600_v41, %v1600_v41  ;;  %v1603_v53 = vsel %vm1539_vm3, %v958_v39, %v1571_v47  ;;  %v17021_v30 = vcombine.low %v1816_v5, %v1820_v24  ;;  %v1845_v5 = vld [vmem:[%s19760_s9 + $0x5a8] sm:$0xff] }
 0x198   : > { %v19925_v48 = vpack.c.bf16 %v1601_v46, %v1601_v46  ;;  %v19937_v58 = vpack.c.bf16 %v1603_v53, %v1603_v53  ;;  %v17032_v39 = vcombine.high %v1825_v0, %v1829_v21  ;;  %v19983_v41 = vsub.s32 5, %v19900_v15  ;;  %v1837_v46 = vld [vmem:[%s19760_s9 + $0x568] sm:$0xff]  ;;  %v20017_v21 = vld [vmem:[#allocation7 + $0x10] sm:$0xff] }
 0x199   : > { %v19930_v54 = vpop.f32.mrb[4].mxu0  ;;  %v19991_v47 = vsub.s32 6, %v19900_v15 }
 0x19a   : > { %14026 = vmatprep.mubr.bf16.mxu0 %v19925_v48  ;;  %14682 = vmatprep.mubr.bf16.mxu1 %v19925_v48  ;;  %22429 = vst [vmem:[#allocation20_spill] sm:$0xff] %v19937_v58  ;;  %v19939_v59 = vpop.f32.mrb[5].mxu0  ;;  %22431 = vst [vmem:[#allocation22_spill] sm:$0xff] %v19983_v41  ;;  %v451_v53 = vrot.slane %v19954_v7, %v19983_v41 }
 0x19b   : > { %14027 = vmatmul.mubr.bf16.vlgmr.msra.gmra.mrb[32].mxu0 %v19927_v49  ;;  %14683 = vmatmul.mubr.bf16.vlgmr.msra.gmra.mrb[32].mxu1 %v19927_v49  ;;  %v19943_v60 = vpop.f32.mrb[4].mxu1  ;;  %v1000_v61 = vpop.f32.mrb[6].mxu0  ;;  %v455_v57 = vrot.slane %v19954_v7, %v19991_v47 }
 0x19c   : > { %14036 = vmatpush1.bf16.msra.mxu0 %v16997_v33  ;;  %14692 = vmatpush1.bf16.msra.mxu1 %v16999_v25  ;;  %v19951_v1 = vpop.f32.mrb[5].mxu1  ;;  %v1001_v2 = vpop.f32.mrb[7].mxu0  ;;  %v1821_v33 = vld [vmem:[%s19760_s9 + $0x4e8] sm:$0xff]  ;;  %v17013_v25 = vcombine.low %v1808_v52, %v1812_v55  ;;  %v19996_v52 = vsub.s32 7, %v19900_v15  ;;  %v17029_v55 = vcombine.low %v1824_v12, %v1828_v20  ;;  %v17038_v61 = vcombine.high %v1832_v40, %v1836_v44 }
 0x19d   : > { %14037 = vmatprep.subr.bf16.mxu0 %v17006_v50  ;;  %14693 = vmatprep.subr.bf16.mxu1 %v17008_v51  ;;  %v1041_v6 = vpop.f32.mrb[6].mxu1  ;;  %v17024_v11 = vcombine.high %v1817_v26, %v1821_v33  ;;  %v17023_v31 = vcombine.low %v1817_v26, %v1821_v33  ;;  %v447_v51 = vrot.slane %v19954_v7, %v19977_v34 }
 0x19e   : > { %14067 = vmatprep.mubr.bf16.mxu0 %v19937_v58  ;;  %14723 = vmatprep.mubr.bf16.mxu1 %v19937_v58  ;;  %v1042_v29 = vpop.f32.mrb[7].mxu1  ;;  %v459_v15 = vrot.slane %v19954_v7, %v19996_v52 }
 0x1a0   : > { %14038 = vmatpush1.bf16.msra.mxu0 %v17005_v62  ;;  %14694 = vmatpush1.bf16.msra.mxu1 %v17007_v63  ;;  %v17040_v62 = vcombine.high %v1833_v45, %v1837_v46  ;;  %v1840_v63 = vld [vmem:[%s19760_s9 + $0x580] sm:$0xff] }
 0x1a1   : > { %14039 = vmatprep.subr.bf16.mxu0 %v17014_v3  ;;  %14695 = vmatprep.subr.bf16.mxu1 %v17016_v4  ;;  %v19967_v13 = vpop.f32.mrb[8].mxu0  ;;  %v1844_v3 = vld [vmem:[%s19760_s9 + $0x5a0] sm:$0xff]  ;;  %v1841_v4 = vld [vmem:[%s19760_s9 + $0x588] sm:$0xff] }
 0x1a2   : > { %v19974_v22 = vpop.f32.mrb[9].mxu0  ;;  %v17048_v12 = vcombine.high %v1841_v4, %v1845_v5 }
 0x1a3   : > { %v1119_v23 = vpop.f32.mrb[8].mxu1  ;;  %v1082_v28 = vpop.f32.mrb[10].mxu0 }
 0x1a4   : > { %14040 = vmatpush1.bf16.msra.mxu0 %v17013_v25  ;;  %14696 = vmatpush1.bf16.msra.mxu1 %v17015_v8  ;;  %v19979_v35 = vadd.f32 %v1119_v23, %v439_v9  ;;  %v1121_v36 = vpop.f32.mrb[9].mxu1  ;;  %v1083_v37 = vpop.f32.mrb[11].mxu0  ;;  %v17037_v25 = vcombine.low %v1832_v40, %v1836_v44  ;;  %v17039_v8 = vcombine.low %v1833_v45, %v1837_v46  ;;  %v1852_v23 = vld [vmem:[%s19760_s9 + $0x5e0] sm:$0xff]  ;;  %v1849_v28 = vld [vmem:[%s19760_s9 + $0x5c8] sm:$0xff] }
 0x1a5   : > { %14041 = vmatprep.subr.bf16.mxu0 %v17022_v10  ;;  %14697 = vmatprep.subr.bf16.mxu1 %v17024_v11  ;;  %v19985_v42 = vadd.f32 %v1121_v36, %v443_v14  ;;  %v1123_v43 = vpop.f32.mrb[10].mxu1  ;;  %v17046_v11 = vcombine.high %v1840_v63, %v1844_v3  ;;  %v1848_v14 = vld [vmem:[%s19760_s9 + $0x5c0] sm:$0xff]  ;;  %v17045_v36 = vcombine.low %v1840_v63, %v1844_v3 }
 0x1a6   : > { %v1124_v50 = vpop.f32.mrb[11].mxu1  ;;  %v17047_v37 = vcombine.low %v1841_v4, %v1845_v5  ;;  %v1856_v43 = vld [vmem:[%s19760_s9 + $0x600] sm:$0xff]  ;;  %v475_v45 = vrot.slane %v20017_v21, %v19911_v19  ;;  %vm1546_vm12 = vcmp.gt.f32.partialorder %v19979_v35, 0.0 }
 0x1a7   : > { %v1860_v46 = vld [vmem:[%s19760_s9 + $0x620] sm:$0xff]  ;;  %v1857_v50 = vld [vmem:[%s19760_s9 + $0x608] sm:$0xff]  ;;  %vm1547_vm11 = vcmp.gt.f32.partialorder %v19985_v42, 0.0 }
 0x1a8   : > { %14042 = vmatpush1.bf16.msra.mxu0 %v17021_v30  ;;  %14698 = vmatpush1.bf16.msra.mxu1 %v17023_v31  ;;  %v1853_v30 = vld [vmem:[%s19760_s9 + $0x5e8] sm:$0xff]  ;;  %v1864_v4 = vld [vmem:[%s19760_s9 + $0x640] sm:$0xff] }
 0x1a9   : > { %14043 = vmatprep.subr.bf16.mxu0 %v17030_v38  ;;  %14699 = vmatprep.subr.bf16.mxu1 %v17032_v39  ;;  %v1160_v2 = vpop.f32.mrb[12].mxu0  ;;  %v471_v38 = vrot.slane %v20017_v21, %v19960_v27  ;;  %v17054_v39 = vcombine.high %v1848_v14, %v1852_v23  ;;  %v17056_v40 = vcombine.high %v1849_v28, %v1853_v30 }
 0x1aa   : > { %v20008_v6 = vadd.f32 %v1160_v2, %v447_v51  ;;  %v1162_v24 = vpop.f32.mrb[13].mxu0  ;;  %v1861_v51 = vld [vmem:[%s19760_s9 + $0x628] sm:$0xff] }
 0x1ab   : > { %v1201_v26 = vpop.f32.mrb[12].mxu1  ;;  %v20010_v33 = vadd.f32 %v1162_v24, %v451_v53  ;;  %v1164_v29 = vpop.f32.mrb[14].mxu0  ;;  %v17064_v3 = vcombine.high %v1857_v50, %v1861_v51 }
 0x1ac   : > { %14044 = vmatpush1.bf16.msra.mxu0 %v17029_v55  ;;  %14700 = vmatpush1.bf16.msra.mxu1 %v17031_v56  ;;  %v20012_v9 = vadd.f32 %v1201_v26, %v455_v57  ;;  %v1203_v7 = vpop.f32.mrb[13].mxu1  ;;  %v1165_v10 = vpop.f32.mrb[15].mxu0  ;;  %v17053_v57 = vcombine.low %v1848_v14, %v1852_v23  ;;  %v1868_v26 = vld [vmem:[%s19760_s9 + $0x660] sm:$0xff]  ;;  %v1865_v29 = vld [vmem:[%s19760_s9 + $0x648] sm:$0xff]  ;;  %v487_v14 = vrot.slane %v20017_v21, %v19991_v47  ;;  %vm1548_vm14 = vcmp.gt.f32.partialorder %v20008_v6, 0.0 }
 0x1ad   : > { %14045 = vmatprep.subr.bf16.mxu0 %v17038_v61  ;;  %14701 = vmatprep.subr.bf16.mxu1 %v17040_v62  ;;  %v20015_v20 = vadd.f32 %v1203_v7, %v459_v15  ;;  %v1205_v0 = vpop.f32.mrb[14].mxu1  ;;  %v17055_v61 = vcombine.low %v1849_v28, %v1853_v30  ;;  %v17062_v15 = vcombine.high %v1856_v43, %v1860_v46  ;;  %v1872_v28 = vld [vmem:[%s19760_s9 + $0x680] sm:$0xff]  ;;  %vm1549_vm13 = vcmp.gt.f32.partialorder %v20010_v33, 0.0 }
 0x1ae   : > { %v1206_v31 = vpop.f32.mrb[15].mxu1  ;;  %v479_v7 = vrot.slane %v20017_v21, %v19977_v34  ;;  %v483_v10 = vrot.slane %v20017_v21, %v19983_v41  ;;  %v17070_v0 = vcombine.high %v1864_v4, %v1868_v26  ;;  %vm1550_vm0 = vcmp.gt.f32.partialorder %v20012_v9, 0.0 }
 0x1af   : > { %v491_v31 = vrot.slane %v20017_v21, %v19996_v52  ;;  %vm1551_vm15 = vcmp.gt.f32.partialorder %v20015_v20, 0.0 }
 0x1b0   : > { %14046 = vmatpush1.bf16.msra.mxu0 %v17037_v25  ;;  %14702 = vmatpush1.bf16.msra.mxu1 %v17039_v8  ;;  %v1869_v25 = vld [vmem:[%s19760_s9 + $0x668] sm:$0xff] }
 0x1b1   : > { %14047 = vmatprep.subr.bf16.mxu0 %v17046_v11  ;;  %14703 = vmatprep.subr.bf16.mxu1 %v17048_v12  ;;  %v20025_v44 = vpop.f32.mrb[16].mxu0  ;;  %v17061_v11 = vcombine.low %v1856_v43, %v1860_v46  ;;  %v17063_v12 = vcombine.low %v1857_v50, %v1861_v51  ;;  %v17072_v23 = vcombine.high %v1865_v29, %v1869_v25 }
 0x1b2   : > { %v20032_v53 = vpop.f32.mrb[17].mxu0  ;;  %v17069_v50 = vcombine.low %v1864_v4, %v1868_v26  ;;  %v17071_v51 = vcombine.low %v1865_v29, %v1869_v25  ;;  %v1885_v4 = vld [vmem:[%s19760_s9 + $0x6e8] sm:$0xff] }
 0x1b3   : > { %v1283_v55 = vpop.f32.mrb[16].mxu1  ;;  %v1246_v56 = vpop.f32.mrb[18].mxu0 }
 0x1b4   : > { %14048 = vmatpush1.bf16.msra.mxu0 %v17045_v36  ;;  %14704 = vmatpush1.bf16.msra.mxu1 %v17047_v37  ;;  %v20034_v62 = vadd.f32 %v1283_v55, %v471_v38  ;;  %v1285_v63 = vpop.f32.mrb[17].mxu1  ;;  %v1247_v2 = vpop.f32.mrb[19].mxu0  ;;  %v1876_v36 = vld [vmem:[%s19760_s9 + $0x6a0] sm:$0xff]  ;;  %v1873_v37 = vld [vmem:[%s19760_s9 + $0x688] sm:$0xff] }
 0x1b5   : > { %14049 = vmatprep.subr.bf16.mxu0 %v17054_v39  ;;  %14705 = vmatprep.subr.bf16.mxu1 %v17056_v40  ;;  %v20037_v5 = vadd.f32 %v1285_v63, %v475_v45  ;;  %v1287_v24 = vpop.f32.mrb[18].mxu1  ;;  %v1877_v38 = vld [vmem:[%s19760_s9 + $0x6a8] sm:$0xff]  ;;  %v1880_v63 = vld [vmem:[%s19760_s9 + $0x6c0] sm:$0xff]  ;;  %v17077_v29 = vcombine.low %v1872_v28, %v1876_v36 }
 0x1b6   : > { %v1288_v8 = vpop.f32.mrb[19].mxu1  ;;  %v1884_v24 = vld [vmem:[%s19760_s9 + $0x6e0] sm:$0xff]  ;;  %v17079_v25 = vcombine.low %v1873_v37, %v1877_v38 }
 0x1b7   : > { %v1881_v8 = vld [vmem:[%s19760_s9 + $0x6c8] sm:$0xff]  ;;  %vm1555_vm3 = vcmp.gt.f32.partialorder %v20037_v5, 0.0 }
 0x1b8   : > { %14050 = vmatpush1.bf16.msra.mxu0 %v17053_v57  ;;  %14706 = vmatpush1.bf16.msra.mxu1 %v17055_v61  ;;  %v17078_v57 = vcombine.high %v1872_v28, %v1876_v36  ;;  %v17080_v61 = vcombine.high %v1873_v37, %v1877_v38  ;;  %v17085_v37 = vcombine.low %v1880_v63, %v1884_v24 }
 0x1b9   : > { %14051 = vmatprep.subr.bf16.mxu0 %v17062_v15  ;;  %14707 = vmatprep.subr.bf16.mxu1 %v17064_v3  ;;  %v1324_v30 = vpop.f32.mrb[20].mxu0  ;;  %v20063_v3 = vld [vmem:[#allocation7 + $0x18] sm:$0xff]  ;;  %v17087_v38 = vcombine.low %v1881_v8, %v1885_v4 }
 0x1ba   : > { %v20054_v39 = vadd.f32 %v1324_v30, %v479_v7  ;;  %v1326_v40 = vpop.f32.mrb[21].mxu0  ;;  %v503_v7 = vrot.slane %v20063_v3, %v19960_v27  ;;  %v1889_v30 = vld [vmem:[%s19760_s9 + $0x708] sm:$0xff] }
 0x1bb   : > { %v1365_v43 = vpop.f32.mrb[20].mxu1  ;;  %v20056_v45 = vadd.f32 %v1326_v40, %v483_v10  ;;  %v1328_v46 = vpop.f32.mrb[22].mxu0  ;;  %v17086_v10 = vcombine.high %v1880_v63, %v1884_v24  ;;  %v511_v63 = vrot.slane %v20063_v3, %v19977_v34  ;;  %v515_v24 = vrot.slane %v20063_v3, %v19983_v41 }
 0x1bc   : > { %14052 = vmatpush1.bf16.msra.mxu0 %v17061_v11  ;;  %14708 = vmatpush1.bf16.msra.mxu1 %v17063_v12  ;;  %v20058_v55 = vadd.f32 %v1365_v43, %v487_v14  ;;  %v1367_v21 = vpop.f32.mrb[21].mxu1  ;;  %v1329_v56 = vpop.f32.mrb[23].mxu0  ;;  %v17088_v11 = vcombine.high %v1881_v8, %v1885_v4  ;;  %v1888_v12 = vld [vmem:[%s19760_s9 + $0x700] sm:$0xff] }
 0x1bd   : > { %14053 = vmatprep.subr.bf16.mxu0 %v17070_v0  ;;  %14709 = vmatprep.subr.bf16.mxu1 %v17072_v23  ;;  %v20061_v2 = vadd.f32 %v1367_v21, %v491_v31  ;;  %v1369_v15 = vpop.f32.mrb[22].mxu1  ;;  %v507_v0 = vrot.slane %v20063_v3, %v19911_v19  ;;  %v1892_v23 = vld [vmem:[%s19760_s9 + $0x720] sm:$0xff]  ;;  %v1893_v31 = vld [vmem:[%s19760_s9 + $0x728] sm:$0xff] }
 0x1be   : > { %v1370_v26 = vpop.f32.mrb[23].mxu1  ;;  %v17096_v21 = vcombine.high %v1889_v30, %v1893_v31  ;;  %v1896_v56 = vld [vmem:[%s19760_s9 + $0x740] sm:$0xff]  ;;  %v17093_v8 = vcombine.low %v1888_v12, %v1892_v23  ;;  %v17095_v4 = vcombine.low %v1889_v30, %v1893_v31  ;;  %v419_v30 = vrot.slane %v19905_v17, %v19983_v41 }
 0x1bf   : > { %v1900_v15 = vld [vmem:[%s19760_s9 + $0x760] sm:$0xff]  ;;  %v1897_v26 = vld [vmem:[%s19760_s9 + $0x748] sm:$0xff] }
 0x1c0   : > { %14054 = vmatpush1.bf16.msra.mxu0 %v17069_v50  ;;  %14710 = vmatpush1.bf16.msra.mxu1 %v17071_v51  ;;  %v17094_v51 = vcombine.high %v1888_v12, %v1892_v23  ;;  %v1912_v41 = vld [vmem:[%s19760_s9 + $0x7c0] sm:$0xff] }
 0x1c1   : > { %14055 = vmatprep.subr.bf16.mxu0 %v17078_v57  ;;  %14711 = vmatprep.subr.bf16.mxu1 %v17080_v61  ;;  %v20071_v14 = vpop.f32.mrb[24].mxu0 }
 0x1c2   : > { %v20078_v40 = vpop.f32.mrb[25].mxu0 }
 0x1c3   : > { %v1447_v28 = vpop.f32.mrb[24].mxu1  ;;  %v1410_v36 = vpop.f32.mrb[26].mxu0 }
 0x1c4   : > { %14056 = vmatpush1.bf16.msra.mxu0 %v17077_v29  ;;  %14712 = vmatpush1.bf16.msra.mxu1 %v17079_v25  ;;  %v20080_v43 = vadd.f32 %v1447_v28, %v503_v7  ;;  %v1449_v46 = vpop.f32.mrb[25].mxu1  ;;  %v1411_v50 = vpop.f32.mrb[27].mxu0  ;;  %v1901_v29 = vld [vmem:[%s19760_s9 + $0x768] sm:$0xff]  ;;  %v519_v25 = vrot.slane %v20063_v3, %v19991_v47  ;;  %v17102_v7 = vcombine.high %v1896_v56, %v1900_v15 }
 0x1c5   : > { %14057 = vmatprep.subr.bf16.mxu0 %v17086_v10  ;;  %14713 = vmatprep.subr.bf16.mxu1 %v17088_v11  ;;  %v20083_v57 = vadd.f32 %v1449_v46, %v507_v0  ;;  %v1451_v61 = vpop.f32.mrb[26].mxu1  ;;  %v17104_v10 = vcombine.high %v1897_v26, %v1901_v29  ;;  %v1904_v11 = vld [vmem:[%s19760_s9 + $0x780] sm:$0xff]  ;;  %v523_v28 = vrot.slane %v20063_v3, %v19996_v52 }
 0x1c6   : > { %v1452_v36 = vpop.f32.mrb[27].mxu1  ;;  %v407_v46 = vrot.slane %v19905_v17, %v19960_v27  ;;  %v1908_v50 = vld [vmem:[%s19760_s9 + $0x7a0] sm:$0xff]  ;;  %v17101_v3 = vcombine.low %v1896_v56, %v1900_v15  ;;  %v17103_v61 = vcombine.low %v1897_v26, %v1901_v29  ;;  %v1913_v56 = vld [vmem:[%s19760_s9 + $0x7c8] sm:$0xff]  ;;  %v999_v29 = vadd.f32 %v19939_v59, %v419_v30 }
 0x1c7   : > { %v17110_v19 = vcombine.high %v1904_v11, %v1908_v50  ;;  %v1917_v15 = vld [vmem:[%s19760_s9 + $0x7e8] sm:$0xff] }
 0x1c8   : > { %14058 = vmatpush1.bf16.msra.mxu0 %v17085_v37  ;;  %14714 = vmatpush1.bf16.msra.mxu1 %v17087_v38  ;;  %v1905_v37 = vld [vmem:[%s19760_s9 + $0x788] sm:$0xff]  ;;  %vm1541_vm5 = vcmp.gt.f32.partialorder %v999_v29, 0.0 }
 0x1c9   : > { %14059 = vmatprep.subr.bf16.mxu0 %v17094_v51  ;;  %14715 = vmatprep.subr.bf16.mxu1 %v17096_v21  ;;  %v1488_v0 = vpop.f32.mrb[28].mxu0  ;;  %v1909_v38 = vld [vmem:[%s19760_s9 + $0x7a8] sm:$0xff] }
 0x1ca   : > { %v20102_v12 = vadd.f32 %v1488_v0, %v511_v63  ;;  %v1490_v23 = vpop.f32.mrb[29].mxu0  ;;  %v17112_v27 = vcombine.high %v1905_v37, %v1909_v38  ;;  %v1929_v30 = vld [vmem:[%s19760_s9 + $0x848] sm:$0xff] }
 0x1cb   : > { %v1529_v31 = vpop.f32.mrb[28].mxu1  ;;  %v20106_v51 = vadd.f32 %v1490_v23, %v515_v24  ;;  %v1492_v21 = vpop.f32.mrb[30].mxu0  ;;  %v1920_v23 = vld [vmem:[%s19760_s9 + $0x800] sm:$0xff] }
 0x1cc   : > { %14060 = vmatpush1.bf16.msra.mxu0 %v17093_v8  ;;  %14716 = vmatpush1.bf16.msra.mxu1 %v17095_v4  ;;  %v20108_v36 = vadd.f32 %v1529_v31, %v519_v25  ;;  %v1531_v63 = vpop.f32.mrb[29].mxu1  ;;  %v1493_v0 = vpop.f32.mrb[31].mxu0  ;;  %v956_v8 = vadd.f32 %v19919_v32, %v407_v46  ;;  %v1916_v4 = vld [vmem:[%s19760_s9 + $0x7e0] sm:$0xff]  ;;  %v17109_v25 = vcombine.low %v1904_v11, %v1908_v50  ;;  %v1921_v31 = vld [vmem:[%s19760_s9 + $0x808] sm:$0xff] }
 0x1cd   : > { %14061 = vmatprep.subr.bf16.mxu0 %v17102_v7  ;;  %14717 = vmatprep.subr.bf16.mxu1 %v17104_v10  ;;  %v20111_v58 = vadd.f32 %v1531_v63, %v523_v28  ;;  %v1533_v24 = vpop.f32.mrb[30].mxu1  ;;  %v17111_v7 = vcombine.low %v1905_v37, %v1909_v38  ;;  %v17118_v10 = vcombine.high %v1912_v41, %v1916_v4  ;;  %v1924_v46 = vld [vmem:[%s19760_s9 + $0x820] sm:$0xff]  ;;  %v1925_v21 = vld [vmem:[%s19760_s9 + $0x828] sm:$0xff]  ;;  %v1573_v63 = vmul.f32 0.01, %v999_v29 }
 0x1ce   : > { %v1534_v26 = vpop.f32.mrb[31].mxu1  ;;  %v17120_v28 = vcombine.high %v1913_v56, %v1917_v15  ;;  %v1570_v32 = vmul.f32 0.01, %v956_v8  ;;  %vm1538_vm4 = vcmp.gt.f32.partialorder %v956_v8, 0.0  ;;  %v17117_v59 = vcombine.low %v1912_v41, %v1916_v4  ;;  %v1928_v50 = vld [vmem:[%s19760_s9 + $0x840] sm:$0xff] }
 0x1cf   : > { %v17119_v11 = vcombine.low %v1913_v56, %v1917_v15  ;;  %v1932_v38 = vld [vmem:[%s19760_s9 + $0x860] sm:$0xff]  ;;  %v17125_v0 = vcombine.low %v1920_v23, %v1924_v46  ;;  %v17127_v41 = vcombine.low %v1921_v31, %v1925_v21  ;;  %v1937_v26 = vld [vmem:[%s19760_s9 + $0x888] sm:$0xff] }
 0x1d0   : > { %14062 = vmatpush1.bf16.msra.mxu0 %v17101_v3  ;;  %14718 = vmatpush1.bf16.msra.mxu1 %v17103_v61  ;;  %v1602_v37 = vsel %vm1538_vm4, %v956_v8, %v1570_v32  ;;  %v1933_v3 = vld [vmem:[%s19760_s9 + $0x868] sm:$0xff]  ;;  %v1605_v61 = vsel %vm1541_vm5, %v999_v29, %v1573_v63  ;;  %v17134_v4 = vcombine.high %v1928_v50, %v1932_v38  ;;  %v1936_v15 = vld [vmem:[%s19760_s9 + $0x880] sm:$0xff]  ;;  %vm1554_vm4 = vcmp.gt.f32.partialorder %v20034_v62, 0.0 }
 0x1d1   : > { %14063 = vmatprep.subr.bf16.mxu0 %v17110_v19  ;;  %14719 = vmatprep.subr.bf16.mxu1 %v17112_v27  ;;  %v17126_v19 = vcombine.high %v1920_v23, %v1924_v46  ;;  %v17128_v27 = vcombine.high %v1921_v31, %v1925_v21  ;;  %v20126_v24 = vpack.c.bf16 %v1602_v37, %v1602_v37  ;;  %v1940_v8 = vld [vmem:[%s19760_s9 + $0x8a0] sm:$0xff]  ;;  %v1945_v31 = vld [vmem:[%s19760_s9 + $0x8c8] sm:$0xff]  ;;  %vm1557_vm5 = vcmp.gt.f32.partialorder %v20056_v45, 0.0 }
 0x1d2   : > { %v17136_v56 = vcombine.high %v1929_v30, %v1933_v3  ;;  %v17133_v29 = vcombine.low %v1928_v50, %v1932_v38  ;;  %v1944_v32 = vld [vmem:[%s19760_s9 + $0x8c0] sm:$0xff]  ;;  %v1949_v21 = vld [vmem:[%s19760_s9 + $0x8e8] sm:$0xff]  ;;  %v17141_v63 = vcombine.low %v1936_v15, %v1940_v8 }
 0x1d3   : > { %v1948_v46 = vld [vmem:[%s19760_s9 + $0x8e0] sm:$0xff]  ;;  %v1953_v37 = vld [vmem:[%s19760_s9 + $0x908] sm:$0xff] }
 0x1d4   : > { %14064 = vmatpush1.bf16.msra.mxu0 %v17109_v25  ;;  %14720 = vmatpush1.bf16.msra.mxu1 %v17111_v7  ;;  %v1941_v25 = vld [vmem:[%s19760_s9 + $0x8a8] sm:$0xff]  ;;  %v20132_v7 = vpack.c.bf16 %v1605_v61, %v1605_v61  ;;  %v1956_v50 = vld [vmem:[%s19760_s9 + $0x920] sm:$0xff] }
 0x1d5   : > { %14065 = vmatprep.subr.bf16.mxu0 %v17118_v10  ;;  %14721 = vmatprep.subr.bf16.mxu1 %v17120_v28  ;;  %v17135_v10 = vcombine.low %v1929_v30, %v1933_v3  ;;  %v17142_v28 = vcombine.high %v1936_v15, %v1940_v8  ;;  %v17144_v23 = vcombine.high %v1937_v26, %v1941_v25  ;;  %v1957_v38 = vld [vmem:[%s19760_s9 + $0x928] sm:$0xff] }
 0x1d6   : > { %v17149_v30 = vcombine.low %v1944_v32, %v1948_v46  ;;  %v17151_v3 = vcombine.low %v1945_v31, %v1949_v21  ;;  %v1965_v15 = vld [vmem:[%s19760_s9 + $0x968] sm:$0xff] }
 0x1d8   : > { %14066 = vmatpush1.bf16.msra.mxu0 %v17117_v59  ;;  %14722 = vmatpush1.bf16.msra.mxu1 %v17119_v11  ;;  %v17143_v59 = vcombine.low %v1937_v26, %v1941_v25  ;;  %v17150_v11 = vcombine.high %v1944_v32, %v1948_v46  ;;  %v17159_v26 = vcombine.low %v1953_v37, %v1957_v38  ;;  %v1973_v32 = vld [vmem:[%s19760_s9 + $0x9a8] sm:$0xff] }
 0x1d9   : > { %14076 = vmatprep.subr.bf16.mxu0 %v17126_v19  ;;  %14732 = vmatprep.subr.bf16.mxu1 %v17128_v27  ;;  %v17152_v19 = vcombine.high %v1945_v31, %v1949_v21  ;;  %v1952_v27 = vld [vmem:[%s19760_s9 + $0x900] sm:$0xff] }
 0x1da   : > { %v17158_v61 = vcombine.high %v1952_v27, %v1956_v50  ;;  %v17157_v8 = vcombine.low %v1952_v27, %v1956_v50  ;;  %v1981_v27 = vld [vmem:[%s19760_s9 + $0x9e8] sm:$0xff] }
 0x1db   : > { %14068 = vmatmul.mubr.bf16.vlgmr.msra.gmra.mrb[32].mxu0 %v20126_v24  ;;  %14724 = vmatmul.mubr.bf16.vlgmr.msra.gmra.mrb[32].mxu1 %v20126_v24 }
 0x1dc   : > { %14077 = vmatpush1.bf16.msra.mxu0 %v17125_v0  ;;  %14733 = vmatpush1.bf16.msra.mxu1 %v17127_v41  ;;  %v17160_v0 = vcombine.high %v1953_v37, %v1957_v38  ;;  %v1960_v41 = vld [vmem:[%s19760_s9 + $0x940] sm:$0xff] }
 0x1dd   : > { %14078 = vmatprep.subr.bf16.mxu0 %v17134_v4  ;;  %14734 = vmatprep.subr.bf16.mxu1 %v17136_v56  ;;  %v1964_v4 = vld [vmem:[%s19760_s9 + $0x960] sm:$0xff]  ;;  %v1961_v56 = vld [vmem:[%s19760_s9 + $0x948] sm:$0xff] }
 0x1de   : > { %14108 = vmatprep.mubr.bf16.mxu0 %v20132_v7  ;;  %14764 = vmatprep.mubr.bf16.mxu1 %v20132_v7  ;;  %v17166_v25 = vcombine.high %v1960_v41, %v1964_v4  ;;  %v17165_v46 = vcombine.low %v1960_v41, %v1964_v4  ;;  %v17167_v31 = vcombine.low %v1961_v56, %v1965_v15  ;;  %v1989_v41 = vld [vmem:[%s19760_s9 + $0xa28] sm:$0xff] }
 0x1e0   : > { %14079 = vmatpush1.bf16.msra.mxu0 %v17133_v29  ;;  %14735 = vmatpush1.bf16.msra.mxu1 %v17135_v10  ;;  %v17168_v29 = vcombine.high %v1961_v56, %v1965_v15  ;;  %v1968_v10 = vld [vmem:[%s19760_s9 + $0x980] sm:$0xff] }
 0x1e1   : > { %14080 = vmatprep.subr.bf16.mxu0 %v17142_v28  ;;  %14736 = vmatprep.subr.bf16.mxu1 %v17144_v23  ;;  %v1972_v28 = vld [vmem:[%s19760_s9 + $0x9a0] sm:$0xff]  ;;  %v1969_v23 = vld [vmem:[%s19760_s9 + $0x988] sm:$0xff] }
 0x1e2   : > { %v17174_v21 = vcombine.high %v1968_v10, %v1972_v28  ;;  %v17173_v50 = vcombine.low %v1968_v10, %v1972_v28  ;;  %v17175_v37 = vcombine.low %v1969_v23, %v1973_v32  ;;  %v1997_v10 = vld [vmem:[%s19760_s9 + $0xa68] sm:$0xff] }
 0x1e4   : > { %14081 = vmatpush1.bf16.msra.mxu0 %v17141_v63  ;;  %14737 = vmatpush1.bf16.msra.mxu1 %v17143_v59  ;;  %v17176_v63 = vcombine.high %v1969_v23, %v1973_v32  ;;  %v1976_v59 = vld [vmem:[%s19760_s9 + $0x9c0] sm:$0xff] }
 0x1e5   : > { %14082 = vmatprep.subr.bf16.mxu0 %v17150_v11  ;;  %14738 = vmatprep.subr.bf16.mxu1 %v17152_v19  ;;  %v1980_v11 = vld [vmem:[%s19760_s9 + $0x9e0] sm:$0xff]  ;;  %v1977_v19 = vld [vmem:[%s19760_s9 + $0x9c8] sm:$0xff] }
 0x1e6   : > { %v17182_v38 = vcombine.high %v1976_v59, %v1980_v11  ;;  %v17181_v4 = vcombine.low %v1976_v59, %v1980_v11  ;;  %v17183_v56 = vcombine.low %v1977_v19, %v1981_v27  ;;  %v2005_v59 = vld [vmem:[%s19760_s9 + $0xaa8] sm:$0xff] }
 0x1e8   : > { %14083 = vmatpush1.bf16.msra.mxu0 %v17149_v30  ;;  %14739 = vmatpush1.bf16.msra.mxu1 %v17151_v3  ;;  %v17184_v30 = vcombine.high %v1977_v19, %v1981_v27  ;;  %v1984_v3 = vld [vmem:[%s19760_s9 + $0xa00] sm:$0xff] }
 0x1e9   : > { %14084 = vmatprep.subr.bf16.mxu0 %v17158_v61  ;;  %14740 = vmatprep.subr.bf16.mxu1 %v17160_v0  ;;  %v1988_v61 = vld [vmem:[%s19760_s9 + $0xa20] sm:$0xff]  ;;  %v1985_v0 = vld [vmem:[%s19760_s9 + $0xa08] sm:$0xff] }
 0x1ea   : > { %v17190_v15 = vcombine.high %v1984_v3, %v1988_v61  ;;  %v17189_v28 = vcombine.low %v1984_v3, %v1988_v61  ;;  %v17191_v23 = vcombine.low %v1985_v0, %v1989_v41  ;;  %v2013_v3 = vld [vmem:[%s19760_s9 + $0xae8] sm:$0xff] }
 0x1ec   : > { %14085 = vmatpush1.bf16.msra.mxu0 %v17157_v8  ;;  %14741 = vmatpush1.bf16.msra.mxu1 %v17159_v26  ;;  %v17192_v8 = vcombine.high %v1985_v0, %v1989_v41  ;;  %v1992_v26 = vld [vmem:[%s19760_s9 + $0xa40] sm:$0xff] }
 0x1ed   : > { %14086 = vmatprep.subr.bf16.mxu0 %v17166_v25  ;;  %14742 = vmatprep.subr.bf16.mxu1 %v17168_v29  ;;  %v1996_v25 = vld [vmem:[%s19760_s9 + $0xa60] sm:$0xff]  ;;  %v1993_v29 = vld [vmem:[%s19760_s9 + $0xa48] sm:$0xff] }
 0x1ee   : > { %v17198_v32 = vcombine.high %v1992_v26, %v1996_v25  ;;  %v17197_v11 = vcombine.low %v1992_v26, %v1996_v25  ;;  %v17199_v19 = vcombine.low %v1993_v29, %v1997_v10  ;;  %v2021_v26 = vld [vmem:[%s19760_s9 + $0xb28] sm:$0xff] }
 0x1f0   : > { %14087 = vmatpush1.bf16.msra.mxu0 %v17165_v46  ;;  %14743 = vmatpush1.bf16.msra.mxu1 %v17167_v31  ;;  %v17200_v46 = vcombine.high %v1993_v29, %v1997_v10  ;;  %v2000_v31 = vld [vmem:[%s19760_s9 + $0xa80] sm:$0xff] }
 0x1f1   : > { %14088 = vmatprep.subr.bf16.mxu0 %v17174_v21  ;;  %14744 = vmatprep.subr.bf16.mxu1 %v17176_v63  ;;  %v2004_v21 = vld [vmem:[%s19760_s9 + $0xaa0] sm:$0xff]  ;;  %v2001_v63 = vld [vmem:[%s19760_s9 + $0xa88] sm:$0xff] }
 0x1f2   : > { %v17206_v27 = vcombine.high %v2000_v31, %v2004_v21  ;;  %v17205_v61 = vcombine.low %v2000_v31, %v2004_v21  ;;  %v17207_v0 = vcombine.low %v2001_v63, %v2005_v59  ;;  %v2029_v31 = vld [vmem:[%s19760_s9 + $0xb68] sm:$0xff] }
 0x1f4   : > { %14089 = vmatpush1.bf16.msra.mxu0 %v17173_v50  ;;  %14745 = vmatpush1.bf16.msra.mxu1 %v17175_v37  ;;  %v17208_v50 = vcombine.high %v2001_v63, %v2005_v59  ;;  %v2008_v37 = vld [vmem:[%s19760_s9 + $0xac0] sm:$0xff] }
 0x1f5   : > { %14090 = vmatprep.subr.bf16.mxu0 %v17182_v38  ;;  %14746 = vmatprep.subr.bf16.mxu1 %v17184_v30  ;;  %v2012_v38 = vld [vmem:[%s19760_s9 + $0xae0] sm:$0xff]  ;;  %v2009_v30 = vld [vmem:[%s19760_s9 + $0xac8] sm:$0xff] }
 0x1f6   : > { %v17214_v41 = vcombine.high %v2008_v37, %v2012_v38  ;;  %v17213_v25 = vcombine.low %v2008_v37, %v2012_v38  ;;  %v17215_v29 = vcombine.low %v2009_v30, %v2013_v3  ;;  %v2033_v37 = vld [vmem:[%s19760_s9 + $0xb88] sm:$0xff] }
 0x1f7   : > { %v2037_v38 = vld [vmem:[%s19760_s9 + $0xba8] sm:$0xff] }
 0x1f8   : > { %14091 = vmatpush1.bf16.msra.mxu0 %v17181_v4  ;;  %14747 = vmatpush1.bf16.msra.mxu1 %v17183_v56  ;;  %v17216_v4 = vcombine.high %v2009_v30, %v2013_v3  ;;  %v2016_v56 = vld [vmem:[%s19760_s9 + $0xb00] sm:$0xff]  ;;  %v427_v30 = vrot.slane %v19905_v17, %v19996_v52 }
 0x1f9   : > { %14092 = vmatprep.subr.bf16.mxu0 %v17190_v15  ;;  %14748 = vmatprep.subr.bf16.mxu1 %v17192_v8  ;;  %v2020_v15 = vld [vmem:[%s19760_s9 + $0xb20] sm:$0xff]  ;;  %v2017_v8 = vld [vmem:[%s19760_s9 + $0xb08] sm:$0xff] }
 0x1fa   : > { %v17222_v10 = vcombine.high %v2016_v56, %v2020_v15  ;;  %v17221_v21 = vcombine.low %v2016_v56, %v2020_v15  ;;  %v17223_v63 = vcombine.low %v2017_v8, %v2021_v26  ;;  %v2044_v15 = vld [vmem:[%s19760_s9 + $0xbe0] sm:$0xff] }
 0x1fc   : > { %14093 = vmatpush1.bf16.msra.mxu0 %v17189_v28  ;;  %14749 = vmatpush1.bf16.msra.mxu1 %v17191_v23  ;;  %v17224_v28 = vcombine.high %v2017_v8, %v2021_v26  ;;  %v2024_v23 = vld [vmem:[%s19760_s9 + $0xb40] sm:$0xff]  ;;  %v2041_v8 = vld [vmem:[%s19760_s9 + $0xbc8] sm:$0xff] }
 0x1fd   : > { %14094 = vmatprep.subr.bf16.mxu0 %v17198_v32  ;;  %14750 = vmatprep.subr.bf16.mxu1 %v17200_v46  ;;  %v2028_v32 = vld [vmem:[%s19760_s9 + $0xb60] sm:$0xff]  ;;  %v2025_v46 = vld [vmem:[%s19760_s9 + $0xb48] sm:$0xff] }
 0x1fe   : > { %v17230_v59 = vcombine.high %v2024_v23, %v2028_v32  ;;  %v17229_v3 = vcombine.low %v2024_v23, %v2028_v32  ;;  %v2045_v26 = vld [vmem:[%s19760_s9 + $0xbe8] sm:$0xff]  ;;  %v2048_v23 = vld [vmem:[%s19760_s9 + $0xc00] sm:$0xff] }
 0x200   : > { %14095 = vmatpush1.bf16.msra.mxu0 %v17197_v11  ;;  %14751 = vmatpush1.bf16.msra.mxu1 %v17199_v19  ;;  %v17232_v11 = vcombine.high %v2025_v46, %v2029_v31  ;;  %v2032_v19 = vld [vmem:[%s19760_s9 + $0xb80] sm:$0xff] }
 0x201   : > { %14096 = vmatprep.subr.bf16.mxu0 %v17206_v27  ;;  %14752 = vmatprep.subr.bf16.mxu1 %v17208_v50  ;;  %v415_v27 = vrot.slane %v19905_v17, %v19977_v34  ;;  %v2036_v50 = vld [vmem:[%s19760_s9 + $0xba0] sm:$0xff]  ;;  %v1040_v17 = vadd.f32 %v19951_v1, %v427_v30  ;;  %v2061_v30 = vld [vmem:[%s19760_s9 + $0xc68] sm:$0xff] }
 0x203   : > { %v997_v56 = vadd.f32 %v19930_v54, %v415_v27  ;;  %v2049_v54 = vld [vmem:[%s19760_s9 + $0xc08] sm:$0xff]  ;;  %vm1543_vm7 = vcmp.gt.f32.partialorder %v1040_v17, 0.0  ;;  %v2056_v27 = vld [vmem:[%s19760_s9 + $0xc40] sm:$0xff] }
 0x204   : > { %14097 = vmatpush1.bf16.msra.mxu0 %v17205_v61  ;;  %14753 = vmatpush1.bf16.msra.mxu1 %v17207_v0  ;;  %v17231_v61 = vcombine.low %v2025_v46, %v2029_v31  ;;  %v17238_v0 = vcombine.high %v2032_v19, %v2036_v50  ;;  %v2052_v46 = vld [vmem:[%s19760_s9 + $0xc20] sm:$0xff]  ;;  %v2053_v31 = vld [vmem:[%s19760_s9 + $0xc28] sm:$0xff] }
 0x205   : > { %14098 = vmatprep.subr.bf16.mxu0 %v17214_v41  ;;  %14754 = vmatprep.subr.bf16.mxu1 %v17216_v4  ;;  %v17240_v41 = vcombine.high %v2033_v37, %v2037_v38  ;;  %v2040_v4 = vld [vmem:[%s19760_s9 + $0xbc0] sm:$0xff]  ;;  %v1572_v32 = vmul.f32 0.01, %v997_v56  ;;  %vm1540_vm6 = vcmp.gt.f32.partialorder %v997_v56, 0.0 }
 0x206   : > { %v17245_v1 = vcombine.low %v2040_v4, %v2044_v15 }
 0x208   : > { %14099 = vmatpush1.bf16.msra.mxu0 %v17213_v25  ;;  %14755 = vmatpush1.bf16.msra.mxu1 %v17215_v29  ;;  %v17237_v25 = vcombine.low %v2032_v19, %v2036_v50  ;;  %v17239_v29 = vcombine.low %v2033_v37, %v2037_v38  ;;  %v1604_v19 = vsel %vm1540_vm6, %v997_v56, %v1572_v32  ;;  %v2060_v37 = vld [vmem:[%s19760_s9 + $0xc60] sm:$0xff]  ;;  %v2057_v38 = vld [vmem:[%s19760_s9 + $0xc48] sm:$0xff]  ;;  %vm1556_vm6 = vcmp.gt.f32.partialorder %v20054_v39, 0.0 }
 0x209   : > { %14100 = vmatprep.subr.bf16.mxu0 %v17222_v10  ;;  %14756 = vmatprep.subr.bf16.mxu1 %v17224_v28  ;;  %v17246_v10 = vcombine.high %v2040_v4, %v2044_v15  ;;  %v17248_v28 = vcombine.high %v2041_v8, %v2045_v26  ;;  %v17262_v4 = vcombine.high %v2056_v27, %v2060_v37  ;;  %v2064_v15 = vld [vmem:[%s19760_s9 + $0xc80] sm:$0xff] }
 0x20a   : > { %v17264_v56 = vcombine.high %v2057_v38, %v2061_v30  ;;  %v2076_v32 = vld [vmem:[%s19760_s9 + $0xce0] sm:$0xff] }
 0x20c   : > { %14101 = vmatpush1.bf16.msra.mxu0 %v17221_v21  ;;  %14757 = vmatpush1.bf16.msra.mxu1 %v17223_v63  ;;  %v1575_v21 = vmul.f32 0.01, %v1040_v17  ;;  %v17247_v63 = vcombine.low %v2041_v8, %v2045_v26  ;;  %v2068_v8 = vld [vmem:[%s19760_s9 + $0xca0] sm:$0xff]  ;;  %v2065_v26 = vld [vmem:[%s19760_s9 + $0xc88] sm:$0xff] }
 0x20d   : > { %14102 = vmatprep.subr.bf16.mxu0 %v17230_v59  ;;  %14758 = vmatprep.subr.bf16.mxu1 %v17232_v11  ;;  %v17254_v59 = vcombine.high %v2048_v23, %v2052_v46  ;;  %v17256_v11 = vcombine.high %v2049_v54, %v2053_v31 }
 0x20e   : > { %v1607_v50 = vsel %vm1543_vm7, %v1040_v17, %v1575_v21  ;;  %v2069_v17 = vld [vmem:[%s19760_s9 + $0xca8] sm:$0xff]  ;;  %vm1559_vm7 = vcmp.gt.f32.partialorder %v20061_v2, 0.0 }
 0x20f   : > { %v17271_v21 = vcombine.low %v2065_v26, %v2069_v17 }
 0x210   : > { %14103 = vmatpush1.bf16.msra.mxu0 %v17229_v3  ;;  %14759 = vmatpush1.bf16.msra.mxu1 %v17231_v61  ;;  %v17253_v3 = vcombine.low %v2048_v23, %v2052_v46  ;;  %v20204_v61 = vpack.c.bf16 %v1604_v19, %v1604_v19  ;;  %v2072_v23 = vld [vmem:[%s19760_s9 + $0xcc0] sm:$0xff]  ;;  %v2073_v46 = vld [vmem:[%s19760_s9 + $0xcc8] sm:$0xff] }
 0x211   : > { %14104 = vmatprep.subr.bf16.mxu0 %v17238_v0  ;;  %14760 = vmatprep.subr.bf16.mxu1 %v17240_v41  ;;  %v17255_v0 = vcombine.low %v2049_v54, %v2053_v31  ;;  %v20206_v41 = vpack.c.bf16 %v1607_v50, %v1607_v50  ;;  %v2077_v54 = vld [vmem:[%s19760_s9 + $0xce8] sm:$0xff]  ;;  %v17269_v31 = vcombine.low %v2064_v15, %v2068_v8 }
 0x212   : > { %v2081_v19 = vld [vmem:[%s19760_s9 + $0xd08] sm:$0xff]  ;;  %v17277_v50 = vcombine.low %v2072_v23, %v2076_v32 }
 0x214   : > { %14105 = vmatpush1.bf16.msra.mxu0 %v17237_v25  ;;  %14761 = vmatpush1.bf16.msra.mxu1 %v17239_v29  ;;  %v17261_v25 = vcombine.low %v2056_v27, %v2060_v37  ;;  %v17263_v29 = vcombine.low %v2057_v38, %v2061_v30  ;;  %v2085_v27 = vld [vmem:[%s19760_s9 + $0xd28] sm:$0xff]  ;;  %v17279_v37 = vcombine.low %v2073_v46, %v2077_v54 }
 0x215   : > { %14106 = vmatprep.subr.bf16.mxu0 %v17246_v10  ;;  %14762 = vmatprep.subr.bf16.mxu1 %v17248_v28  ;;  %v17270_v10 = vcombine.high %v2064_v15, %v2068_v8  ;;  %v17272_v28 = vcombine.high %v2065_v26, %v2069_v17  ;;  %v17288_v30 = vcombine.high %v2081_v19, %v2085_v27 }
 0x216   : > { %v17287_v8 = vcombine.low %v2081_v19, %v2085_v27 }
 0x218   : > { %14107 = vmatpush1.bf16.msra.mxu0 %v17245_v1  ;;  %14763 = vmatpush1.bf16.msra.mxu1 %v17247_v63  ;;  %v17278_v1 = vcombine.high %v2072_v23, %v2076_v32  ;;  %v17280_v63 = vcombine.high %v2073_v46, %v2077_v54 }
 0x219   : > { %14117 = vmatprep.subr.bf16.mxu0 %v17254_v59  ;;  %14773 = vmatprep.subr.bf16.mxu1 %v17256_v11  ;;  %v2080_v59 = vld [vmem:[%s19760_s9 + $0xd00] sm:$0xff] }
 0x21a   : > { %v2084_v11 = vld [vmem:[%s19760_s9 + $0xd20] sm:$0xff] }
 0x21b   : > { %14109 = vmatmul.mubr.bf16.vlgmr.msra.gmra.mrb[32].mxu0 %v20204_v61  ;;  %14765 = vmatmul.mubr.bf16.vlgmr.msra.gmra.mrb[32].mxu1 %v20204_v61  ;;  %v17286_v38 = vcombine.high %v2080_v59, %v2084_v11  ;;  %v17285_v15 = vcombine.low %v2080_v59, %v2084_v11 }
 0x21c   : > { %14118 = vmatpush1.bf16.msra.mxu0 %v17253_v3  ;;  %14149 = vmatprep.mubr.bf16.mxu0 %v20206_v41  ;;  %v2088_v3 = vld [vmem:[%s19760_s9 + $0xd40] sm:$0xff] }
 0x21d   : > { %14774 = vmatpush1.bf16.msra.mxu1 %v17255_v0  ;;  %14805 = vmatprep.mubr.bf16.mxu1 %v20206_v41  ;;  %v2092_v0 = vld [vmem:[%s19760_s9 + $0xd60] sm:$0xff] }
 0x21e   : > { %14119 = vmatprep.subr.bf16.mxu0 %v17262_v4  ;;  %14775 = vmatprep.subr.bf16.mxu1 %v17264_v56  ;;  %v2089_v4 = vld [vmem:[%s19760_s9 + $0xd48] sm:$0xff]  ;;  %v17294_v26 = vcombine.high %v2088_v3, %v2092_v0  ;;  %v17293_v23 = vcombine.low %v2088_v3, %v2092_v0 }
 0x21f   : > { %v2093_v56 = vld [vmem:[%s19760_s9 + $0xd68] sm:$0xff] }
 0x220   : > { %14120 = vmatpush1.bf16.msra.mxu0 %v17261_v25  ;;  %v17296_v17 = vcombine.high %v2089_v4, %v2093_v56  ;;  %v2096_v25 = vld [vmem:[%s19760_s9 + $0xd80] sm:$0xff]  ;;  %v17295_v32 = vcombine.low %v2089_v4, %v2093_v56 }
 0x221   : > { %14776 = vmatpush1.bf16.msra.mxu1 %v17263_v29  ;;  %14121 = vmatprep.subr.bf16.mxu0 %v17270_v10  ;;  %v2100_v29 = vld [vmem:[%s19760_s9 + $0xda0] sm:$0xff]  ;;  %v2097_v10 = vld [vmem:[%s19760_s9 + $0xd88] sm:$0xff] }
 0x222   : > { %14777 = vmatprep.subr.bf16.mxu1 %v17272_v28  ;;  %v2101_v28 = vld [vmem:[%s19760_s9 + $0xda8] sm:$0xff]  ;;  %v17302_v46 = vcombine.high %v2096_v25, %v2100_v29  ;;  %v17301_v59 = vcombine.low %v2096_v25, %v2100_v29 }
 0x223   : > { %v17304_v54 = vcombine.high %v2097_v10, %v2101_v28  ;;  %v17303_v11 = vcombine.low %v2097_v10, %v2101_v28 }
 0x224   : > { %14122 = vmatpush1.bf16.msra.mxu0 %v17269_v31  ;;  %v2104_v31 = vld [vmem:[%s19760_s9 + $0xdc0] sm:$0xff] }
 0x225   : > { %14778 = vmatpush1.bf16.msra.mxu1 %v17271_v21  ;;  %14123 = vmatprep.subr.bf16.mxu0 %v17278_v1  ;;  %v2108_v21 = vld [vmem:[%s19760_s9 + $0xde0] sm:$0xff]  ;;  %v2105_v1 = vld [vmem:[%s19760_s9 + $0xdc8] sm:$0xff] }
 0x226   : > { %14779 = vmatprep.subr.bf16.mxu1 %v17280_v63  ;;  %v2109_v63 = vld [vmem:[%s19760_s9 + $0xde8] sm:$0xff]  ;;  %v17310_v19 = vcombine.high %v2104_v31, %v2108_v21  ;;  %v17309_v3 = vcombine.low %v2104_v31, %v2108_v21 }
 0x227   : > { %v17312_v27 = vcombine.high %v2105_v1, %v2109_v63  ;;  %v17311_v0 = vcombine.low %v2105_v1, %v2109_v63 }
 0x228   : > { %14124 = vmatpush1.bf16.msra.mxu0 %v17277_v50  ;;  %v2112_v50 = vld [vmem:[%s19760_s9 + $0xe00] sm:$0xff] }
 0x229   : > { %14780 = vmatpush1.bf16.msra.mxu1 %v17279_v37  ;;  %14125 = vmatprep.subr.bf16.mxu0 %v17286_v38  ;;  %v2116_v37 = vld [vmem:[%s19760_s9 + $0xe20] sm:$0xff]  ;;  %v2113_v38 = vld [vmem:[%s19760_s9 + $0xe08] sm:$0xff] }
 0x22a   : > { %14781 = vmatprep.subr.bf16.mxu1 %v17288_v30  ;;  %v2117_v30 = vld [vmem:[%s19760_s9 + $0xe28] sm:$0xff]  ;;  %v17318_v4 = vcombine.high %v2112_v50, %v2116_v37  ;;  %v17317_v25 = vcombine.low %v2112_v50, %v2116_v37 }
 0x22b   : > { %v17320_v56 = vcombine.high %v2113_v38, %v2117_v30  ;;  %v17319_v29 = vcombine.low %v2113_v38, %v2117_v30 }
 0x22c   : > { %14126 = vmatpush1.bf16.msra.mxu0 %v17285_v15  ;;  %v2120_v15 = vld [vmem:[%s19760_s9 + $0xe40] sm:$0xff] }
 0x22d   : > { %14782 = vmatpush1.bf16.msra.mxu1 %v17287_v8  ;;  %14127 = vmatprep.subr.bf16.mxu0 %v17294_v26  ;;  %v2124_v8 = vld [vmem:[%s19760_s9 + $0xe60] sm:$0xff]  ;;  %v2121_v26 = vld [vmem:[%s19760_s9 + $0xe48] sm:$0xff] }
 0x22e   : > { %14783 = vmatprep.subr.bf16.mxu1 %v17296_v17  ;;  %v2125_v17 = vld [vmem:[%s19760_s9 + $0xe68] sm:$0xff]  ;;  %v17326_v10 = vcombine.high %v2120_v15, %v2124_v8  ;;  %v17325_v31 = vcombine.low %v2120_v15, %v2124_v8 }
 0x22f   : > { %v17328_v28 = vcombine.high %v2121_v26, %v2125_v17  ;;  %v17327_v21 = vcombine.low %v2121_v26, %v2125_v17 }
 0x230   : > { %14128 = vmatpush1.bf16.msra.mxu0 %v17293_v23  ;;  %v2128_v23 = vld [vmem:[%s19760_s9 + $0xe80] sm:$0xff] }
 0x231   : > { %14784 = vmatpush1.bf16.msra.mxu1 %v17295_v32  ;;  %14129 = vmatprep.subr.bf16.mxu0 %v17302_v46  ;;  %v2132_v32 = vld [vmem:[%s19760_s9 + $0xea0] sm:$0xff]  ;;  %v2129_v46 = vld [vmem:[%s19760_s9 + $0xe88] sm:$0xff] }
 0x232   : > { %14785 = vmatprep.subr.bf16.mxu1 %v17304_v54  ;;  %v2133_v54 = vld [vmem:[%s19760_s9 + $0xea8] sm:$0xff]  ;;  %v17334_v1 = vcombine.high %v2128_v23, %v2132_v32  ;;  %v17333_v50 = vcombine.low %v2128_v23, %v2132_v32 }
 0x233   : > { %v17336_v63 = vcombine.high %v2129_v46, %v2133_v54  ;;  %v17335_v37 = vcombine.low %v2129_v46, %v2133_v54  ;;  %v19261_v54 = vld [vmem:[#allocation7] sm:$0xff] }
 0x234   : > { %14130 = vmatpush1.bf16.msra.mxu0 %v17301_v59  ;;  %v2136_v59 = vld [vmem:[%s19760_s9 + $0xec0] sm:$0xff] }
 0x235   : > { %14786 = vmatpush1.bf16.msra.mxu1 %v17303_v11  ;;  %14131 = vmatprep.subr.bf16.mxu0 %v17310_v19  ;;  %v2140_v11 = vld [vmem:[%s19760_s9 + $0xee0] sm:$0xff]  ;;  %v2137_v19 = vld [vmem:[%s19760_s9 + $0xec8] sm:$0xff] }
 0x236   : > { %14787 = vmatprep.subr.bf16.mxu1 %v17312_v27  ;;  %v2141_v27 = vld [vmem:[%s19760_s9 + $0xee8] sm:$0xff]  ;;  %v17342_v38 = vcombine.high %v2136_v59, %v2140_v11  ;;  %v17341_v15 = vcombine.low %v2136_v59, %v2140_v11 }
 0x237   : > { %v17344_v30 = vcombine.high %v2137_v19, %v2141_v27  ;;  %v17343_v8 = vcombine.low %v2137_v19, %v2141_v27  ;;  %v2161_v59 = vld [vmem:[%s19760_s9 + $0xf88] sm:$0xff] }
 0x238   : > { %14132 = vmatpush1.bf16.msra.mxu0 %v17309_v3  ;;  %v2144_v3 = vld [vmem:[%s19760_s9 + $0xf00] sm:$0xff]  ;;  %v2165_v11 = vld [vmem:[%s19760_s9 + $0xfa8] sm:$0xff] }
 0x239   : > { %14788 = vmatpush1.bf16.msra.mxu1 %v17311_v0  ;;  %14133 = vmatprep.subr.bf16.mxu0 %v17318_v4  ;;  %v2148_v0 = vld [vmem:[%s19760_s9 + $0xf20] sm:$0xff]  ;;  %v2145_v4 = vld [vmem:[%s19760_s9 + $0xf08] sm:$0xff] }
 0x23a   : > { %14789 = vmatprep.subr.bf16.mxu1 %v17320_v56  ;;  %v2149_v56 = vld [vmem:[%s19760_s9 + $0xf28] sm:$0xff]  ;;  %v17350_v26 = vcombine.high %v2144_v3, %v2148_v0  ;;  %v17349_v23 = vcombine.low %v2144_v3, %v2148_v0  ;;  %v17368_v3 = vcombine.high %v2161_v59, %v2165_v11  ;;  %v2168_v0 = vld [vmem:[%s19760_s9 + $0xfc0] sm:$0xff] }
 0x23b   : > { %v17352_v17 = vcombine.high %v2145_v4, %v2149_v56  ;;  %v17351_v32 = vcombine.low %v2145_v4, %v2149_v56  ;;  %v20265_v19 = vld [vmem:[#allocation7 + $0x8] sm:$0xff]  ;;  %v2172_v4 = vld [vmem:[%s19760_s9 + $0xfe0] sm:$0xff] }
 0x23c   : > { %14134 = vmatpush1.bf16.msra.mxu0 %v17317_v25  ;;  %v2152_v25 = vld [vmem:[%s19760_s9 + $0xf40] sm:$0xff]  ;;  %v435_v27 = vrot.slane %v20265_v19, %v19908_v18  ;;  %v2169_v56 = vld [vmem:[%s19760_s9 + $0xfc8] sm:$0xff] }
 0x23d   : > { %14790 = vmatpush1.bf16.msra.mxu1 %v17319_v29  ;;  %14135 = vmatprep.subr.bf16.mxu0 %v17326_v10  ;;  %v2156_v29 = vld [vmem:[%s19760_s9 + $0xf60] sm:$0xff]  ;;  %v2153_v10 = vld [vmem:[%s19760_s9 + $0xf48] sm:$0xff] }
 0x23e   : > { %14791 = vmatprep.subr.bf16.mxu1 %v17328_v28  ;;  %v2157_v28 = vld [vmem:[%s19760_s9 + $0xf68] sm:$0xff]  ;;  %v17358_v46 = vcombine.high %v2152_v25, %v2156_v29 }
 0x240   : > { %14136 = vmatpush1.bf16.msra.mxu0 %v17325_v31  ;;  %v423_v31 = vrot.slane %v19261_v54, %v19991_v47 }
 0x241   : > { %14792 = vmatpush1.bf16.msra.mxu1 %v17327_v21  ;;  %14137 = vmatprep.subr.bf16.mxu0 %v17334_v1  ;;  %v17360_v21 = vcombine.high %v2153_v10, %v2157_v28  ;;  %v2160_v1 = vld [vmem:[%s19760_s9 + $0xf80] sm:$0xff] }
 0x242   : > { %14793 = vmatprep.subr.bf16.mxu1 %v17336_v63  ;;  %v2164_v63 = vld [vmem:[%s19760_s9 + $0xfa0] sm:$0xff] }
 0x244   : > { %14138 = vmatpush1.bf16.msra.mxu0 %v17333_v50  ;;  %v17357_v50 = vcombine.low %v2152_v25, %v2156_v29  ;;  %v17374_v25 = vcombine.high %v2168_v0, %v2172_v4 }
 0x245   : > { %14794 = vmatpush1.bf16.msra.mxu1 %v17335_v37  ;;  %14139 = vmatprep.subr.bf16.mxu0 %v17342_v38  ;;  %v17359_v37 = vcombine.low %v2153_v10, %v2157_v28  ;;  %v17366_v38 = vcombine.high %v2160_v1, %v2164_v63  ;;  %v2176_v10 = vld [vmem:[%s19760_s9 + $0x1000] sm:$0xff] }
 0x246   : > { %14795 = vmatprep.subr.bf16.mxu1 %v17344_v30  ;;  %v1038_v30 = vadd.f32 %v19943_v60, %v423_v31  ;;  %v2180_v28 = vld [vmem:[%s19760_s9 + $0x1020] sm:$0xff] }
 0x247   : > { %v17382_v31 = vcombine.high %v2176_v10, %v2180_v28 }
 0x248   : > { %14140 = vmatpush1.bf16.msra.mxu0 %v17341_v15  ;;  %v2173_v15 = vld [vmem:[%s19760_s9 + $0xfe8] sm:$0xff]  ;;  %v1574_v29 = vmul.f32 0.01, %v1038_v30  ;;  %vm1542_vm8 = vcmp.gt.f32.partialorder %v1038_v30, 0.0 }
 0x249   : > { %14796 = vmatpush1.bf16.msra.mxu1 %v17343_v8  ;;  %14141 = vmatprep.subr.bf16.mxu0 %v17350_v26  ;;  %v1081_v8 = vadd.f32 %v19974_v22, %v435_v27  ;;  %v17365_v26 = vcombine.low %v2160_v1, %v2164_v63  ;;  %v17376_v60 = vcombine.high %v2169_v56, %v2173_v15  ;;  %v2184_v63 = vld [vmem:[%s19760_s9 + $0x1040] sm:$0xff] }
 0x24a   : > { %14797 = vmatprep.subr.bf16.mxu1 %v17352_v17  ;;  %v17367_v17 = vcombine.low %v2161_v59, %v2165_v11  ;;  %v17373_v22 = vcombine.low %v2168_v0, %v2172_v4  ;;  %v17375_v54 = vcombine.low %v2169_v56, %v2173_v15  ;;  %v2188_v59 = vld [vmem:[%s19760_s9 + $0x1060] sm:$0xff]  ;;  %v17381_v27 = vcombine.low %v2176_v10, %v2180_v28 }
 0x24b   : > { %vm1545_vm9 = vcmp.gt.f32.partialorder %v1081_v8, 0.0  ;;  %v2192_v0 = vld [vmem:[%s19760_s9 + $0x1080] sm:$0xff] }
 0x24c   : > { %14142 = vmatpush1.bf16.msra.mxu0 %v17349_v23  ;;  %v2177_v23 = vld [vmem:[%s19760_s9 + $0x1008] sm:$0xff]  ;;  %v2196_v4 = vld [vmem:[%s19760_s9 + $0x10a0] sm:$0xff] }
 0x24d   : > { %14798 = vmatpush1.bf16.msra.mxu1 %v17351_v32  ;;  %14143 = vmatprep.subr.bf16.mxu0 %v17358_v46  ;;  %v2181_v32 = vld [vmem:[%s19760_s9 + $0x1028] sm:$0xff]  ;;  %v1577_v46 = vmul.f32 0.01, %v1081_v8  ;;  %v2200_v10 = vld [vmem:[%s19760_s9 + $0x10c0] sm:$0xff] }
 0x24e   : > { %14799 = vmatprep.subr.bf16.mxu1 %v17360_v21  ;;  %v1606_v21 = vsel %vm1542_vm8, %v1038_v30, %v1574_v29  ;;  %v17384_v1 = vcombine.high %v2177_v23, %v2181_v32  ;;  %v17390_v30 = vcombine.high %v2184_v63, %v2188_v59  ;;  %v17398_v29 = vcombine.high %v2192_v0, %v2196_v4  ;;  %v2204_v28 = vld [vmem:[%s19760_s9 + $0x10e0] sm:$0xff] }
 0x24f   : > { %v1609_v11 = vsel %vm1545_vm9, %v1081_v8, %v1577_v46  ;;  %v2193_v8 = vld [vmem:[%s19760_s9 + $0x1088] sm:$0xff]  ;;  %v17397_v46 = vcombine.low %v2192_v0, %v2196_v4  ;;  %vm1558_vm8 = vcmp.gt.f32.partialorder %v20058_v55, 0.0 }
 0x250   : > { %14144 = vmatpush1.bf16.msra.mxu0 %v17357_v50  ;;  %v2185_v50 = vld [vmem:[%s19760_s9 + $0x1048] sm:$0xff]  ;;  %v20287_v56 = vpack.c.bf16 %v1609_v11, %v1609_v11  ;;  %v17405_v11 = vcombine.low %v2200_v10, %v2204_v28 }
 0x251   : > { %14800 = vmatpush1.bf16.msra.mxu1 %v17359_v37  ;;  %14145 = vmatprep.subr.bf16.mxu0 %v17366_v38  ;;  %v2189_v37 = vld [vmem:[%s19760_s9 + $0x1068] sm:$0xff]  ;;  %v20283_v38 = vpack.c.bf16 %v1606_v21, %v1606_v21  ;;  %v2208_v21 = vld [vmem:[%s19760_s9 + $0x1100] sm:$0xff] }
 0x252   : > { %14801 = vmatprep.subr.bf16.mxu1 %v17368_v3  ;;  %v17383_v3 = vcombine.low %v2177_v23, %v2181_v32  ;;  %v17392_v15 = vcombine.high %v2185_v50, %v2189_v37  ;;  %v2201_v23 = vld [vmem:[%s19760_s9 + $0x10c8] sm:$0xff] }
 0x253   : > { %v2205_v32 = vld [vmem:[%s19760_s9 + $0x10e8] sm:$0xff] }
 0x254   : > { %14146 = vmatpush1.bf16.msra.mxu0 %v17365_v26  ;;  %v2197_v26 = vld [vmem:[%s19760_s9 + $0x10a8] sm:$0xff] }
 0x255   : > { %14802 = vmatpush1.bf16.msra.mxu1 %v17367_v17  ;;  %14147 = vmatprep.subr.bf16.mxu0 %v17374_v25  ;;  %v17389_v17 = vcombine.low %v2184_v63, %v2188_v59  ;;  %v17391_v25 = vcombine.low %v2185_v50, %v2189_v37  ;;  %v2209_v63 = vld [vmem:[%s19760_s9 + $0x1108] sm:$0xff] }
 0x256   : > { %14803 = vmatprep.subr.bf16.mxu1 %v17376_v60  ;;  %v17400_v60 = vcombine.high %v2193_v8, %v2197_v26  ;;  %v2213_v59 = vld [vmem:[%s19760_s9 + $0x1128] sm:$0xff] }
 0x257   : > { %v17416_v37 = vcombine.high %v2209_v63, %v2213_v59  ;;  %v2217_v0 = vld [vmem:[%s19760_s9 + $0x1148] sm:$0xff] }
 0x258   : > { %14148 = vmatpush1.bf16.msra.mxu0 %v17373_v22  ;;  %v17399_v22 = vcombine.low %v2193_v8, %v2197_v26  ;;  %v2221_v4 = vld [vmem:[%s19760_s9 + $0x1168] sm:$0xff]  ;;  %v17415_v8 = vcombine.low %v2209_v63, %v2213_v59 }
 0x259   : > { %14804 = vmatpush1.bf16.msra.mxu1 %v17375_v54  ;;  %14158 = vmatprep.subr.bf16.mxu0 %v17382_v31  ;;  %v17406_v54 = vcombine.high %v2200_v10, %v2204_v28  ;;  %v17408_v31 = vcombine.high %v2201_v23, %v2205_v32  ;;  %v2229_v10 = vld [vmem:[%s19760_s9 + $0x11a8] sm:$0xff] }
 0x25a   : > { %14814 = vmatprep.subr.bf16.mxu1 %v17384_v1  ;;  %v2212_v1 = vld [vmem:[%s19760_s9 + $0x1120] sm:$0xff] }
 0x25b   : > { %14150 = vmatmul.mubr.bf16.vlgmr.msra.gmra.mrb[32].mxu0 %v20283_v38  ;;  %v17414_v50 = vcombine.high %v2208_v21, %v2212_v1 }
 0x25c   : > { %14806 = vmatmul.mubr.bf16.vlgmr.msra.gmra.mrb[32].mxu1 %v20283_v38  ;;  %14159 = vmatpush1.bf16.msra.mxu0 %v17381_v27  ;;  %v17407_v27 = vcombine.low %v2201_v23, %v2205_v32  ;;  %v17423_v23 = vcombine.low %v2217_v0, %v2221_v4 }
 0x25d   : > { %14190 = vmatprep.mubr.bf16.mxu0 %v20287_v56  ;;  %14815 = vmatpush1.bf16.msra.mxu1 %v17383_v3  ;;  %v2216_v3 = vld [vmem:[%s19760_s9 + $0x1140] sm:$0xff] }
 0x25e   : > { %14846 = vmatprep.mubr.bf16.mxu1 %v20287_v56  ;;  %14160 = vmatprep.subr.bf16.mxu0 %v17390_v30  ;;  %v2220_v30 = vld [vmem:[%s19760_s9 + $0x1160] sm:$0xff] }
 0x25f   : > { %14816 = vmatprep.subr.bf16.mxu1 %v17392_v15  ;;  %v17413_v15 = vcombine.low %v2208_v21, %v2212_v1  ;;  %v17422_v26 = vcombine.high %v2216_v3, %v2220_v30  ;;  %v17421_v28 = vcombine.low %v2216_v3, %v2220_v30  ;;  %v2237_v21 = vld [vmem:[%s19760_s9 + $0x11e8] sm:$0xff] }
 0x260   : > { %14161 = vmatpush1.bf16.msra.mxu0 %v17389_v17  ;;  %v17424_v17 = vcombine.high %v2217_v0, %v2221_v4  ;;  %v2245_v3 = vld [vmem:[%s19760_s9 + $0x1228] sm:$0xff] }
 0x261   : > { %14817 = vmatpush1.bf16.msra.mxu1 %v17391_v25  ;;  %14162 = vmatprep.subr.bf16.mxu0 %v17398_v29  ;;  %v2224_v25 = vld [vmem:[%s19760_s9 + $0x1180] sm:$0xff] }
 0x262   : > { %14818 = vmatprep.subr.bf16.mxu1 %v17400_v60  ;;  %v2228_v29 = vld [vmem:[%s19760_s9 + $0x11a0] sm:$0xff]  ;;  %v2225_v60 = vld [vmem:[%s19760_s9 + $0x1188] sm:$0xff] }
 0x263   : > { %v17430_v32 = vcombine.high %v2224_v25, %v2228_v29  ;;  %v17429_v1 = vcombine.low %v2224_v25, %v2228_v29  ;;  %v17431_v63 = vcombine.low %v2225_v60, %v2229_v10  ;;  %v2253_v25 = vld [vmem:[%s19760_s9 + $0x1268] sm:$0xff] }
 0x264   : > { %14163 = vmatpush1.bf16.msra.mxu0 %v17397_v46  ;;  %v17432_v46 = vcombine.high %v2225_v60, %v2229_v10 }
 0x265   : > { %14819 = vmatpush1.bf16.msra.mxu1 %v17399_v22  ;;  %14164 = vmatprep.subr.bf16.mxu0 %v17406_v54  ;;  %v2232_v22 = vld [vmem:[%s19760_s9 + $0x11c0] sm:$0xff] }
 0x266   : > { %14820 = vmatprep.subr.bf16.mxu1 %v17408_v31  ;;  %v2236_v54 = vld [vmem:[%s19760_s9 + $0x11e0] sm:$0xff]  ;;  %v2233_v31 = vld [vmem:[%s19760_s9 + $0x11c8] sm:$0xff] }
 0x267   : > { %v17438_v59 = vcombine.high %v2232_v22, %v2236_v54  ;;  %v17437_v30 = vcombine.low %v2232_v22, %v2236_v54  ;;  %v17439_v0 = vcombine.low %v2233_v31, %v2237_v21  ;;  %v2261_v22 = vld [vmem:[%s19760_s9 + $0x12a8] sm:$0xff] }
 0x268   : > { %14165 = vmatpush1.bf16.msra.mxu0 %v17405_v11  ;;  %v17440_v11 = vcombine.high %v2233_v31, %v2237_v21 }
 0x269   : > { %14821 = vmatpush1.bf16.msra.mxu1 %v17407_v27  ;;  %14166 = vmatprep.subr.bf16.mxu0 %v17414_v50  ;;  %v2240_v27 = vld [vmem:[%s19760_s9 + $0x1200] sm:$0xff] }
 0x26a   : > { %14822 = vmatprep.subr.bf16.mxu1 %v17416_v37  ;;  %v2244_v50 = vld [vmem:[%s19760_s9 + $0x1220] sm:$0xff]  ;;  %v2241_v37 = vld [vmem:[%s19760_s9 + $0x1208] sm:$0xff] }
 0x26b   : > { %v17446_v4 = vcombine.high %v2240_v27, %v2244_v50  ;;  %v17445_v29 = vcombine.low %v2240_v27, %v2244_v50  ;;  %v17447_v60 = vcombine.low %v2241_v37, %v2245_v3  ;;  %v2269_v27 = vld [vmem:[%s19760_s9 + $0x12e8] sm:$0xff] }
 0x26c   : > { %14167 = vmatpush1.bf16.msra.mxu0 %v17413_v15  ;;  %v17448_v15 = vcombine.high %v2241_v37, %v2245_v3 }
 0x26d   : > { %14823 = vmatpush1.bf16.msra.mxu1 %v17415_v8  ;;  %14168 = vmatprep.subr.bf16.mxu0 %v17422_v26  ;;  %v2248_v8 = vld [vmem:[%s19760_s9 + $0x1240] sm:$0xff] }
 0x26e   : > { %14824 = vmatprep.subr.bf16.mxu1 %v17424_v17  ;;  %v2252_v26 = vld [vmem:[%s19760_s9 + $0x1260] sm:$0xff]  ;;  %v2249_v17 = vld [vmem:[%s19760_s9 + $0x1248] sm:$0xff] }
 0x26f   : > { %v17454_v10 = vcombine.high %v2248_v8, %v2252_v26  ;;  %v17453_v54 = vcombine.low %v2248_v8, %v2252_v26  ;;  %v17455_v31 = vcombine.low %v2249_v17, %v2253_v25  ;;  %v2277_v8 = vld [vmem:[%s19760_s9 + $0x1328] sm:$0xff] }
 0x270   : > { %14169 = vmatpush1.bf16.msra.mxu0 %v17421_v28  ;;  %v17456_v28 = vcombine.high %v2249_v17, %v2253_v25 }
 0x271   : > { %14825 = vmatpush1.bf16.msra.mxu1 %v17423_v23  ;;  %14170 = vmatprep.subr.bf16.mxu0 %v17430_v32  ;;  %v2256_v23 = vld [vmem:[%s19760_s9 + $0x1280] sm:$0xff] }
 0x272   : > { %14826 = vmatprep.subr.bf16.mxu1 %v17432_v46  ;;  %v2260_v32 = vld [vmem:[%s19760_s9 + $0x12a0] sm:$0xff]  ;;  %v2257_v46 = vld [vmem:[%s19760_s9 + $0x1288] sm:$0xff] }
 0x273   : > { %v17462_v21 = vcombine.high %v2256_v23, %v2260_v32  ;;  %v17461_v50 = vcombine.low %v2256_v23, %v2260_v32  ;;  %v17463_v37 = vcombine.low %v2257_v46, %v2261_v22  ;;  %v2285_v23 = vld [vmem:[%s19760_s9 + $0x1368] sm:$0xff] }
 0x274   : > { %14171 = vmatpush1.bf16.msra.mxu0 %v17429_v1  ;;  %v17464_v1 = vcombine.high %v2257_v46, %v2261_v22 }
 0x275   : > { %14827 = vmatpush1.bf16.msra.mxu1 %v17431_v63  ;;  %14172 = vmatprep.subr.bf16.mxu0 %v17438_v59  ;;  %v2264_v63 = vld [vmem:[%s19760_s9 + $0x12c0] sm:$0xff] }
 0x276   : > { %14828 = vmatprep.subr.bf16.mxu1 %v17440_v11  ;;  %v2268_v59 = vld [vmem:[%s19760_s9 + $0x12e0] sm:$0xff]  ;;  %v2265_v11 = vld [vmem:[%s19760_s9 + $0x12c8] sm:$0xff] }
 0x277   : > { %v17470_v3 = vcombine.high %v2264_v63, %v2268_v59  ;;  %v17469_v26 = vcombine.low %v2264_v63, %v2268_v59  ;;  %v17471_v17 = vcombine.low %v2265_v11, %v2269_v27  ;;  %v2289_v63 = vld [vmem:[%s19760_s9 + $0x1388] sm:$0xff] }
 0x278   : > { %14173 = vmatpush1.bf16.msra.mxu0 %v17437_v30  ;;  %v17472_v30 = vcombine.high %v2265_v11, %v2269_v27  ;;  %v2293_v59 = vld [vmem:[%s19760_s9 + $0x13a8] sm:$0xff] }
 0x279   : > { %14829 = vmatpush1.bf16.msra.mxu1 %v17439_v0  ;;  %14174 = vmatprep.subr.bf16.mxu0 %v17446_v4  ;;  %v2272_v0 = vld [vmem:[%s19760_s9 + $0x1300] sm:$0xff] }
 0x27a   : > { %14830 = vmatprep.subr.bf16.mxu1 %v17448_v15  ;;  %v2276_v4 = vld [vmem:[%s19760_s9 + $0x1320] sm:$0xff]  ;;  %v2273_v15 = vld [vmem:[%s19760_s9 + $0x1308] sm:$0xff] }
 0x27b   : > { %v17478_v25 = vcombine.high %v2272_v0, %v2276_v4  ;;  %v17477_v32 = vcombine.low %v2272_v0, %v2276_v4  ;;  %v17479_v46 = vcombine.low %v2273_v15, %v2277_v8  ;;  %v2297_v0 = vld [vmem:[%s19760_s9 + $0x13c8] sm:$0xff] }
 0x27c   : > { %14175 = vmatpush1.bf16.msra.mxu0 %v17445_v29  ;;  %v17480_v29 = vcombine.high %v2273_v15, %v2277_v8  ;;  %v2301_v4 = vld [vmem:[%s19760_s9 + $0x13e8] sm:$0xff]  ;;  %v17495_v8 = vcombine.low %v2289_v63, %v2293_v59 }
 0x27d   : > { %14831 = vmatpush1.bf16.msra.mxu1 %v17447_v60  ;;  %14176 = vmatprep.subr.bf16.mxu0 %v17454_v10  ;;  %v2280_v60 = vld [vmem:[%s19760_s9 + $0x1340] sm:$0xff] }
 0x27e   : > { %14832 = vmatprep.subr.bf16.mxu1 %v17456_v28  ;;  %v2284_v10 = vld [vmem:[%s19760_s9 + $0x1360] sm:$0xff]  ;;  %v2281_v28 = vld [vmem:[%s19760_s9 + $0x1348] sm:$0xff] }
 0x27f   : > { %v17486_v22 = vcombine.high %v2280_v60, %v2284_v10  ;;  %v17485_v11 = vcombine.low %v2280_v60, %v2284_v10  ;;  %v17487_v27 = vcombine.low %v2281_v28, %v2285_v23  ;;  %v2305_v60 = vld [vmem:[%s19760_s9 + $0x1408] sm:$0xff] }
 0x280   : > { %14177 = vmatpush1.bf16.msra.mxu0 %v17453_v54  ;;  %v431_v54 = vrot.slane %v20265_v19, %v19903_v16  ;;  %v17496_v19 = vcombine.high %v2289_v63, %v2293_v59  ;;  %v2309_v10 = vld [vmem:[%s19760_s9 + $0x1428] sm:$0xff] }
 0x281   : > { %14833 = vmatpush1.bf16.msra.mxu1 %v17455_v31  ;;  %14178 = vmatprep.subr.bf16.mxu0 %v17462_v21  ;;  %v17488_v31 = vcombine.high %v2281_v28, %v2285_v23  ;;  %v2288_v21 = vld [vmem:[%s19760_s9 + $0x1380] sm:$0xff]  ;;  %v1579_v28 = vmul.f32 0.01, %v19985_v42  ;;  %v2313_v59 = vld [vmem:[%s19760_s9 + $0x1448] sm:$0xff] }
 0x282   : > { %14834 = vmatprep.subr.bf16.mxu1 %v17464_v1  ;;  %v2292_v1 = vld [vmem:[%s19760_s9 + $0x13a0] sm:$0xff] }
 0x283   : > { %v17493_v15 = vcombine.low %v2288_v21, %v2292_v1 }
 0x284   : > { %14179 = vmatpush1.bf16.msra.mxu0 %v17461_v50  ;;  %v17494_v50 = vcombine.high %v2288_v21, %v2292_v1  ;;  %v2316_v21 = vld [vmem:[%s19760_s9 + $0x1460] sm:$0xff]  ;;  %v1611_v1 = vsel %vm1547_vm11, %v19985_v42, %v1579_v28  ;;  %vm1563_vm11 = vcmp.gt.f32.partialorder %v20083_v57, 0.0 }
 0x285   : > { %14835 = vmatpush1.bf16.msra.mxu1 %v17463_v37  ;;  %14180 = vmatprep.subr.bf16.mxu0 %v17470_v3  ;;  %v1079_v37 = vadd.f32 %v19967_v13, %v431_v54  ;;  %v2296_v3 = vld [vmem:[%s19760_s9 + $0x13c0] sm:$0xff]  ;;  %v17512_v54 = vcombine.high %v2305_v60, %v2309_v10 }
 0x286   : > { %14836 = vmatprep.subr.bf16.mxu1 %v17472_v30  ;;  %v2300_v30 = vld [vmem:[%s19760_s9 + $0x13e0] sm:$0xff] }
 0x287   : > { %v2304_v13 = vld [vmem:[%s19760_s9 + $0x1400] sm:$0xff]  ;;  %vm1544_vm10 = vcmp.gt.f32.partialorder %v1079_v37, 0.0  ;;  %v17501_v23 = vcombine.low %v2296_v3, %v2300_v30 }
 0x288   : > { %14181 = vmatpush1.bf16.msra.mxu0 %v17469_v26  ;;  %v17502_v26 = vcombine.high %v2296_v3, %v2300_v30  ;;  %v2324_v3 = vld [vmem:[%s19760_s9 + $0x14a0] sm:$0xff]  ;;  %v20365_v30 = vpack.c.bf16 %v1611_v1, %v1611_v1 }
 0x289   : > { %14837 = vmatpush1.bf16.msra.mxu1 %v17471_v17  ;;  %14182 = vmatprep.subr.bf16.mxu0 %v17478_v25  ;;  %v1576_v17 = vmul.f32 0.01, %v1079_v37  ;;  %v17504_v25 = vcombine.high %v2297_v0, %v2301_v4 }
 0x28a   : > { %14838 = vmatprep.subr.bf16.mxu1 %v17480_v29  ;;  %v2308_v29 = vld [vmem:[%s19760_s9 + $0x1420] sm:$0xff] }
 0x28b   : > { %v17509_v63 = vcombine.low %v2304_v13, %v2308_v29 }
 0x28c   : > { %14183 = vmatpush1.bf16.msra.mxu0 %v17477_v32  ;;  %v17503_v32 = vcombine.low %v2297_v0, %v2301_v4  ;;  %v2321_v0 = vld [vmem:[%s19760_s9 + $0x1488] sm:$0xff] }
 0x28d   : > { %14839 = vmatpush1.bf16.msra.mxu1 %v17479_v46  ;;  %14184 = vmatprep.subr.bf16.mxu0 %v17486_v22  ;;  %v17510_v46 = vcombine.high %v2304_v13, %v2308_v29  ;;  %v1608_v22 = vsel %vm1544_vm10, %v1079_v37, %v1576_v17  ;;  %v2325_v4 = vld [vmem:[%s19760_s9 + $0x14a8] sm:$0xff]  ;;  %v2332_v13 = vld [vmem:[%s19760_s9 + $0x14e0] sm:$0xff] }
 0x28e   : > { %14840 = vmatprep.subr.bf16.mxu1 %v17488_v31  ;;  %v2312_v31 = vld [vmem:[%s19760_s9 + $0x1440] sm:$0xff]  ;;  %v17528_v17 = vcombine.high %v2321_v0, %v2325_v4  ;;  %v2329_v29 = vld [vmem:[%s19760_s9 + $0x14c8] sm:$0xff]  ;;  %v17527_v28 = vcombine.low %v2321_v0, %v2325_v4 }
 0x28f   : > { %v17518_v37 = vcombine.high %v2312_v31, %v2316_v21 }
 0x290   : > { %14185 = vmatpush1.bf16.msra.mxu0 %v17485_v11  ;;  %v2317_v11 = vld [vmem:[%s19760_s9 + $0x1468] sm:$0xff] }
 0x291   : > { %14841 = vmatpush1.bf16.msra.mxu1 %v17487_v27  ;;  %14186 = vmatprep.subr.bf16.mxu0 %v17494_v50  ;;  %v20361_v27 = vpack.c.bf16 %v1608_v22, %v1608_v22  ;;  %v17511_v50 = vcombine.low %v2305_v60, %v2309_v10  ;;  %v17520_v42 = vcombine.high %v2313_v59, %v2317_v11  ;;  %v2333_v60 = vld [vmem:[%s19760_s9 + $0x14e8] sm:$0xff]  ;;  %v2340_v22 = vld [vmem:[%s19760_s9 + $0x1520] sm:$0xff] }
 0x292   : > { %14842 = vmatprep.subr.bf16.mxu1 %v17496_v19  ;;  %v2320_v19 = vld [vmem:[%s19760_s9 + $0x1480] sm:$0xff]  ;;  %v17535_v1 = vcombine.low %v2329_v29, %v2333_v60 }
 0x293   : > { %v17525_v10 = vcombine.low %v2320_v19, %v2324_v3 }
 0x294   : > { %14187 = vmatpush1.bf16.msra.mxu0 %v17493_v15  ;;  %v17517_v15 = vcombine.low %v2312_v31, %v2316_v21  ;;  %v2341_v31 = vld [vmem:[%s19760_s9 + $0x1528] sm:$0xff] }
 0x295   : > { %14843 = vmatpush1.bf16.msra.mxu1 %v17495_v8  ;;  %14188 = vmatprep.subr.bf16.mxu0 %v17502_v26  ;;  %v17519_v8 = vcombine.low %v2313_v59, %v2317_v11  ;;  %v17526_v26 = vcombine.high %v2320_v19, %v2324_v3  ;;  %v2344_v11 = vld [vmem:[%s19760_s9 + $0x1540] sm:$0xff]  ;;  %v2349_v19 = vld [vmem:[%s19760_s9 + $0x1568] sm:$0xff] }
 0x296   : > { %14844 = vmatprep.subr.bf16.mxu1 %v17504_v25  ;;  %v2328_v25 = vld [vmem:[%s19760_s9 + $0x14c0] sm:$0xff] }
 0x297   : > { %v17533_v21 = vcombine.low %v2328_v25, %v2332_v13 }
 0x298   : > { %14189 = vmatpush1.bf16.msra.mxu0 %v17501_v23  ;;  %v17534_v23 = vcombine.high %v2328_v25, %v2332_v13 }
 0x299   : > { %14845 = vmatpush1.bf16.msra.mxu1 %v17503_v32  ;;  %14199 = vmatprep.subr.bf16.mxu0 %v17510_v46  ;;  %v17536_v32 = vcombine.high %v2329_v29, %v2333_v60  ;;  %v2336_v46 = vld [vmem:[%s19760_s9 + $0x1500] sm:$0xff] }
 0x29a   : > { %14855 = vmatprep.subr.bf16.mxu1 %v17512_v54  ;;  %v2337_v54 = vld [vmem:[%s19760_s9 + $0x1508] sm:$0xff]  ;;  %v17541_v3 = vcombine.low %v2336_v46, %v2340_v22 }
 0x29b   : > { %14191 = vmatmul.mubr.bf16.vlgmr.msra.gmra.mrb[32].mxu0 %v20361_v27  ;;  %v17544_v59 = vcombine.high %v2337_v54, %v2341_v31 }
 0x29c   : > { %14847 = vmatmul.mubr.bf16.vlgmr.msra.gmra.mrb[32].mxu1 %v20361_v27  ;;  %14200 = vmatpush1.bf16.msra.mxu0 %v17509_v63  ;;  %v17542_v63 = vcombine.high %v2336_v46, %v2340_v22 }
 0x29d   : > { %14231 = vmatprep.mubr.bf16.mxu0 %v20365_v30  ;;  %14856 = vmatpush1.bf16.msra.mxu1 %v17511_v50  ;;  %v2348_v50 = vld [vmem:[%s19760_s9 + $0x1560] sm:$0xff] }
 0x29e   : > { %14887 = vmatprep.mubr.bf16.mxu1 %v20365_v30  ;;  %14201 = vmatprep.subr.bf16.mxu0 %v17518_v37  ;;  %v2345_v37 = vld [vmem:[%s19760_s9 + $0x1548] sm:$0xff]  ;;  %v17550_v0 = vcombine.high %v2344_v11, %v2348_v50  ;;  %v17549_v25 = vcombine.low %v2344_v11, %v2348_v50 }
 0x29f   : > { %14857 = vmatprep.subr.bf16.mxu1 %v17520_v42  ;;  %v17543_v42 = vcombine.low %v2337_v54, %v2341_v31  ;;  %v17552_v4 = vcombine.high %v2345_v37, %v2349_v19  ;;  %v17551_v13 = vcombine.low %v2345_v37, %v2349_v19 }
 0x2a0   : > { %14202 = vmatpush1.bf16.msra.mxu0 %v17517_v15  ;;  %v2352_v15 = vld [vmem:[%s19760_s9 + $0x1580] sm:$0xff] }
 0x2a1   : > { %14858 = vmatpush1.bf16.msra.mxu1 %v17519_v8  ;;  %14203 = vmatprep.subr.bf16.mxu0 %v17526_v26  ;;  %v2356_v8 = vld [vmem:[%s19760_s9 + $0x15a0] sm:$0xff]  ;;  %v2353_v26 = vld [vmem:[%s19760_s9 + $0x1588] sm:$0xff] }
 0x2a2   : > { %14859 = vmatprep.subr.bf16.mxu1 %v17528_v17  ;;  %v2357_v17 = vld [vmem:[%s19760_s9 + $0x15a8] sm:$0xff]  ;;  %v17558_v29 = vcombine.high %v2352_v15, %v2356_v8  ;;  %v17557_v46 = vcombine.low %v2352_v15, %v2356_v8 }
 0x2a3   : > { %v17560_v60 = vcombine.high %v2353_v26, %v2357_v17  ;;  %v17559_v22 = vcombine.low %v2353_v26, %v2357_v17 }
 0x2a4   : > { %14204 = vmatpush1.bf16.msra.mxu0 %v17525_v10  ;;  %v2360_v10 = vld [vmem:[%s19760_s9 + $0x15c0] sm:$0xff] }
 0x2a5   : > { %14860 = vmatpush1.bf16.msra.mxu1 %v17527_v28  ;;  %14205 = vmatprep.subr.bf16.mxu0 %v17534_v23  ;;  %v2364_v28 = vld [vmem:[%s19760_s9 + $0x15e0] sm:$0xff]  ;;  %v2361_v23 = vld [vmem:[%s19760_s9 + $0x15c8] sm:$0xff] }
 0x2a6   : > { %14861 = vmatprep.subr.bf16.mxu1 %v17536_v32  ;;  %v2365_v32 = vld [vmem:[%s19760_s9 + $0x15e8] sm:$0xff]  ;;  %v17566_v54 = vcombine.high %v2360_v10, %v2364_v28  ;;  %v17565_v11 = vcombine.low %v2360_v10, %v2364_v28 }
 0x2a7   : > { %v17568_v31 = vcombine.high %v2361_v23, %v2365_v32  ;;  %v17567_v50 = vcombine.low %v2361_v23, %v2365_v32 }
 0x2a8   : > { %14206 = vmatpush1.bf16.msra.mxu0 %v17533_v21  ;;  %v2368_v21 = vld [vmem:[%s19760_s9 + $0x1600] sm:$0xff] }
 0x2a9   : > { %14862 = vmatpush1.bf16.msra.mxu1 %v17535_v1  ;;  %14207 = vmatprep.subr.bf16.mxu0 %v17542_v63  ;;  %v2372_v1 = vld [vmem:[%s19760_s9 + $0x1620] sm:$0xff]  ;;  %v2369_v63 = vld [vmem:[%s19760_s9 + $0x1608] sm:$0xff] }
 0x2aa   : > { %14863 = vmatprep.subr.bf16.mxu1 %v17544_v59  ;;  %v2373_v59 = vld [vmem:[%s19760_s9 + $0x1628] sm:$0xff]  ;;  %v17574_v37 = vcombine.high %v2368_v21, %v2372_v1  ;;  %v17573_v15 = vcombine.low %v2368_v21, %v2372_v1 }
 0x2ab   : > { %v17576_v19 = vcombine.high %v2369_v63, %v2373_v59  ;;  %v17575_v8 = vcombine.low %v2369_v63, %v2373_v59 }
 0x2ac   : > { %14208 = vmatpush1.bf16.msra.mxu0 %v17541_v3  ;;  %v2376_v3 = vld [vmem:[%s19760_s9 + $0x1640] sm:$0xff] }
 0x2ad   : > { %14864 = vmatpush1.bf16.msra.mxu1 %v17543_v42  ;;  %14209 = vmatprep.subr.bf16.mxu0 %v17550_v0  ;;  %v2380_v42 = vld [vmem:[%s19760_s9 + $0x1660] sm:$0xff]  ;;  %v2377_v0 = vld [vmem:[%s19760_s9 + $0x1648] sm:$0xff] }
 0x2ae   : > { %14865 = vmatprep.subr.bf16.mxu1 %v17552_v4  ;;  %v2381_v4 = vld [vmem:[%s19760_s9 + $0x1668] sm:$0xff]  ;;  %v17582_v26 = vcombine.high %v2376_v3, %v2380_v42  ;;  %v17581_v10 = vcombine.low %v2376_v3, %v2380_v42 }
 0x2af   : > { %v17584_v17 = vcombine.high %v2377_v0, %v2381_v4  ;;  %v17583_v28 = vcombine.low %v2377_v0, %v2381_v4 }
 0x2b0   : > { %14210 = vmatpush1.bf16.msra.mxu0 %v17549_v25  ;;  %v2384_v25 = vld [vmem:[%s19760_s9 + $0x1680] sm:$0xff] }
 0x2b1   : > { %14866 = vmatpush1.bf16.msra.mxu1 %v17551_v13  ;;  %14211 = vmatprep.subr.bf16.mxu0 %v17558_v29  ;;  %v2388_v13 = vld [vmem:[%s19760_s9 + $0x16a0] sm:$0xff]  ;;  %v2385_v29 = vld [vmem:[%s19760_s9 + $0x1688] sm:$0xff] }
 0x2b2   : > { %14867 = vmatprep.subr.bf16.mxu1 %v17560_v60  ;;  %v2389_v60 = vld [vmem:[%s19760_s9 + $0x16a8] sm:$0xff]  ;;  %v17590_v23 = vcombine.high %v2384_v25, %v2388_v13  ;;  %v17589_v21 = vcombine.low %v2384_v25, %v2388_v13 }
 0x2b3   : > { %v17592_v32 = vcombine.high %v2385_v29, %v2389_v60  ;;  %v17591_v1 = vcombine.low %v2385_v29, %v2389_v60 }
 0x2b4   : > { %14212 = vmatpush1.bf16.msra.mxu0 %v17557_v46  ;;  %v2392_v46 = vld [vmem:[%s19760_s9 + $0x16c0] sm:$0xff] }
 0x2b5   : > { %14868 = vmatpush1.bf16.msra.mxu1 %v17559_v22  ;;  %14213 = vmatprep.subr.bf16.mxu0 %v17566_v54  ;;  %v2396_v22 = vld [vmem:[%s19760_s9 + $0x16e0] sm:$0xff]  ;;  %v2393_v54 = vld [vmem:[%s19760_s9 + $0x16c8] sm:$0xff] }
 0x2b6   : > { %14869 = vmatprep.subr.bf16.mxu1 %v17568_v31  ;;  %v2397_v31 = vld [vmem:[%s19760_s9 + $0x16e8] sm:$0xff]  ;;  %v17598_v63 = vcombine.high %v2392_v46, %v2396_v22  ;;  %v17597_v3 = vcombine.low %v2392_v46, %v2396_v22 }
 0x2b7   : > { %v17600_v59 = vcombine.high %v2393_v54, %v2397_v31  ;;  %v17599_v42 = vcombine.low %v2393_v54, %v2397_v31 }
 0x2b8   : > { %14214 = vmatpush1.bf16.msra.mxu0 %v17565_v11  ;;  %v2400_v11 = vld [vmem:[%s19760_s9 + $0x1700] sm:$0xff] }
 0x2b9   : > { %14870 = vmatpush1.bf16.msra.mxu1 %v17567_v50  ;;  %14215 = vmatprep.subr.bf16.mxu0 %v17574_v37  ;;  %v2404_v50 = vld [vmem:[%s19760_s9 + $0x1720] sm:$0xff]  ;;  %v2401_v37 = vld [vmem:[%s19760_s9 + $0x1708] sm:$0xff] }
 0x2ba   : > { %14871 = vmatprep.subr.bf16.mxu1 %v17576_v19  ;;  %v2405_v19 = vld [vmem:[%s19760_s9 + $0x1728] sm:$0xff]  ;;  %v17606_v0 = vcombine.high %v2400_v11, %v2404_v50  ;;  %v17605_v25 = vcombine.low %v2400_v11, %v2404_v50 }
 0x2bb   : > { %v17608_v4 = vcombine.high %v2401_v37, %v2405_v19  ;;  %v17607_v13 = vcombine.low %v2401_v37, %v2405_v19  ;;  %v1578_v19 = vmul.f32 0.01, %v19979_v35 }
 0x2bc   : > { %14216 = vmatpush1.bf16.msra.mxu0 %v17573_v15  ;;  %v2408_v15 = vld [vmem:[%s19760_s9 + $0x1740] sm:$0xff] }
 0x2bd   : > { %14872 = vmatpush1.bf16.msra.mxu1 %v17575_v8  ;;  %14217 = vmatprep.subr.bf16.mxu0 %v17582_v26  ;;  %v2412_v8 = vld [vmem:[%s19760_s9 + $0x1760] sm:$0xff]  ;;  %v2409_v26 = vld [vmem:[%s19760_s9 + $0x1748] sm:$0xff] }
 0x2be   : > { %14873 = vmatprep.subr.bf16.mxu1 %v17584_v17  ;;  %v2413_v17 = vld [vmem:[%s19760_s9 + $0x1768] sm:$0xff]  ;;  %v17614_v29 = vcombine.high %v2408_v15, %v2412_v8  ;;  %v17613_v46 = vcombine.low %v2408_v15, %v2412_v8  ;;  %v1581_v8 = vmul.f32 0.01, %v20010_v33 }
 0x2bf   : > { %v17616_v60 = vcombine.high %v2409_v26, %v2413_v17  ;;  %v17615_v22 = vcombine.low %v2409_v26, %v2413_v17  ;;  %v2437_v15 = vld [vmem:[%s19760_s9 + $0x1828] sm:$0xff] }
 0x2c0   : > { %14218 = vmatpush1.bf16.msra.mxu0 %v17581_v10  ;;  %v2416_v10 = vld [vmem:[%s19760_s9 + $0x1780] sm:$0xff] }
 0x2c1   : > { %14874 = vmatpush1.bf16.msra.mxu1 %v17583_v28  ;;  %14219 = vmatprep.subr.bf16.mxu0 %v17590_v23  ;;  %v2420_v28 = vld [vmem:[%s19760_s9 + $0x17a0] sm:$0xff]  ;;  %v2417_v23 = vld [vmem:[%s19760_s9 + $0x1788] sm:$0xff] }
 0x2c2   : > { %14875 = vmatprep.subr.bf16.mxu1 %v17592_v32  ;;  %v2421_v32 = vld [vmem:[%s19760_s9 + $0x17a8] sm:$0xff]  ;;  %v17622_v54 = vcombine.high %v2416_v10, %v2420_v28  ;;  %v17621_v11 = vcombine.low %v2416_v10, %v2420_v28  ;;  %v2444_v10 = vld [vmem:[%s19760_s9 + $0x1860] sm:$0xff]  ;;  %v1613_v28 = vsel %vm1549_vm13, %v20010_v33, %v1581_v8  ;;  %vm1565_vm13 = vcmp.gt.f32.partialorder %v20106_v51, 0.0 }
 0x2c3   : > { %v17624_v31 = vcombine.high %v2417_v23, %v2421_v32  ;;  %v17623_v50 = vcombine.low %v2417_v23, %v2421_v32  ;;  %v2441_v32 = vld [vmem:[%s19760_s9 + $0x1848] sm:$0xff] }
 0x2c4   : > { %14220 = vmatpush1.bf16.msra.mxu0 %v17589_v21  ;;  %v2424_v21 = vld [vmem:[%s19760_s9 + $0x17c0] sm:$0xff] }
 0x2c5   : > { %14876 = vmatpush1.bf16.msra.mxu1 %v17591_v1  ;;  %14221 = vmatprep.subr.bf16.mxu0 %v17598_v63  ;;  %v2428_v1 = vld [vmem:[%s19760_s9 + $0x17e0] sm:$0xff]  ;;  %v2425_v63 = vld [vmem:[%s19760_s9 + $0x17c8] sm:$0xff] }
 0x2c6   : > { %14877 = vmatprep.subr.bf16.mxu1 %v17600_v59  ;;  %v2429_v59 = vld [vmem:[%s19760_s9 + $0x17e8] sm:$0xff]  ;;  %v17630_v37 = vcombine.high %v2424_v21, %v2428_v1  ;;  %v17629_v26 = vcombine.low %v2424_v21, %v2428_v1  ;;  %v2452_v21 = vld [vmem:[%s19760_s9 + $0x18a0] sm:$0xff]  ;;  %v20443_v1 = vpack.c.bf16 %v1613_v28, %v1613_v28 }
 0x2c7   : > { %v17631_v17 = vcombine.low %v2425_v63, %v2429_v59 }
 0x2c8   : > { %14222 = vmatpush1.bf16.msra.mxu0 %v17597_v3  ;;  %v17632_v3 = vcombine.high %v2425_v63, %v2429_v59  ;;  %v2449_v63 = vld [vmem:[%s19760_s9 + $0x1888] sm:$0xff] }
 0x2c9   : > { %14878 = vmatpush1.bf16.msra.mxu1 %v17599_v42  ;;  %14223 = vmatprep.subr.bf16.mxu0 %v17606_v0  ;;  %v2432_v42 = vld [vmem:[%s19760_s9 + $0x1800] sm:$0xff]  ;;  %v2453_v59 = vld [vmem:[%s19760_s9 + $0x18a8] sm:$0xff] }
 0x2ca   : > { %14879 = vmatprep.subr.bf16.mxu1 %v17608_v4  ;;  %v2436_v0 = vld [vmem:[%s19760_s9 + $0x1820] sm:$0xff]  ;;  %v2433_v4 = vld [vmem:[%s19760_s9 + $0x1808] sm:$0xff]  ;;  %v17655_v8 = vcombine.low %v2449_v63, %v2453_v59 }
 0x2cb   : > { %v17637_v23 = vcombine.low %v2432_v42, %v2436_v0 }
 0x2cc   : > { %14224 = vmatpush1.bf16.msra.mxu0 %v17605_v25  ;;  %v17638_v25 = vcombine.high %v2432_v42, %v2436_v0  ;;  %v2460_v42 = vld [vmem:[%s19760_s9 + $0x18e0] sm:$0xff]  ;;  %v2457_v0 = vld [vmem:[%s19760_s9 + $0x18c8] sm:$0xff] }
 0x2cd   : > { %14880 = vmatpush1.bf16.msra.mxu1 %v17607_v13  ;;  %14225 = vmatprep.subr.bf16.mxu0 %v17614_v29  ;;  %v1610_v13 = vsel %vm1546_vm12, %v19979_v35, %v1578_v19  ;;  %v17640_v29 = vcombine.high %v2433_v4, %v2437_v15  ;;  %v17656_v19 = vcombine.high %v2449_v63, %v2453_v59  ;;  %vm1562_vm12 = vcmp.gt.f32.partialorder %v20080_v43, 0.0 }
 0x2ce   : > { %14881 = vmatprep.subr.bf16.mxu1 %v17616_v60  ;;  %v2440_v60 = vld [vmem:[%s19760_s9 + $0x1840] sm:$0xff] }
 0x2cf   : > { %v17646_v35 = vcombine.high %v2440_v60, %v2444_v10 }
 0x2d0   : > { %14226 = vmatpush1.bf16.msra.mxu0 %v17613_v46  ;;  %v2445_v46 = vld [vmem:[%s19760_s9 + $0x1868] sm:$0xff] }
 0x2d1   : > { %14882 = vmatpush1.bf16.msra.mxu1 %v17615_v22  ;;  %14227 = vmatprep.subr.bf16.mxu0 %v17622_v54  ;;  %v20439_v22 = vpack.c.bf16 %v1610_v13, %v1610_v13  ;;  %v17639_v54 = vcombine.low %v2433_v4, %v2437_v15  ;;  %v17648_v33 = vcombine.high %v2441_v32, %v2445_v46  ;;  %v2461_v4 = vld [vmem:[%s19760_s9 + $0x18e8] sm:$0xff]  ;;  %v2468_v13 = vld [vmem:[%s19760_s9 + $0x1920] sm:$0xff] }
 0x2d2   : > { %14883 = vmatprep.subr.bf16.mxu1 %v17624_v31  ;;  %v2448_v31 = vld [vmem:[%s19760_s9 + $0x1880] sm:$0xff]  ;;  %v17663_v28 = vcombine.low %v2457_v0, %v2461_v4 }
 0x2d3   : > { %v17653_v15 = vcombine.low %v2448_v31, %v2452_v21 }
 0x2d4   : > { %14228 = vmatpush1.bf16.msra.mxu0 %v17621_v11  ;;  %v17645_v11 = vcombine.low %v2440_v60, %v2444_v10  ;;  %v2469_v60 = vld [vmem:[%s19760_s9 + $0x1928] sm:$0xff] }
 0x2d5   : > { %14884 = vmatpush1.bf16.msra.mxu1 %v17623_v50  ;;  %14229 = vmatprep.subr.bf16.mxu0 %v17630_v37  ;;  %v17647_v50 = vcombine.low %v2441_v32, %v2445_v46  ;;  %v17654_v37 = vcombine.high %v2448_v31, %v2452_v21  ;;  %v2472_v46 = vld [vmem:[%s19760_s9 + $0x1940] sm:$0xff]  ;;  %v2477_v31 = vld [vmem:[%s19760_s9 + $0x1968] sm:$0xff] }
 0x2d6   : > { %14885 = vmatprep.subr.bf16.mxu1 %v17632_v3  ;;  %v2456_v3 = vld [vmem:[%s19760_s9 + $0x18c0] sm:$0xff] }
 0x2d7   : > { %v17661_v10 = vcombine.low %v2456_v3, %v2460_v42 }
 0x2d8   : > { %14230 = vmatpush1.bf16.msra.mxu0 %v17629_v26  ;;  %v17662_v26 = vcombine.high %v2456_v3, %v2460_v42 }
 0x2d9   : > { %14886 = vmatpush1.bf16.msra.mxu1 %v17631_v17  ;;  %14240 = vmatprep.subr.bf16.mxu0 %v17638_v25  ;;  %v17664_v17 = vcombine.high %v2457_v0, %v2461_v4  ;;  %v2464_v25 = vld [vmem:[%s19760_s9 + $0x1900] sm:$0xff] }
 0x2da   : > { %14896 = vmatprep.subr.bf16.mxu1 %v17640_v29  ;;  %v2465_v29 = vld [vmem:[%s19760_s9 + $0x1908] sm:$0xff]  ;;  %v17669_v21 = vcombine.low %v2464_v25, %v2468_v13 }
 0x2db   : > { %14232 = vmatmul.mubr.bf16.vlgmr.msra.gmra.mrb[32].mxu0 %v20439_v22  ;;  %v17672_v32 = vcombine.high %v2465_v29, %v2469_v60 }
 0x2dc   : > { %14888 = vmatmul.mubr.bf16.vlgmr.msra.gmra.mrb[32].mxu1 %v20439_v22  ;;  %14241 = vmatpush1.bf16.msra.mxu0 %v17637_v23  ;;  %v17670_v23 = vcombine.high %v2464_v25, %v2468_v13 }
 0x2dd   : > { %14272 = vmatprep.mubr.bf16.mxu0 %v20443_v1  ;;  %14897 = vmatpush1.bf16.msra.mxu1 %v17639_v54  ;;  %v2476_v54 = vld [vmem:[%s19760_s9 + $0x1960] sm:$0xff] }
 0x2de   : > { %14928 = vmatprep.mubr.bf16.mxu1 %v20443_v1  ;;  %14242 = vmatprep.subr.bf16.mxu0 %v17646_v35  ;;  %v2473_v35 = vld [vmem:[%s19760_s9 + $0x1948] sm:$0xff]  ;;  %v17678_v63 = vcombine.high %v2472_v46, %v2476_v54  ;;  %v17677_v3 = vcombine.low %v2472_v46, %v2476_v54 }
 0x2df   : > { %14898 = vmatprep.subr.bf16.mxu1 %v17648_v33  ;;  %v17671_v33 = vcombine.low %v2465_v29, %v2469_v60  ;;  %v17680_v59 = vcombine.high %v2473_v35, %v2477_v31  ;;  %v17679_v42 = vcombine.low %v2473_v35, %v2477_v31 }
 0x2e0   : > { %14243 = vmatpush1.bf16.msra.mxu0 %v17645_v11  ;;  %v2480_v11 = vld [vmem:[%s19760_s9 + $0x1980] sm:$0xff] }
 0x2e1   : > { %14899 = vmatpush1.bf16.msra.mxu1 %v17647_v50  ;;  %14244 = vmatprep.subr.bf16.mxu0 %v17654_v37  ;;  %v2484_v50 = vld [vmem:[%s19760_s9 + $0x19a0] sm:$0xff]  ;;  %v2481_v37 = vld [vmem:[%s19760_s9 + $0x1988] sm:$0xff] }
 0x2e2   : > { %14900 = vmatprep.subr.bf16.mxu1 %v17656_v19  ;;  %v2485_v19 = vld [vmem:[%s19760_s9 + $0x19a8] sm:$0xff]  ;;  %v17686_v0 = vcombine.high %v2480_v11, %v2484_v50  ;;  %v17685_v25 = vcombine.low %v2480_v11, %v2484_v50 }
 0x2e3   : > { %v17688_v4 = vcombine.high %v2481_v37, %v2485_v19  ;;  %v17687_v13 = vcombine.low %v2481_v37, %v2485_v19 }
 0x2e4   : > { %14245 = vmatpush1.bf16.msra.mxu0 %v17653_v15  ;;  %v2488_v15 = vld [vmem:[%s19760_s9 + $0x19c0] sm:$0xff] }
 0x2e5   : > { %14901 = vmatpush1.bf16.msra.mxu1 %v17655_v8  ;;  %14246 = vmatprep.subr.bf16.mxu0 %v17662_v26  ;;  %v2492_v8 = vld [vmem:[%s19760_s9 + $0x19e0] sm:$0xff]  ;;  %v2489_v26 = vld [vmem:[%s19760_s9 + $0x19c8] sm:$0xff] }
 0x2e6   : > { %14902 = vmatprep.subr.bf16.mxu1 %v17664_v17  ;;  %v2493_v17 = vld [vmem:[%s19760_s9 + $0x19e8] sm:$0xff]  ;;  %v17694_v29 = vcombine.high %v2488_v15, %v2492_v8  ;;  %v17693_v46 = vcombine.low %v2488_v15, %v2492_v8 }
 0x2e7   : > { %v17696_v60 = vcombine.high %v2489_v26, %v2493_v17  ;;  %v17695_v54 = vcombine.low %v2489_v26, %v2493_v17 }
 0x2e8   : > { %14247 = vmatpush1.bf16.msra.mxu0 %v17661_v10  ;;  %v2496_v10 = vld [vmem:[%s19760_s9 + $0x1a00] sm:$0xff] }
 0x2e9   : > { %14903 = vmatpush1.bf16.msra.mxu1 %v17663_v28  ;;  %14248 = vmatprep.subr.bf16.mxu0 %v17670_v23  ;;  %v2500_v28 = vld [vmem:[%s19760_s9 + $0x1a20] sm:$0xff]  ;;  %v2497_v23 = vld [vmem:[%s19760_s9 + $0x1a08] sm:$0xff] }
 0x2ea   : > { %14904 = vmatprep.subr.bf16.mxu1 %v17672_v32  ;;  %v2501_v32 = vld [vmem:[%s19760_s9 + $0x1a28] sm:$0xff]  ;;  %v17702_v35 = vcombine.high %v2496_v10, %v2500_v28  ;;  %v17701_v11 = vcombine.low %v2496_v10, %v2500_v28 }
 0x2eb   : > { %v17704_v31 = vcombine.high %v2497_v23, %v2501_v32  ;;  %v17703_v50 = vcombine.low %v2497_v23, %v2501_v32 }
 0x2ec   : > { %14249 = vmatpush1.bf16.msra.mxu0 %v17669_v21  ;;  %v2504_v21 = vld [vmem:[%s19760_s9 + $0x1a40] sm:$0xff] }
 0x2ed   : > { %14905 = vmatpush1.bf16.msra.mxu1 %v17671_v33  ;;  %14250 = vmatprep.subr.bf16.mxu0 %v17678_v63  ;;  %v2508_v33 = vld [vmem:[%s19760_s9 + $0x1a60] sm:$0xff]  ;;  %v2505_v63 = vld [vmem:[%s19760_s9 + $0x1a48] sm:$0xff] }
 0x2ee   : > { %14906 = vmatprep.subr.bf16.mxu1 %v17680_v59  ;;  %v2509_v59 = vld [vmem:[%s19760_s9 + $0x1a68] sm:$0xff]  ;;  %v17710_v37 = vcombine.high %v2504_v21, %v2508_v33  ;;  %v17709_v15 = vcombine.low %v2504_v21, %v2508_v33 }
 0x2ef   : > { %v17712_v19 = vcombine.high %v2505_v63, %v2509_v59  ;;  %v17711_v8 = vcombine.low %v2505_v63, %v2509_v59 }
 0x2f0   : > { %14251 = vmatpush1.bf16.msra.mxu0 %v17677_v3  ;;  %v2512_v3 = vld [vmem:[%s19760_s9 + $0x1a80] sm:$0xff] }
 0x2f1   : > { %14907 = vmatpush1.bf16.msra.mxu1 %v17679_v42  ;;  %14252 = vmatprep.subr.bf16.mxu0 %v17686_v0  ;;  %v2516_v42 = vld [vmem:[%s19760_s9 + $0x1aa0] sm:$0xff]  ;;  %v2513_v0 = vld [vmem:[%s19760_s9 + $0x1a88] sm:$0xff] }
 0x2f2   : > { %14908 = vmatprep.subr.bf16.mxu1 %v17688_v4  ;;  %v2517_v4 = vld [vmem:[%s19760_s9 + $0x1aa8] sm:$0xff]  ;;  %v17718_v26 = vcombine.high %v2512_v3, %v2516_v42  ;;  %v17717_v10 = vcombine.low %v2512_v3, %v2516_v42 }
 0x2f3   : > { %v17720_v17 = vcombine.high %v2513_v0, %v2517_v4  ;;  %v17719_v28 = vcombine.low %v2513_v0, %v2517_v4 }
 0x2f4   : > { %14253 = vmatpush1.bf16.msra.mxu0 %v17685_v25  ;;  %v2520_v25 = vld [vmem:[%s19760_s9 + $0x1ac0] sm:$0xff] }
 0x2f5   : > { %14909 = vmatpush1.bf16.msra.mxu1 %v17687_v13  ;;  %14254 = vmatprep.subr.bf16.mxu0 %v17694_v29  ;;  %v2524_v13 = vld [vmem:[%s19760_s9 + $0x1ae0] sm:$0xff]  ;;  %v2521_v29 = vld [vmem:[%s19760_s9 + $0x1ac8] sm:$0xff] }
 0x2f6   : > { %14910 = vmatprep.subr.bf16.mxu1 %v17696_v60  ;;  %v2525_v60 = vld [vmem:[%s19760_s9 + $0x1ae8] sm:$0xff]  ;;  %v17726_v23 = vcombine.high %v2520_v25, %v2524_v13  ;;  %v17725_v21 = vcombine.low %v2520_v25, %v2524_v13 }
 0x2f7   : > { %v17728_v32 = vcombine.high %v2521_v29, %v2525_v60  ;;  %v17727_v33 = vcombine.low %v2521_v29, %v2525_v60 }
 0x2f8   : > { %14255 = vmatpush1.bf16.msra.mxu0 %v17693_v46  ;;  %v2528_v46 = vld [vmem:[%s19760_s9 + $0x1b00] sm:$0xff] }
 0x2f9   : > { %14911 = vmatpush1.bf16.msra.mxu1 %v17695_v54  ;;  %14256 = vmatprep.subr.bf16.mxu0 %v17702_v35  ;;  %v2532_v54 = vld [vmem:[%s19760_s9 + $0x1b20] sm:$0xff]  ;;  %v2529_v35 = vld [vmem:[%s19760_s9 + $0x1b08] sm:$0xff] }
 0x2fa   : > { %14912 = vmatprep.subr.bf16.mxu1 %v17704_v31  ;;  %v2533_v31 = vld [vmem:[%s19760_s9 + $0x1b28] sm:$0xff]  ;;  %v17734_v63 = vcombine.high %v2528_v46, %v2532_v54  ;;  %v17733_v3 = vcombine.low %v2528_v46, %v2532_v54 }
 0x2fb   : > { %v17736_v59 = vcombine.high %v2529_v35, %v2533_v31  ;;  %v17735_v42 = vcombine.low %v2529_v35, %v2533_v31  ;;  %v1580_v31 = vmul.f32 0.01, %v20008_v6 }
 0x2fc   : > { %14257 = vmatpush1.bf16.msra.mxu0 %v17701_v11  ;;  %v2536_v11 = vld [vmem:[%s19760_s9 + $0x1b40] sm:$0xff] }
 0x2fd   : > { %14913 = vmatpush1.bf16.msra.mxu1 %v17703_v50  ;;  %14258 = vmatprep.subr.bf16.mxu0 %v17710_v37  ;;  %v2540_v50 = vld [vmem:[%s19760_s9 + $0x1b60] sm:$0xff]  ;;  %v2537_v37 = vld [vmem:[%s19760_s9 + $0x1b48] sm:$0xff] }
 0x2fe   : > { %14914 = vmatprep.subr.bf16.mxu1 %v17712_v19  ;;  %v2541_v19 = vld [vmem:[%s19760_s9 + $0x1b68] sm:$0xff]  ;;  %v17742_v0 = vcombine.high %v2536_v11, %v2540_v50  ;;  %v17741_v25 = vcombine.low %v2536_v11, %v2540_v50  ;;  %v1583_v50 = vmul.f32 0.01, %v20015_v20 }
 0x2ff   : > { %v17744_v4 = vcombine.high %v2537_v37, %v2541_v19  ;;  %v17743_v13 = vcombine.low %v2537_v37, %v2541_v19  ;;  %v2565_v11 = vld [vmem:[%s19760_s9 + $0x1c28] sm:$0xff] }
 0x300   : > { %14259 = vmatpush1.bf16.msra.mxu0 %v17709_v15  ;;  %v2544_v15 = vld [vmem:[%s19760_s9 + $0x1b80] sm:$0xff] }
 0x301   : > { %14915 = vmatpush1.bf16.msra.mxu1 %v17711_v8  ;;  %14260 = vmatprep.subr.bf16.mxu0 %v17718_v26  ;;  %v2548_v8 = vld [vmem:[%s19760_s9 + $0x1ba0] sm:$0xff]  ;;  %v2545_v26 = vld [vmem:[%s19760_s9 + $0x1b88] sm:$0xff] }
 0x302   : > { %14916 = vmatprep.subr.bf16.mxu1 %v17720_v17  ;;  %v2549_v17 = vld [vmem:[%s19760_s9 + $0x1ba8] sm:$0xff]  ;;  %v17750_v29 = vcombine.high %v2544_v15, %v2548_v8  ;;  %v17749_v46 = vcombine.low %v2544_v15, %v2548_v8  ;;  %v2572_v15 = vld [vmem:[%s19760_s9 + $0x1c60] sm:$0xff]  ;;  %v1615_v8 = vsel %vm1551_vm15, %v20015_v20, %v1583_v50  ;;  %vm1567_vm15 = vcmp.gt.f32.partialorder %v20111_v58, 0.0 }
 0x303   : > { %v17752_v60 = vcombine.high %v2545_v26, %v2549_v17  ;;  %v17751_v54 = vcombine.low %v2545_v26, %v2549_v17  ;;  %v2569_v17 = vld [vmem:[%s19760_s9 + $0x1c48] sm:$0xff] }
 0x304   : > { %14261 = vmatpush1.bf16.msra.mxu0 %v17717_v10  ;;  %v2552_v10 = vld [vmem:[%s19760_s9 + $0x1bc0] sm:$0xff] }
 0x305   : > { %14917 = vmatpush1.bf16.msra.mxu1 %v17719_v28  ;;  %14262 = vmatprep.subr.bf16.mxu0 %v17726_v23  ;;  %v2556_v28 = vld [vmem:[%s19760_s9 + $0x1be0] sm:$0xff]  ;;  %v2553_v23 = vld [vmem:[%s19760_s9 + $0x1bc8] sm:$0xff] }
 0x306   : > { %14918 = vmatprep.subr.bf16.mxu1 %v17728_v32  ;;  %v2557_v32 = vld [vmem:[%s19760_s9 + $0x1be8] sm:$0xff]  ;;  %v17758_v35 = vcombine.high %v2552_v10, %v2556_v28  ;;  %v17757_v37 = vcombine.low %v2552_v10, %v2556_v28  ;;  %v2580_v10 = vld [vmem:[%s19760_s9 + $0x1ca0] sm:$0xff]  ;;  %v20521_v28 = vpack.c.bf16 %v1615_v8, %v1615_v8 }
 0x307   : > { %v17759_v19 = vcombine.low %v2553_v23, %v2557_v32 }
 0x308   : > { %14263 = vmatpush1.bf16.msra.mxu0 %v17725_v21  ;;  %v17760_v21 = vcombine.high %v2553_v23, %v2557_v32  ;;  %v2577_v23 = vld [vmem:[%s19760_s9 + $0x1c88] sm:$0xff] }
 0x309   : > { %14919 = vmatpush1.bf16.msra.mxu1 %v17727_v33  ;;  %14264 = vmatprep.subr.bf16.mxu0 %v17734_v63  ;;  %v2560_v33 = vld [vmem:[%s19760_s9 + $0x1c00] sm:$0xff]  ;;  %v2581_v32 = vld [vmem:[%s19760_s9 + $0x1ca8] sm:$0xff] }
 0x30a   : > { %14920 = vmatprep.subr.bf16.mxu1 %v17736_v59  ;;  %v2564_v63 = vld [vmem:[%s19760_s9 + $0x1c20] sm:$0xff]  ;;  %v2561_v59 = vld [vmem:[%s19760_s9 + $0x1c08] sm:$0xff]  ;;  %v17783_v50 = vcombine.low %v2577_v23, %v2581_v32 }
 0x30b   : > { %v17765_v26 = vcombine.low %v2560_v33, %v2564_v63 }
 0x30c   : > { %14265 = vmatpush1.bf16.msra.mxu0 %v17733_v3  ;;  %v17766_v3 = vcombine.high %v2560_v33, %v2564_v63  ;;  %v2588_v33 = vld [vmem:[%s19760_s9 + $0x1ce0] sm:$0xff]  ;;  %v2585_v63 = vld [vmem:[%s19760_s9 + $0x1cc8] sm:$0xff] }
 0x30d   : > { %14921 = vmatpush1.bf16.msra.mxu1 %v17735_v42  ;;  %14266 = vmatprep.subr.bf16.mxu0 %v17742_v0  ;;  %v1612_v42 = vsel %vm1548_vm14, %v20008_v6, %v1580_v31  ;;  %v17768_v0 = vcombine.high %v2561_v59, %v2565_v11  ;;  %v17784_v31 = vcombine.high %v2577_v23, %v2581_v32  ;;  %vm1564_vm14 = vcmp.gt.f32.partialorder %v20102_v12, 0.0 }
 0x30e   : > { %14922 = vmatprep.subr.bf16.mxu1 %v17744_v4  ;;  %v2568_v4 = vld [vmem:[%s19760_s9 + $0x1c40] sm:$0xff] }
 0x30f   : > { %v17774_v6 = vcombine.high %v2568_v4, %v2572_v15 }
 0x310   : > { %14267 = vmatpush1.bf16.msra.mxu0 %v17741_v25  ;;  %v2573_v25 = vld [vmem:[%s19760_s9 + $0x1c68] sm:$0xff] }
 0x311   : > { %14923 = vmatpush1.bf16.msra.mxu1 %v17743_v13  ;;  %14268 = vmatprep.subr.bf16.mxu0 %v17750_v29  ;;  %v20517_v13 = vpack.c.bf16 %v1612_v42, %v1612_v42  ;;  %v17767_v29 = vcombine.low %v2561_v59, %v2565_v11  ;;  %v17776_v20 = vcombine.high %v2569_v17, %v2573_v25  ;;  %v2589_v59 = vld [vmem:[%s19760_s9 + $0x1ce8] sm:$0xff]  ;;  %v2596_v42 = vld [vmem:[%s19760_s9 + $0x1d20] sm:$0xff] }
 0x312   : > { %14924 = vmatprep.subr.bf16.mxu1 %v17752_v60  ;;  %v2576_v60 = vld [vmem:[%s19760_s9 + $0x1c80] sm:$0xff]  ;;  %v17791_v8 = vcombine.low %v2585_v63, %v2589_v59 }
 0x313   : > { %v17781_v11 = vcombine.low %v2576_v60, %v2580_v10 }
 0x314   : > { %14269 = vmatpush1.bf16.msra.mxu0 %v17749_v46  ;;  %v17773_v46 = vcombine.low %v2568_v4, %v2572_v15  ;;  %v2597_v4 = vld [vmem:[%s19760_s9 + $0x1d28] sm:$0xff] }
 0x315   : > { %14925 = vmatpush1.bf16.msra.mxu1 %v17751_v54  ;;  %14270 = vmatprep.subr.bf16.mxu0 %v17758_v35  ;;  %v17775_v54 = vcombine.low %v2569_v17, %v2573_v25  ;;  %v17782_v35 = vcombine.high %v2576_v60, %v2580_v10  ;;  %v2600_v25 = vld [vmem:[%s19760_s9 + $0x1d40] sm:$0xff]  ;;  %v2605_v60 = vld [vmem:[%s19760_s9 + $0x1d68] sm:$0xff] }
 0x316   : > { %14926 = vmatprep.subr.bf16.mxu1 %v17760_v21  ;;  %v2584_v21 = vld [vmem:[%s19760_s9 + $0x1cc0] sm:$0xff] }
 0x317   : > { %v17789_v15 = vcombine.low %v2584_v21, %v2588_v33 }
 0x318   : > { %14271 = vmatpush1.bf16.msra.mxu0 %v17757_v37  ;;  %v17790_v37 = vcombine.high %v2584_v21, %v2588_v33 }
 0x319   : > { %14927 = vmatpush1.bf16.msra.mxu1 %v17759_v19  ;;  %14281 = vmatprep.subr.bf16.mxu0 %v17766_v3  ;;  %v17792_v19 = vcombine.high %v2585_v63, %v2589_v59  ;;  %v2592_v3 = vld [vmem:[%s19760_s9 + $0x1d00] sm:$0xff] }
 0x31a   : > { %14937 = vmatprep.subr.bf16.mxu1 %v17768_v0  ;;  %v2593_v0 = vld [vmem:[%s19760_s9 + $0x1d08] sm:$0xff]  ;;  %v17797_v10 = vcombine.low %v2592_v3, %v2596_v42 }
 0x31b   : > { %14273 = vmatmul.mubr.bf16.vlgmr.msra.gmra.mrb[32].mxu0 %v20517_v13  ;;  %v17800_v17 = vcombine.high %v2593_v0, %v2597_v4 }
 0x31c   : > { %14929 = vmatmul.mubr.bf16.vlgmr.msra.gmra.mrb[32].mxu1 %v20517_v13  ;;  %14282 = vmatpush1.bf16.msra.mxu0 %v17765_v26  ;;  %v17798_v26 = vcombine.high %v2592_v3, %v2596_v42 }
 0x31d   : > { %14313 = vmatprep.mubr.bf16.mxu0 %v20521_v28  ;;  %14938 = vmatpush1.bf16.msra.mxu1 %v17767_v29  ;;  %v2604_v29 = vld [vmem:[%s19760_s9 + $0x1d60] sm:$0xff] }
 0x31e   : > { %14969 = vmatprep.mubr.bf16.mxu1 %v20521_v28  ;;  %14283 = vmatprep.subr.bf16.mxu0 %v17774_v6  ;;  %v2601_v6 = vld [vmem:[%s19760_s9 + $0x1d48] sm:$0xff]  ;;  %v17806_v23 = vcombine.high %v2600_v25, %v2604_v29  ;;  %v17805_v21 = vcombine.low %v2600_v25, %v2604_v29 }
 0x31f   : > { %14939 = vmatprep.subr.bf16.mxu1 %v17776_v20  ;;  %v17799_v20 = vcombine.low %v2593_v0, %v2597_v4  ;;  %v17808_v32 = vcombine.high %v2601_v6, %v2605_v60  ;;  %v17807_v33 = vcombine.low %v2601_v6, %v2605_v60 }
 0x320   : > { %14284 = vmatpush1.bf16.msra.mxu0 %v17773_v46  ;;  %v2608_v46 = vld [vmem:[%s19760_s9 + $0x1d80] sm:$0xff] }
 0x321   : > { %14940 = vmatpush1.bf16.msra.mxu1 %v17775_v54  ;;  %14285 = vmatprep.subr.bf16.mxu0 %v17782_v35  ;;  %v2612_v54 = vld [vmem:[%s19760_s9 + $0x1da0] sm:$0xff]  ;;  %v2609_v35 = vld [vmem:[%s19760_s9 + $0x1d88] sm:$0xff] }
 0x322   : > { %14941 = vmatprep.subr.bf16.mxu1 %v17784_v31  ;;  %v2613_v31 = vld [vmem:[%s19760_s9 + $0x1da8] sm:$0xff]  ;;  %v17814_v63 = vcombine.high %v2608_v46, %v2612_v54  ;;  %v17813_v3 = vcombine.low %v2608_v46, %v2612_v54 }
 0x323   : > { %v17816_v59 = vcombine.high %v2609_v35, %v2613_v31  ;;  %v17815_v42 = vcombine.low %v2609_v35, %v2613_v31 }
 0x324   : > { %14286 = vmatpush1.bf16.msra.mxu0 %v17781_v11  ;;  %v2616_v11 = vld [vmem:[%s19760_s9 + $0x1dc0] sm:$0xff] }
 0x325   : > { %14942 = vmatpush1.bf16.msra.mxu1 %v17783_v50  ;;  %14287 = vmatprep.subr.bf16.mxu0 %v17790_v37  ;;  %v2620_v50 = vld [vmem:[%s19760_s9 + $0x1de0] sm:$0xff]  ;;  %v2617_v37 = vld [vmem:[%s19760_s9 + $0x1dc8] sm:$0xff] }
 0x326   : > { %14943 = vmatprep.subr.bf16.mxu1 %v17792_v19  ;;  %v2621_v19 = vld [vmem:[%s19760_s9 + $0x1de8] sm:$0xff]  ;;  %v17822_v0 = vcombine.high %v2616_v11, %v2620_v50  ;;  %v17821_v25 = vcombine.low %v2616_v11, %v2620_v50 }
 0x327   : > { %v17824_v4 = vcombine.high %v2617_v37, %v2621_v19  ;;  %v17823_v29 = vcombine.low %v2617_v37, %v2621_v19 }
 0x328   : > { %14288 = vmatpush1.bf16.msra.mxu0 %v17789_v15  ;;  %v2624_v15 = vld [vmem:[%s19760_s9 + $0x1e00] sm:$0xff] }
 0x329   : > { %14944 = vmatpush1.bf16.msra.mxu1 %v17791_v8  ;;  %14289 = vmatprep.subr.bf16.mxu0 %v17798_v26  ;;  %v2628_v8 = vld [vmem:[%s19760_s9 + $0x1e20] sm:$0xff]  ;;  %v2625_v26 = vld [vmem:[%s19760_s9 + $0x1e08] sm:$0xff] }
 0x32a   : > { %14945 = vmatprep.subr.bf16.mxu1 %v17800_v17  ;;  %v2629_v17 = vld [vmem:[%s19760_s9 + $0x1e28] sm:$0xff]  ;;  %v17830_v6 = vcombine.high %v2624_v15, %v2628_v8  ;;  %v17829_v46 = vcombine.low %v2624_v15, %v2628_v8 }
 0x32b   : > { %v17832_v60 = vcombine.high %v2625_v26, %v2629_v17  ;;  %v17831_v54 = vcombine.low %v2625_v26, %v2629_v17 }
 0x32c   : > { %14290 = vmatpush1.bf16.msra.mxu0 %v17797_v10  ;;  %v2632_v10 = vld [vmem:[%s19760_s9 + $0x1e40] sm:$0xff] }
 0x32d   : > { %14946 = vmatpush1.bf16.msra.mxu1 %v17799_v20  ;;  %14291 = vmatprep.subr.bf16.mxu0 %v17806_v23  ;;  %v2636_v20 = vld [vmem:[%s19760_s9 + $0x1e60] sm:$0xff]  ;;  %v2633_v23 = vld [vmem:[%s19760_s9 + $0x1e48] sm:$0xff] }
 0x32e   : > { %14947 = vmatprep.subr.bf16.mxu1 %v17808_v32  ;;  %v2637_v32 = vld [vmem:[%s19760_s9 + $0x1e68] sm:$0xff]  ;;  %v17838_v35 = vcombine.high %v2632_v10, %v2636_v20  ;;  %v17837_v11 = vcombine.low %v2632_v10, %v2636_v20 }
 0x32f   : > { %v17840_v31 = vcombine.high %v2633_v23, %v2637_v32  ;;  %v17839_v50 = vcombine.low %v2633_v23, %v2637_v32 }
 0x330   : > { %14292 = vmatpush1.bf16.msra.mxu0 %v17805_v21  ;;  %v2640_v21 = vld [vmem:[%s19760_s9 + $0x1e80] sm:$0xff] }
 0x331   : > { %14948 = vmatpush1.bf16.msra.mxu1 %v17807_v33  ;;  %14293 = vmatprep.subr.bf16.mxu0 %v17814_v63  ;;  %v2644_v33 = vld [vmem:[%s19760_s9 + $0x1ea0] sm:$0xff]  ;;  %v2641_v63 = vld [vmem:[%s19760_s9 + $0x1e88] sm:$0xff] }
 0x332   : > { %14949 = vmatprep.subr.bf16.mxu1 %v17816_v59  ;;  %v2645_v59 = vld [vmem:[%s19760_s9 + $0x1ea8] sm:$0xff]  ;;  %v17846_v37 = vcombine.high %v2640_v21, %v2644_v33  ;;  %v17845_v15 = vcombine.low %v2640_v21, %v2644_v33 }
 0x333   : > { %v17848_v19 = vcombine.high %v2641_v63, %v2645_v59  ;;  %v17847_v8 = vcombine.low %v2641_v63, %v2645_v59 }
 0x334   : > { %14294 = vmatpush1.bf16.msra.mxu0 %v17813_v3  ;;  %v2648_v3 = vld [vmem:[%s19760_s9 + $0x1ec0] sm:$0xff] }
 0x335   : > { %14950 = vmatpush1.bf16.msra.mxu1 %v17815_v42  ;;  %14295 = vmatprep.subr.bf16.mxu0 %v17822_v0  ;;  %v2652_v42 = vld [vmem:[%s19760_s9 + $0x1ee0] sm:$0xff]  ;;  %v2649_v0 = vld [vmem:[%s19760_s9 + $0x1ec8] sm:$0xff] }
 0x336   : > { %14951 = vmatprep.subr.bf16.mxu1 %v17824_v4  ;;  %v2653_v4 = vld [vmem:[%s19760_s9 + $0x1ee8] sm:$0xff]  ;;  %v17854_v26 = vcombine.high %v2648_v3, %v2652_v42  ;;  %v17853_v10 = vcombine.low %v2648_v3, %v2652_v42  ;;  %v20577_v3 = vld [vmem:[#allocation7 + $0x10] sm:$0xff] }
 0x337   : > { %v17856_v17 = vcombine.high %v2649_v0, %v2653_v4  ;;  %v17855_v20 = vcombine.low %v2649_v0, %v2653_v4  ;;  %v467_v42 = vrot.slane %v20577_v3, %v19908_v18 }
 0x338   : > { %14296 = vmatpush1.bf16.msra.mxu0 %v17821_v25  ;;  %v2656_v25 = vld [vmem:[%s19760_s9 + $0x1f00] sm:$0xff] }
 0x339   : > { %14952 = vmatpush1.bf16.msra.mxu1 %v17823_v29  ;;  %14297 = vmatprep.subr.bf16.mxu0 %v17830_v6  ;;  %v2660_v29 = vld [vmem:[%s19760_s9 + $0x1f20] sm:$0xff]  ;;  %v2657_v6 = vld [vmem:[%s19760_s9 + $0x1f08] sm:$0xff] }
 0x33a   : > { %14953 = vmatprep.subr.bf16.mxu1 %v17832_v60  ;;  %v2661_v60 = vld [vmem:[%s19760_s9 + $0x1f28] sm:$0xff]  ;;  %v17862_v23 = vcombine.high %v2656_v25, %v2660_v29  ;;  %v17861_v21 = vcombine.low %v2656_v25, %v2660_v29 }
 0x33b   : > { %v17864_v32 = vcombine.high %v2657_v6, %v2661_v60  ;;  %v17863_v33 = vcombine.low %v2657_v6, %v2661_v60  ;;  %v2681_v25 = vld [vmem:[%s19760_s9 + $0x1fc8] sm:$0xff]  ;;  %v1245_v6 = vadd.f32 %v20032_v53, %v467_v42 }
 0x33c   : > { %14298 = vmatpush1.bf16.msra.mxu0 %v17829_v46  ;;  %v2664_v46 = vld [vmem:[%s19760_s9 + $0x1f40] sm:$0xff]  ;;  %v2685_v29 = vld [vmem:[%s19760_s9 + $0x1fe8] sm:$0xff] }
 0x33d   : > { %14954 = vmatpush1.bf16.msra.mxu1 %v17831_v54  ;;  %14299 = vmatprep.subr.bf16.mxu0 %v17838_v35  ;;  %v2668_v54 = vld [vmem:[%s19760_s9 + $0x1f60] sm:$0xff]  ;;  %v2665_v35 = vld [vmem:[%s19760_s9 + $0x1f48] sm:$0xff]  ;;  %vm1553_vm1 = vcmp.gt.f32.partialorder %v1245_v6, 0.0 }
 0x33e   : > { %14955 = vmatprep.subr.bf16.mxu1 %v17840_v31  ;;  %v2669_v31 = vld [vmem:[%s19760_s9 + $0x1f68] sm:$0xff]  ;;  %v17870_v63 = vcombine.high %v2664_v46, %v2668_v54  ;;  %v17869_v0 = vcombine.low %v2664_v46, %v2668_v54  ;;  %v2688_v46 = vld [vmem:[%s19760_s9 + $0x2000] sm:$0xff] }
 0x33f   : > { %v17872_v59 = vcombine.high %v2665_v35, %v2669_v31  ;;  %v17871_v4 = vcombine.low %v2665_v35, %v2669_v31  ;;  %v2692_v54 = vld [vmem:[%s19760_s9 + $0x2020] sm:$0xff]  ;;  %v2689_v35 = vld [vmem:[%s19760_s9 + $0x2008] sm:$0xff] }
 0x340   : > { %14300 = vmatpush1.bf16.msra.mxu0 %v17837_v11  ;;  %v2672_v11 = vld [vmem:[%s19760_s9 + $0x1f80] sm:$0xff]  ;;  %v2693_v31 = vld [vmem:[%s19760_s9 + $0x2028] sm:$0xff]  ;;  %v17893_v42 = vcombine.low %v2688_v46, %v2692_v54 }
 0x341   : > { %14956 = vmatpush1.bf16.msra.mxu1 %v17839_v50  ;;  %14301 = vmatprep.subr.bf16.mxu0 %v17846_v37  ;;  %v2676_v50 = vld [vmem:[%s19760_s9 + $0x1fa0] sm:$0xff]  ;;  %v2673_v37 = vld [vmem:[%s19760_s9 + $0x1f88] sm:$0xff] }
 0x342   : > { %14957 = vmatprep.subr.bf16.mxu1 %v17848_v19  ;;  %v2677_v19 = vld [vmem:[%s19760_s9 + $0x1fa8] sm:$0xff]  ;;  %v17877_v60 = vcombine.low %v2672_v11, %v2676_v50 }
 0x344   : > { %14302 = vmatpush1.bf16.msra.mxu0 %v17845_v15  ;;  %v17878_v15 = vcombine.high %v2672_v11, %v2676_v50  ;;  %v17896_v11 = vcombine.high %v2689_v35, %v2693_v31  ;;  %v2696_v50 = vld [vmem:[%s19760_s9 + $0x2040] sm:$0xff] }
 0x345   : > { %14958 = vmatpush1.bf16.msra.mxu1 %v17847_v8  ;;  %14303 = vmatprep.subr.bf16.mxu0 %v17854_v26  ;;  %v17880_v8 = vcombine.high %v2673_v37, %v2677_v19  ;;  %v2680_v26 = vld [vmem:[%s19760_s9 + $0x1fc0] sm:$0xff] }
 0x346   : > { %14959 = vmatprep.subr.bf16.mxu1 %v17856_v17  ;;  %v2684_v17 = vld [vmem:[%s19760_s9 + $0x1fe0] sm:$0xff] }
 0x347   : > { %v17885_v53 = vcombine.low %v2680_v26, %v2684_v17 }
 0x348   : > { %14304 = vmatpush1.bf16.msra.mxu0 %v17853_v10  ;;  %v17879_v10 = vcombine.low %v2673_v37, %v2677_v19  ;;  %v2700_v37 = vld [vmem:[%s19760_s9 + $0x2060] sm:$0xff] }
 0x349   : > { %14960 = vmatpush1.bf16.msra.mxu1 %v17855_v20  ;;  %14305 = vmatprep.subr.bf16.mxu0 %v17862_v23  ;;  %v17886_v20 = vcombine.high %v2680_v26, %v2684_v17  ;;  %v1582_v23 = vmul.f32 0.01, %v20012_v9  ;;  %v2704_v26 = vld [vmem:[%s19760_s9 + $0x2080] sm:$0xff] }
 0x34a   : > { %14961 = vmatprep.subr.bf16.mxu1 %v17864_v32  ;;  %v17888_v32 = vcombine.high %v2681_v25, %v2685_v29  ;;  %v2708_v17 = vld [vmem:[%s19760_s9 + $0x20a0] sm:$0xff] }
 0x34c   : > { %14306 = vmatpush1.bf16.msra.mxu0 %v17861_v21  ;;  %v1585_v21 = vmul.f32 0.01, %v1245_v6 }
 0x34d   : > { %14962 = vmatpush1.bf16.msra.mxu1 %v17863_v33  ;;  %14307 = vmatprep.subr.bf16.mxu0 %v17870_v63  ;;  %v17887_v33 = vcombine.low %v2681_v25, %v2685_v29  ;;  %v17894_v63 = vcombine.high %v2688_v46, %v2692_v54  ;;  %v2712_v46 = vld [vmem:[%s19760_s9 + $0x20c0] sm:$0xff] }
 0x34e   : > { %14963 = vmatprep.subr.bf16.mxu1 %v17872_v59  ;;  %v1614_v59 = vsel %vm1550_vm0, %v20012_v9, %v1582_v23  ;;  %v1617_v19 = vsel %vm1553_vm1, %v1245_v6, %v1585_v21  ;;  %v17902_v9 = vcombine.high %v2696_v50, %v2700_v37  ;;  %v2705_v6 = vld [vmem:[%s19760_s9 + $0x2088] sm:$0xff]  ;;  %v17910_v23 = vcombine.high %v2704_v26, %v2708_v17  ;;  %v2716_v54 = vld [vmem:[%s19760_s9 + $0x20e0] sm:$0xff] }
 0x34f   : > { %v20601_v25 = vpack.c.bf16 %v1617_v19, %v1617_v19  ;;  %v17909_v21 = vcombine.low %v2704_v26, %v2708_v17  ;;  %v17917_v19 = vcombine.low %v2712_v46, %v2716_v54  ;;  %v2729_v26 = vld [vmem:[%s19760_s9 + $0x2148] sm:$0xff]  ;;  %vm1566_vm0 = vcmp.gt.f32.partialorder %v20108_v36, 0.0 }
 0x350   : > { %14308 = vmatpush1.bf16.msra.mxu0 %v17869_v0  ;;  %v2697_v0 = vld [vmem:[%s19760_s9 + $0x2048] sm:$0xff] }
 0x351   : > { %14964 = vmatpush1.bf16.msra.mxu1 %v17871_v4  ;;  %14309 = vmatprep.subr.bf16.mxu0 %v17878_v15  ;;  %v2701_v4 = vld [vmem:[%s19760_s9 + $0x2068] sm:$0xff]  ;;  %v20597_v15 = vpack.c.bf16 %v1614_v59, %v1614_v59  ;;  %v2720_v59 = vld [vmem:[%s19760_s9 + $0x2100] sm:$0xff] }
 0x352   : > { %14965 = vmatprep.subr.bf16.mxu1 %v17880_v8  ;;  %v17895_v8 = vcombine.low %v2689_v35, %v2693_v31  ;;  %v17904_v29 = vcombine.high %v2697_v0, %v2701_v4  ;;  %v2713_v35 = vld [vmem:[%s19760_s9 + $0x20c8] sm:$0xff] }
 0x353   : > { %v2717_v31 = vld [vmem:[%s19760_s9 + $0x20e8] sm:$0xff] }
 0x354   : > { %14310 = vmatpush1.bf16.msra.mxu0 %v17877_v60  ;;  %v2709_v60 = vld [vmem:[%s19760_s9 + $0x20a8] sm:$0xff] }
 0x355   : > { %14966 = vmatpush1.bf16.msra.mxu1 %v17879_v10  ;;  %14311 = vmatprep.subr.bf16.mxu0 %v17886_v20  ;;  %v17901_v10 = vcombine.low %v2696_v50, %v2700_v37  ;;  %v17903_v20 = vcombine.low %v2697_v0, %v2701_v4  ;;  %v2721_v50 = vld [vmem:[%s19760_s9 + $0x2108] sm:$0xff] }
 0x356   : > { %14967 = vmatprep.subr.bf16.mxu1 %v17888_v32  ;;  %v17912_v32 = vcombine.high %v2705_v6, %v2709_v60  ;;  %v2725_v37 = vld [vmem:[%s19760_s9 + $0x2128] sm:$0xff] }
 0x357   : > { %v17928_v4 = vcombine.high %v2721_v50, %v2725_v37  ;;  %v2733_v17 = vld [vmem:[%s19760_s9 + $0x2168] sm:$0xff] }
 0x358   : > { %14312 = vmatpush1.bf16.msra.mxu0 %v17885_v53  ;;  %v17911_v53 = vcombine.low %v2705_v6, %v2709_v60  ;;  %v17927_v6 = vcombine.low %v2721_v50, %v2725_v37 }
 0x359   : > { %14968 = vmatpush1.bf16.msra.mxu1 %v17887_v33  ;;  %14322 = vmatprep.subr.bf16.mxu0 %v17894_v63  ;;  %v17918_v33 = vcombine.high %v2712_v46, %v2716_v54  ;;  %v17920_v63 = vcombine.high %v2713_v35, %v2717_v31  ;;  %v2741_v46 = vld [vmem:[%s19760_s9 + $0x21a8] sm:$0xff] }
 0x35a   : > { %14978 = vmatprep.subr.bf16.mxu1 %v17896_v11  ;;  %v2724_v11 = vld [vmem:[%s19760_s9 + $0x2120] sm:$0xff] }
 0x35b   : > { %14314 = vmatmul.mubr.bf16.vlgmr.msra.gmra.mrb[32].mxu0 %v20597_v15  ;;  %v17926_v0 = vcombine.high %v2720_v59, %v2724_v11 }
 0x35c   : > { %14970 = vmatmul.mubr.bf16.vlgmr.msra.gmra.mrb[32].mxu1 %v20597_v15  ;;  %14323 = vmatpush1.bf16.msra.mxu0 %v17893_v42  ;;  %v17919_v42 = vcombine.low %v2713_v35, %v2717_v31  ;;  %v17935_v35 = vcombine.low %v2729_v26, %v2733_v17 }
 0x35d   : > { %14354 = vmatprep.mubr.bf16.mxu0 %v20601_v25  ;;  %14979 = vmatpush1.bf16.msra.mxu1 %v17895_v8  ;;  %v2728_v8 = vld [vmem:[%s19760_s9 + $0x2140] sm:$0xff] }
 0x35e   : > { %15010 = vmatprep.mubr.bf16.mxu1 %v20601_v25  ;;  %14324 = vmatprep.subr.bf16.mxu0 %v17902_v9  ;;  %v2732_v9 = vld [vmem:[%s19760_s9 + $0x2160] sm:$0xff] }
 0x35f   : > { %14980 = vmatprep.subr.bf16.mxu1 %v17904_v29  ;;  %v17925_v29 = vcombine.low %v2720_v59, %v2724_v11  ;;  %v17934_v60 = vcombine.high %v2728_v8, %v2732_v9  ;;  %v17933_v54 = vcombine.low %v2728_v8, %v2732_v9  ;;  %v2749_v59 = vld [vmem:[%s19760_s9 + $0x21e8] sm:$0xff] }
 0x360   : > { %14325 = vmatpush1.bf16.msra.mxu0 %v17901_v10  ;;  %v17936_v10 = vcombine.high %v2729_v26, %v2733_v17  ;;  %v2757_v8 = vld [vmem:[%s19760_s9 + $0x2228] sm:$0xff] }
 0x361   : > { %14981 = vmatpush1.bf16.msra.mxu1 %v17903_v20  ;;  %14326 = vmatprep.subr.bf16.mxu0 %v17910_v23  ;;  %v2736_v20 = vld [vmem:[%s19760_s9 + $0x2180] sm:$0xff] }
 0x362   : > { %14982 = vmatprep.subr.bf16.mxu1 %v17912_v32  ;;  %v2740_v23 = vld [vmem:[%s19760_s9 + $0x21a0] sm:$0xff]  ;;  %v2737_v32 = vld [vmem:[%s19760_s9 + $0x2188] sm:$0xff] }
 0x363   : > { %v17942_v31 = vcombine.high %v2736_v20, %v2740_v23  ;;  %v17941_v11 = vcombine.low %v2736_v20, %v2740_v23  ;;  %v17943_v50 = vcombine.low %v2737_v32, %v2741_v46  ;;  %v2765_v20 = vld [vmem:[%s19760_s9 + $0x2268] sm:$0xff] }
 0x364   : > { %14327 = vmatpush1.bf16.msra.mxu0 %v17909_v21  ;;  %v17944_v21 = vcombine.high %v2737_v32, %v2741_v46 }
 0x365   : > { %14983 = vmatpush1.bf16.msra.mxu1 %v17911_v53  ;;  %14328 = vmatprep.subr.bf16.mxu0 %v17918_v33  ;;  %v2744_v53 = vld [vmem:[%s19760_s9 + $0x21c0] sm:$0xff] }
 0x366   : > { %14984 = vmatprep.subr.bf16.mxu1 %v17920_v63  ;;  %v2748_v33 = vld [vmem:[%s19760_s9 + $0x21e0] sm:$0xff]  ;;  %v2745_v63 = vld [vmem:[%s19760_s9 + $0x21c8] sm:$0xff] }
 0x367   : > { %v17950_v37 = vcombine.high %v2744_v53, %v2748_v33  ;;  %v17949_v9 = vcombine.low %v2744_v53, %v2748_v33  ;;  %v17951_v26 = vcombine.low %v2745_v63, %v2749_v59  ;;  %v2773_v53 = vld [vmem:[%s19760_s9 + $0x22a8] sm:$0xff] }
 0x368   : > { %14329 = vmatpush1.bf16.msra.mxu0 %v17917_v19  ;;  %v17952_v19 = vcombine.high %v2745_v63, %v2749_v59 }
 0x369   : > { %14985 = vmatpush1.bf16.msra.mxu1 %v17919_v42  ;;  %14330 = vmatprep.subr.bf16.mxu0 %v17926_v0  ;;  %v2752_v42 = vld [vmem:[%s19760_s9 + $0x2200] sm:$0xff] }
 0x36a   : > { %14986 = vmatprep.subr.bf16.mxu1 %v17928_v4  ;;  %v2756_v0 = vld [vmem:[%s19760_s9 + $0x2220] sm:$0xff]  ;;  %v2753_v4 = vld [vmem:[%s19760_s9 + $0x2208] sm:$0xff] }
 0x36b   : > { %v17958_v17 = vcombine.high %v2752_v42, %v2756_v0  ;;  %v17957_v23 = vcombine.low %v2752_v42, %v2756_v0  ;;  %v17959_v32 = vcombine.low %v2753_v4, %v2757_v8  ;;  %v2781_v42 = vld [vmem:[%s19760_s9 + $0x22e8] sm:$0xff] }
 0x36c   : > { %14331 = vmatpush1.bf16.msra.mxu0 %v17925_v29  ;;  %v17960_v29 = vcombine.high %v2753_v4, %v2757_v8 }
 0x36d   : > { %14987 = vmatpush1.bf16.msra.mxu1 %v17927_v6  ;;  %14332 = vmatprep.subr.bf16.mxu0 %v17934_v60  ;;  %v2760_v6 = vld [vmem:[%s19760_s9 + $0x2240] sm:$0xff] }
 0x36e   : > { %14988 = vmatprep.subr.bf16.mxu1 %v17936_v10  ;;  %v2764_v60 = vld [vmem:[%s19760_s9 + $0x2260] sm:$0xff]  ;;  %v2761_v10 = vld [vmem:[%s19760_s9 + $0x2248] sm:$0xff] }
 0x36f   : > { %v17966_v46 = vcombine.high %v2760_v6, %v2764_v60  ;;  %v17965_v33 = vcombine.low %v2760_v6, %v2764_v60  ;;  %v17967_v63 = vcombine.low %v2761_v10, %v2765_v20  ;;  %v2789_v6 = vld [vmem:[%s19760_s9 + $0x2328] sm:$0xff] }
 0x370   : > { %14333 = vmatpush1.bf16.msra.mxu0 %v17933_v54  ;;  %v17968_v54 = vcombine.high %v2761_v10, %v2765_v20 }
 0x371   : > { %14989 = vmatpush1.bf16.msra.mxu1 %v17935_v35  ;;  %14334 = vmatprep.subr.bf16.mxu0 %v17942_v31  ;;  %v2768_v35 = vld [vmem:[%s19760_s9 + $0x2280] sm:$0xff] }
 0x372   : > { %14990 = vmatprep.subr.bf16.mxu1 %v17944_v21  ;;  %v2772_v31 = vld [vmem:[%s19760_s9 + $0x22a0] sm:$0xff]  ;;  %v2769_v21 = vld [vmem:[%s19760_s9 + $0x2288] sm:$0xff] }
 0x373   : > { %v17974_v59 = vcombine.high %v2768_v35, %v2772_v31  ;;  %v17973_v0 = vcombine.low %v2768_v35, %v2772_v31  ;;  %v17975_v4 = vcombine.low %v2769_v21, %v2773_v53  ;;  %v2797_v35 = vld [vmem:[%s19760_s9 + $0x2368] sm:$0xff] }
 0x374   : > { %14335 = vmatpush1.bf16.msra.mxu0 %v17941_v11  ;;  %v17976_v11 = vcombine.high %v2769_v21, %v2773_v53 }
 0x375   : > { %14991 = vmatpush1.bf16.msra.mxu1 %v17943_v50  ;;  %14336 = vmatprep.subr.bf16.mxu0 %v17950_v37  ;;  %v2776_v50 = vld [vmem:[%s19760_s9 + $0x22c0] sm:$0xff] }
 0x376   : > { %14992 = vmatprep.subr.bf16.mxu1 %v17952_v19  ;;  %v2780_v37 = vld [vmem:[%s19760_s9 + $0x22e0] sm:$0xff]  ;;  %v2777_v19 = vld [vmem:[%s19760_s9 + $0x22c8] sm:$0xff] }
 0x377   : > { %v17982_v8 = vcombine.high %v2776_v50, %v2780_v37  ;;  %v17981_v60 = vcombine.low %v2776_v50, %v2780_v37  ;;  %v17983_v10 = vcombine.low %v2777_v19, %v2781_v42  ;;  %v2801_v50 = vld [vmem:[%s19760_s9 + $0x2388] sm:$0xff] }
 0x378   : > { %14337 = vmatpush1.bf16.msra.mxu0 %v17949_v9  ;;  %v17984_v9 = vcombine.high %v2777_v19, %v2781_v42  ;;  %v2805_v37 = vld [vmem:[%s19760_s9 + $0x23a8] sm:$0xff] }
 0x379   : > { %14993 = vmatpush1.bf16.msra.mxu1 %v17951_v26  ;;  %14338 = vmatprep.subr.bf16.mxu0 %v17958_v17  ;;  %v2784_v26 = vld [vmem:[%s19760_s9 + $0x2300] sm:$0xff] }
 0x37a   : > { %14994 = vmatprep.subr.bf16.mxu1 %v17960_v29  ;;  %v2788_v17 = vld [vmem:[%s19760_s9 + $0x2320] sm:$0xff]  ;;  %v2785_v29 = vld [vmem:[%s19760_s9 + $0x2308] sm:$0xff] }
 0x37b   : > { %v17990_v20 = vcombine.high %v2784_v26, %v2788_v17  ;;  %v17989_v31 = vcombine.low %v2784_v26, %v2788_v17  ;;  %v17991_v21 = vcombine.low %v2785_v29, %v2789_v6  ;;  %v2809_v26 = vld [vmem:[%s19760_s9 + $0x23c8] sm:$0xff] }
 0x37c   : > { %14339 = vmatpush1.bf16.msra.mxu0 %v17957_v23  ;;  %v17992_v23 = vcombine.high %v2785_v29, %v2789_v6  ;;  %v2813_v17 = vld [vmem:[%s19760_s9 + $0x23e8] sm:$0xff]  ;;  %v18007_v6 = vcombine.low %v2801_v50, %v2805_v37 }
 0x37d   : > { %14995 = vmatpush1.bf16.msra.mxu1 %v17959_v32  ;;  %14340 = vmatprep.subr.bf16.mxu0 %v17966_v46  ;;  %v2792_v32 = vld [vmem:[%s19760_s9 + $0x2340] sm:$0xff] }
 0x37e   : > { %14996 = vmatprep.subr.bf16.mxu1 %v17968_v54  ;;  %v2796_v46 = vld [vmem:[%s19760_s9 + $0x2360] sm:$0xff]  ;;  %v2793_v54 = vld [vmem:[%s19760_s9 + $0x2348] sm:$0xff] }
 0x37f   : > { %v17998_v53 = vcombine.high %v2792_v32, %v2796_v46  ;;  %v17997_v19 = vcombine.low %v2792_v32, %v2796_v46  ;;  %v17999_v42 = vcombine.low %v2793_v54, %v2797_v35  ;;  %v2817_v32 = vld [vmem:[%s19760_s9 + $0x2408] sm:$0xff] }
 0x380   : > { %14341 = vmatpush1.bf16.msra.mxu0 %v17965_v33  ;;  %v463_v33 = vrot.slane %v20577_v3, %v19903_v16  ;;  %v18008_v3 = vcombine.high %v2801_v50, %v2805_v37  ;;  %v2821_v46 = vld [vmem:[%s19760_s9 + $0x2428] sm:$0xff] }
 0x381   : > { %14997 = vmatpush1.bf16.msra.mxu1 %v17967_v63  ;;  %14342 = vmatprep.subr.bf16.mxu0 %v17974_v59  ;;  %v18000_v63 = vcombine.high %v2793_v54, %v2797_v35  ;;  %v2800_v59 = vld [vmem:[%s19760_s9 + $0x2380] sm:$0xff]  ;;  %v1587_v54 = vmul.f32 0.01, %v20037_v5  ;;  %v2825_v37 = vld [vmem:[%s19760_s9 + $0x2448] sm:$0xff] }
 0x382   : > { %14998 = vmatprep.subr.bf16.mxu1 %v17976_v11  ;;  %v2804_v11 = vld [vmem:[%s19760_s9 + $0x23a0] sm:$0xff] }
 0x383   : > { %v18005_v29 = vcombine.low %v2800_v59, %v2804_v11 }
 0x384   : > { %14343 = vmatpush1.bf16.msra.mxu0 %v17973_v0  ;;  %v18006_v0 = vcombine.high %v2800_v59, %v2804_v11  ;;  %v2828_v59 = vld [vmem:[%s19760_s9 + $0x2460] sm:$0xff]  ;;  %v1619_v11 = vsel %vm1555_vm3, %v20037_v5, %v1587_v54 }
 0x385   : > { %14999 = vmatpush1.bf16.msra.mxu1 %v17975_v4  ;;  %14344 = vmatprep.subr.bf16.mxu0 %v17982_v8  ;;  %v1243_v4 = vadd.f32 %v20025_v44, %v463_v33  ;;  %v2808_v8 = vld [vmem:[%s19760_s9 + $0x23c0] sm:$0xff]  ;;  %v18024_v33 = vcombine.high %v2817_v32, %v2821_v46 }
 0x386   : > { %15000 = vmatprep.subr.bf16.mxu1 %v17984_v9  ;;  %v2812_v9 = vld [vmem:[%s19760_s9 + $0x23e0] sm:$0xff] }
 0x387   : > { %v2816_v44 = vld [vmem:[%s19760_s9 + $0x2400] sm:$0xff]  ;;  %vm1552_vm2 = vcmp.gt.f32.partialorder %v1243_v4, 0.0  ;;  %v18013_v35 = vcombine.low %v2808_v8, %v2812_v9 }
 0x388   : > { %14345 = vmatpush1.bf16.msra.mxu0 %v17981_v60  ;;  %v18014_v60 = vcombine.high %v2808_v8, %v2812_v9  ;;  %v2836_v8 = vld [vmem:[%s19760_s9 + $0x24a0] sm:$0xff]  ;;  %v20679_v9 = vpack.c.bf16 %v1619_v11, %v1619_v11 }
 0x389   : > { %15001 = vmatpush1.bf16.msra.mxu1 %v17983_v10  ;;  %14346 = vmatprep.subr.bf16.mxu0 %v17990_v20  ;;  %v1584_v10 = vmul.f32 0.01, %v1243_v4  ;;  %v18016_v20 = vcombine.high %v2809_v26, %v2813_v17 }
 0x38a   : > { %15002 = vmatprep.subr.bf16.mxu1 %v17992_v23  ;;  %v2820_v23 = vld [vmem:[%s19760_s9 + $0x2420] sm:$0xff] }
 0x38b   : > { %v18021_v50 = vcombine.low %v2816_v44, %v2820_v23 }
 0x38c   : > { %14347 = vmatpush1.bf16.msra.mxu0 %v17989_v31  ;;  %v18015_v31 = vcombine.low %v2809_v26, %v2813_v17  ;;  %v2833_v26 = vld [vmem:[%s19760_s9 + $0x2488] sm:$0xff] }
 0x38d   : > { %15003 = vmatpush1.bf16.msra.mxu1 %v17991_v21  ;;  %14348 = vmatprep.subr.bf16.mxu0 %v17998_v53  ;;  %v18022_v21 = vcombine.high %v2816_v44, %v2820_v23  ;;  %v1616_v53 = vsel %vm1552_vm2, %v1243_v4, %v1584_v10  ;;  %v2837_v17 = vld [vmem:[%s19760_s9 + $0x24a8] sm:$0xff]  ;;  %v2844_v44 = vld [vmem:[%s19760_s9 + $0x24e0] sm:$0xff] }
 0x38e   : > { %15004 = vmatprep.subr.bf16.mxu1 %v18000_v63  ;;  %v2824_v63 = vld [vmem:[%s19760_s9 + $0x2440] sm:$0xff]  ;;  %v18040_v10 = vcombine.high %v2833_v26, %v2837_v17  ;;  %v2841_v23 = vld [vmem:[%s19760_s9 + $0x24c8] sm:$0xff]  ;;  %v18039_v54 = vcombine.low %v2833_v26, %v2837_v17 }
 0x38f   : > { %v18030_v4 = vcombine.high %v2824_v63, %v2828_v59 }
 0x390   : > { %14349 = vmatpush1.bf16.msra.mxu0 %v17997_v19  ;;  %v2829_v19 = vld [vmem:[%s19760_s9 + $0x2468] sm:$0xff] }
 0x391   : > { %15005 = vmatpush1.bf16.msra.mxu1 %v17999_v42  ;;  %14350 = vmatprep.subr.bf16.mxu0 %v18006_v0  ;;  %v20675_v42 = vpack.c.bf16 %v1616_v53, %v1616_v53  ;;  %v18023_v0 = vcombine.low %v2817_v32, %v2821_v46  ;;  %v18032_v5 = vcombine.high %v2825_v37, %v2829_v19  ;;  %v2845_v32 = vld [vmem:[%s19760_s9 + $0x24e8] sm:$0xff]  ;;  %v2852_v53 = vld [vmem:[%s19760_s9 + $0x2520] sm:$0xff] }
 0x392   : > { %15006 = vmatprep.subr.bf16.mxu1 %v18008_v3  ;;  %v2832_v3 = vld [vmem:[%s19760_s9 + $0x2480] sm:$0xff]  ;;  %v18047_v11 = vcombine.low %v2841_v23, %v2845_v32 }
 0x393   : > { %v18037_v46 = vcombine.low %v2832_v3, %v2836_v8 }
 0x394   : > { %14351 = vmatpush1.bf16.msra.mxu0 %v18005_v29  ;;  %v18029_v29 = vcombine.low %v2824_v63, %v2828_v59  ;;  %v2853_v63 = vld [vmem:[%s19760_s9 + $0x2528] sm:$0xff] }
 0x395   : > { %15007 = vmatpush1.bf16.msra.mxu1 %v18007_v6  ;;  %14352 = vmatprep.subr.bf16.mxu0 %v18014_v60  ;;  %v18031_v6 = vcombine.low %v2825_v37, %v2829_v19  ;;  %v18038_v60 = vcombine.high %v2832_v3, %v2836_v8  ;;  %v2856_v19 = vld [vmem:[%s19760_s9 + $0x2540] sm:$0xff]  ;;  %v2861_v3 = vld [vmem:[%s19760_s9 + $0x2568] sm:$0xff] }
 0x396   : > { %15008 = vmatprep.subr.bf16.mxu1 %v18016_v20  ;;  %v2840_v20 = vld [vmem:[%s19760_s9 + $0x24c0] sm:$0xff] }
 0x397   : > { %v18045_v59 = vcombine.low %v2840_v20, %v2844_v44 }
 0x398   : > { %14353 = vmatpush1.bf16.msra.mxu0 %v18013_v35  ;;  %v18046_v35 = vcombine.high %v2840_v20, %v2844_v44 }
 0x399   : > { %15009 = vmatpush1.bf16.msra.mxu1 %v18015_v31  ;;  %14363 = vmatprep.subr.bf16.mxu0 %v18022_v21  ;;  %v18048_v31 = vcombine.high %v2841_v23, %v2845_v32  ;;  %v2848_v21 = vld [vmem:[%s19760_s9 + $0x2500] sm:$0xff] }
 0x39a   : > { %15019 = vmatprep.subr.bf16.mxu1 %v18024_v33  ;;  %v2849_v33 = vld [vmem:[%s19760_s9 + $0x2508] sm:$0xff]  ;;  %v18053_v8 = vcombine.low %v2848_v21, %v2852_v53 }
 0x39b   : > { %14355 = vmatmul.mubr.bf16.vlgmr.msra.gmra.mrb[32].mxu0 %v20675_v42  ;;  %v18056_v37 = vcombine.high %v2849_v33, %v2853_v63 }
 0x39c   : > { %15011 = vmatmul.mubr.bf16.vlgmr.msra.gmra.mrb[32].mxu1 %v20675_v42  ;;  %14364 = vmatpush1.bf16.msra.mxu0 %v18021_v50  ;;  %v18054_v50 = vcombine.high %v2848_v21, %v2852_v53 }
 0x39d   : > { %14395 = vmatprep.mubr.bf16.mxu0 %v20679_v9  ;;  %15020 = vmatpush1.bf16.msra.mxu1 %v18023_v0  ;;  %v2860_v0 = vld [vmem:[%s19760_s9 + $0x2560] sm:$0xff] }
 0x39e   : > { %15051 = vmatprep.mubr.bf16.mxu1 %v20679_v9  ;;  %14365 = vmatprep.subr.bf16.mxu0 %v18030_v4  ;;  %v2857_v4 = vld [vmem:[%s19760_s9 + $0x2548] sm:$0xff]  ;;  %v18062_v26 = vcombine.high %v2856_v19, %v2860_v0  ;;  %v18061_v20 = vcombine.low %v2856_v19, %v2860_v0 }
 0x39f   : > { %15021 = vmatprep.subr.bf16.mxu1 %v18032_v5  ;;  %v18055_v5 = vcombine.low %v2849_v33, %v2853_v63  ;;  %v18064_v17 = vcombine.high %v2857_v4, %v2861_v3  ;;  %v18063_v44 = vcombine.low %v2857_v4, %v2861_v3 }
 0x3a0   : > { %14366 = vmatpush1.bf16.msra.mxu0 %v18029_v29  ;;  %v2864_v29 = vld [vmem:[%s19760_s9 + $0x2580] sm:$0xff] }
 0x3a1   : > { %15022 = vmatpush1.bf16.msra.mxu1 %v18031_v6  ;;  %14367 = vmatprep.subr.bf16.mxu0 %v18038_v60  ;;  %v2868_v6 = vld [vmem:[%s19760_s9 + $0x25a0] sm:$0xff]  ;;  %v2865_v60 = vld [vmem:[%s19760_s9 + $0x2588] sm:$0xff] }
 0x3a2   : > { %15023 = vmatprep.subr.bf16.mxu1 %v18040_v10  ;;  %v2869_v10 = vld [vmem:[%s19760_s9 + $0x25a8] sm:$0xff]  ;;  %v18070_v23 = vcombine.high %v2864_v29, %v2868_v6  ;;  %v18069_v21 = vcombine.low %v2864_v29, %v2868_v6 }
 0x3a3   : > { %v18072_v32 = vcombine.high %v2865_v60, %v2869_v10  ;;  %v18071_v53 = vcombine.low %v2865_v60, %v2869_v10 }
 0x3a4   : > { %14368 = vmatpush1.bf16.msra.mxu0 %v18037_v46  ;;  %v2872_v46 = vld [vmem:[%s19760_s9 + $0x25c0] sm:$0xff] }
 0x3a5   : > { %15024 = vmatpush1.bf16.msra.mxu1 %v18039_v54  ;;  %14369 = vmatprep.subr.bf16.mxu0 %v18046_v35  ;;  %v2876_v54 = vld [vmem:[%s19760_s9 + $0x25e0] sm:$0xff]  ;;  %v2873_v35 = vld [vmem:[%s19760_s9 + $0x25c8] sm:$0xff] }
 0x3a6   : > { %15025 = vmatprep.subr.bf16.mxu1 %v18048_v31  ;;  %v2877_v31 = vld [vmem:[%s19760_s9 + $0x25e8] sm:$0xff]  ;;  %v18078_v33 = vcombine.high %v2872_v46, %v2876_v54  ;;  %v18077_v19 = vcombine.low %v2872_v46, %v2876_v54 }
 0x3a7   : > { %v18080_v63 = vcombine.high %v2873_v35, %v2877_v31  ;;  %v18079_v0 = vcombine.low %v2873_v35, %v2877_v31 }
 0x3a8   : > { %14370 = vmatpush1.bf16.msra.mxu0 %v18045_v59  ;;  %v2880_v59 = vld [vmem:[%s19760_s9 + $0x2600] sm:$0xff] }
 0x3a9   : > { %15026 = vmatpush1.bf16.msra.mxu1 %v18047_v11  ;;  %14371 = vmatprep.subr.bf16.mxu0 %v18054_v50  ;;  %v2884_v11 = vld [vmem:[%s19760_s9 + $0x2620] sm:$0xff]  ;;  %v2881_v50 = vld [vmem:[%s19760_s9 + $0x2608] sm:$0xff] }
 0x3aa   : > { %15027 = vmatprep.subr.bf16.mxu1 %v18056_v37  ;;  %v2885_v37 = vld [vmem:[%s19760_s9 + $0x2628] sm:$0xff]  ;;  %v18086_v4 = vcombine.high %v2880_v59, %v2884_v11  ;;  %v18085_v29 = vcombine.low %v2880_v59, %v2884_v11 }
 0x3ab   : > { %v18088_v3 = vcombine.high %v2881_v50, %v2885_v37  ;;  %v18087_v6 = vcombine.low %v2881_v50, %v2885_v37 }
 0x3ac   : > { %14372 = vmatpush1.bf16.msra.mxu0 %v18053_v8  ;;  %v2888_v8 = vld [vmem:[%s19760_s9 + $0x2640] sm:$0xff] }
 0x3ad   : > { %15028 = vmatpush1.bf16.msra.mxu1 %v18055_v5  ;;  %14373 = vmatprep.subr.bf16.mxu0 %v18062_v26  ;;  %v2892_v5 = vld [vmem:[%s19760_s9 + $0x2660] sm:$0xff]  ;;  %v2889_v26 = vld [vmem:[%s19760_s9 + $0x2648] sm:$0xff] }
 0x3ae   : > { %15029 = vmatprep.subr.bf16.mxu1 %v18064_v17  ;;  %v2893_v17 = vld [vmem:[%s19760_s9 + $0x2668] sm:$0xff]  ;;  %v18094_v60 = vcombine.high %v2888_v8, %v2892_v5  ;;  %v18093_v46 = vcombine.low %v2888_v8, %v2892_v5 }
 0x3af   : > { %v18096_v10 = vcombine.high %v2889_v26, %v2893_v17  ;;  %v18095_v54 = vcombine.low %v2889_v26, %v2893_v17 }
 0x3b0   : > { %14374 = vmatpush1.bf16.msra.mxu0 %v18061_v20  ;;  %v2896_v20 = vld [vmem:[%s19760_s9 + $0x2680] sm:$0xff] }
 0x3b1   : > { %15030 = vmatpush1.bf16.msra.mxu1 %v18063_v44  ;;  %14375 = vmatprep.subr.bf16.mxu0 %v18070_v23  ;;  %v2900_v44 = vld [vmem:[%s19760_s9 + $0x26a0] sm:$0xff]  ;;  %v2897_v23 = vld [vmem:[%s19760_s9 + $0x2688] sm:$0xff] }
 0x3b2   : > { %15031 = vmatprep.subr.bf16.mxu1 %v18072_v32  ;;  %v2901_v32 = vld [vmem:[%s19760_s9 + $0x26a8] sm:$0xff]  ;;  %v18102_v35 = vcombine.high %v2896_v20, %v2900_v44  ;;  %v18101_v59 = vcombine.low %v2896_v20, %v2900_v44 }
 0x3b3   : > { %v18104_v31 = vcombine.high %v2897_v23, %v2901_v32  ;;  %v18103_v11 = vcombine.low %v2897_v23, %v2901_v32 }
 0x3b4   : > { %14376 = vmatpush1.bf16.msra.mxu0 %v18069_v21  ;;  %v2904_v21 = vld [vmem:[%s19760_s9 + $0x26c0] sm:$0xff] }
 0x3b5   : > { %15032 = vmatpush1.bf16.msra.mxu1 %v18071_v53  ;;  %14377 = vmatprep.subr.bf16.mxu0 %v18078_v33  ;;  %v2908_v53 = vld [vmem:[%s19760_s9 + $0x26e0] sm:$0xff]  ;;  %v2905_v33 = vld [vmem:[%s19760_s9 + $0x26c8] sm:$0xff] }
 0x3b6   : > { %15033 = vmatprep.subr.bf16.mxu1 %v18080_v63  ;;  %v2909_v63 = vld [vmem:[%s19760_s9 + $0x26e8] sm:$0xff]  ;;  %v18110_v50 = vcombine.high %v2904_v21, %v2908_v53  ;;  %v18109_v8 = vcombine.low %v2904_v21, %v2908_v53 }
 0x3b7   : > { %v18112_v37 = vcombine.high %v2905_v33, %v2909_v63  ;;  %v18111_v5 = vcombine.low %v2905_v33, %v2909_v63 }
 0x3b8   : > { %14378 = vmatpush1.bf16.msra.mxu0 %v18077_v19  ;;  %v2912_v19 = vld [vmem:[%s19760_s9 + $0x2700] sm:$0xff] }
 0x3b9   : > { %15034 = vmatpush1.bf16.msra.mxu1 %v18079_v0  ;;  %14379 = vmatprep.subr.bf16.mxu0 %v18086_v4  ;;  %v2916_v0 = vld [vmem:[%s19760_s9 + $0x2720] sm:$0xff]  ;;  %v2913_v4 = vld [vmem:[%s19760_s9 + $0x2708] sm:$0xff] }
 0x3ba   : > { %15035 = vmatprep.subr.bf16.mxu1 %v18088_v3  ;;  %v2917_v3 = vld [vmem:[%s19760_s9 + $0x2728] sm:$0xff]  ;;  %v18118_v26 = vcombine.high %v2912_v19, %v2916_v0  ;;  %v18117_v20 = vcombine.low %v2912_v19, %v2916_v0 }
 0x3bb   : > { %v18120_v17 = vcombine.high %v2913_v4, %v2917_v3  ;;  %v18119_v44 = vcombine.low %v2913_v4, %v2917_v3  ;;  %v1586_v3 = vmul.f32 0.01, %v20034_v62 }
 0x3bc   : > { %14380 = vmatpush1.bf16.msra.mxu0 %v18085_v29  ;;  %v2920_v29 = vld [vmem:[%s19760_s9 + $0x2740] sm:$0xff] }
 0x3bd   : > { %15036 = vmatpush1.bf16.msra.mxu1 %v18087_v6  ;;  %14381 = vmatprep.subr.bf16.mxu0 %v18094_v60  ;;  %v2924_v6 = vld [vmem:[%s19760_s9 + $0x2760] sm:$0xff]  ;;  %v2921_v60 = vld [vmem:[%s19760_s9 + $0x2748] sm:$0xff] }
 0x3be   : > { %15037 = vmatprep.subr.bf16.mxu1 %v18096_v10  ;;  %v2925_v10 = vld [vmem:[%s19760_s9 + $0x2768] sm:$0xff]  ;;  %v18126_v23 = vcombine.high %v2920_v29, %v2924_v6  ;;  %v18125_v21 = vcombine.low %v2920_v29, %v2924_v6  ;;  %v1589_v6 = vmul.f32 0.01, %v20056_v45 }
 0x3bf   : > { %v18128_v32 = vcombine.high %v2921_v60, %v2925_v10  ;;  %v18127_v53 = vcombine.low %v2921_v60, %v2925_v10  ;;  %v2949_v29 = vld [vmem:[%s19760_s9 + $0x2828] sm:$0xff] }
 0x3c0   : > { %14382 = vmatpush1.bf16.msra.mxu0 %v18093_v46  ;;  %v2928_v46 = vld [vmem:[%s19760_s9 + $0x2780] sm:$0xff] }
 0x3c1   : > { %15038 = vmatpush1.bf16.msra.mxu1 %v18095_v54  ;;  %14383 = vmatprep.subr.bf16.mxu0 %v18102_v35  ;;  %v2932_v54 = vld [vmem:[%s19760_s9 + $0x27a0] sm:$0xff]  ;;  %v2929_v35 = vld [vmem:[%s19760_s9 + $0x2788] sm:$0xff] }
 0x3c2   : > { %15039 = vmatprep.subr.bf16.mxu1 %v18104_v31  ;;  %v2933_v31 = vld [vmem:[%s19760_s9 + $0x27a8] sm:$0xff]  ;;  %v18134_v33 = vcombine.high %v2928_v46, %v2932_v54  ;;  %v18133_v19 = vcombine.low %v2928_v46, %v2932_v54  ;;  %v2956_v46 = vld [vmem:[%s19760_s9 + $0x2860] sm:$0xff]  ;;  %v1621_v54 = vsel %vm1557_vm5, %v20056_v45, %v1589_v6 }
 0x3c3   : > { %v18136_v63 = vcombine.high %v2929_v35, %v2933_v31  ;;  %v18135_v0 = vcombine.low %v2929_v35, %v2933_v31  ;;  %v2953_v31 = vld [vmem:[%s19760_s9 + $0x2848] sm:$0xff] }
 0x3c4   : > { %14384 = vmatpush1.bf16.msra.mxu0 %v18101_v59  ;;  %v2936_v59 = vld [vmem:[%s19760_s9 + $0x27c0] sm:$0xff] }
 0x3c5   : > { %15040 = vmatpush1.bf16.msra.mxu1 %v18103_v11  ;;  %14385 = vmatprep.subr.bf16.mxu0 %v18110_v50  ;;  %v2940_v11 = vld [vmem:[%s19760_s9 + $0x27e0] sm:$0xff]  ;;  %v2937_v50 = vld [vmem:[%s19760_s9 + $0x27c8] sm:$0xff] }
 0x3c6   : > { %15041 = vmatprep.subr.bf16.mxu1 %v18112_v37  ;;  %v2941_v37 = vld [vmem:[%s19760_s9 + $0x27e8] sm:$0xff]  ;;  %v18142_v4 = vcombine.high %v2936_v59, %v2940_v11  ;;  %v18141_v60 = vcombine.low %v2936_v59, %v2940_v11  ;;  %v2964_v59 = vld [vmem:[%s19760_s9 + $0x28a0] sm:$0xff]  ;;  %v20757_v11 = vpack.c.bf16 %v1621_v54, %v1621_v54 }
 0x3c7   : > { %v18143_v10 = vcombine.low %v2937_v50, %v2941_v37 }
 0x3c8   : > { %14386 = vmatpush1.bf16.msra.mxu0 %v18109_v8  ;;  %v18144_v8 = vcombine.high %v2937_v50, %v2941_v37  ;;  %v2961_v50 = vld [vmem:[%s19760_s9 + $0x2888] sm:$0xff] }
 0x3c9   : > { %15042 = vmatpush1.bf16.msra.mxu1 %v18111_v5  ;;  %14387 = vmatprep.subr.bf16.mxu0 %v18118_v26  ;;  %v2944_v5 = vld [vmem:[%s19760_s9 + $0x2800] sm:$0xff]  ;;  %v2965_v37 = vld [vmem:[%s19760_s9 + $0x28a8] sm:$0xff] }
 0x3ca   : > { %15043 = vmatprep.subr.bf16.mxu1 %v18120_v17  ;;  %v2948_v26 = vld [vmem:[%s19760_s9 + $0x2820] sm:$0xff]  ;;  %v2945_v17 = vld [vmem:[%s19760_s9 + $0x2808] sm:$0xff]  ;;  %v18167_v6 = vcombine.low %v2961_v50, %v2965_v37 }
 0x3cb   : > { %v18149_v35 = vcombine.low %v2944_v5, %v2948_v26 }
 0x3cc   : > { %14388 = vmatpush1.bf16.msra.mxu0 %v18117_v20  ;;  %v18150_v20 = vcombine.high %v2944_v5, %v2948_v26  ;;  %v2972_v5 = vld [vmem:[%s19760_s9 + $0x28e0] sm:$0xff]  ;;  %v2969_v26 = vld [vmem:[%s19760_s9 + $0x28c8] sm:$0xff] }
 0x3cd   : > { %15044 = vmatpush1.bf16.msra.mxu1 %v18119_v44  ;;  %14389 = vmatprep.subr.bf16.mxu0 %v18126_v23  ;;  %v1618_v44 = vsel %vm1554_vm4, %v20034_v62, %v1586_v3  ;;  %v18152_v23 = vcombine.high %v2945_v17, %v2949_v29  ;;  %v18168_v3 = vcombine.high %v2961_v50, %v2965_v37 }
 0x3ce   : > { %15045 = vmatprep.subr.bf16.mxu1 %v18128_v32  ;;  %v2952_v32 = vld [vmem:[%s19760_s9 + $0x2840] sm:$0xff] }
 0x3cf   : > { %v18158_v62 = vcombine.high %v2952_v32, %v2956_v46 }
 0x3d0   : > { %14390 = vmatpush1.bf16.msra.mxu0 %v18125_v21  ;;  %v2957_v21 = vld [vmem:[%s19760_s9 + $0x2868] sm:$0xff] }
 0x3d1   : > { %15046 = vmatpush1.bf16.msra.mxu1 %v18127_v53  ;;  %14391 = vmatprep.subr.bf16.mxu0 %v18134_v33  ;;  %v20753_v53 = vpack.c.bf16 %v1618_v44, %v1618_v44  ;;  %v18151_v33 = vcombine.low %v2945_v17, %v2949_v29  ;;  %v18160_v45 = vcombine.high %v2953_v31, %v2957_v21  ;;  %v2973_v17 = vld [vmem:[%s19760_s9 + $0x28e8] sm:$0xff]  ;;  %v2980_v44 = vld [vmem:[%s19760_s9 + $0x2920] sm:$0xff] }
 0x3d2   : > { %15047 = vmatprep.subr.bf16.mxu1 %v18136_v63  ;;  %v2960_v63 = vld [vmem:[%s19760_s9 + $0x2880] sm:$0xff]  ;;  %v18175_v54 = vcombine.low %v2969_v26, %v2973_v17 }
 0x3d3   : > { %v18165_v29 = vcombine.low %v2960_v63, %v2964_v59 }
 0x3d4   : > { %14392 = vmatpush1.bf16.msra.mxu0 %v18133_v19  ;;  %v18157_v19 = vcombine.low %v2952_v32, %v2956_v46  ;;  %v2981_v32 = vld [vmem:[%s19760_s9 + $0x2928] sm:$0xff] }
 0x3d5   : > { %15048 = vmatpush1.bf16.msra.mxu1 %v18135_v0  ;;  %14393 = vmatprep.subr.bf16.mxu0 %v18142_v4  ;;  %v18159_v0 = vcombine.low %v2953_v31, %v2957_v21  ;;  %v18166_v4 = vcombine.high %v2960_v63, %v2964_v59  ;;  %v2984_v21 = vld [vmem:[%s19760_s9 + $0x2940] sm:$0xff]  ;;  %v2989_v63 = vld [vmem:[%s19760_s9 + $0x2968] sm:$0xff] }
 0x3d6   : > { %15049 = vmatprep.subr.bf16.mxu1 %v18144_v8  ;;  %v2968_v8 = vld [vmem:[%s19760_s9 + $0x28c0] sm:$0xff] }
 0x3d7   : > { %v18173_v46 = vcombine.low %v2968_v8, %v2972_v5 }
 0x3d8   : > { %14394 = vmatpush1.bf16.msra.mxu0 %v18141_v60  ;;  %v18174_v60 = vcombine.high %v2968_v8, %v2972_v5 }
 0x3d9   : > { %15050 = vmatpush1.bf16.msra.mxu1 %v18143_v10  ;;  %14404 = vmatprep.subr.bf16.mxu0 %v18150_v20  ;;  %v18176_v10 = vcombine.high %v2969_v26, %v2973_v17  ;;  %v2976_v20 = vld [vmem:[%s19760_s9 + $0x2900] sm:$0xff] }
 0x3da   : > { %15060 = vmatprep.subr.bf16.mxu1 %v18152_v23  ;;  %v2977_v23 = vld [vmem:[%s19760_s9 + $0x2908] sm:$0xff]  ;;  %v18181_v59 = vcombine.low %v2976_v20, %v2980_v44 }
 0x3db   : > { %14396 = vmatmul.mubr.bf16.vlgmr.msra.gmra.mrb[32].mxu0 %v20753_v53  ;;  %v18184_v31 = vcombine.high %v2977_v23, %v2981_v32 }
 0x3dc   : > { %15052 = vmatmul.mubr.bf16.vlgmr.msra.gmra.mrb[32].mxu1 %v20753_v53  ;;  %14405 = vmatpush1.bf16.msra.mxu0 %v18149_v35  ;;  %v18182_v35 = vcombine.high %v2976_v20, %v2980_v44 }
 0x3dd   : > { %14436 = vmatprep.mubr.bf16.mxu0 %v20757_v11  ;;  %15061 = vmatpush1.bf16.msra.mxu1 %v18151_v33  ;;  %v2988_v33 = vld [vmem:[%s19760_s9 + $0x2960] sm:$0xff] }
 0x3de   : > { %15092 = vmatprep.mubr.bf16.mxu1 %v20757_v11  ;;  %14406 = vmatprep.subr.bf16.mxu0 %v18158_v62  ;;  %v2985_v62 = vld [vmem:[%s19760_s9 + $0x2948] sm:$0xff]  ;;  %v18190_v50 = vcombine.high %v2984_v21, %v2988_v33  ;;  %v18189_v8 = vcombine.low %v2984_v21, %v2988_v33 }
 0x3df   : > { %15062 = vmatprep.subr.bf16.mxu1 %v18160_v45  ;;  %v18183_v45 = vcombine.low %v2977_v23, %v2981_v32  ;;  %v18192_v37 = vcombine.high %v2985_v62, %v2989_v63  ;;  %v18191_v5 = vcombine.low %v2985_v62, %v2989_v63 }
 0x3e0   : > { %14407 = vmatpush1.bf16.msra.mxu0 %v18157_v19  ;;  %v2992_v19 = vld [vmem:[%s19760_s9 + $0x2980] sm:$0xff] }
 0x3e1   : > { %15063 = vmatpush1.bf16.msra.mxu1 %v18159_v0  ;;  %14408 = vmatprep.subr.bf16.mxu0 %v18166_v4  ;;  %v2996_v0 = vld [vmem:[%s19760_s9 + $0x29a0] sm:$0xff]  ;;  %v2993_v4 = vld [vmem:[%s19760_s9 + $0x2988] sm:$0xff] }
 0x3e2   : > { %15064 = vmatprep.subr.bf16.mxu1 %v18168_v3  ;;  %v2997_v3 = vld [vmem:[%s19760_s9 + $0x29a8] sm:$0xff]  ;;  %v18198_v26 = vcombine.high %v2992_v19, %v2996_v0  ;;  %v18197_v20 = vcombine.low %v2992_v19, %v2996_v0 }
 0x3e3   : > { %v18200_v17 = vcombine.high %v2993_v4, %v2997_v3  ;;  %v18199_v44 = vcombine.low %v2993_v4, %v2997_v3 }
 0x3e4   : > { %14409 = vmatpush1.bf16.msra.mxu0 %v18165_v29  ;;  %v3000_v29 = vld [vmem:[%s19760_s9 + $0x29c0] sm:$0xff] }
 0x3e5   : > { %15065 = vmatpush1.bf16.msra.mxu1 %v18167_v6  ;;  %14410 = vmatprep.subr.bf16.mxu0 %v18174_v60  ;;  %v3004_v6 = vld [vmem:[%s19760_s9 + $0x29e0] sm:$0xff]  ;;  %v3001_v60 = vld [vmem:[%s19760_s9 + $0x29c8] sm:$0xff] }
 0x3e6   : > { %15066 = vmatprep.subr.bf16.mxu1 %v18176_v10  ;;  %v3005_v10 = vld [vmem:[%s19760_s9 + $0x29e8] sm:$0xff]  ;;  %v18206_v23 = vcombine.high %v3000_v29, %v3004_v6  ;;  %v18205_v21 = vcombine.low %v3000_v29, %v3004_v6 }
 0x3e7   : > { %v18208_v32 = vcombine.high %v3001_v60, %v3005_v10  ;;  %v18207_v33 = vcombine.low %v3001_v60, %v3005_v10 }
 0x3e8   : > { %14411 = vmatpush1.bf16.msra.mxu0 %v18173_v46  ;;  %v3008_v46 = vld [vmem:[%s19760_s9 + $0x2a00] sm:$0xff] }
 0x3e9   : > { %15067 = vmatpush1.bf16.msra.mxu1 %v18175_v54  ;;  %14412 = vmatprep.subr.bf16.mxu0 %v18182_v35  ;;  %v3012_v54 = vld [vmem:[%s19760_s9 + $0x2a20] sm:$0xff]  ;;  %v3009_v35 = vld [vmem:[%s19760_s9 + $0x2a08] sm:$0xff] }
 0x3ea   : > { %15068 = vmatprep.subr.bf16.mxu1 %v18184_v31  ;;  %v3013_v31 = vld [vmem:[%s19760_s9 + $0x2a28] sm:$0xff]  ;;  %v18214_v62 = vcombine.high %v3008_v46, %v3012_v54  ;;  %v18213_v19 = vcombine.low %v3008_v46, %v3012_v54 }
 0x3eb   : > { %v18216_v63 = vcombine.high %v3009_v35, %v3013_v31  ;;  %v18215_v0 = vcombine.low %v3009_v35, %v3013_v31 }
 0x3ec   : > { %14413 = vmatpush1.bf16.msra.mxu0 %v18181_v59  ;;  %v3016_v59 = vld [vmem:[%s19760_s9 + $0x2a40] sm:$0xff] }
 0x3ed   : > { %15069 = vmatpush1.bf16.msra.mxu1 %v18183_v45  ;;  %14414 = vmatprep.subr.bf16.mxu0 %v18190_v50  ;;  %v3020_v45 = vld [vmem:[%s19760_s9 + $0x2a60] sm:$0xff]  ;;  %v3017_v50 = vld [vmem:[%s19760_s9 + $0x2a48] sm:$0xff] }
 0x3ee   : > { %15070 = vmatprep.subr.bf16.mxu1 %v18192_v37  ;;  %v3021_v37 = vld [vmem:[%s19760_s9 + $0x2a68] sm:$0xff]  ;;  %v18222_v4 = vcombine.high %v3016_v59, %v3020_v45  ;;  %v18221_v29 = vcombine.low %v3016_v59, %v3020_v45 }
 0x3ef   : > { %v18224_v3 = vcombine.high %v3017_v50, %v3021_v37  ;;  %v18223_v6 = vcombine.low %v3017_v50, %v3021_v37 }
 0x3f0   : > { %14415 = vmatpush1.bf16.msra.mxu0 %v18189_v8  ;;  %v3024_v8 = vld [vmem:[%s19760_s9 + $0x2a80] sm:$0xff] }
 0x3f1   : > { %15071 = vmatpush1.bf16.msra.mxu1 %v18191_v5  ;;  %14416 = vmatprep.subr.bf16.mxu0 %v18198_v26  ;;  %v3028_v5 = vld [vmem:[%s19760_s9 + $0x2aa0] sm:$0xff]  ;;  %v3025_v26 = vld [vmem:[%s19760_s9 + $0x2a88] sm:$0xff] }
 0x3f2   : > { %15072 = vmatprep.subr.bf16.mxu1 %v18200_v17  ;;  %v3029_v17 = vld [vmem:[%s19760_s9 + $0x2aa8] sm:$0xff]  ;;  %v18230_v60 = vcombine.high %v3024_v8, %v3028_v5  ;;  %v18229_v46 = vcombine.low %v3024_v8, %v3028_v5 }
 0x3f3   : > { %v18232_v10 = vcombine.high %v3025_v26, %v3029_v17  ;;  %v18231_v54 = vcombine.low %v3025_v26, %v3029_v17 }
 0x3f4   : > { %14417 = vmatpush1.bf16.msra.mxu0 %v18197_v20  ;;  %v3032_v20 = vld [vmem:[%s19760_s9 + $0x2ac0] sm:$0xff] }
 0x3f5   : > { %15073 = vmatpush1.bf16.msra.mxu1 %v18199_v44  ;;  %14418 = vmatprep.subr.bf16.mxu0 %v18206_v23  ;;  %v3036_v44 = vld [vmem:[%s19760_s9 + $0x2ae0] sm:$0xff]  ;;  %v3033_v23 = vld [vmem:[%s19760_s9 + $0x2ac8] sm:$0xff] }
 0x3f6   : > { %15074 = vmatprep.subr.bf16.mxu1 %v18208_v32  ;;  %v3037_v32 = vld [vmem:[%s19760_s9 + $0x2ae8] sm:$0xff]  ;;  %v18238_v35 = vcombine.high %v3032_v20, %v3036_v44  ;;  %v18237_v59 = vcombine.low %v3032_v20, %v3036_v44 }
 0x3f7   : > { %v18240_v31 = vcombine.high %v3033_v23, %v3037_v32  ;;  %v18239_v45 = vcombine.low %v3033_v23, %v3037_v32 }
 0x3f8   : > { %14419 = vmatpush1.bf16.msra.mxu0 %v18205_v21  ;;  %v3040_v21 = vld [vmem:[%s19760_s9 + $0x2b00] sm:$0xff] }
 0x3f9   : > { %15075 = vmatpush1.bf16.msra.mxu1 %v18207_v33  ;;  %14420 = vmatprep.subr.bf16.mxu0 %v18214_v62  ;;  %v3044_v33 = vld [vmem:[%s19760_s9 + $0x2b20] sm:$0xff]  ;;  %v3041_v62 = vld [vmem:[%s19760_s9 + $0x2b08] sm:$0xff] }
 0x3fa   : > { %15076 = vmatprep.subr.bf16.mxu1 %v18216_v63  ;;  %v3045_v63 = vld [vmem:[%s19760_s9 + $0x2b28] sm:$0xff]  ;;  %v18246_v50 = vcombine.high %v3040_v21, %v3044_v33  ;;  %v18245_v8 = vcombine.low %v3040_v21, %v3044_v33 }
 0x3fb   : > { %v18248_v37 = vcombine.high %v3041_v62, %v3045_v63  ;;  %v18247_v5 = vcombine.low %v3041_v62, %v3045_v63  ;;  %v1588_v63 = vmul.f32 0.01, %v20054_v39 }
 0x3fc   : > { %14421 = vmatpush1.bf16.msra.mxu0 %v18213_v19  ;;  %v3048_v19 = vld [vmem:[%s19760_s9 + $0x2b40] sm:$0xff] }
 0x3fd   : > { %15077 = vmatpush1.bf16.msra.mxu1 %v18215_v0  ;;  %14422 = vmatprep.subr.bf16.mxu0 %v18222_v4  ;;  %v3052_v0 = vld [vmem:[%s19760_s9 + $0x2b60] sm:$0xff]  ;;  %v3049_v4 = vld [vmem:[%s19760_s9 + $0x2b48] sm:$0xff] }
 0x3fe   : > { %15078 = vmatprep.subr.bf16.mxu1 %v18224_v3  ;;  %v3053_v3 = vld [vmem:[%s19760_s9 + $0x2b68] sm:$0xff]  ;;  %v18254_v26 = vcombine.high %v3048_v19, %v3052_v0  ;;  %v18253_v20 = vcombine.low %v3048_v19, %v3052_v0  ;;  %v1591_v0 = vmul.f32 0.01, %v20061_v2 }
 0x3ff   : > { %v18256_v17 = vcombine.high %v3049_v4, %v3053_v3  ;;  %v18255_v44 = vcombine.low %v3049_v4, %v3053_v3  ;;  %v3077_v19 = vld [vmem:[%s19760_s9 + $0x2c28] sm:$0xff] }
 0x400   : > { %14423 = vmatpush1.bf16.msra.mxu0 %v18221_v29  ;;  %v3056_v29 = vld [vmem:[%s19760_s9 + $0x2b80] sm:$0xff] }
 0x401   : > { %15079 = vmatpush1.bf16.msra.mxu1 %v18223_v6  ;;  %14424 = vmatprep.subr.bf16.mxu0 %v18230_v60  ;;  %v3060_v6 = vld [vmem:[%s19760_s9 + $0x2ba0] sm:$0xff]  ;;  %v3057_v60 = vld [vmem:[%s19760_s9 + $0x2b88] sm:$0xff] }
 0x402   : > { %15080 = vmatprep.subr.bf16.mxu1 %v18232_v10  ;;  %v3061_v10 = vld [vmem:[%s19760_s9 + $0x2ba8] sm:$0xff]  ;;  %v18262_v23 = vcombine.high %v3056_v29, %v3060_v6  ;;  %v18261_v21 = vcombine.low %v3056_v29, %v3060_v6  ;;  %v3084_v29 = vld [vmem:[%s19760_s9 + $0x2c60] sm:$0xff]  ;;  %v1623_v6 = vsel %vm1559_vm7, %v20061_v2, %v1591_v0 }
 0x403   : > { %v18264_v32 = vcombine.high %v3057_v60, %v3061_v10  ;;  %v18263_v33 = vcombine.low %v3057_v60, %v3061_v10  ;;  %v3081_v10 = vld [vmem:[%s19760_s9 + $0x2c48] sm:$0xff] }
 0x404   : > { %14425 = vmatpush1.bf16.msra.mxu0 %v18229_v46  ;;  %v3064_v46 = vld [vmem:[%s19760_s9 + $0x2bc0] sm:$0xff] }
 0x405   : > { %15081 = vmatpush1.bf16.msra.mxu1 %v18231_v54  ;;  %14426 = vmatprep.subr.bf16.mxu0 %v18238_v35  ;;  %v3068_v54 = vld [vmem:[%s19760_s9 + $0x2be0] sm:$0xff]  ;;  %v3065_v35 = vld [vmem:[%s19760_s9 + $0x2bc8] sm:$0xff] }
 0x406   : > { %15082 = vmatprep.subr.bf16.mxu1 %v18240_v31  ;;  %v3069_v31 = vld [vmem:[%s19760_s9 + $0x2be8] sm:$0xff]  ;;  %v18270_v62 = vcombine.high %v3064_v46, %v3068_v54  ;;  %v18269_v4 = vcombine.low %v3064_v46, %v3068_v54  ;;  %v3092_v46 = vld [vmem:[%s19760_s9 + $0x2ca0] sm:$0xff]  ;;  %v20835_v54 = vpack.c.bf16 %v1623_v6, %v1623_v6 }
 0x407   : > { %v18271_v3 = vcombine.low %v3065_v35, %v3069_v31 }
 0x408   : > { %14427 = vmatpush1.bf16.msra.mxu0 %v18237_v59  ;;  %v18272_v59 = vcombine.high %v3065_v35, %v3069_v31  ;;  %v3089_v35 = vld [vmem:[%s19760_s9 + $0x2c88] sm:$0xff] }
 0x409   : > { %15083 = vmatpush1.bf16.msra.mxu1 %v18239_v45  ;;  %14428 = vmatprep.subr.bf16.mxu0 %v18246_v50  ;;  %v3072_v45 = vld [vmem:[%s19760_s9 + $0x2c00] sm:$0xff]  ;;  %v3093_v31 = vld [vmem:[%s19760_s9 + $0x2ca8] sm:$0xff] }
 0x40a   : > { %15084 = vmatprep.subr.bf16.mxu1 %v18248_v37  ;;  %v3076_v50 = vld [vmem:[%s19760_s9 + $0x2c20] sm:$0xff]  ;;  %v3073_v37 = vld [vmem:[%s19760_s9 + $0x2c08] sm:$0xff]  ;;  %v18295_v0 = vcombine.low %v3089_v35, %v3093_v31 }
 0x40b   : > { %v18277_v60 = vcombine.low %v3072_v45, %v3076_v50 }
 0x40c   : > { %14429 = vmatpush1.bf16.msra.mxu0 %v18245_v8  ;;  %v18278_v8 = vcombine.high %v3072_v45, %v3076_v50  ;;  %v3100_v45 = vld [vmem:[%s19760_s9 + $0x2ce0] sm:$0xff]  ;;  %v3097_v50 = vld [vmem:[%s19760_s9 + $0x2cc8] sm:$0xff] }
 0x40d   : > { %15085 = vmatpush1.bf16.msra.mxu1 %v18247_v5  ;;  %14430 = vmatprep.subr.bf16.mxu0 %v18254_v26  ;;  %v1620_v5 = vsel %vm1556_vm6, %v20054_v39, %v1588_v63  ;;  %v18280_v26 = vcombine.high %v3073_v37, %v3077_v19  ;;  %v18296_v63 = vcombine.high %v3089_v35, %v3093_v31 }
 0x40e   : > { %15086 = vmatprep.subr.bf16.mxu1 %v18256_v17  ;;  %v3080_v17 = vld [vmem:[%s19760_s9 + $0x2c40] sm:$0xff] }
 0x40f   : > { %v18286_v39 = vcombine.high %v3080_v17, %v3084_v29 }
 0x410   : > { %14431 = vmatpush1.bf16.msra.mxu0 %v18253_v20  ;;  %v3085_v20 = vld [vmem:[%s19760_s9 + $0x2c68] sm:$0xff] }
 0x411   : > { %15087 = vmatpush1.bf16.msra.mxu1 %v18255_v44  ;;  %14432 = vmatprep.subr.bf16.mxu0 %v18262_v23  ;;  %v20831_v44 = vpack.c.bf16 %v1620_v5, %v1620_v5  ;;  %v18279_v23 = vcombine.low %v3073_v37, %v3077_v19  ;;  %v18288_v2 = vcombine.high %v3081_v10, %v3085_v20  ;;  %v3101_v37 = vld [vmem:[%s19760_s9 + $0x2ce8] sm:$0xff]  ;;  %v3108_v5 = vld [vmem:[%s19760_s9 + $0x2d20] sm:$0xff] }
 0x412   : > { %15088 = vmatprep.subr.bf16.mxu1 %v18264_v32  ;;  %v3088_v32 = vld [vmem:[%s19760_s9 + $0x2c80] sm:$0xff]  ;;  %v18303_v6 = vcombine.low %v3097_v50, %v3101_v37 }
 0x413   : > { %v18293_v19 = vcombine.low %v3088_v32, %v3092_v46 }
 0x414   : > { %14433 = vmatpush1.bf16.msra.mxu0 %v18261_v21  ;;  %v18285_v21 = vcombine.low %v3080_v17, %v3084_v29  ;;  %v3109_v17 = vld [vmem:[%s19760_s9 + $0x2d28] sm:$0xff] }
 0x415   : > { %15089 = vmatpush1.bf16.msra.mxu1 %v18263_v33  ;;  %14434 = vmatprep.subr.bf16.mxu0 %v18270_v62  ;;  %v18287_v33 = vcombine.low %v3081_v10, %v3085_v20  ;;  %v18294_v62 = vcombine.high %v3088_v32, %v3092_v46  ;;  %v3112_v20 = vld [vmem:[%s19760_s9 + $0x2d40] sm:$0xff]  ;;  %v3117_v32 = vld [vmem:[%s19760_s9 + $0x2d68] sm:$0xff] }
 0x416   : > { %15090 = vmatprep.subr.bf16.mxu1 %v18272_v59  ;;  %v3096_v59 = vld [vmem:[%s19760_s9 + $0x2cc0] sm:$0xff] }
 0x417   : > { %v18301_v29 = vcombine.low %v3096_v59, %v3100_v45 }
 0x418   : > { %14435 = vmatpush1.bf16.msra.mxu0 %v18269_v4  ;;  %v18302_v4 = vcombine.high %v3096_v59, %v3100_v45 }
 0x419   : > { %15091 = vmatpush1.bf16.msra.mxu1 %v18271_v3  ;;  %14445 = vmatprep.subr.bf16.mxu0 %v18278_v8  ;;  %v18304_v3 = vcombine.high %v3097_v50, %v3101_v37  ;;  %v3104_v8 = vld [vmem:[%s19760_s9 + $0x2d00] sm:$0xff] }
 0x41a   : > { %15101 = vmatprep.subr.bf16.mxu1 %v18280_v26  ;;  %v3105_v26 = vld [vmem:[%s19760_s9 + $0x2d08] sm:$0xff]  ;;  %v18309_v46 = vcombine.low %v3104_v8, %v3108_v5 }
 0x41b   : > { %14437 = vmatmul.mubr.bf16.vlgmr.msra.gmra.mrb[32].mxu0 %v20831_v44  ;;  %v18312_v10 = vcombine.high %v3105_v26, %v3109_v17 }
 0x41c   : > { %15093 = vmatmul.mubr.bf16.vlgmr.msra.gmra.mrb[32].mxu1 %v20831_v44  ;;  %14446 = vmatpush1.bf16.msra.mxu0 %v18277_v60  ;;  %v18310_v60 = vcombine.high %v3104_v8, %v3108_v5 }
 0x41d   : > { %14477 = vmatprep.mubr.bf16.mxu0 %v20835_v54  ;;  %15102 = vmatpush1.bf16.msra.mxu1 %v18279_v23  ;;  %v3116_v23 = vld [vmem:[%s19760_s9 + $0x2d60] sm:$0xff] }
 0x41e   : > { %15133 = vmatprep.mubr.bf16.mxu1 %v20835_v54  ;;  %14447 = vmatprep.subr.bf16.mxu0 %v18286_v39  ;;  %v3113_v39 = vld [vmem:[%s19760_s9 + $0x2d48] sm:$0xff]  ;;  %v18318_v35 = vcombine.high %v3112_v20, %v3116_v23  ;;  %v18317_v59 = vcombine.low %v3112_v20, %v3116_v23 }
 0x41f   : > { %15103 = vmatprep.subr.bf16.mxu1 %v18288_v2  ;;  %v18311_v2 = vcombine.low %v3105_v26, %v3109_v17  ;;  %v18320_v31 = vcombine.high %v3113_v39, %v3117_v32  ;;  %v18319_v45 = vcombine.low %v3113_v39, %v3117_v32 }
 0x420   : > { %14448 = vmatpush1.bf16.msra.mxu0 %v18285_v21  ;;  %v3120_v21 = vld [vmem:[%s19760_s9 + $0x2d80] sm:$0xff] }
 0x421   : > { %15104 = vmatpush1.bf16.msra.mxu1 %v18287_v33  ;;  %14449 = vmatprep.subr.bf16.mxu0 %v18294_v62  ;;  %v3124_v33 = vld [vmem:[%s19760_s9 + $0x2da0] sm:$0xff]  ;;  %v3121_v62 = vld [vmem:[%s19760_s9 + $0x2d88] sm:$0xff] }
 0x422   : > { %15105 = vmatprep.subr.bf16.mxu1 %v18296_v63  ;;  %v3125_v63 = vld [vmem:[%s19760_s9 + $0x2da8] sm:$0xff]  ;;  %v18326_v50 = vcombine.high %v3120_v21, %v3124_v33  ;;  %v18325_v8 = vcombine.low %v3120_v21, %v3124_v33 }
 0x423   : > { %v18328_v37 = vcombine.high %v3121_v62, %v3125_v63  ;;  %v18327_v5 = vcombine.low %v3121_v62, %v3125_v63 }
 0x424   : > { %14450 = vmatpush1.bf16.msra.mxu0 %v18293_v19  ;;  %v3128_v19 = vld [vmem:[%s19760_s9 + $0x2dc0] sm:$0xff] }
 0x425   : > { %15106 = vmatpush1.bf16.msra.mxu1 %v18295_v0  ;;  %14451 = vmatprep.subr.bf16.mxu0 %v18302_v4  ;;  %v3132_v0 = vld [vmem:[%s19760_s9 + $0x2de0] sm:$0xff]  ;;  %v3129_v4 = vld [vmem:[%s19760_s9 + $0x2dc8] sm:$0xff] }
 0x426   : > { %15107 = vmatprep.subr.bf16.mxu1 %v18304_v3  ;;  %v3133_v3 = vld [vmem:[%s19760_s9 + $0x2de8] sm:$0xff]  ;;  %v18334_v26 = vcombine.high %v3128_v19, %v3132_v0  ;;  %v18333_v20 = vcombine.low %v3128_v19, %v3132_v0 }
 0x427   : > { %v18336_v17 = vcombine.high %v3129_v4, %v3133_v3  ;;  %v18335_v23 = vcombine.low %v3129_v4, %v3133_v3 }
 0x428   : > { %14452 = vmatpush1.bf16.msra.mxu0 %v18301_v29  ;;  %v3136_v29 = vld [vmem:[%s19760_s9 + $0x2e00] sm:$0xff] }
 0x429   : > { %15108 = vmatpush1.bf16.msra.mxu1 %v18303_v6  ;;  %14453 = vmatprep.subr.bf16.mxu0 %v18310_v60  ;;  %v3140_v6 = vld [vmem:[%s19760_s9 + $0x2e20] sm:$0xff]  ;;  %v3137_v60 = vld [vmem:[%s19760_s9 + $0x2e08] sm:$0xff] }
 0x42a   : > { %15109 = vmatprep.subr.bf16.mxu1 %v18312_v10  ;;  %v3141_v10 = vld [vmem:[%s19760_s9 + $0x2e28] sm:$0xff]  ;;  %v18342_v39 = vcombine.high %v3136_v29, %v3140_v6  ;;  %v18341_v21 = vcombine.low %v3136_v29, %v3140_v6 }
 0x42b   : > { %v18344_v32 = vcombine.high %v3137_v60, %v3141_v10  ;;  %v18343_v33 = vcombine.low %v3137_v60, %v3141_v10 }
 0x42c   : > { %14454 = vmatpush1.bf16.msra.mxu0 %v18309_v46  ;;  %v3144_v46 = vld [vmem:[%s19760_s9 + $0x2e40] sm:$0xff] }
 0x42d   : > { %15110 = vmatpush1.bf16.msra.mxu1 %v18311_v2  ;;  %14455 = vmatprep.subr.bf16.mxu0 %v18318_v35  ;;  %v3148_v2 = vld [vmem:[%s19760_s9 + $0x2e60] sm:$0xff]  ;;  %v3145_v35 = vld [vmem:[%s19760_s9 + $0x2e48] sm:$0xff] }
 0x42e   : > { %15111 = vmatprep.subr.bf16.mxu1 %v18320_v31  ;;  %v3149_v31 = vld [vmem:[%s19760_s9 + $0x2e68] sm:$0xff]  ;;  %v18350_v62 = vcombine.high %v3144_v46, %v3148_v2  ;;  %v18349_v19 = vcombine.low %v3144_v46, %v3148_v2 }
 0x42f   : > { %v18352_v63 = vcombine.high %v3145_v35, %v3149_v31  ;;  %v18351_v0 = vcombine.low %v3145_v35, %v3149_v31 }
 0x430   : > { %14456 = vmatpush1.bf16.msra.mxu0 %v18317_v59  ;;  %v3152_v59 = vld [vmem:[%s19760_s9 + $0x2e80] sm:$0xff] }
 0x431   : > { %15112 = vmatpush1.bf16.msra.mxu1 %v18319_v45  ;;  %14457 = vmatprep.subr.bf16.mxu0 %v18326_v50  ;;  %v3156_v45 = vld [vmem:[%s19760_s9 + $0x2ea0] sm:$0xff]  ;;  %v3153_v50 = vld [vmem:[%s19760_s9 + $0x2e88] sm:$0xff] }
 0x432   : > { %15113 = vmatprep.subr.bf16.mxu1 %v18328_v37  ;;  %v3157_v37 = vld [vmem:[%s19760_s9 + $0x2ea8] sm:$0xff]  ;;  %v18358_v4 = vcombine.high %v3152_v59, %v3156_v45  ;;  %v18357_v29 = vcombine.low %v3152_v59, %v3156_v45 }
 0x433   : > { %v18360_v3 = vcombine.high %v3153_v50, %v3157_v37  ;;  %v18359_v6 = vcombine.low %v3153_v50, %v3157_v37 }
 0x434   : > { %14458 = vmatpush1.bf16.msra.mxu0 %v18325_v8  ;;  %v3160_v8 = vld [vmem:[%s19760_s9 + $0x2ec0] sm:$0xff] }
 0x435   : > { %15114 = vmatpush1.bf16.msra.mxu1 %v18327_v5  ;;  %14459 = vmatprep.subr.bf16.mxu0 %v18334_v26  ;;  %v3164_v5 = vld [vmem:[%s19760_s9 + $0x2ee0] sm:$0xff]  ;;  %v3161_v26 = vld [vmem:[%s19760_s9 + $0x2ec8] sm:$0xff] }
 0x436   : > { %15115 = vmatprep.subr.bf16.mxu1 %v18336_v17  ;;  %v3165_v17 = vld [vmem:[%s19760_s9 + $0x2ee8] sm:$0xff]  ;;  %v18366_v60 = vcombine.high %v3160_v8, %v3164_v5  ;;  %v18365_v46 = vcombine.low %v3160_v8, %v3164_v5  ;;  %v20891_v8 = vld [vmem:[#allocation7 + $0x18] sm:$0xff] }
 0x437   : > { %v18368_v10 = vcombine.high %v3161_v26, %v3165_v17  ;;  %v18367_v2 = vcombine.low %v3161_v26, %v3165_v17  ;;  %v499_v5 = vrot.slane %v20891_v8, %v19908_v18 }
 0x438   : > { %14460 = vmatpush1.bf16.msra.mxu0 %v18333_v20  ;;  %v3168_v20 = vld [vmem:[%s19760_s9 + $0x2f00] sm:$0xff] }
 0x439   : > { %15116 = vmatpush1.bf16.msra.mxu1 %v18335_v23  ;;  %14461 = vmatprep.subr.bf16.mxu0 %v18342_v39  ;;  %v3172_v23 = vld [vmem:[%s19760_s9 + $0x2f20] sm:$0xff]  ;;  %v3169_v39 = vld [vmem:[%s19760_s9 + $0x2f08] sm:$0xff] }
 0x43a   : > { %15117 = vmatprep.subr.bf16.mxu1 %v18344_v32  ;;  %v3173_v32 = vld [vmem:[%s19760_s9 + $0x2f28] sm:$0xff]  ;;  %v18374_v35 = vcombine.high %v3168_v20, %v3172_v23  ;;  %v18373_v59 = vcombine.low %v3168_v20, %v3172_v23 }
 0x43b   : > { %v18376_v31 = vcombine.high %v3169_v39, %v3173_v32  ;;  %v18375_v45 = vcombine.low %v3169_v39, %v3173_v32  ;;  %v3193_v20 = vld [vmem:[%s19760_s9 + $0x2fc8] sm:$0xff]  ;;  %v1409_v39 = vadd.f32 %v20078_v40, %v499_v5 }
 0x43c   : > { %14462 = vmatpush1.bf16.msra.mxu0 %v18341_v21  ;;  %v3176_v21 = vld [vmem:[%s19760_s9 + $0x2f40] sm:$0xff]  ;;  %v3197_v23 = vld [vmem:[%s19760_s9 + $0x2fe8] sm:$0xff] }
 0x43d   : > { %15118 = vmatpush1.bf16.msra.mxu1 %v18343_v33  ;;  %14463 = vmatprep.subr.bf16.mxu0 %v18350_v62  ;;  %v3180_v33 = vld [vmem:[%s19760_s9 + $0x2f60] sm:$0xff]  ;;  %v3177_v62 = vld [vmem:[%s19760_s9 + $0x2f48] sm:$0xff]  ;;  %vm1561_vm9 = vcmp.gt.f32.partialorder %v1409_v39, 0.0 }
 0x43e   : > { %15119 = vmatprep.subr.bf16.mxu1 %v18352_v63  ;;  %v3181_v63 = vld [vmem:[%s19760_s9 + $0x2f68] sm:$0xff]  ;;  %v18382_v50 = vcombine.high %v3176_v21, %v3180_v33  ;;  %v18381_v26 = vcombine.low %v3176_v21, %v3180_v33  ;;  %v3200_v21 = vld [vmem:[%s19760_s9 + $0x3000] sm:$0xff] }
 0x43f   : > { %v18384_v37 = vcombine.high %v3177_v62, %v3181_v63  ;;  %v18383_v17 = vcombine.low %v3177_v62, %v3181_v63  ;;  %v3204_v33 = vld [vmem:[%s19760_s9 + $0x3020] sm:$0xff]  ;;  %v3201_v62 = vld [vmem:[%s19760_s9 + $0x3008] sm:$0xff] }
 0x440   : > { %14464 = vmatpush1.bf16.msra.mxu0 %v18349_v19  ;;  %v3184_v19 = vld [vmem:[%s19760_s9 + $0x2f80] sm:$0xff]  ;;  %v3205_v63 = vld [vmem:[%s19760_s9 + $0x3028] sm:$0xff]  ;;  %v18405_v5 = vcombine.low %v3200_v21, %v3204_v33 }
 0x441   : > { %15120 = vmatpush1.bf16.msra.mxu1 %v18351_v0  ;;  %14465 = vmatprep.subr.bf16.mxu0 %v18358_v4  ;;  %v3188_v0 = vld [vmem:[%s19760_s9 + $0x2fa0] sm:$0xff]  ;;  %v3185_v4 = vld [vmem:[%s19760_s9 + $0x2f88] sm:$0xff] }
 0x442   : > { %15121 = vmatprep.subr.bf16.mxu1 %v18360_v3  ;;  %v3189_v3 = vld [vmem:[%s19760_s9 + $0x2fa8] sm:$0xff]  ;;  %v18389_v32 = vcombine.low %v3184_v19, %v3188_v0 }
 0x444   : > { %14466 = vmatpush1.bf16.msra.mxu0 %v18357_v29  ;;  %v18390_v29 = vcombine.high %v3184_v19, %v3188_v0  ;;  %v18408_v19 = vcombine.high %v3201_v62, %v3205_v63  ;;  %v3208_v0 = vld [vmem:[%s19760_s9 + $0x3040] sm:$0xff] }
 0x445   : > { %15122 = vmatpush1.bf16.msra.mxu1 %v18359_v6  ;;  %14467 = vmatprep.subr.bf16.mxu0 %v18366_v60  ;;  %v18392_v6 = vcombine.high %v3185_v4, %v3189_v3  ;;  %v3192_v60 = vld [vmem:[%s19760_s9 + $0x2fc0] sm:$0xff] }
 0x446   : > { %15123 = vmatprep.subr.bf16.mxu1 %v18368_v10  ;;  %v3196_v10 = vld [vmem:[%s19760_s9 + $0x2fe0] sm:$0xff] }
 0x447   : > { %v18397_v40 = vcombine.low %v3192_v60, %v3196_v10 }
 0x448   : > { %14468 = vmatpush1.bf16.msra.mxu0 %v18365_v46  ;;  %v18391_v46 = vcombine.low %v3185_v4, %v3189_v3  ;;  %v3212_v4 = vld [vmem:[%s19760_s9 + $0x3060] sm:$0xff] }
 0x449   : > { %15124 = vmatpush1.bf16.msra.mxu1 %v18367_v2  ;;  %14469 = vmatprep.subr.bf16.mxu0 %v18374_v35  ;;  %v18398_v2 = vcombine.high %v3192_v60, %v3196_v10  ;;  %v1590_v35 = vmul.f32 0.01, %v20058_v55  ;;  %v3216_v60 = vld [vmem:[%s19760_s9 + $0x3080] sm:$0xff] }
 0x44a   : > { %15125 = vmatprep.subr.bf16.mxu1 %v18376_v31  ;;  %v18400_v31 = vcombine.high %v3193_v20, %v3197_v23  ;;  %v3220_v10 = vld [vmem:[%s19760_s9 + $0x30a0] sm:$0xff] }
 0x44c   : > { %14470 = vmatpush1.bf16.msra.mxu0 %v18373_v59  ;;  %v1593_v59 = vmul.f32 0.01, %v1409_v39 }
 0x44d   : > { %15126 = vmatpush1.bf16.msra.mxu1 %v18375_v45  ;;  %14471 = vmatprep.subr.bf16.mxu0 %v18382_v50  ;;  %v18399_v45 = vcombine.low %v3193_v20, %v3197_v23  ;;  %v18406_v50 = vcombine.high %v3200_v21, %v3204_v33  ;;  %v3224_v21 = vld [vmem:[%s19760_s9 + $0x30c0] sm:$0xff] }
 0x44e   : > { %15127 = vmatprep.subr.bf16.mxu1 %v18384_v37  ;;  %v1622_v37 = vsel %vm1558_vm8, %v20058_v55, %v1590_v35  ;;  %v1625_v3 = vsel %vm1561_vm9, %v1409_v39, %v1593_v59  ;;  %v18414_v55 = vcombine.high %v3208_v0, %v3212_v4  ;;  %v3217_v39 = vld [vmem:[%s19760_s9 + $0x3088] sm:$0xff]  ;;  %v18422_v35 = vcombine.high %v3216_v60, %v3220_v10  ;;  %v3228_v33 = vld [vmem:[%s19760_s9 + $0x30e0] sm:$0xff] }
 0x44f   : > { %v20915_v20 = vpack.c.bf16 %v1625_v3, %v1625_v3  ;;  %v18421_v59 = vcombine.low %v3216_v60, %v3220_v10  ;;  %v18429_v3 = vcombine.low %v3224_v21, %v3228_v33  ;;  %v3241_v60 = vld [vmem:[%s19760_s9 + $0x3148] sm:$0xff] }
 0x450   : > { %14472 = vmatpush1.bf16.msra.mxu0 %v18381_v26  ;;  %v3209_v26 = vld [vmem:[%s19760_s9 + $0x3048] sm:$0xff] }
 0x451   : > { %15128 = vmatpush1.bf16.msra.mxu1 %v18383_v17  ;;  %14473 = vmatprep.subr.bf16.mxu0 %v18390_v29  ;;  %v3213_v17 = vld [vmem:[%s19760_s9 + $0x3068] sm:$0xff]  ;;  %v20911_v29 = vpack.c.bf16 %v1622_v37, %v1622_v37  ;;  %v3232_v37 = vld [vmem:[%s19760_s9 + $0x3100] sm:$0xff] }
 0x452   : > { %15129 = vmatprep.subr.bf16.mxu1 %v18392_v6  ;;  %v18407_v6 = vcombine.low %v3201_v62, %v3205_v63  ;;  %v18416_v23 = vcombine.high %v3209_v26, %v3213_v17  ;;  %v3225_v62 = vld [vmem:[%s19760_s9 + $0x30c8] sm:$0xff] }
 0x453   : > { %v3229_v63 = vld [vmem:[%s19760_s9 + $0x30e8] sm:$0xff] }
 0x454   : > { %14474 = vmatpush1.bf16.msra.mxu0 %v18389_v32  ;;  %v3221_v32 = vld [vmem:[%s19760_s9 + $0x30a8] sm:$0xff] }
 0x455   : > { %15130 = vmatpush1.bf16.msra.mxu1 %v18391_v46  ;;  %14475 = vmatprep.subr.bf16.mxu0 %v18398_v2  ;;  %v18413_v46 = vcombine.low %v3208_v0, %v3212_v4  ;;  %v18415_v2 = vcombine.low %v3209_v26, %v3213_v17  ;;  %v3233_v0 = vld [vmem:[%s19760_s9 + $0x3108] sm:$0xff] }
 0x456   : > { %15131 = vmatprep.subr.bf16.mxu1 %v18400_v31  ;;  %v18424_v31 = vcombine.high %v3217_v39, %v3221_v32  ;;  %v3237_v4 = vld [vmem:[%s19760_s9 + $0x3128] sm:$0xff] }
 0x457   : > { %v18440_v17 = vcombine.high %v3233_v0, %v3237_v4  ;;  %v3245_v10 = vld [vmem:[%s19760_s9 + $0x3168] sm:$0xff] }
 0x458   : > { %14476 = vmatpush1.bf16.msra.mxu0 %v18397_v40  ;;  %v18423_v40 = vcombine.low %v3217_v39, %v3221_v32  ;;  %v18439_v39 = vcombine.low %v3233_v0, %v3237_v4 }
 0x459   : > { %15132 = vmatpush1.bf16.msra.mxu1 %v18399_v45  ;;  %14486 = vmatprep.subr.bf16.mxu0 %v18406_v50  ;;  %v18430_v45 = vcombine.high %v3224_v21, %v3228_v33  ;;  %v18432_v50 = vcombine.high %v3225_v62, %v3229_v63  ;;  %v3253_v21 = vld [vmem:[%s19760_s9 + $0x31a8] sm:$0xff] }
 0x45a   : > { %15142 = vmatprep.subr.bf16.mxu1 %v18408_v19  ;;  %v3236_v19 = vld [vmem:[%s19760_s9 + $0x3120] sm:$0xff] }
 0x45b   : > { %14478 = vmatmul.mubr.bf16.vlgmr.msra.gmra.mrb[32].mxu0 %v20911_v29  ;;  %v18438_v26 = vcombine.high %v3232_v37, %v3236_v19 }
 0x45c   : > { %15134 = vmatmul.mubr.bf16.vlgmr.msra.gmra.mrb[32].mxu1 %v20911_v29  ;;  %14487 = vmatpush1.bf16.msra.mxu0 %v18405_v5  ;;  %v18431_v5 = vcombine.low %v3225_v62, %v3229_v63  ;;  %v18447_v62 = vcombine.low %v3241_v60, %v3245_v10 }
 0x45d   : > { %14518 = vmatprep.mubr.bf16.mxu0 %v20915_v20  ;;  %15143 = vmatpush1.bf16.msra.mxu1 %v18407_v6  ;;  %v3240_v6 = vld [vmem:[%s19760_s9 + $0x3140] sm:$0xff] }
 0x45e   : > { %15174 = vmatprep.mubr.bf16.mxu1 %v20915_v20  ;;  %14488 = vmatprep.subr.bf16.mxu0 %v18414_v55  ;;  %v3244_v55 = vld [vmem:[%s19760_s9 + $0x3160] sm:$0xff] }
 0x45f   : > { %15144 = vmatprep.subr.bf16.mxu1 %v18416_v23  ;;  %v18437_v23 = vcombine.low %v3232_v37, %v3236_v19  ;;  %v18446_v32 = vcombine.high %v3240_v6, %v3244_v55  ;;  %v18445_v33 = vcombine.low %v3240_v6, %v3244_v55  ;;  %v3261_v37 = vld [vmem:[%s19760_s9 + $0x31e8] sm:$0xff] }
 0x460   : > { %14489 = vmatpush1.bf16.msra.mxu0 %v18413_v46  ;;  %v18448_v46 = vcombine.high %v3241_v60, %v3245_v10  ;;  %v3269_v6 = vld [vmem:[%s19760_s9 + $0x3228] sm:$0xff] }
 0x461   : > { %15145 = vmatpush1.bf16.msra.mxu1 %v18415_v2  ;;  %14490 = vmatprep.subr.bf16.mxu0 %v18422_v35  ;;  %v3248_v2 = vld [vmem:[%s19760_s9 + $0x3180] sm:$0xff] }
 0x462   : > { %15146 = vmatprep.subr.bf16.mxu1 %v18424_v31  ;;  %v3252_v35 = vld [vmem:[%s19760_s9 + $0x31a0] sm:$0xff]  ;;  %v3249_v31 = vld [vmem:[%s19760_s9 + $0x3188] sm:$0xff] }
 0x463   : > { %v18454_v63 = vcombine.high %v3248_v2, %v3252_v35  ;;  %v18453_v19 = vcombine.low %v3248_v2, %v3252_v35  ;;  %v18455_v0 = vcombine.low %v3249_v31, %v3253_v21  ;;  %v3277_v2 = vld [vmem:[%s19760_s9 + $0x3268] sm:$0xff] }
 0x464   : > { %14491 = vmatpush1.bf16.msra.mxu0 %v18421_v59  ;;  %v18456_v59 = vcombine.high %v3249_v31, %v3253_v21 }
 0x465   : > { %15147 = vmatpush1.bf16.msra.mxu1 %v18423_v40  ;;  %14492 = vmatprep.subr.bf16.mxu0 %v18430_v45  ;;  %v3256_v40 = vld [vmem:[%s19760_s9 + $0x31c0] sm:$0xff] }
 0x466   : > { %15148 = vmatprep.subr.bf16.mxu1 %v18432_v50  ;;  %v3260_v45 = vld [vmem:[%s19760_s9 + $0x31e0] sm:$0xff]  ;;  %v3257_v50 = vld [vmem:[%s19760_s9 + $0x31c8] sm:$0xff] }
 0x467   : > { %v18462_v4 = vcombine.high %v3256_v40, %v3260_v45  ;;  %v18461_v55 = vcombine.low %v3256_v40, %v3260_v45  ;;  %v18463_v60 = vcombine.low %v3257_v50, %v3261_v37  ;;  %v3285_v40 = vld [vmem:[%s19760_s9 + $0x32a8] sm:$0xff] }
 0x468   : > { %14493 = vmatpush1.bf16.msra.mxu0 %v18429_v3  ;;  %v18464_v3 = vcombine.high %v3257_v50, %v3261_v37 }
 0x469   : > { %15149 = vmatpush1.bf16.msra.mxu1 %v18431_v5  ;;  %14494 = vmatprep.subr.bf16.mxu0 %v18438_v26  ;;  %v3264_v5 = vld [vmem:[%s19760_s9 + $0x3200] sm:$0xff] }
 0x46a   : > { %15150 = vmatprep.subr.bf16.mxu1 %v18440_v17  ;;  %v3268_v26 = vld [vmem:[%s19760_s9 + $0x3220] sm:$0xff]  ;;  %v3265_v17 = vld [vmem:[%s19760_s9 + $0x3208] sm:$0xff] }
 0x46b   : > { %v18470_v10 = vcombine.high %v3264_v5, %v3268_v26  ;;  %v18469_v35 = vcombine.low %v3264_v5, %v3268_v26  ;;  %v18471_v31 = vcombine.low %v3265_v17, %v3269_v6  ;;  %v3293_v5 = vld [vmem:[%s19760_s9 + $0x32e8] sm:$0xff] }
 0x46c   : > { %14495 = vmatpush1.bf16.msra.mxu0 %v18437_v23  ;;  %v18472_v23 = vcombine.high %v3265_v17, %v3269_v6 }
 0x46d   : > { %15151 = vmatpush1.bf16.msra.mxu1 %v18439_v39  ;;  %14496 = vmatprep.subr.bf16.mxu0 %v18446_v32  ;;  %v3272_v39 = vld [vmem:[%s19760_s9 + $0x3240] sm:$0xff] }
 0x46e   : > { %15152 = vmatprep.subr.bf16.mxu1 %v18448_v46  ;;  %v3276_v32 = vld [vmem:[%s19760_s9 + $0x3260] sm:$0xff]  ;;  %v3273_v46 = vld [vmem:[%s19760_s9 + $0x3248] sm:$0xff] }
 0x46f   : > { %v18478_v21 = vcombine.high %v3272_v39, %v3276_v32  ;;  %v18477_v45 = vcombine.low %v3272_v39, %v3276_v32  ;;  %v18479_v50 = vcombine.low %v3273_v46, %v3277_v2  ;;  %v3301_v39 = vld [vmem:[%s19760_s9 + $0x3328] sm:$0xff] }
 0x470   : > { %14497 = vmatpush1.bf16.msra.mxu0 %v18445_v33  ;;  %v18480_v33 = vcombine.high %v3273_v46, %v3277_v2 }
 0x471   : > { %15153 = vmatpush1.bf16.msra.mxu1 %v18447_v62  ;;  %14498 = vmatprep.subr.bf16.mxu0 %v18454_v63  ;;  %v3280_v62 = vld [vmem:[%s19760_s9 + $0x3280] sm:$0xff] }
 0x472   : > { %15154 = vmatprep.subr.bf16.mxu1 %v18456_v59  ;;  %v3284_v63 = vld [vmem:[%s19760_s9 + $0x32a0] sm:$0xff]  ;;  %v3281_v59 = vld [vmem:[%s19760_s9 + $0x3288] sm:$0xff] }
 0x473   : > { %v18486_v37 = vcombine.high %v3280_v62, %v3284_v63  ;;  %v18485_v26 = vcombine.low %v3280_v62, %v3284_v63  ;;  %v18487_v17 = vcombine.low %v3281_v59, %v3285_v40  ;;  %v3309_v62 = vld [vmem:[%s19760_s9 + $0x3368] sm:$0xff] }
 0x474   : > { %14499 = vmatpush1.bf16.msra.mxu0 %v18453_v19  ;;  %v18488_v19 = vcombine.high %v3281_v59, %v3285_v40 }
 0x475   : > { %15155 = vmatpush1.bf16.msra.mxu1 %v18455_v0  ;;  %14500 = vmatprep.subr.bf16.mxu0 %v18462_v4  ;;  %v3288_v0 = vld [vmem:[%s19760_s9 + $0x32c0] sm:$0xff] }
 0x476   : > { %15156 = vmatprep.subr.bf16.mxu1 %v18464_v3  ;;  %v3292_v4 = vld [vmem:[%s19760_s9 + $0x32e0] sm:$0xff]  ;;  %v3289_v3 = vld [vmem:[%s19760_s9 + $0x32c8] sm:$0xff] }
 0x477   : > { %v18494_v6 = vcombine.high %v3288_v0, %v3292_v4  ;;  %v18493_v32 = vcombine.low %v3288_v0, %v3292_v4  ;;  %v18495_v46 = vcombine.low %v3289_v3, %v3293_v5  ;;  %v3313_v0 = vld [vmem:[%s19760_s9 + $0x3388] sm:$0xff] }
 0x478   : > { %14501 = vmatpush1.bf16.msra.mxu0 %v18461_v55  ;;  %v18496_v55 = vcombine.high %v3289_v3, %v3293_v5  ;;  %v3317_v4 = vld [vmem:[%s19760_s9 + $0x33a8] sm:$0xff] }
 0x479   : > { %15157 = vmatpush1.bf16.msra.mxu1 %v18463_v60  ;;  %14502 = vmatprep.subr.bf16.mxu0 %v18470_v10  ;;  %v3296_v60 = vld [vmem:[%s19760_s9 + $0x3300] sm:$0xff] }
 0x47a   : > { %15158 = vmatprep.subr.bf16.mxu1 %v18472_v23  ;;  %v3300_v10 = vld [vmem:[%s19760_s9 + $0x3320] sm:$0xff]  ;;  %v3297_v23 = vld [vmem:[%s19760_s9 + $0x3308] sm:$0xff] }
 0x47b   : > { %v18502_v2 = vcombine.high %v3296_v60, %v3300_v10  ;;  %v18501_v63 = vcombine.low %v3296_v60, %v3300_v10  ;;  %v18503_v59 = vcombine.low %v3297_v23, %v3301_v39  ;;  %v3321_v60 = vld [vmem:[%s19760_s9 + $0x33c8] sm:$0xff] }
 0x47c   : > { %14503 = vmatpush1.bf16.msra.mxu0 %v18469_v35  ;;  %v18504_v35 = vcombine.high %v3297_v23, %v3301_v39  ;;  %v3325_v10 = vld [vmem:[%s19760_s9 + $0x33e8] sm:$0xff]  ;;  %v18519_v39 = vcombine.low %v3313_v0, %v3317_v4 }
 0x47d   : > { %15159 = vmatpush1.bf16.msra.mxu1 %v18471_v31  ;;  %14504 = vmatprep.subr.bf16.mxu0 %v18478_v21  ;;  %v3304_v31 = vld [vmem:[%s19760_s9 + $0x3340] sm:$0xff] }
 0x47e   : > { %15160 = vmatprep.subr.bf16.mxu1 %v18480_v33  ;;  %v3308_v21 = vld [vmem:[%s19760_s9 + $0x3360] sm:$0xff]  ;;  %v3305_v33 = vld [vmem:[%s19760_s9 + $0x3348] sm:$0xff] }
 0x47f   : > { %v18510_v40 = vcombine.high %v3304_v31, %v3308_v21  ;;  %v18509_v3 = vcombine.low %v3304_v31, %v3308_v21  ;;  %v18511_v5 = vcombine.low %v3305_v33, %v3309_v62  ;;  %v3329_v31 = vld [vmem:[%s19760_s9 + $0x3408] sm:$0xff] }
 0x480   : > { %14505 = vmatpush1.bf16.msra.mxu0 %v18477_v45  ;;  %v495_v45 = vrot.slane %v20891_v8, %v19903_v16  ;;  %v18520_v8 = vcombine.high %v3313_v0, %v3317_v4  ;;  %v3333_v21 = vld [vmem:[%s19760_s9 + $0x3428] sm:$0xff] }
 0x481   : > { %15161 = vmatpush1.bf16.msra.mxu1 %v18479_v50  ;;  %14506 = vmatprep.subr.bf16.mxu0 %v18486_v37  ;;  %v18512_v50 = vcombine.high %v3305_v33, %v3309_v62  ;;  %v3312_v37 = vld [vmem:[%s19760_s9 + $0x3380] sm:$0xff]  ;;  %v1595_v33 = vmul.f32 0.01, %v20083_v57  ;;  %v3337_v4 = vld [vmem:[%s19760_s9 + $0x3448] sm:$0xff] }
 0x482   : > { %15162 = vmatprep.subr.bf16.mxu1 %v18488_v19  ;;  %v3316_v19 = vld [vmem:[%s19760_s9 + $0x33a0] sm:$0xff] }
 0x483   : > { %v18517_v23 = vcombine.low %v3312_v37, %v3316_v19 }
 0x484   : > { %14507 = vmatpush1.bf16.msra.mxu0 %v18485_v26  ;;  %v18518_v26 = vcombine.high %v3312_v37, %v3316_v19  ;;  %v3340_v37 = vld [vmem:[%s19760_s9 + $0x3460] sm:$0xff]  ;;  %v1627_v19 = vsel %vm1563_vm11, %v20083_v57, %v1595_v33 }
 0x485   : > { %15163 = vmatpush1.bf16.msra.mxu1 %v18487_v17  ;;  %14508 = vmatprep.subr.bf16.mxu0 %v18494_v6  ;;  %v1407_v17 = vadd.f32 %v20071_v14, %v495_v45  ;;  %v3320_v6 = vld [vmem:[%s19760_s9 + $0x33c0] sm:$0xff]  ;;  %v18536_v45 = vcombine.high %v3329_v31, %v3333_v21 }
 0x486   : > { %15164 = vmatprep.subr.bf16.mxu1 %v18496_v55  ;;  %v3324_v55 = vld [vmem:[%s19760_s9 + $0x33e0] sm:$0xff] }
 0x487   : > { %v3328_v14 = vld [vmem:[%s19760_s9 + $0x3400] sm:$0xff]  ;;  %vm1560_vm10 = vcmp.gt.f32.partialorder %v1407_v17, 0.0  ;;  %v18525_v62 = vcombine.low %v3320_v6, %v3324_v55 }
 0x488   : > { %14509 = vmatpush1.bf16.msra.mxu0 %v18493_v32  ;;  %v18526_v32 = vcombine.high %v3320_v6, %v3324_v55  ;;  %v3348_v6 = vld [vmem:[%s19760_s9 + $0x34a0] sm:$0xff]  ;;  %v20993_v55 = vpack.c.bf16 %v1627_v19, %v1627_v19 }
 0x489   : > { %15165 = vmatpush1.bf16.msra.mxu1 %v18495_v46  ;;  %14510 = vmatprep.subr.bf16.mxu0 %v18502_v2  ;;  %v1592_v46 = vmul.f32 0.01, %v1407_v17  ;;  %v18528_v2 = vcombine.high %v3321_v60, %v3325_v10 }
 0x48a   : > { %15166 = vmatprep.subr.bf16.mxu1 %v18504_v35  ;;  %v3332_v35 = vld [vmem:[%s19760_s9 + $0x3420] sm:$0xff] }
 0x48b   : > { %v18533_v0 = vcombine.low %v3328_v14, %v3332_v35 }
 0x48c   : > { %14511 = vmatpush1.bf16.msra.mxu0 %v18501_v63  ;;  %v18527_v63 = vcombine.low %v3321_v60, %v3325_v10  ;;  %v3345_v60 = vld [vmem:[%s19760_s9 + $0x3488] sm:$0xff] }
 0x48d   : > { %15167 = vmatpush1.bf16.msra.mxu1 %v18503_v59  ;;  %14512 = vmatprep.subr.bf16.mxu0 %v18510_v40  ;;  %v18534_v59 = vcombine.high %v3328_v14, %v3332_v35  ;;  %v1624_v40 = vsel %vm1560_vm10, %v1407_v17, %v1592_v46  ;;  %v3349_v10 = vld [vmem:[%s19760_s9 + $0x34a8] sm:$0xff]  ;;  %v3356_v14 = vld [vmem:[%s19760_s9 + $0x34e0] sm:$0xff] }
 0x48e   : > { %15168 = vmatprep.subr.bf16.mxu1 %v18512_v50  ;;  %v3336_v50 = vld [vmem:[%s19760_s9 + $0x3440] sm:$0xff]  ;;  %v18552_v46 = vcombine.high %v3345_v60, %v3349_v10  ;;  %v3353_v35 = vld [vmem:[%s19760_s9 + $0x34c8] sm:$0xff]  ;;  %v18551_v33 = vcombine.low %v3345_v60, %v3349_v10 }
 0x48f   : > { %v18542_v17 = vcombine.high %v3336_v50, %v3340_v37 }
 0x490   : > { %14513 = vmatpush1.bf16.msra.mxu0 %v18509_v3  ;;  %v3341_v3 = vld [vmem:[%s19760_s9 + $0x3468] sm:$0xff] }
 0x491   : > { %15169 = vmatpush1.bf16.msra.mxu1 %v18511_v5  ;;  %14514 = vmatprep.subr.bf16.mxu0 %v18518_v26  ;;  %v20989_v5 = vpack.c.bf16 %v1624_v40, %v1624_v40  ;;  %v18535_v26 = vcombine.low %v3329_v31, %v3333_v21  ;;  %v18544_v57 = vcombine.high %v3337_v4, %v3341_v3  ;;  %v3357_v31 = vld [vmem:[%s19760_s9 + $0x34e8] sm:$0xff]  ;;  %v3364_v40 = vld [vmem:[%s19760_s9 + $0x3520] sm:$0xff] }
 0x492   : > { %15170 = vmatprep.subr.bf16.mxu1 %v18520_v8  ;;  %v3344_v8 = vld [vmem:[%s19760_s9 + $0x3480] sm:$0xff]  ;;  %v18559_v19 = vcombine.low %v3353_v35, %v3357_v31 }
 0x493   : > { %v18549_v21 = vcombine.low %v3344_v8, %v3348_v6 }
 0x494   : > { %14515 = vmatpush1.bf16.msra.mxu0 %v18517_v23  ;;  %v18541_v23 = vcombine.low %v3336_v50, %v3340_v37  ;;  %v3365_v50 = vld [vmem:[%s19760_s9 + $0x3528] sm:$0xff] }
 0x495   : > { %15171 = vmatpush1.bf16.msra.mxu1 %v18519_v39  ;;  %14516 = vmatprep.subr.bf16.mxu0 %v18526_v32  ;;  %v18543_v39 = vcombine.low %v3337_v4, %v3341_v3  ;;  %v18550_v32 = vcombine.high %v3344_v8, %v3348_v6  ;;  %v3368_v3 = vld [vmem:[%s19760_s9 + $0x3540] sm:$0xff]  ;;  %v3373_v8 = vld [vmem:[%s19760_s9 + $0x3568] sm:$0xff] }
 0x496   : > { %15172 = vmatprep.subr.bf16.mxu1 %v18528_v2  ;;  %v3352_v2 = vld [vmem:[%s19760_s9 + $0x34c0] sm:$0xff] }
 0x497   : > { %v18557_v37 = vcombine.low %v3352_v2, %v3356_v14 }
 0x498   : > { %14517 = vmatpush1.bf16.msra.mxu0 %v18525_v62  ;;  %v18558_v62 = vcombine.high %v3352_v2, %v3356_v14 }
 0x499   : > { %15173 = vmatpush1.bf16.msra.mxu1 %v18527_v63  ;;  %14527 = vmatprep.subr.bf16.mxu0 %v18534_v59  ;;  %v18560_v63 = vcombine.high %v3353_v35, %v3357_v31  ;;  %v3360_v59 = vld [vmem:[%s19760_s9 + $0x3500] sm:$0xff] }
 0x49a   : > { %15183 = vmatprep.subr.bf16.mxu1 %v18536_v45  ;;  %v3361_v45 = vld [vmem:[%s19760_s9 + $0x3508] sm:$0xff]  ;;  %v18565_v6 = vcombine.low %v3360_v59, %v3364_v40 }
 0x49b   : > { %14519 = vmatmul.mubr.bf16.vlgmr.msra.gmra.mrb[32].mxu0 %v20989_v5  ;;  %v18568_v4 = vcombine.high %v3361_v45, %v3365_v50 }
 0x49c   : > { %15175 = vmatmul.mubr.bf16.vlgmr.msra.gmra.mrb[32].mxu1 %v20989_v5  ;;  %14528 = vmatpush1.bf16.msra.mxu0 %v18533_v0  ;;  %v18566_v0 = vcombine.high %v3360_v59, %v3364_v40 }
 0x49d   : > { %14559 = vmatprep.mubr.bf16.mxu0 %v20993_v55  ;;  %15184 = vmatpush1.bf16.msra.mxu1 %v18535_v26  ;;  %v3372_v26 = vld [vmem:[%s19760_s9 + $0x3560] sm:$0xff] }
 0x49e   : > { %15215 = vmatprep.mubr.bf16.mxu1 %v20993_v55  ;;  %14529 = vmatprep.subr.bf16.mxu0 %v18542_v17  ;;  %v3369_v17 = vld [vmem:[%s19760_s9 + $0x3548] sm:$0xff]  ;;  %v18574_v60 = vcombine.high %v3368_v3, %v3372_v26  ;;  %v18573_v2 = vcombine.low %v3368_v3, %v3372_v26 }
 0x49f   : > { %15185 = vmatprep.subr.bf16.mxu1 %v18544_v57  ;;  %v18567_v57 = vcombine.low %v3361_v45, %v3365_v50  ;;  %v18576_v10 = vcombine.high %v3369_v17, %v3373_v8  ;;  %v18575_v14 = vcombine.low %v3369_v17, %v3373_v8 }
 0x4a0   : > { %14530 = vmatpush1.bf16.msra.mxu0 %v18541_v23  ;;  %v3376_v23 = vld [vmem:[%s19760_s9 + $0x3580] sm:$0xff] }
 0x4a1   : > { %15186 = vmatpush1.bf16.msra.mxu1 %v18543_v39  ;;  %14531 = vmatprep.subr.bf16.mxu0 %v18550_v32  ;;  %v3380_v39 = vld [vmem:[%s19760_s9 + $0x35a0] sm:$0xff]  ;;  %v3377_v32 = vld [vmem:[%s19760_s9 + $0x3588] sm:$0xff] }
 0x4a2   : > { %15187 = vmatprep.subr.bf16.mxu1 %v18552_v46  ;;  %v3381_v46 = vld [vmem:[%s19760_s9 + $0x35a8] sm:$0xff]  ;;  %v18582_v35 = vcombine.high %v3376_v23, %v3380_v39  ;;  %v18581_v59 = vcombine.low %v3376_v23, %v3380_v39 }
 0x4a3   : > { %v18584_v31 = vcombine.high %v3377_v32, %v3381_v46  ;;  %v18583_v40 = vcombine.low %v3377_v32, %v3381_v46 }
 0x4a4   : > { %14532 = vmatpush1.bf16.msra.mxu0 %v18549_v21  ;;  %v3384_v21 = vld [vmem:[%s19760_s9 + $0x35c0] sm:$0xff] }
 0x4a5   : > { %15188 = vmatpush1.bf16.msra.mxu1 %v18551_v33  ;;  %14533 = vmatprep.subr.bf16.mxu0 %v18558_v62  ;;  %v3388_v33 = vld [vmem:[%s19760_s9 + $0x35e0] sm:$0xff]  ;;  %v3385_v62 = vld [vmem:[%s19760_s9 + $0x35c8] sm:$0xff] }
 0x4a6   : > { %15189 = vmatprep.subr.bf16.mxu1 %v18560_v63  ;;  %v3389_v63 = vld [vmem:[%s19760_s9 + $0x35e8] sm:$0xff]  ;;  %v18590_v45 = vcombine.high %v3384_v21, %v3388_v33  ;;  %v18589_v3 = vcombine.low %v3384_v21, %v3388_v33 }
 0x4a7   : > { %v18592_v50 = vcombine.high %v3385_v62, %v3389_v63  ;;  %v18591_v26 = vcombine.low %v3385_v62, %v3389_v63 }
 0x4a8   : > { %14534 = vmatpush1.bf16.msra.mxu0 %v18557_v37  ;;  %v3392_v37 = vld [vmem:[%s19760_s9 + $0x3600] sm:$0xff] }
 0x4a9   : > { %15190 = vmatpush1.bf16.msra.mxu1 %v18559_v19  ;;  %14535 = vmatprep.subr.bf16.mxu0 %v18566_v0  ;;  %v3396_v19 = vld [vmem:[%s19760_s9 + $0x3620] sm:$0xff]  ;;  %v3393_v0 = vld [vmem:[%s19760_s9 + $0x3608] sm:$0xff] }
 0x4aa   : > { %15191 = vmatprep.subr.bf16.mxu1 %v18568_v4  ;;  %v3397_v4 = vld [vmem:[%s19760_s9 + $0x3628] sm:$0xff]  ;;  %v18598_v17 = vcombine.high %v3392_v37, %v3396_v19  ;;  %v18597_v23 = vcombine.low %v3392_v37, %v3396_v19 }
 0x4ab   : > { %v18600_v8 = vcombine.high %v3393_v0, %v3397_v4  ;;  %v18599_v39 = vcombine.low %v3393_v0, %v3397_v4 }
 0x4ac   : > { %14536 = vmatpush1.bf16.msra.mxu0 %v18565_v6  ;;  %v3400_v6 = vld [vmem:[%s19760_s9 + $0x3640] sm:$0xff] }
 0x4ad   : > { %15192 = vmatpush1.bf16.msra.mxu1 %v18567_v57  ;;  %14537 = vmatprep.subr.bf16.mxu0 %v18574_v60  ;;  %v3404_v57 = vld [vmem:[%s19760_s9 + $0x3660] sm:$0xff]  ;;  %v3401_v60 = vld [vmem:[%s19760_s9 + $0x3648] sm:$0xff] }
 0x4ae   : > { %15193 = vmatprep.subr.bf16.mxu1 %v18576_v10  ;;  %v3405_v10 = vld [vmem:[%s19760_s9 + $0x3668] sm:$0xff]  ;;  %v18606_v32 = vcombine.high %v3400_v6, %v3404_v57  ;;  %v18605_v21 = vcombine.low %v3400_v6, %v3404_v57 }
 0x4af   : > { %v18608_v46 = vcombine.high %v3401_v60, %v3405_v10  ;;  %v18607_v33 = vcombine.low %v3401_v60, %v3405_v10 }
 0x4b0   : > { %14538 = vmatpush1.bf16.msra.mxu0 %v18573_v2  ;;  %v3408_v2 = vld [vmem:[%s19760_s9 + $0x3680] sm:$0xff] }
 0x4b1   : > { %15194 = vmatpush1.bf16.msra.mxu1 %v18575_v14  ;;  %14539 = vmatprep.subr.bf16.mxu0 %v18582_v35  ;;  %v3412_v14 = vld [vmem:[%s19760_s9 + $0x36a0] sm:$0xff]  ;;  %v3409_v35 = vld [vmem:[%s19760_s9 + $0x3688] sm:$0xff] }
 0x4b2   : > { %15195 = vmatprep.subr.bf16.mxu1 %v18584_v31  ;;  %v3413_v31 = vld [vmem:[%s19760_s9 + $0x36a8] sm:$0xff]  ;;  %v18614_v62 = vcombine.high %v3408_v2, %v3412_v14  ;;  %v18613_v37 = vcombine.low %v3408_v2, %v3412_v14 }
 0x4b3   : > { %v18616_v63 = vcombine.high %v3409_v35, %v3413_v31  ;;  %v18615_v19 = vcombine.low %v3409_v35, %v3413_v31 }
 0x4b4   : > { %14540 = vmatpush1.bf16.msra.mxu0 %v18581_v59  ;;  %v3416_v59 = vld [vmem:[%s19760_s9 + $0x36c0] sm:$0xff] }
 0x4b5   : > { %15196 = vmatpush1.bf16.msra.mxu1 %v18583_v40  ;;  %14541 = vmatprep.subr.bf16.mxu0 %v18590_v45  ;;  %v3420_v40 = vld [vmem:[%s19760_s9 + $0x36e0] sm:$0xff]  ;;  %v3417_v45 = vld [vmem:[%s19760_s9 + $0x36c8] sm:$0xff] }
 0x4b6   : > { %15197 = vmatprep.subr.bf16.mxu1 %v18592_v50  ;;  %v3421_v50 = vld [vmem:[%s19760_s9 + $0x36e8] sm:$0xff]  ;;  %v18622_v0 = vcombine.high %v3416_v59, %v3420_v40  ;;  %v18621_v6 = vcombine.low %v3416_v59, %v3420_v40 }
 0x4b7   : > { %v18624_v4 = vcombine.high %v3417_v45, %v3421_v50  ;;  %v18623_v57 = vcombine.low %v3417_v45, %v3421_v50 }
 0x4b8   : > { %14542 = vmatpush1.bf16.msra.mxu0 %v18589_v3  ;;  %v3424_v3 = vld [vmem:[%s19760_s9 + $0x3700] sm:$0xff] }
 0x4b9   : > { %15198 = vmatpush1.bf16.msra.mxu1 %v18591_v26  ;;  %14543 = vmatprep.subr.bf16.mxu0 %v18598_v17  ;;  %v3428_v26 = vld [vmem:[%s19760_s9 + $0x3720] sm:$0xff]  ;;  %v3425_v17 = vld [vmem:[%s19760_s9 + $0x3708] sm:$0xff] }
 0x4ba   : > { %15199 = vmatprep.subr.bf16.mxu1 %v18600_v8  ;;  %v3429_v8 = vld [vmem:[%s19760_s9 + $0x3728] sm:$0xff]  ;;  %v18630_v60 = vcombine.high %v3424_v3, %v3428_v26  ;;  %v18629_v2 = vcombine.low %v3424_v3, %v3428_v26 }
 0x4bb   : > { %v18632_v10 = vcombine.high %v3425_v17, %v3429_v8  ;;  %v18631_v14 = vcombine.low %v3425_v17, %v3429_v8  ;;  %v1594_v8 = vmul.f32 0.01, %v20080_v43 }
 0x4bc   : > { %14544 = vmatpush1.bf16.msra.mxu0 %v18597_v23  ;;  %v3432_v23 = vld [vmem:[%s19760_s9 + $0x3740] sm:$0xff] }
 0x4bd   : > { %15200 = vmatpush1.bf16.msra.mxu1 %v18599_v39  ;;  %14545 = vmatprep.subr.bf16.mxu0 %v18606_v32  ;;  %v3436_v39 = vld [vmem:[%s19760_s9 + $0x3760] sm:$0xff]  ;;  %v3433_v32 = vld [vmem:[%s19760_s9 + $0x3748] sm:$0xff] }
 0x4be   : > { %15201 = vmatprep.subr.bf16.mxu1 %v18608_v46  ;;  %v3437_v46 = vld [vmem:[%s19760_s9 + $0x3768] sm:$0xff]  ;;  %v18638_v35 = vcombine.high %v3432_v23, %v3436_v39  ;;  %v18637_v59 = vcombine.low %v3432_v23, %v3436_v39  ;;  %v1597_v39 = vmul.f32 0.01, %v20106_v51 }
 0x4bf   : > { %v18640_v31 = vcombine.high %v3433_v32, %v3437_v46  ;;  %v18639_v40 = vcombine.low %v3433_v32, %v3437_v46  ;;  %v3461_v23 = vld [vmem:[%s19760_s9 + $0x3828] sm:$0xff] }
 0x4c0   : > { %14546 = vmatpush1.bf16.msra.mxu0 %v18605_v21  ;;  %v3440_v21 = vld [vmem:[%s19760_s9 + $0x3780] sm:$0xff] }
 0x4c1   : > { %15202 = vmatpush1.bf16.msra.mxu1 %v18607_v33  ;;  %14547 = vmatprep.subr.bf16.mxu0 %v18614_v62  ;;  %v3444_v33 = vld [vmem:[%s19760_s9 + $0x37a0] sm:$0xff]  ;;  %v3441_v62 = vld [vmem:[%s19760_s9 + $0x3788] sm:$0xff] }
 0x4c2   : > { %15203 = vmatprep.subr.bf16.mxu1 %v18616_v63  ;;  %v3445_v63 = vld [vmem:[%s19760_s9 + $0x37a8] sm:$0xff]  ;;  %v18646_v45 = vcombine.high %v3440_v21, %v3444_v33  ;;  %v18645_v3 = vcombine.low %v3440_v21, %v3444_v33  ;;  %v3468_v21 = vld [vmem:[%s19760_s9 + $0x3860] sm:$0xff]  ;;  %v1629_v33 = vsel %vm1565_vm13, %v20106_v51, %v1597_v39 }
 0x4c3   : > { %v18648_v50 = vcombine.high %v3441_v62, %v3445_v63  ;;  %v18647_v26 = vcombine.low %v3441_v62, %v3445_v63  ;;  %v3465_v63 = vld [vmem:[%s19760_s9 + $0x3848] sm:$0xff] }
 0x4c4   : > { %14548 = vmatpush1.bf16.msra.mxu0 %v18613_v37  ;;  %v3448_v37 = vld [vmem:[%s19760_s9 + $0x37c0] sm:$0xff] }
 0x4c5   : > { %15204 = vmatpush1.bf16.msra.mxu1 %v18615_v19  ;;  %14549 = vmatprep.subr.bf16.mxu0 %v18622_v0  ;;  %v3452_v19 = vld [vmem:[%s19760_s9 + $0x37e0] sm:$0xff]  ;;  %v3449_v0 = vld [vmem:[%s19760_s9 + $0x37c8] sm:$0xff] }
 0x4c6   : > { %15205 = vmatprep.subr.bf16.mxu1 %v18624_v4  ;;  %v3453_v4 = vld [vmem:[%s19760_s9 + $0x37e8] sm:$0xff]  ;;  %v18654_v17 = vcombine.high %v3448_v37, %v3452_v19  ;;  %v18653_v32 = vcombine.low %v3448_v37, %v3452_v19  ;;  %v3476_v37 = vld [vmem:[%s19760_s9 + $0x38a0] sm:$0xff]  ;;  %v21071_v19 = vpack.c.bf16 %v1629_v33, %v1629_v33 }
 0x4c7   : > { %v18655_v46 = vcombine.low %v3449_v0, %v3453_v4 }
 0x4c8   : > { %14550 = vmatpush1.bf16.msra.mxu0 %v18621_v6  ;;  %v18656_v6 = vcombine.high %v3449_v0, %v3453_v4  ;;  %v3473_v0 = vld [vmem:[%s19760_s9 + $0x3888] sm:$0xff] }
 0x4c9   : > { %15206 = vmatpush1.bf16.msra.mxu1 %v18623_v57  ;;  %14551 = vmatprep.subr.bf16.mxu0 %v18630_v60  ;;  %v3456_v57 = vld [vmem:[%s19760_s9 + $0x3800] sm:$0xff]  ;;  %v3477_v4 = vld [vmem:[%s19760_s9 + $0x38a8] sm:$0xff] }
 0x4ca   : > { %15207 = vmatprep.subr.bf16.mxu1 %v18632_v10  ;;  %v3460_v60 = vld [vmem:[%s19760_s9 + $0x3820] sm:$0xff]  ;;  %v3457_v10 = vld [vmem:[%s19760_s9 + $0x3808] sm:$0xff]  ;;  %v18679_v39 = vcombine.low %v3473_v0, %v3477_v4 }
 0x4cb   : > { %v18661_v62 = vcombine.low %v3456_v57, %v3460_v60 }
 0x4cc   : > { %14552 = vmatpush1.bf16.msra.mxu0 %v18629_v2  ;;  %v18662_v2 = vcombine.high %v3456_v57, %v3460_v60  ;;  %v3484_v57 = vld [vmem:[%s19760_s9 + $0x38e0] sm:$0xff]  ;;  %v3481_v60 = vld [vmem:[%s19760_s9 + $0x38c8] sm:$0xff] }
 0x4cd   : > { %15208 = vmatpush1.bf16.msra.mxu1 %v18631_v14  ;;  %14553 = vmatprep.subr.bf16.mxu0 %v18638_v35  ;;  %v1626_v14 = vsel %vm1562_vm12, %v20080_v43, %v1594_v8  ;;  %v18664_v35 = vcombine.high %v3457_v10, %v3461_v23  ;;  %v18680_v8 = vcombine.high %v3473_v0, %v3477_v4 }
 0x4ce   : > { %15209 = vmatprep.subr.bf16.mxu1 %v18640_v31  ;;  %v3464_v31 = vld [vmem:[%s19760_s9 + $0x3840] sm:$0xff] }
 0x4cf   : > { %v18670_v43 = vcombine.high %v3464_v31, %v3468_v21 }
 0x4d0   : > { %14554 = vmatpush1.bf16.msra.mxu0 %v18637_v59  ;;  %v3469_v59 = vld [vmem:[%s19760_s9 + $0x3868] sm:$0xff] }
 0x4d1   : > { %15210 = vmatpush1.bf16.msra.mxu1 %v18639_v40  ;;  %14555 = vmatprep.subr.bf16.mxu0 %v18646_v45  ;;  %v21067_v40 = vpack.c.bf16 %v1626_v14, %v1626_v14  ;;  %v18663_v45 = vcombine.low %v3457_v10, %v3461_v23  ;;  %v18672_v51 = vcombine.high %v3465_v63, %v3469_v59  ;;  %v3485_v10 = vld [vmem:[%s19760_s9 + $0x38e8] sm:$0xff]  ;;  %v3492_v14 = vld [vmem:[%s19760_s9 + $0x3920] sm:$0xff] }
 0x4d2   : > { %15211 = vmatprep.subr.bf16.mxu1 %v18648_v50  ;;  %v3472_v50 = vld [vmem:[%s19760_s9 + $0x3880] sm:$0xff]  ;;  %v18687_v33 = vcombine.low %v3481_v60, %v3485_v10 }
 0x4d3   : > { %v18677_v23 = vcombine.low %v3472_v50, %v3476_v37 }
 0x4d4   : > { %14556 = vmatpush1.bf16.msra.mxu0 %v18645_v3  ;;  %v18669_v3 = vcombine.low %v3464_v31, %v3468_v21  ;;  %v3493_v31 = vld [vmem:[%s19760_s9 + $0x3928] sm:$0xff] }
 0x4d5   : > { %15212 = vmatpush1.bf16.msra.mxu1 %v18647_v26  ;;  %14557 = vmatprep.subr.bf16.mxu0 %v18654_v17  ;;  %v18671_v26 = vcombine.low %v3465_v63, %v3469_v59  ;;  %v18678_v17 = vcombine.high %v3472_v50, %v3476_v37  ;;  %v3496_v59 = vld [vmem:[%s19760_s9 + $0x3940] sm:$0xff]  ;;  %v3501_v50 = vld [vmem:[%s19760_s9 + $0x3968] sm:$0xff] }
 0x4d6   : > { %15213 = vmatprep.subr.bf16.mxu1 %v18656_v6  ;;  %v3480_v6 = vld [vmem:[%s19760_s9 + $0x38c0] sm:$0xff] }
 0x4d7   : > { %v18685_v21 = vcombine.low %v3480_v6, %v3484_v57 }
 0x4d8   : > { %14558 = vmatpush1.bf16.msra.mxu0 %v18653_v32  ;;  %v18686_v32 = vcombine.high %v3480_v6, %v3484_v57 }
 0x4d9   : > { %15214 = vmatpush1.bf16.msra.mxu1 %v18655_v46  ;;  %14568 = vmatprep.subr.bf16.mxu0 %v18662_v2  ;;  %v18688_v46 = vcombine.high %v3481_v60, %v3485_v10  ;;  %v3488_v2 = vld [vmem:[%s19760_s9 + $0x3900] sm:$0xff] }
 0x4da   : > { %15224 = vmatprep.subr.bf16.mxu1 %v18664_v35  ;;  %v3489_v35 = vld [vmem:[%s19760_s9 + $0x3908] sm:$0xff]  ;;  %v18693_v37 = vcombine.low %v3488_v2, %v3492_v14 }
 0x4db   : > { %14560 = vmatmul.mubr.bf16.vlgmr.msra.gmra.mrb[32].mxu0 %v21067_v40  ;;  %v18696_v63 = vcombine.high %v3489_v35, %v3493_v31 }
 0x4dc   : > { %15216 = vmatmul.mubr.bf16.vlgmr.msra.gmra.mrb[32].mxu1 %v21067_v40  ;;  %14569 = vmatpush1.bf16.msra.mxu0 %v18661_v62  ;;  %v18694_v62 = vcombine.high %v3488_v2, %v3492_v14 }
 0x4dd   : > { %14600 = vmatprep.mubr.bf16.mxu0 %v21071_v19  ;;  %15225 = vmatpush1.bf16.msra.mxu1 %v18663_v45  ;;  %v3500_v45 = vld [vmem:[%s19760_s9 + $0x3960] sm:$0xff] }
 0x4de   : > { %15256 = vmatprep.mubr.bf16.mxu1 %v21071_v19  ;;  %14570 = vmatprep.subr.bf16.mxu0 %v18670_v43  ;;  %v3497_v43 = vld [vmem:[%s19760_s9 + $0x3948] sm:$0xff]  ;;  %v18702_v0 = vcombine.high %v3496_v59, %v3500_v45  ;;  %v18701_v6 = vcombine.low %v3496_v59, %v3500_v45 }
 0x4df   : > { %15226 = vmatprep.subr.bf16.mxu1 %v18672_v51  ;;  %v18695_v51 = vcombine.low %v3489_v35, %v3493_v31  ;;  %v18704_v4 = vcombine.high %v3497_v43, %v3501_v50  ;;  %v18703_v57 = vcombine.low %v3497_v43, %v3501_v50 }
 0x4e0   : > { %14571 = vmatpush1.bf16.msra.mxu0 %v18669_v3  ;;  %v3504_v3 = vld [vmem:[%s19760_s9 + $0x3980] sm:$0xff] }
 0x4e1   : > { %15227 = vmatpush1.bf16.msra.mxu1 %v18671_v26  ;;  %14572 = vmatprep.subr.bf16.mxu0 %v18678_v17  ;;  %v3508_v26 = vld [vmem:[%s19760_s9 + $0x39a0] sm:$0xff]  ;;  %v3505_v17 = vld [vmem:[%s19760_s9 + $0x3988] sm:$0xff] }
 0x4e2   : > { %15228 = vmatprep.subr.bf16.mxu1 %v18680_v8  ;;  %v3509_v8 = vld [vmem:[%s19760_s9 + $0x39a8] sm:$0xff]  ;;  %v18710_v60 = vcombine.high %v3504_v3, %v3508_v26  ;;  %v18709_v2 = vcombine.low %v3504_v3, %v3508_v26 }
 0x4e3   : > { %v18712_v10 = vcombine.high %v3505_v17, %v3509_v8  ;;  %v18711_v14 = vcombine.low %v3505_v17, %v3509_v8 }
 0x4e4   : > { %14573 = vmatpush1.bf16.msra.mxu0 %v18677_v23  ;;  %v3512_v23 = vld [vmem:[%s19760_s9 + $0x39c0] sm:$0xff] }
 0x4e5   : > { %15229 = vmatpush1.bf16.msra.mxu1 %v18679_v39  ;;  %14574 = vmatprep.subr.bf16.mxu0 %v18686_v32  ;;  %v3516_v39 = vld [vmem:[%s19760_s9 + $0x39e0] sm:$0xff]  ;;  %v3513_v32 = vld [vmem:[%s19760_s9 + $0x39c8] sm:$0xff] }
 0x4e6   : > { %15230 = vmatprep.subr.bf16.mxu1 %v18688_v46  ;;  %v3517_v46 = vld [vmem:[%s19760_s9 + $0x39e8] sm:$0xff]  ;;  %v18718_v35 = vcombine.high %v3512_v23, %v3516_v39  ;;  %v18717_v59 = vcombine.low %v3512_v23, %v3516_v39 }
 0x4e7   : > { %v18720_v31 = vcombine.high %v3513_v32, %v3517_v46  ;;  %v18719_v45 = vcombine.low %v3513_v32, %v3517_v46 }
 0x4e8   : > { %14575 = vmatpush1.bf16.msra.mxu0 %v18685_v21  ;;  %v3520_v21 = vld [vmem:[%s19760_s9 + $0x3a00] sm:$0xff] }
 0x4e9   : > { %15231 = vmatpush1.bf16.msra.mxu1 %v18687_v33  ;;  %14576 = vmatprep.subr.bf16.mxu0 %v18694_v62  ;;  %v3524_v33 = vld [vmem:[%s19760_s9 + $0x3a20] sm:$0xff]  ;;  %v3521_v62 = vld [vmem:[%s19760_s9 + $0x3a08] sm:$0xff] }
 0x4ea   : > { %15232 = vmatprep.subr.bf16.mxu1 %v18696_v63  ;;  %v3525_v63 = vld [vmem:[%s19760_s9 + $0x3a28] sm:$0xff]  ;;  %v18726_v43 = vcombine.high %v3520_v21, %v3524_v33  ;;  %v18725_v3 = vcombine.low %v3520_v21, %v3524_v33 }
 0x4eb   : > { %v18728_v50 = vcombine.high %v3521_v62, %v3525_v63  ;;  %v18727_v26 = vcombine.low %v3521_v62, %v3525_v63 }
 0x4ec   : > { %14577 = vmatpush1.bf16.msra.mxu0 %v18693_v37  ;;  %v3528_v37 = vld [vmem:[%s19760_s9 + $0x3a40] sm:$0xff] }
 0x4ed   : > { %15233 = vmatpush1.bf16.msra.mxu1 %v18695_v51  ;;  %14578 = vmatprep.subr.bf16.mxu0 %v18702_v0  ;;  %v3532_v51 = vld [vmem:[%s19760_s9 + $0x3a60] sm:$0xff]  ;;  %v3529_v0 = vld [vmem:[%s19760_s9 + $0x3a48] sm:$0xff] }
 0x4ee   : > { %15234 = vmatprep.subr.bf16.mxu1 %v18704_v4  ;;  %v3533_v4 = vld [vmem:[%s19760_s9 + $0x3a68] sm:$0xff]  ;;  %v18734_v17 = vcombine.high %v3528_v37, %v3532_v51  ;;  %v18733_v23 = vcombine.low %v3528_v37, %v3532_v51 }
 0x4ef   : > { %v18736_v8 = vcombine.high %v3529_v0, %v3533_v4  ;;  %v18735_v39 = vcombine.low %v3529_v0, %v3533_v4 }
 0x4f0   : > { %14579 = vmatpush1.bf16.msra.mxu0 %v18701_v6  ;;  %v3536_v6 = vld [vmem:[%s19760_s9 + $0x3a80] sm:$0xff] }
 0x4f1   : > { %15235 = vmatpush1.bf16.msra.mxu1 %v18703_v57  ;;  %14580 = vmatprep.subr.bf16.mxu0 %v18710_v60  ;;  %v3540_v57 = vld [vmem:[%s19760_s9 + $0x3aa0] sm:$0xff]  ;;  %v3537_v60 = vld [vmem:[%s19760_s9 + $0x3a88] sm:$0xff] }
 0x4f2   : > { %15236 = vmatprep.subr.bf16.mxu1 %v18712_v10  ;;  %v3541_v10 = vld [vmem:[%s19760_s9 + $0x3aa8] sm:$0xff]  ;;  %v18742_v32 = vcombine.high %v3536_v6, %v3540_v57  ;;  %v18741_v21 = vcombine.low %v3536_v6, %v3540_v57 }
 0x4f3   : > { %v18744_v46 = vcombine.high %v3537_v60, %v3541_v10  ;;  %v18743_v33 = vcombine.low %v3537_v60, %v3541_v10 }
 0x4f4   : > { %14581 = vmatpush1.bf16.msra.mxu0 %v18709_v2  ;;  %v3544_v2 = vld [vmem:[%s19760_s9 + $0x3ac0] sm:$0xff] }
 0x4f5   : > { %15237 = vmatpush1.bf16.msra.mxu1 %v18711_v14  ;;  %14582 = vmatprep.subr.bf16.mxu0 %v18718_v35  ;;  %v3548_v14 = vld [vmem:[%s19760_s9 + $0x3ae0] sm:$0xff]  ;;  %v3545_v35 = vld [vmem:[%s19760_s9 + $0x3ac8] sm:$0xff] }
 0x4f6   : > { %15238 = vmatprep.subr.bf16.mxu1 %v18720_v31  ;;  %v3549_v31 = vld [vmem:[%s19760_s9 + $0x3ae8] sm:$0xff]  ;;  %v18750_v62 = vcombine.high %v3544_v2, %v3548_v14  ;;  %v18749_v37 = vcombine.low %v3544_v2, %v3548_v14 }
 0x4f7   : > { %v18752_v63 = vcombine.high %v3545_v35, %v3549_v31  ;;  %v18751_v51 = vcombine.low %v3545_v35, %v3549_v31 }
 0x4f8   : > { %14583 = vmatpush1.bf16.msra.mxu0 %v18717_v59  ;;  %v3552_v59 = vld [vmem:[%s19760_s9 + $0x3b00] sm:$0xff] }
 0x4f9   : > { %15239 = vmatpush1.bf16.msra.mxu1 %v18719_v45  ;;  %14584 = vmatprep.subr.bf16.mxu0 %v18726_v43  ;;  %v3556_v45 = vld [vmem:[%s19760_s9 + $0x3b20] sm:$0xff]  ;;  %v3553_v43 = vld [vmem:[%s19760_s9 + $0x3b08] sm:$0xff] }
 0x4fa   : > { %15240 = vmatprep.subr.bf16.mxu1 %v18728_v50  ;;  %v3557_v50 = vld [vmem:[%s19760_s9 + $0x3b28] sm:$0xff]  ;;  %v18758_v0 = vcombine.high %v3552_v59, %v3556_v45  ;;  %v18757_v6 = vcombine.low %v3552_v59, %v3556_v45 }
 0x4fb   : > { %v18760_v4 = vcombine.high %v3553_v43, %v3557_v50  ;;  %v18759_v57 = vcombine.low %v3553_v43, %v3557_v50  ;;  %v1596_v50 = vmul.f32 0.01, %v20102_v12 }
 0x4fc   : > { %14585 = vmatpush1.bf16.msra.mxu0 %v18725_v3  ;;  %v3560_v3 = vld [vmem:[%s19760_s9 + $0x3b40] sm:$0xff] }
 0x4fd   : > { %15241 = vmatpush1.bf16.msra.mxu1 %v18727_v26  ;;  %14586 = vmatprep.subr.bf16.mxu0 %v18734_v17  ;;  %v3564_v26 = vld [vmem:[%s19760_s9 + $0x3b60] sm:$0xff]  ;;  %v3561_v17 = vld [vmem:[%s19760_s9 + $0x3b48] sm:$0xff] }
 0x4fe   : > { %15242 = vmatprep.subr.bf16.mxu1 %v18736_v8  ;;  %v3565_v8 = vld [vmem:[%s19760_s9 + $0x3b68] sm:$0xff]  ;;  %v18766_v60 = vcombine.high %v3560_v3, %v3564_v26  ;;  %v18765_v2 = vcombine.low %v3560_v3, %v3564_v26  ;;  %v1599_v26 = vmul.f32 0.01, %v20111_v58 }
 0x4ff   : > { %v18768_v10 = vcombine.high %v3561_v17, %v3565_v8  ;;  %v18767_v14 = vcombine.low %v3561_v17, %v3565_v8  ;;  %v3589_v3 = vld [vmem:[%s19760_s9 + $0x3c28] sm:$0xff] }
 0x500   : > { %14587 = vmatpush1.bf16.msra.mxu0 %v18733_v23  ;;  %v3568_v23 = vld [vmem:[%s19760_s9 + $0x3b80] sm:$0xff] }
 0x501   : > { %15243 = vmatpush1.bf16.msra.mxu1 %v18735_v39  ;;  %14588 = vmatprep.subr.bf16.mxu0 %v18742_v32  ;;  %v3572_v39 = vld [vmem:[%s19760_s9 + $0x3ba0] sm:$0xff]  ;;  %v3569_v32 = vld [vmem:[%s19760_s9 + $0x3b88] sm:$0xff] }
 0x502   : > { %15244 = vmatprep.subr.bf16.mxu1 %v18744_v46  ;;  %v3573_v46 = vld [vmem:[%s19760_s9 + $0x3ba8] sm:$0xff]  ;;  %v18774_v35 = vcombine.high %v3568_v23, %v3572_v39  ;;  %v18773_v59 = vcombine.low %v3568_v23, %v3572_v39  ;;  %v3596_v23 = vld [vmem:[%s19760_s9 + $0x3c60] sm:$0xff]  ;;  %v1631_v39 = vsel %vm1567_vm15, %v20111_v58, %v1599_v26 }
 0x503   : > { %v18776_v31 = vcombine.high %v3569_v32, %v3573_v46  ;;  %v18775_v45 = vcombine.low %v3569_v32, %v3573_v46  ;;  %v3593_v46 = vld [vmem:[%s19760_s9 + $0x3c48] sm:$0xff] }
 0x504   : > { %14589 = vmatpush1.bf16.msra.mxu0 %v18741_v21  ;;  %v3576_v21 = vld [vmem:[%s19760_s9 + $0x3bc0] sm:$0xff] }
 0x505   : > { %15245 = vmatpush1.bf16.msra.mxu1 %v18743_v33  ;;  %14590 = vmatprep.subr.bf16.mxu0 %v18750_v62  ;;  %v3580_v33 = vld [vmem:[%s19760_s9 + $0x3be0] sm:$0xff]  ;;  %v3577_v62 = vld [vmem:[%s19760_s9 + $0x3bc8] sm:$0xff] }
 0x506   : > { %15246 = vmatprep.subr.bf16.mxu1 %v18752_v63  ;;  %v3581_v63 = vld [vmem:[%s19760_s9 + $0x3be8] sm:$0xff]  ;;  %v18782_v43 = vcombine.high %v3576_v21, %v3580_v33  ;;  %v18781_v17 = vcombine.low %v3576_v21, %v3580_v33  ;;  %v3604_v21 = vld [vmem:[%s19760_s9 + $0x3ca0] sm:$0xff]  ;;  %v21149_v33 = vpack.c.bf16 %v1631_v39, %v1631_v39 }
 0x507   : > { %v18783_v8 = vcombine.low %v3577_v62, %v3581_v63 }
 0x508   : > { %14591 = vmatpush1.bf16.msra.mxu0 %v18749_v37  ;;  %v18784_v37 = vcombine.high %v3577_v62, %v3581_v63  ;;  %v3601_v62 = vld [vmem:[%s19760_s9 + $0x3c88] sm:$0xff] }
 0x509   : > { %15247 = vmatpush1.bf16.msra.mxu1 %v18751_v51  ;;  %14592 = vmatprep.subr.bf16.mxu0 %v18758_v0  ;;  %v3584_v51 = vld [vmem:[%s19760_s9 + $0x3c00] sm:$0xff]  ;;  %v3605_v63 = vld [vmem:[%s19760_s9 + $0x3ca8] sm:$0xff] }
 0x50a   : > { %15248 = vmatprep.subr.bf16.mxu1 %v18760_v4  ;;  %v3588_v0 = vld [vmem:[%s19760_s9 + $0x3c20] sm:$0xff]  ;;  %v3585_v4 = vld [vmem:[%s19760_s9 + $0x3c08] sm:$0xff]  ;;  %v18807_v26 = vcombine.low %v3601_v62, %v3605_v63 }
 0x50b   : > { %v18789_v32 = vcombine.low %v3584_v51, %v3588_v0 }
 0x50c   : > { %14593 = vmatpush1.bf16.msra.mxu0 %v18757_v6  ;;  %v18790_v6 = vcombine.high %v3584_v51, %v3588_v0  ;;  %v3612_v51 = vld [vmem:[%s19760_s9 + $0x3ce0] sm:$0xff]  ;;  %v3609_v0 = vld [vmem:[%s19760_s9 + $0x3cc8] sm:$0xff] }
 0x50d   : > { %15249 = vmatpush1.bf16.msra.mxu1 %v18759_v57  ;;  %14594 = vmatprep.subr.bf16.mxu0 %v18766_v60  ;;  %v1628_v57 = vsel %vm1564_vm14, %v20102_v12, %v1596_v50  ;;  %v18792_v60 = vcombine.high %v3585_v4, %v3589_v3  ;;  %v18808_v50 = vcombine.high %v3601_v62, %v3605_v63 }
 0x50e   : > { %15250 = vmatprep.subr.bf16.mxu1 %v18768_v10  ;;  %v3592_v10 = vld [vmem:[%s19760_s9 + $0x3c40] sm:$0xff] }
 0x50f   : > { %v18798_v12 = vcombine.high %v3592_v10, %v3596_v23 }
 0x510   : > { %14595 = vmatpush1.bf16.msra.mxu0 %v18765_v2  ;;  %v3597_v2 = vld [vmem:[%s19760_s9 + $0x3c68] sm:$0xff] }
 0x511   : > { %15251 = vmatpush1.bf16.msra.mxu1 %v18767_v14  ;;  %14596 = vmatprep.subr.bf16.mxu0 %v18774_v35  ;;  %v21145_v14 = vpack.c.bf16 %v1628_v57, %v1628_v57  ;;  %v18791_v35 = vcombine.low %v3585_v4, %v3589_v3  ;;  %v18800_v58 = vcombine.high %v3593_v46, %v3597_v2  ;;  %v3613_v4 = vld [vmem:[%s19760_s9 + $0x3ce8] sm:$0xff]  ;;  %v3620_v57 = vld [vmem:[%s19760_s9 + $0x3d20] sm:$0xff] }
 0x512   : > { %15252 = vmatprep.subr.bf16.mxu1 %v18776_v31  ;;  %v3600_v31 = vld [vmem:[%s19760_s9 + $0x3c80] sm:$0xff]  ;;  %v18815_v39 = vcombine.low %v3609_v0, %v3613_v4 }
 0x513   : > { %v18805_v3 = vcombine.low %v3600_v31, %v3604_v21 }
 0x514   : > { %14597 = vmatpush1.bf16.msra.mxu0 %v18773_v59  ;;  %v18797_v59 = vcombine.low %v3592_v10, %v3596_v23  ;;  %v3621_v10 = vld [vmem:[%s19760_s9 + $0x3d28] sm:$0xff] }
 0x515   : > { %15253 = vmatpush1.bf16.msra.mxu1 %v18775_v45  ;;  %14598 = vmatprep.subr.bf16.mxu0 %v18782_v43  ;;  %v18799_v45 = vcombine.low %v3593_v46, %v3597_v2  ;;  %v18806_v43 = vcombine.high %v3600_v31, %v3604_v21  ;;  %v3624_v2 = vld [vmem:[%s19760_s9 + $0x3d40] sm:$0xff]  ;;  %v3629_v31 = vld [vmem:[%s19760_s9 + $0x3d68] sm:$0xff] }
 0x516   : > { %15254 = vmatprep.subr.bf16.mxu1 %v18784_v37  ;;  %v3608_v37 = vld [vmem:[%s19760_s9 + $0x3cc0] sm:$0xff] }
 0x517   : > { %v18813_v23 = vcombine.low %v3608_v37, %v3612_v51 }
 0x518   : > { %14599 = vmatpush1.bf16.msra.mxu0 %v18781_v17  ;;  %v18814_v17 = vcombine.high %v3608_v37, %v3612_v51 }
 0x519   : > { %15255 = vmatpush1.bf16.msra.mxu1 %v18783_v8  ;;  %14609 = vmatprep.subr.bf16.mxu0 %v18790_v6  ;;  %v18816_v8 = vcombine.high %v3609_v0, %v3613_v4  ;;  %v3616_v6 = vld [vmem:[%s19760_s9 + $0x3d00] sm:$0xff] }
 0x51a   : > { %15265 = vmatprep.subr.bf16.mxu1 %v18792_v60  ;;  %v3617_v60 = vld [vmem:[%s19760_s9 + $0x3d08] sm:$0xff]  ;;  %v18821_v21 = vcombine.low %v3616_v6, %v3620_v57 }
 0x51b   : > { %14601 = vmatmul.mubr.bf16.vlgmr.msra.gmra.mrb[32].mxu0 %v21145_v14  ;;  %v18824_v46 = vcombine.high %v3617_v60, %v3621_v10 }
 0x51c   : > { %15257 = vmatmul.mubr.bf16.vlgmr.msra.gmra.mrb[32].mxu1 %v21145_v14  ;;  %14610 = vmatpush1.bf16.msra.mxu0 %v18789_v32  ;;  %v18822_v32 = vcombine.high %v3616_v6, %v3620_v57 }
 0x51d   : > { %14641 = vmatprep.mubr.bf16.mxu0 %v21149_v33  ;;  %15266 = vmatpush1.bf16.msra.mxu1 %v18791_v35  ;;  %v3628_v35 = vld [vmem:[%s19760_s9 + $0x3d60] sm:$0xff] }
 0x51e   : > { %15297 = vmatprep.mubr.bf16.mxu1 %v21149_v33  ;;  %14611 = vmatprep.subr.bf16.mxu0 %v18798_v12  ;;  %v3625_v12 = vld [vmem:[%s19760_s9 + $0x3d48] sm:$0xff]  ;;  %v18830_v62 = vcombine.high %v3624_v2, %v3628_v35  ;;  %v18829_v37 = vcombine.low %v3624_v2, %v3628_v35 }
 0x51f   : > { %15267 = vmatprep.subr.bf16.mxu1 %v18800_v58  ;;  %v18823_v58 = vcombine.low %v3617_v60, %v3621_v10  ;;  %v18832_v63 = vcombine.high %v3625_v12, %v3629_v31  ;;  %v18831_v51 = vcombine.low %v3625_v12, %v3629_v31 }
 0x520   : > { %14612 = vmatpush1.bf16.msra.mxu0 %v18797_v59  ;;  %v3632_v59 = vld [vmem:[%s19760_s9 + $0x3d80] sm:$0xff] }
 0x521   : > { %15268 = vmatpush1.bf16.msra.mxu1 %v18799_v45  ;;  %14613 = vmatprep.subr.bf16.mxu0 %v18806_v43  ;;  %v3636_v45 = vld [vmem:[%s19760_s9 + $0x3da0] sm:$0xff]  ;;  %v3633_v43 = vld [vmem:[%s19760_s9 + $0x3d88] sm:$0xff] }
 0x522   : > { %15269 = vmatprep.subr.bf16.mxu1 %v18808_v50  ;;  %v3637_v50 = vld [vmem:[%s19760_s9 + $0x3da8] sm:$0xff]  ;;  %v18838_v0 = vcombine.high %v3632_v59, %v3636_v45  ;;  %v18837_v6 = vcombine.low %v3632_v59, %v3636_v45 }
 0x523   : > { %v18840_v4 = vcombine.high %v3633_v43, %v3637_v50  ;;  %v18839_v57 = vcombine.low %v3633_v43, %v3637_v50 }
 0x524   : > { %14614 = vmatpush1.bf16.msra.mxu0 %v18805_v3  ;;  %v3640_v3 = vld [vmem:[%s19760_s9 + $0x3dc0] sm:$0xff] }
 0x525   : > { %15270 = vmatpush1.bf16.msra.mxu1 %v18807_v26  ;;  %14615 = vmatprep.subr.bf16.mxu0 %v18814_v17  ;;  %v3644_v26 = vld [vmem:[%s19760_s9 + $0x3de0] sm:$0xff]  ;;  %v3641_v17 = vld [vmem:[%s19760_s9 + $0x3dc8] sm:$0xff] }
 0x526   : > { %15271 = vmatprep.subr.bf16.mxu1 %v18816_v8  ;;  %v3645_v8 = vld [vmem:[%s19760_s9 + $0x3de8] sm:$0xff]  ;;  %v18846_v60 = vcombine.high %v3640_v3, %v3644_v26  ;;  %v18845_v2 = vcombine.low %v3640_v3, %v3644_v26 }
 0x527   : > { %v18848_v10 = vcombine.high %v3641_v17, %v3645_v8  ;;  %v18847_v35 = vcombine.low %v3641_v17, %v3645_v8 }
 0x528   : > { %14616 = vmatpush1.bf16.msra.mxu0 %v18813_v23  ;;  %v3648_v23 = vld [vmem:[%s19760_s9 + $0x3e00] sm:$0xff] }
 0x529   : > { %15272 = vmatpush1.bf16.msra.mxu1 %v18815_v39  ;;  %14617 = vmatprep.subr.bf16.mxu0 %v18822_v32  ;;  %v3652_v39 = vld [vmem:[%s19760_s9 + $0x3e20] sm:$0xff]  ;;  %v3649_v32 = vld [vmem:[%s19760_s9 + $0x3e08] sm:$0xff] }
 0x52a   : > { %15273 = vmatprep.subr.bf16.mxu1 %v18824_v46  ;;  %v3653_v46 = vld [vmem:[%s19760_s9 + $0x3e28] sm:$0xff]  ;;  %v18854_v12 = vcombine.high %v3648_v23, %v3652_v39  ;;  %v18853_v59 = vcombine.low %v3648_v23, %v3652_v39 }
 0x52b   : > { %v18856_v31 = vcombine.high %v3649_v32, %v3653_v46  ;;  %v18855_v45 = vcombine.low %v3649_v32, %v3653_v46 }
 0x52c   : > { %14618 = vmatpush1.bf16.msra.mxu0 %v18821_v21  ;;  %v3656_v21 = vld [vmem:[%s19760_s9 + $0x3e40] sm:$0xff] }
 0x52d   : > { %15274 = vmatpush1.bf16.msra.mxu1 %v18823_v58  ;;  %14619 = vmatprep.subr.bf16.mxu0 %v18830_v62  ;;  %v3660_v58 = vld [vmem:[%s19760_s9 + $0x3e60] sm:$0xff]  ;;  %v3657_v62 = vld [vmem:[%s19760_s9 + $0x3e48] sm:$0xff] }
 0x52e   : > { %15275 = vmatprep.subr.bf16.mxu1 %v18832_v63  ;;  %v3661_v63 = vld [vmem:[%s19760_s9 + $0x3e68] sm:$0xff]  ;;  %v18862_v43 = vcombine.high %v3656_v21, %v3660_v58  ;;  %v18861_v3 = vcombine.low %v3656_v21, %v3660_v58 }
 0x52f   : > { %v18864_v50 = vcombine.high %v3657_v62, %v3661_v63  ;;  %v18863_v26 = vcombine.low %v3657_v62, %v3661_v63 }
 0x530   : > { %14620 = vmatpush1.bf16.msra.mxu0 %v18829_v37  ;;  %v3664_v37 = vld [vmem:[%s19760_s9 + $0x3e80] sm:$0xff] }
 0x531   : > { %15276 = vmatpush1.bf16.msra.mxu1 %v18831_v51  ;;  %14621 = vmatprep.subr.bf16.mxu0 %v18838_v0  ;;  %v3668_v51 = vld [vmem:[%s19760_s9 + $0x3ea0] sm:$0xff]  ;;  %v3665_v0 = vld [vmem:[%s19760_s9 + $0x3e88] sm:$0xff] }
 0x532   : > { %15277 = vmatprep.subr.bf16.mxu1 %v18840_v4  ;;  %v3669_v4 = vld [vmem:[%s19760_s9 + $0x3ea8] sm:$0xff]  ;;  %v18870_v17 = vcombine.high %v3664_v37, %v3668_v51  ;;  %v18869_v23 = vcombine.low %v3664_v37, %v3668_v51 }
 0x533   : > { %v18872_v8 = vcombine.high %v3665_v0, %v3669_v4  ;;  %v18871_v39 = vcombine.low %v3665_v0, %v3669_v4 }
 0x534   : > { %14622 = vmatpush1.bf16.msra.mxu0 %v18837_v6  ;;  %v3672_v6 = vld [vmem:[%s19760_s9 + $0x3ec0] sm:$0xff] }
 0x535   : > { %15278 = vmatpush1.bf16.msra.mxu1 %v18839_v57  ;;  %14623 = vmatprep.subr.bf16.mxu0 %v18846_v60  ;;  %v3676_v57 = vld [vmem:[%s19760_s9 + $0x3ee0] sm:$0xff]  ;;  %v3673_v60 = vld [vmem:[%s19760_s9 + $0x3ec8] sm:$0xff] }
 0x536   : > { %15279 = vmatprep.subr.bf16.mxu1 %v18848_v10  ;;  %v3677_v10 = vld [vmem:[%s19760_s9 + $0x3ee8] sm:$0xff]  ;;  %v18878_v32 = vcombine.high %v3672_v6, %v3676_v57  ;;  %v18877_v21 = vcombine.low %v3672_v6, %v3676_v57 }
 0x537   : > { %v18880_v46 = vcombine.high %v3673_v60, %v3677_v10  ;;  %v18879_v58 = vcombine.low %v3673_v60, %v3677_v10 }
 0x538   : > { %14624 = vmatpush1.bf16.msra.mxu0 %v18845_v2  ;;  %v3680_v2 = vld [vmem:[%s19760_s9 + $0x3f00] sm:$0xff] }
 0x539   : > { %15280 = vmatpush1.bf16.msra.mxu1 %v18847_v35  ;;  %14625 = vmatprep.subr.bf16.mxu0 %v18854_v12  ;;  %v3684_v35 = vld [vmem:[%s19760_s9 + $0x3f20] sm:$0xff]  ;;  %v3681_v12 = vld [vmem:[%s19760_s9 + $0x3f08] sm:$0xff] }
 0x53a   : > { %15281 = vmatprep.subr.bf16.mxu1 %v18856_v31  ;;  %v3685_v31 = vld [vmem:[%s19760_s9 + $0x3f28] sm:$0xff]  ;;  %v18886_v62 = vcombine.high %v3680_v2, %v3684_v35  ;;  %v18885_v37 = vcombine.low %v3680_v2, %v3684_v35 }
 0x53b   : > { %v18888_v63 = vcombine.high %v3681_v12, %v3685_v31  ;;  %v18887_v51 = vcombine.low %v3681_v12, %v3685_v31  ;;  %v1598_v31 = vmul.f32 0.01, %v20108_v36 }
 0x53c   : > { %14626 = vmatpush1.bf16.msra.mxu0 %v18853_v59  ;;  %v3688_v59 = vld [vmem:[%s19760_s9 + $0x3f40] sm:$0xff] }
 0x53d   : > { %15282 = vmatpush1.bf16.msra.mxu1 %v18855_v45  ;;  %14627 = vmatprep.subr.bf16.mxu0 %v18862_v43  ;;  %v3692_v45 = vld [vmem:[%s19760_s9 + $0x3f60] sm:$0xff]  ;;  %v3689_v43 = vld [vmem:[%s19760_s9 + $0x3f48] sm:$0xff] }
 0x53e   : > { %15283 = vmatprep.subr.bf16.mxu1 %v18864_v50  ;;  %v3693_v50 = vld [vmem:[%s19760_s9 + $0x3f68] sm:$0xff]  ;;  %v18894_v0 = vcombine.high %v3688_v59, %v3692_v45  ;;  %v18893_v6 = vcombine.low %v3688_v59, %v3692_v45  ;;  %v1671_v59 = vld [vmem:[%s19760_s9 + $0x38] sm:$0xff] }
 0x53f   : > { %v18896_v4 = vcombine.high %v3689_v43, %v3693_v50  ;;  %v18895_v57 = vcombine.low %v3689_v43, %v3693_v50 }
 0x540   : > { %14628 = vmatpush1.bf16.msra.mxu0 %v18861_v3  ;;  %v3696_v3 = vld [vmem:[%s19760_s9 + $0x3f80] sm:$0xff] }
 0x541   : > { %15284 = vmatpush1.bf16.msra.mxu1 %v18863_v26  ;;  %14629 = vmatprep.subr.bf16.mxu0 %v18870_v17  ;;  %v3700_v26 = vld [vmem:[%s19760_s9 + $0x3fa0] sm:$0xff]  ;;  %v3697_v17 = vld [vmem:[%s19760_s9 + $0x3f88] sm:$0xff] }
 0x542   : > { %15285 = vmatprep.subr.bf16.mxu1 %v18872_v8  ;;  %v3701_v8 = vld [vmem:[%s19760_s9 + $0x3fa8] sm:$0xff]  ;;  %v18902_v60 = vcombine.high %v3696_v3, %v3700_v26  ;;  %v18901_v2 = vcombine.low %v3696_v3, %v3700_v26  ;;  %v1675_v26 = vld [vmem:[%s19760_s9 + $0x58] sm:$0xff] }
 0x543   : > { %v18904_v10 = vcombine.high %v3697_v17, %v3701_v8  ;;  %v18903_v35 = vcombine.low %v3697_v17, %v3701_v8  ;;  %v1679_v17 = vld [vmem:[%s19760_s9 + $0x78] sm:$0xff] }
 0x544   : > { %14630 = vmatpush1.bf16.msra.mxu0 %v18869_v23  ;;  %v3704_v23 = vld [vmem:[%s19760_s9 + $0x3fc0] sm:$0xff] }
 0x545   : > { %15286 = vmatpush1.bf16.msra.mxu1 %v18871_v39  ;;  %14631 = vmatprep.subr.bf16.mxu0 %v18878_v32  ;;  %v3708_v39 = vld [vmem:[%s19760_s9 + $0x3fe0] sm:$0xff]  ;;  %v3705_v32 = vld [vmem:[%s19760_s9 + $0x3fc8] sm:$0xff] }
 0x546   : > { %15287 = vmatprep.subr.bf16.mxu1 %v18880_v46  ;;  %v3709_v46 = vld [vmem:[%s19760_s9 + $0x3fe8] sm:$0xff]  ;;  %v18910_v12 = vcombine.high %v3704_v23, %v3708_v39  ;;  %v18909_v45 = vcombine.low %v3704_v23, %v3708_v39  ;;  %v1683_v23 = vld [vmem:[%s19760_s9 + $0x98] sm:$0xff] }
 0x547   : > { %v18911_v43 = vcombine.low %v3705_v32, %v3709_v46  ;;  %v1687_v39 = vld [vmem:[%s19760_s9 + $0xb8] sm:$0xff] }
 0x548   : > { %14632 = vmatpush1.bf16.msra.mxu0 %v18877_v21  ;;  %v18912_v21 = vcombine.high %v3705_v32, %v3709_v46  ;;  %v16883_v46 = vcombine.low %v1675_v26, %v1679_v17 }
 0x549   : > { %15288 = vmatpush1.bf16.msra.mxu1 %v18879_v58  ;;  %14633 = vmatprep.subr.bf16.mxu0 %v18886_v62  ;;  %v1666_v58 = vld [vmem:[%s19760_s9 + $0x10] sm:$0xff] }
 0x54a   : > { %15289 = vmatprep.subr.bf16.mxu1 %v18888_v63  ;;  %v1670_v62 = vld [vmem:[%s19760_s9 + $0x30] sm:$0xff]  ;;  %v1667_v63 = vld [vmem:[%s19760_s9 + $0x18] sm:$0xff] }
 0x54b   : > { %v16874_v50 = vcombine.high %v1666_v58, %v1670_v62  ;;  %v16873_v3 = vcombine.low %v1666_v58, %v1670_v62  ;;  %v1695_v58 = vld [vmem:[%s19760_s9 + $0xf8] sm:$0xff] }
 0x54c   : > { %14634 = vmatpush1.bf16.msra.mxu0 %v18885_v37  ;;  %v1630_v37 = vsel %vm1566_vm0, %v20108_v36, %v1598_v31  ;;  %v1686_v36 = vld [vmem:[%s19760_s9 + $0xb0] sm:$0xff] }
 0x54d   : > { %15290 = vmatpush1.bf16.msra.mxu1 %v18887_v51  ;;  %14635 = vmatprep.subr.bf16.mxu0 %v18894_v0  ;;  %v16876_v51 = vcombine.high %v1667_v63, %v1671_v59  ;;  %v1674_v0 = vld [vmem:[%s19760_s9 + $0x50] sm:$0xff]  ;;  %v21220_v8 = vpack.c.bf16 %v1630_v37, %v1630_v37  ;;  %v1703_v37 = vld [vmem:[%s19760_s9 + $0x138] sm:$0xff] }
 0x54e   : > { %15291 = vmatprep.subr.bf16.mxu1 %v18896_v4  ;;  %v1678_v4 = vld [vmem:[%s19760_s9 + $0x70] sm:$0xff] }
 0x54f   : > { %v16881_v32 = vcombine.low %v1674_v0, %v1678_v4  ;;  %v1694_v31 = vld [vmem:[%s19760_s9 + $0xf0] sm:$0xff] }
 0x550   : > { %14636 = vmatpush1.bf16.msra.mxu0 %v18893_v6  ;;  %v16875_v6 = vcombine.low %v1667_v63, %v1671_v59  ;;  %v16891_v63 = vcombine.low %v1683_v23, %v1687_v39 }
 0x551   : > { %15292 = vmatpush1.bf16.msra.mxu1 %v18895_v57  ;;  %14637 = vmatprep.subr.bf16.mxu0 %v18902_v60  ;;  %v16882_v57 = vcombine.high %v1674_v0, %v1678_v4  ;;  %v1682_v60 = vld [vmem:[%s19760_s9 + $0x90] sm:$0xff] }
 0x552   : > { %15293 = vmatprep.subr.bf16.mxu1 %v18904_v10  ;;  %v16884_v10 = vcombine.high %v1675_v26, %v1679_v17  ;;  %v16889_v62 = vcombine.low %v1682_v60, %v1686_v36  ;;  %v1706_v26 = vld [vmem:[%s19760_s9 + $0x150] sm:$0xff] }
 0x553   : > { %v1710_v17 = vld [vmem:[%s19760_s9 + $0x170] sm:$0xff] }
 0x554   : > { %14638 = vmatpush1.bf16.msra.mxu0 %v18901_v2  ;;  %v16890_v2 = vcombine.high %v1682_v60, %v1686_v36 }
 0x555   : > { %15294 = vmatpush1.bf16.msra.mxu1 %v18903_v35  ;;  %14639 = vmatprep.subr.bf16.mxu0 %v18910_v12  ;;  %v16892_v35 = vcombine.high %v1683_v23, %v1687_v39  ;;  %v1690_v12 = vld [vmem:[%s19760_s9 + $0xd0] sm:$0xff] }
 0x556   : > { %15295 = vmatprep.subr.bf16.mxu1 %v18912_v21  ;;  %v1691_v21 = vld [vmem:[%s19760_s9 + $0xd8] sm:$0xff]  ;;  %v16898_v59 = vcombine.high %v1690_v12, %v1694_v31  ;;  %v1714_v39 = vld [vmem:[%s19760_s9 + $0x190] sm:$0xff] }
 0x557   : > { %v16899_v0 = vcombine.low %v1691_v21, %v1695_v58 }
 0x558   : > { %14640 = vmatpush1.bf16.msra.mxu0 %v18909_v45  ;;  %v1698_v45 = vld [vmem:[%s19760_s9 + $0x110] sm:$0xff] }
 0x559   : > { %15296 = vmatpush1.bf16.msra.mxu1 %v18911_v43  ;;  %15306 = vmatprep.subr.bf16.mxu0 %v16874_v50  ;;  %v1702_v43 = vld [vmem:[%s19760_s9 + $0x130] sm:$0xff]  ;;  %v1699_v50 = vld [vmem:[%s19760_s9 + $0x118] sm:$0xff] }
 0x55a   : > { %15962 = vmatprep.subr.bf16.mxu1 %v16876_v51  ;;  %v16897_v51 = vcombine.low %v1690_v12, %v1694_v31  ;;  %v16906_v4 = vcombine.high %v1698_v45, %v1702_v43  ;;  %v16905_v60 = vcombine.low %v1698_v45, %v1702_v43  ;;  %v16907_v36 = vcombine.low %v1699_v50, %v1703_v37 }
 0x55b   : > { %14642 = vmatmul.mubr.bf16.vlgmr.msra.gmra.mrb[32].mxu0 %v21220_v8 }
 0x55c   : > { %15298 = vmatmul.mubr.bf16.vlgmr.msra.gmra.mrb[32].mxu1 %v21220_v8  ;;  %15307 = vmatpush1.bf16.msra.mxu0 %v16873_v3  ;;  %v16908_v3 = vcombine.high %v1699_v50, %v1703_v37  ;;  %v1730_v37 = vld [vmem:[%s19760_s9 + $0x210] sm:$0xff] }
 0x55d   : > { %15338 = vmatprep.mubr.bf16.mxu0 %v19925_v48  ;;  %15963 = vmatpush1.bf16.msra.mxu1 %v16875_v6  ;;  %v1707_v6 = vld [vmem:[%s19760_s9 + $0x158] sm:$0xff] }
 0x55e   : > { %15994 = vmatprep.mubr.bf16.mxu1 %v19925_v48  ;;  %15308 = vmatprep.subr.bf16.mxu0 %v16882_v57  ;;  %v16900_v48 = vcombine.high %v1691_v21, %v1695_v58  ;;  %v1711_v57 = vld [vmem:[%s19760_s9 + $0x178] sm:$0xff]  ;;  %v1722_v58 = vld [vmem:[%s19760_s9 + $0x1d0] sm:$0xff] }
 0x55f   : > { %15964 = vmatprep.subr.bf16.mxu1 %v16884_v10  ;;  %v16914_v10 = vcombine.high %v1706_v26, %v1710_v17  ;;  %v16916_v23 = vcombine.high %v1707_v6, %v1711_v57  ;;  %v16915_v12 = vcombine.low %v1707_v6, %v1711_v57  ;;  %v1738_v57 = vld [vmem:[%s19760_s9 + $0x250] sm:$0xff] }
 0x560   : > { %15309 = vmatpush1.bf16.msra.mxu0 %v16881_v32  ;;  %v1718_v32 = vld [vmem:[%s19760_s9 + $0x1b0] sm:$0xff] }
 0x561   : > { %15965 = vmatpush1.bf16.msra.mxu1 %v16883_v46  ;;  %15310 = vmatprep.subr.bf16.mxu0 %v16890_v2  ;;  %v1715_v46 = vld [vmem:[%s19760_s9 + $0x198] sm:$0xff]  ;;  %v16922_v31 = vcombine.high %v1714_v39, %v1718_v32 }
 0x562   : > { %15966 = vmatprep.subr.bf16.mxu1 %v16892_v35  ;;  %v1719_v2 = vld [vmem:[%s19760_s9 + $0x1b8] sm:$0xff]  ;;  %v16913_v35 = vcombine.low %v1706_v26, %v1710_v17 }
 0x563   : > { %v16924_v21 = vcombine.high %v1715_v46, %v1719_v2  ;;  %v16923_v45 = vcombine.low %v1715_v46, %v1719_v2  ;;  %v1746_v2 = vld [vmem:[%s19760_s9 + $0x290] sm:$0xff] }
 0x564   : > { %15311 = vmatpush1.bf16.msra.mxu0 %v16889_v62  ;;  %v1726_v62 = vld [vmem:[%s19760_s9 + $0x1f0] sm:$0xff] }
 0x565   : > { %15967 = vmatpush1.bf16.msra.mxu1 %v16891_v63  ;;  %15312 = vmatprep.subr.bf16.mxu0 %v16898_v59  ;;  %v1723_v63 = vld [vmem:[%s19760_s9 + $0x1d8] sm:$0xff]  ;;  %v16930_v43 = vcombine.high %v1722_v58, %v1726_v62 }
 0x566   : > { %15968 = vmatprep.subr.bf16.mxu1 %v16900_v48  ;;  %v1727_v59 = vld [vmem:[%s19760_s9 + $0x1f8] sm:$0xff]  ;;  %v16921_v48 = vcombine.low %v1714_v39, %v1718_v32 }
 0x567   : > { %v16932_v50 = vcombine.high %v1723_v63, %v1727_v59  ;;  %v16931_v26 = vcombine.low %v1723_v63, %v1727_v59  ;;  %v1754_v59 = vld [vmem:[%s19760_s9 + $0x2d0] sm:$0xff] }
 0x568   : > { %15313 = vmatpush1.bf16.msra.mxu0 %v16897_v51  ;;  %v1734_v51 = vld [vmem:[%s19760_s9 + $0x230] sm:$0xff] }
 0x569   : > { %15969 = vmatpush1.bf16.msra.mxu1 %v16899_v0  ;;  %15314 = vmatprep.subr.bf16.mxu0 %v16906_v4  ;;  %v1731_v0 = vld [vmem:[%s19760_s9 + $0x218] sm:$0xff]  ;;  %v16938_v17 = vcombine.high %v1730_v37, %v1734_v51 }
 0x56a   : > { %15970 = vmatprep.subr.bf16.mxu1 %v16908_v3  ;;  %v1735_v4 = vld [vmem:[%s19760_s9 + $0x238] sm:$0xff]  ;;  %v16929_v3 = vcombine.low %v1722_v58, %v1726_v62 }
 0x56b   : > { %v16940_v6 = vcombine.high %v1731_v0, %v1735_v4  ;;  %v16939_v39 = vcombine.low %v1731_v0, %v1735_v4  ;;  %v1762_v4 = vld [vmem:[%s19760_s9 + $0x310] sm:$0xff] }
 0x56c   : > { %15315 = vmatpush1.bf16.msra.mxu0 %v16905_v60  ;;  %v1742_v60 = vld [vmem:[%s19760_s9 + $0x270] sm:$0xff] }
 0x56d   : > { %15971 = vmatpush1.bf16.msra.mxu1 %v16907_v36  ;;  %15316 = vmatprep.subr.bf16.mxu0 %v16914_v10  ;;  %v1739_v36 = vld [vmem:[%s19760_s9 + $0x258] sm:$0xff]  ;;  %v16946_v32 = vcombine.high %v1738_v57, %v1742_v60 }
 0x56e   : > { %15972 = vmatprep.subr.bf16.mxu1 %v16916_v23  ;;  %v1743_v10 = vld [vmem:[%s19760_s9 + $0x278] sm:$0xff]  ;;  %v16937_v23 = vcombine.low %v1730_v37, %v1734_v51 }
 0x56f   : > { %v16948_v46 = vcombine.high %v1739_v36, %v1743_v10  ;;  %v16947_v58 = vcombine.low %v1739_v36, %v1743_v10  ;;  %v1770_v10 = vld [vmem:[%s19760_s9 + $0x350] sm:$0xff] }
 0x570   : > { %15317 = vmatpush1.bf16.msra.mxu0 %v16913_v35  ;;  %v1750_v35 = vld [vmem:[%s19760_s9 + $0x2b0] sm:$0xff] }
 0x571   : > { %15973 = vmatpush1.bf16.msra.mxu1 %v16915_v12  ;;  %15318 = vmatprep.subr.bf16.mxu0 %v16922_v31  ;;  %v1747_v12 = vld [vmem:[%s19760_s9 + $0x298] sm:$0xff]  ;;  %v16954_v62 = vcombine.high %v1746_v2, %v1750_v35 }
 0x572   : > { %15974 = vmatprep.subr.bf16.mxu1 %v16924_v21  ;;  %v1751_v31 = vld [vmem:[%s19760_s9 + $0x2b8] sm:$0xff]  ;;  %v16945_v21 = vcombine.low %v1738_v57, %v1742_v60 }
 0x573   : > { %v16956_v63 = vcombine.high %v1747_v12, %v1751_v31  ;;  %v16955_v37 = vcombine.low %v1747_v12, %v1751_v31  ;;  %v1778_v31 = vld [vmem:[%s19760_s9 + $0x390] sm:$0xff] }
 0x574   : > { %15319 = vmatpush1.bf16.msra.mxu0 %v16921_v48  ;;  %v1758_v48 = vld [vmem:[%s19760_s9 + $0x2f0] sm:$0xff] }
 0x575   : > { %15975 = vmatpush1.bf16.msra.mxu1 %v16923_v45  ;;  %15320 = vmatprep.subr.bf16.mxu0 %v16930_v43  ;;  %v1755_v45 = vld [vmem:[%s19760_s9 + $0x2d8] sm:$0xff]  ;;  %v16962_v51 = vcombine.high %v1754_v59, %v1758_v48 }
 0x576   : > { %15976 = vmatprep.subr.bf16.mxu1 %v16932_v50  ;;  %v1759_v43 = vld [vmem:[%s19760_s9 + $0x2f8] sm:$0xff]  ;;  %v16953_v50 = vcombine.low %v1746_v2, %v1750_v35 }
 0x577   : > { %v16964_v0 = vcombine.high %v1755_v45, %v1759_v43  ;;  %v16963_v57 = vcombine.low %v1755_v45, %v1759_v43  ;;  %v1786_v43 = vld [vmem:[%s19760_s9 + $0x3d0] sm:$0xff] }
 0x578   : > { %15321 = vmatpush1.bf16.msra.mxu0 %v16929_v3  ;;  %v1766_v3 = vld [vmem:[%s19760_s9 + $0x330] sm:$0xff] }
 0x579   : > { %15977 = vmatpush1.bf16.msra.mxu1 %v16931_v26  ;;  %15322 = vmatprep.subr.bf16.mxu0 %v16938_v17  ;;  %v1763_v26 = vld [vmem:[%s19760_s9 + $0x318] sm:$0xff]  ;;  %v16970_v60 = vcombine.high %v1762_v4, %v1766_v3 }
 0x57a   : > { %15978 = vmatprep.subr.bf16.mxu1 %v16940_v6  ;;  %v1767_v17 = vld [vmem:[%s19760_s9 + $0x338] sm:$0xff]  ;;  %v16961_v6 = vcombine.low %v1754_v59, %v1758_v48 }
 0x57b   : > { %v16972_v36 = vcombine.high %v1763_v26, %v1767_v17  ;;  %v16971_v2 = vcombine.low %v1763_v26, %v1767_v17  ;;  %v1794_v17 = vld [vmem:[%s19760_s9 + $0x410] sm:$0xff] }
 0x57c   : > { %15323 = vmatpush1.bf16.msra.mxu0 %v16937_v23  ;;  %v1774_v23 = vld [vmem:[%s19760_s9 + $0x370] sm:$0xff] }
 0x57d   : > { %15979 = vmatpush1.bf16.msra.mxu1 %v16939_v39  ;;  %15324 = vmatprep.subr.bf16.mxu0 %v16946_v32  ;;  %v1771_v39 = vld [vmem:[%s19760_s9 + $0x358] sm:$0xff]  ;;  %v16978_v35 = vcombine.high %v1770_v10, %v1774_v23 }
 0x57e   : > { %15980 = vmatprep.subr.bf16.mxu1 %v16948_v46  ;;  %v1775_v32 = vld [vmem:[%s19760_s9 + $0x378] sm:$0xff]  ;;  %v16969_v46 = vcombine.low %v1762_v4, %v1766_v3 }
 0x57f   : > { %v16980_v12 = vcombine.high %v1771_v39, %v1775_v32  ;;  %v16979_v59 = vcombine.low %v1771_v39, %v1775_v32  ;;  %v1802_v32 = vld [vmem:[%s19760_s9 + $0x450] sm:$0xff] }
 0x580   : > { %15325 = vmatpush1.bf16.msra.mxu0 %v16945_v21  ;;  %v1782_v21 = vld [vmem:[%s19760_s9 + $0x3b0] sm:$0xff] }
 0x581   : > { %15981 = vmatpush1.bf16.msra.mxu1 %v16947_v58  ;;  %15326 = vmatprep.subr.bf16.mxu0 %v16954_v62  ;;  %v1779_v58 = vld [vmem:[%s19760_s9 + $0x398] sm:$0xff]  ;;  %v16986_v48 = vcombine.high %v1778_v31, %v1782_v21 }
 0x582   : > { %15982 = vmatprep.subr.bf16.mxu1 %v16956_v63  ;;  %v1783_v62 = vld [vmem:[%s19760_s9 + $0x3b8] sm:$0xff]  ;;  %v16977_v63 = vcombine.low %v1770_v10, %v1774_v23 }
 0x583   : > { %v16988_v45 = vcombine.high %v1779_v58, %v1783_v62  ;;  %v16987_v4 = vcombine.low %v1779_v58, %v1783_v62  ;;  %v1810_v58 = vld [vmem:[%s19760_s9 + $0x490] sm:$0xff] }
 0x584   : > { %15327 = vmatpush1.bf16.msra.mxu0 %v16953_v50  ;;  %v1790_v50 = vld [vmem:[%s19760_s9 + $0x3f0] sm:$0xff] }
 0x585   : > { %15983 = vmatpush1.bf16.msra.mxu1 %v16955_v37  ;;  %15328 = vmatprep.subr.bf16.mxu0 %v16962_v51  ;;  %v1787_v37 = vld [vmem:[%s19760_s9 + $0x3d8] sm:$0xff]  ;;  %v16994_v3 = vcombine.high %v1786_v43, %v1790_v50  ;;  %v1814_v62 = vld [vmem:[%s19760_s9 + $0x4b0] sm:$0xff] }
 0x586   : > { %15984 = vmatprep.subr.bf16.mxu1 %v16964_v0  ;;  %v1791_v51 = vld [vmem:[%s19760_s9 + $0x3f8] sm:$0xff]  ;;  %v16985_v0 = vcombine.low %v1778_v31, %v1782_v21 }
 0x587   : > { %v16996_v26 = vcombine.high %v1787_v37, %v1791_v51  ;;  %v16995_v10 = vcombine.low %v1787_v37, %v1791_v51  ;;  %v17018_v37 = vcombine.high %v1810_v58, %v1814_v62 }
 0x588   : > { %15329 = vmatpush1.bf16.msra.mxu0 %v16961_v6  ;;  %v1798_v6 = vld [vmem:[%s19760_s9 + $0x430] sm:$0xff] }
 0x589   : > { %15985 = vmatpush1.bf16.msra.mxu1 %v16963_v57  ;;  %15330 = vmatprep.subr.bf16.mxu0 %v16970_v60  ;;  %v1795_v57 = vld [vmem:[%s19760_s9 + $0x418] sm:$0xff]  ;;  %v17002_v23 = vcombine.high %v1794_v17, %v1798_v6 }
 0x58a   : > { %15986 = vmatprep.subr.bf16.mxu1 %v16972_v36  ;;  %v1799_v60 = vld [vmem:[%s19760_s9 + $0x438] sm:$0xff]  ;;  %v16993_v36 = vcombine.low %v1786_v43, %v1790_v50 }
 0x58b   : > { %v17004_v39 = vcombine.high %v1795_v57, %v1799_v60  ;;  %v17003_v31 = vcombine.low %v1795_v57, %v1799_v60  ;;  %v22432_v43 = vld [vmem:[#allocation20_spill] sm:$0xff]  ;;  %v1826_v60 = vld [vmem:[%s19760_s9 + $0x510] sm:$0xff] }
 0x58c   : > { %15331 = vmatpush1.bf16.msra.mxu0 %v16969_v46  ;;  %v1806_v46 = vld [vmem:[%s19760_s9 + $0x470] sm:$0xff] }
 0x58d   : > { %15987 = vmatpush1.bf16.msra.mxu1 %v16971_v2  ;;  %15332 = vmatprep.subr.bf16.mxu0 %v16978_v35  ;;  %v17001_v2 = vcombine.low %v1794_v17, %v1798_v6  ;;  %v1803_v35 = vld [vmem:[%s19760_s9 + $0x458] sm:$0xff]  ;;  %v17010_v21 = vcombine.high %v1802_v32, %v1806_v46 }
 0x58e   : > { %15988 = vmatprep.subr.bf16.mxu1 %v16980_v12  ;;  %v1807_v12 = vld [vmem:[%s19760_s9 + $0x478] sm:$0xff] }
 0x58f   : > { %v17011_v50 = vcombine.low %v1803_v35, %v1807_v12 }
 0x590   : > { %15333 = vmatpush1.bf16.msra.mxu0 %v16977_v63  ;;  %v17012_v63 = vcombine.high %v1803_v35, %v1807_v12  ;;  %v1834_v35 = vld [vmem:[%s19760_s9 + $0x550] sm:$0xff] }
 0x591   : > { %15989 = vmatpush1.bf16.msra.mxu1 %v16979_v59  ;;  %15334 = vmatprep.subr.bf16.mxu0 %v16986_v48  ;;  %v1811_v59 = vld [vmem:[%s19760_s9 + $0x498] sm:$0xff]  ;;  %v1838_v12 = vld [vmem:[%s19760_s9 + $0x570] sm:$0xff] }
 0x592   : > { %15990 = vmatprep.subr.bf16.mxu1 %v16988_v45  ;;  %v1815_v48 = vld [vmem:[%s19760_s9 + $0x4b8] sm:$0xff]  ;;  %v17009_v45 = vcombine.low %v1802_v32, %v1806_v46 }
 0x593   : > { %v17020_v51 = vcombine.high %v1811_v59, %v1815_v48  ;;  %v17019_v17 = vcombine.low %v1811_v59, %v1815_v48  ;;  %v1842_v48 = vld [vmem:[%s19760_s9 + $0x590] sm:$0xff] }
 0x594   : > { %15335 = vmatpush1.bf16.msra.mxu0 %v16985_v0  ;;  %v1818_v0 = vld [vmem:[%s19760_s9 + $0x4d0] sm:$0xff] }
 0x595   : > { %15991 = vmatpush1.bf16.msra.mxu1 %v16987_v4  ;;  %15336 = vmatprep.subr.bf16.mxu0 %v16994_v3  ;;  %v1822_v4 = vld [vmem:[%s19760_s9 + $0x4f0] sm:$0xff]  ;;  %v1819_v3 = vld [vmem:[%s19760_s9 + $0x4d8] sm:$0xff] }
 0x596   : > { %15992 = vmatprep.subr.bf16.mxu1 %v16996_v26  ;;  %v17017_v26 = vcombine.low %v1810_v58, %v1814_v62  ;;  %v17026_v6 = vcombine.high %v1818_v0, %v1822_v4 }
 0x598   : > { %15337 = vmatpush1.bf16.msra.mxu0 %v16993_v36  ;;  %v1830_v36 = vld [vmem:[%s19760_s9 + $0x530] sm:$0xff] }
 0x599   : > { %15993 = vmatpush1.bf16.msra.mxu1 %v16995_v10  ;;  %15347 = vmatprep.subr.bf16.mxu0 %v17002_v23  ;;  %v1827_v10 = vld [vmem:[%s19760_s9 + $0x518] sm:$0xff]  ;;  %v17034_v46 = vcombine.high %v1826_v60, %v1830_v36  ;;  %v17033_v58 = vcombine.low %v1826_v60, %v1830_v36 }
 0x59a   : > { %16003 = vmatprep.subr.bf16.mxu1 %v17004_v39  ;;  %v1831_v23 = vld [vmem:[%s19760_s9 + $0x538] sm:$0xff]  ;;  %v17025_v39 = vcombine.low %v1818_v0, %v1822_v4 }
 0x59b   : > { %15339 = vmatmul.mubr.bf16.vlgmr.msra.gmra.mrb[36].mxu0 %v19927_v49  ;;  %v17035_v62 = vcombine.low %v1827_v10, %v1831_v23 }
 0x59c   : > { %15995 = vmatmul.mubr.bf16.vlgmr.msra.gmra.mrb[36].mxu1 %v19927_v49  ;;  %15348 = vmatpush1.bf16.msra.mxu0 %v17001_v2  ;;  %v1823_v49 = vld [vmem:[%s19760_s9 + $0x4f8] sm:$0xff]  ;;  %v17036_v2 = vcombine.high %v1827_v10, %v1831_v23  ;;  %v1858_v10 = vld [vmem:[%s19760_s9 + $0x610] sm:$0xff] }
 0x59d   : > { %15379 = vmatprep.mubr.bf16.mxu0 %v22432_v43  ;;  %16004 = vmatpush1.bf16.msra.mxu1 %v17003_v31  ;;  %v17028_v57 = vcombine.high %v1819_v3, %v1823_v49  ;;  %v17027_v32 = vcombine.low %v1819_v3, %v1823_v49  ;;  %v1835_v31 = vld [vmem:[%s19760_s9 + $0x558] sm:$0xff]  ;;  %v1850_v3 = vld [vmem:[%s19760_s9 + $0x5d0] sm:$0xff] }
 0x59e   : > { %16035 = vmatprep.mubr.bf16.mxu1 %v22432_v43  ;;  %15349 = vmatprep.subr.bf16.mxu0 %v17010_v21  ;;  %v1839_v21 = vld [vmem:[%s19760_s9 + $0x578] sm:$0xff]  ;;  %v1854_v49 = vld [vmem:[%s19760_s9 + $0x5f0] sm:$0xff] }
 0x59f   : > { %16005 = vmatprep.subr.bf16.mxu1 %v17012_v63  ;;  %v17042_v63 = vcombine.high %v1834_v35, %v1838_v12  ;;  %v17044_v59 = vcombine.high %v1835_v31, %v1839_v21  ;;  %v1843_v43 = vld [vmem:[%s19760_s9 + $0x598] sm:$0xff]  ;;  %v17058_v60 = vcombine.high %v1850_v3, %v1854_v49  ;;  %v1862_v23 = vld [vmem:[%s19760_s9 + $0x630] sm:$0xff] }
 0x5a0   : > { %15350 = vmatpush1.bf16.msra.mxu0 %v17009_v45  ;;  %v1846_v45 = vld [vmem:[%s19760_s9 + $0x5b0] sm:$0xff] }
 0x5a1   : > { %16006 = vmatpush1.bf16.msra.mxu1 %v17011_v50  ;;  %15351 = vmatprep.subr.bf16.mxu0 %v17018_v37  ;;  %v1847_v50 = vld [vmem:[%s19760_s9 + $0x5b8] sm:$0xff]  ;;  %v17041_v37 = vcombine.low %v1834_v35, %v1838_v12  ;;  %v17050_v0 = vcombine.high %v1842_v48, %v1846_v45  ;;  %v17066_v35 = vcombine.high %v1858_v10, %v1862_v23 }
 0x5a2   : > { %16007 = vmatprep.subr.bf16.mxu1 %v17020_v51  ;;  %v17043_v51 = vcombine.low %v1835_v31, %v1839_v21  ;;  %v17052_v4 = vcombine.high %v1843_v43, %v1847_v50  ;;  %v1866_v31 = vld [vmem:[%s19760_s9 + $0x650] sm:$0xff] }
 0x5a3   : > { %v1870_v21 = vld [vmem:[%s19760_s9 + $0x670] sm:$0xff] }
 0x5a4   : > { %15352 = vmatpush1.bf16.msra.mxu0 %v17017_v26  ;;  %v1851_v26 = vld [vmem:[%s19760_s9 + $0x5d8] sm:$0xff] }
 0x5a5   : > { %16008 = vmatpush1.bf16.msra.mxu1 %v17019_v17  ;;  %15353 = vmatprep.subr.bf16.mxu0 %v17026_v6  ;;  %v1855_v17 = vld [vmem:[%s19760_s9 + $0x5f8] sm:$0xff]  ;;  %v17049_v6 = vcombine.low %v1842_v48, %v1846_v45  ;;  %v17074_v48 = vcombine.high %v1866_v31, %v1870_v21 }
 0x5a6   : > { %16009 = vmatprep.subr.bf16.mxu1 %v17028_v57  ;;  %v17051_v57 = vcombine.low %v1843_v43, %v1847_v50  ;;  %v17060_v36 = vcombine.high %v1851_v26, %v1855_v17  ;;  %v1874_v43 = vld [vmem:[%s19760_s9 + $0x690] sm:$0xff] }
 0x5a7   : > { %v1878_v50 = vld [vmem:[%s19760_s9 + $0x6b0] sm:$0xff] }
 0x5a8   : > { %15354 = vmatpush1.bf16.msra.mxu0 %v17025_v39  ;;  %v1859_v39 = vld [vmem:[%s19760_s9 + $0x618] sm:$0xff] }
 0x5a9   : > { %16010 = vmatpush1.bf16.msra.mxu1 %v17027_v32  ;;  %15355 = vmatprep.subr.bf16.mxu0 %v17034_v46  ;;  %v1863_v32 = vld [vmem:[%s19760_s9 + $0x638] sm:$0xff]  ;;  %v17057_v46 = vcombine.low %v1850_v3, %v1854_v49  ;;  %v17082_v3 = vcombine.high %v1874_v43, %v1878_v50 }
 0x5aa   : > { %16011 = vmatprep.subr.bf16.mxu1 %v17036_v2  ;;  %v17059_v2 = vcombine.low %v1851_v26, %v1855_v17  ;;  %v17068_v12 = vcombine.high %v1859_v39, %v1863_v32  ;;  %v1882_v26 = vld [vmem:[%s19760_s9 + $0x6d0] sm:$0xff] }
 0x5ab   : > { %v1886_v17 = vld [vmem:[%s19760_s9 + $0x6f0] sm:$0xff] }
 0x5ac   : > { %15356 = vmatpush1.bf16.msra.mxu0 %v17033_v58  ;;  %v1867_v58 = vld [vmem:[%s19760_s9 + $0x658] sm:$0xff] }
 0x5ad   : > { %16012 = vmatpush1.bf16.msra.mxu1 %v17035_v62  ;;  %15357 = vmatprep.subr.bf16.mxu0 %v17042_v63  ;;  %v1871_v62 = vld [vmem:[%s19760_s9 + $0x678] sm:$0xff]  ;;  %v17065_v63 = vcombine.low %v1858_v10, %v1862_v23  ;;  %v17090_v10 = vcombine.high %v1882_v26, %v1886_v17 }
 0x5ae   : > { %16013 = vmatprep.subr.bf16.mxu1 %v17044_v59  ;;  %v17067_v59 = vcombine.low %v1859_v39, %v1863_v32  ;;  %v17076_v45 = vcombine.high %v1867_v58, %v1871_v62  ;;  %v1890_v39 = vld [vmem:[%s19760_s9 + $0x710] sm:$0xff] }
 0x5af   : > { %v1894_v32 = vld [vmem:[%s19760_s9 + $0x730] sm:$0xff] }
 0x5b0   : > { %15358 = vmatpush1.bf16.msra.mxu0 %v17041_v37  ;;  %v1875_v37 = vld [vmem:[%s19760_s9 + $0x698] sm:$0xff] }
 0x5b1   : > { %16014 = vmatpush1.bf16.msra.mxu1 %v17043_v51  ;;  %15359 = vmatprep.subr.bf16.mxu0 %v17050_v0  ;;  %v1879_v51 = vld [vmem:[%s19760_s9 + $0x6b8] sm:$0xff]  ;;  %v17073_v0 = vcombine.low %v1866_v31, %v1870_v21  ;;  %v17098_v31 = vcombine.high %v1890_v39, %v1894_v32 }
 0x5b2   : > { %16015 = vmatprep.subr.bf16.mxu1 %v17052_v4  ;;  %v17075_v4 = vcombine.low %v1867_v58, %v1871_v62  ;;  %v17084_v49 = vcombine.high %v1875_v37, %v1879_v51  ;;  %v1898_v58 = vld [vmem:[%s19760_s9 + $0x750] sm:$0xff] }
 0x5b3   : > { %v1902_v62 = vld [vmem:[%s19760_s9 + $0x770] sm:$0xff] }
 0x5b4   : > { %15360 = vmatpush1.bf16.msra.mxu0 %v17049_v6  ;;  %v1883_v6 = vld [vmem:[%s19760_s9 + $0x6d8] sm:$0xff] }
 0x5b5   : > { %16016 = vmatpush1.bf16.msra.mxu1 %v17051_v57  ;;  %15361 = vmatprep.subr.bf16.mxu0 %v17058_v60  ;;  %v1887_v57 = vld [vmem:[%s19760_s9 + $0x6f8] sm:$0xff]  ;;  %v17081_v60 = vcombine.low %v1874_v43, %v1878_v50  ;;  %v17106_v43 = vcombine.high %v1898_v58, %v1902_v62 }
 0x5b6   : > { %16017 = vmatprep.subr.bf16.mxu1 %v17060_v36  ;;  %v17083_v36 = vcombine.low %v1875_v37, %v1879_v51  ;;  %v17092_v23 = vcombine.high %v1883_v6, %v1887_v57  ;;  %v1906_v37 = vld [vmem:[%s19760_s9 + $0x790] sm:$0xff] }
 0x5b7   : > { %v1910_v51 = vld [vmem:[%s19760_s9 + $0x7b0] sm:$0xff] }
 0x5b8   : > { %15362 = vmatpush1.bf16.msra.mxu0 %v17057_v46  ;;  %v1891_v46 = vld [vmem:[%s19760_s9 + $0x718] sm:$0xff] }
 0x5b9   : > { %16018 = vmatpush1.bf16.msra.mxu1 %v17059_v2  ;;  %15363 = vmatprep.subr.bf16.mxu0 %v17066_v35  ;;  %v1895_v2 = vld [vmem:[%s19760_s9 + $0x738] sm:$0xff]  ;;  %v17089_v35 = vcombine.low %v1882_v26, %v1886_v17  ;;  %v17114_v26 = vcombine.high %v1906_v37, %v1910_v51 }
 0x5ba   : > { %16019 = vmatprep.subr.bf16.mxu1 %v17068_v12  ;;  %v17091_v12 = vcombine.low %v1883_v6, %v1887_v57  ;;  %v17100_v21 = vcombine.high %v1891_v46, %v1895_v2  ;;  %v1914_v6 = vld [vmem:[%s19760_s9 + $0x7d0] sm:$0xff] }
 0x5bb   : > { %v1918_v57 = vld [vmem:[%s19760_s9 + $0x7f0] sm:$0xff] }
 0x5bc   : > { %15364 = vmatpush1.bf16.msra.mxu0 %v17065_v63  ;;  %v1899_v63 = vld [vmem:[%s19760_s9 + $0x758] sm:$0xff] }
 0x5bd   : > { %16020 = vmatpush1.bf16.msra.mxu1 %v17067_v59  ;;  %15365 = vmatprep.subr.bf16.mxu0 %v17074_v48  ;;  %v1903_v59 = vld [vmem:[%s19760_s9 + $0x778] sm:$0xff]  ;;  %v17097_v48 = vcombine.low %v1890_v39, %v1894_v32  ;;  %v17122_v39 = vcombine.high %v1914_v6, %v1918_v57 }
 0x5be   : > { %16021 = vmatprep.subr.bf16.mxu1 %v17076_v45  ;;  %v17099_v45 = vcombine.low %v1891_v46, %v1895_v2  ;;  %v17108_v50 = vcombine.high %v1899_v63, %v1903_v59  ;;  %v1922_v46 = vld [vmem:[%s19760_s9 + $0x810] sm:$0xff] }
 0x5bf   : > { %v1926_v2 = vld [vmem:[%s19760_s9 + $0x830] sm:$0xff] }
 0x5c0   : > { %15366 = vmatpush1.bf16.msra.mxu0 %v17073_v0  ;;  %v1907_v0 = vld [vmem:[%s19760_s9 + $0x798] sm:$0xff] }
 0x5c1   : > { %16022 = vmatpush1.bf16.msra.mxu1 %v17075_v4  ;;  %15367 = vmatprep.subr.bf16.mxu0 %v17082_v3  ;;  %v1911_v4 = vld [vmem:[%s19760_s9 + $0x7b8] sm:$0xff]  ;;  %v17105_v3 = vcombine.low %v1898_v58, %v1902_v62  ;;  %v17130_v58 = vcombine.high %v1922_v46, %v1926_v2 }
 0x5c2   : > { %16023 = vmatprep.subr.bf16.mxu1 %v17084_v49  ;;  %v17107_v49 = vcombine.low %v1899_v63, %v1903_v59  ;;  %v17116_v17 = vcombine.high %v1907_v0, %v1911_v4  ;;  %v1930_v63 = vld [vmem:[%s19760_s9 + $0x850] sm:$0xff] }
 0x5c3   : > { %v1934_v59 = vld [vmem:[%s19760_s9 + $0x870] sm:$0xff] }
 0x5c4   : > { %15368 = vmatpush1.bf16.msra.mxu0 %v17081_v60  ;;  %v1915_v60 = vld [vmem:[%s19760_s9 + $0x7d8] sm:$0xff] }
 0x5c5   : > { %16024 = vmatpush1.bf16.msra.mxu1 %v17083_v36  ;;  %15369 = vmatprep.subr.bf16.mxu0 %v17090_v10  ;;  %v1919_v36 = vld [vmem:[%s19760_s9 + $0x7f8] sm:$0xff]  ;;  %v17113_v10 = vcombine.low %v1906_v37, %v1910_v51  ;;  %v17138_v37 = vcombine.high %v1930_v63, %v1934_v59  ;;  %v1938_v51 = vld [vmem:[%s19760_s9 + $0x890] sm:$0xff] }
 0x5c6   : > { %16025 = vmatprep.subr.bf16.mxu1 %v17092_v23  ;;  %v17115_v23 = vcombine.low %v1907_v0, %v1911_v4  ;;  %v17124_v32 = vcombine.high %v1915_v60, %v1919_v36  ;;  %v1942_v0 = vld [vmem:[%s19760_s9 + $0x8b0] sm:$0xff] }
 0x5c8   : > { %15370 = vmatpush1.bf16.msra.mxu0 %v17089_v35  ;;  %v1923_v35 = vld [vmem:[%s19760_s9 + $0x818] sm:$0xff] }
 0x5c9   : > { %16026 = vmatpush1.bf16.msra.mxu1 %v17091_v12  ;;  %15371 = vmatprep.subr.bf16.mxu0 %v17098_v31  ;;  %v1927_v12 = vld [vmem:[%s19760_s9 + $0x838] sm:$0xff]  ;;  %v17121_v31 = vcombine.low %v1914_v6, %v1918_v57  ;;  %v17146_v6 = vcombine.high %v1938_v51, %v1942_v0 }
 0x5ca   : > { %16027 = vmatprep.subr.bf16.mxu1 %v17100_v21  ;;  %v17123_v21 = vcombine.low %v1915_v60, %v1919_v36  ;;  %v17132_v62 = vcombine.high %v1923_v35, %v1927_v12  ;;  %v1946_v60 = vld [vmem:[%s19760_s9 + $0x8d0] sm:$0xff] }
 0x5cb   : > { %v1950_v36 = vld [vmem:[%s19760_s9 + $0x8f0] sm:$0xff] }
 0x5cc   : > { %15372 = vmatpush1.bf16.msra.mxu0 %v17097_v48  ;;  %v17129_v48 = vcombine.low %v1922_v46, %v1926_v2  ;;  %v1954_v46 = vld [vmem:[%s19760_s9 + $0x910] sm:$0xff] }
 0x5cd   : > { %16028 = vmatpush1.bf16.msra.mxu1 %v17099_v45  ;;  %15373 = vmatprep.subr.bf16.mxu0 %v17106_v43  ;;  %v1931_v45 = vld [vmem:[%s19760_s9 + $0x858] sm:$0xff]  ;;  %v1958_v2 = vld [vmem:[%s19760_s9 + $0x930] sm:$0xff] }
 0x5ce   : > { %16029 = vmatprep.subr.bf16.mxu1 %v17108_v50  ;;  %v1935_v43 = vld [vmem:[%s19760_s9 + $0x878] sm:$0xff]  ;;  %v17131_v50 = vcombine.low %v1923_v35, %v1927_v12 }
 0x5cf   : > { %v17140_v4 = vcombine.high %v1931_v45, %v1935_v43  ;;  %v1955_v35 = vld [vmem:[%s19760_s9 + $0x918] sm:$0xff] }
 0x5d0   : > { %15374 = vmatpush1.bf16.msra.mxu0 %v17105_v3  ;;  %v1939_v3 = vld [vmem:[%s19760_s9 + $0x898] sm:$0xff] }
 0x5d1   : > { %16030 = vmatpush1.bf16.msra.mxu1 %v17107_v49  ;;  %15375 = vmatprep.subr.bf16.mxu0 %v17114_v26  ;;  %v1943_v49 = vld [vmem:[%s19760_s9 + $0x8b8] sm:$0xff]  ;;  %v17137_v26 = vcombine.low %v1930_v63, %v1934_v59  ;;  %v1962_v63 = vld [vmem:[%s19760_s9 + $0x950] sm:$0xff] }
 0x5d2   : > { %16031 = vmatprep.subr.bf16.mxu1 %v17116_v17  ;;  %v17139_v17 = vcombine.low %v1931_v45, %v1935_v43  ;;  %v17148_v57 = vcombine.high %v1939_v3, %v1943_v49  ;;  %v1959_v12 = vld [vmem:[%s19760_s9 + $0x938] sm:$0xff]  ;;  %v1966_v59 = vld [vmem:[%s19760_s9 + $0x970] sm:$0xff]  ;;  %v17161_v43 = vcombine.low %v1954_v46, %v1958_v2 }
 0x5d3   : > { %v1967_v45 = vld [vmem:[%s19760_s9 + $0x978] sm:$0xff] }
 0x5d4   : > { %15376 = vmatpush1.bf16.msra.mxu0 %v17113_v10  ;;  %v1947_v10 = vld [vmem:[%s19760_s9 + $0x8d8] sm:$0xff] }
 0x5d5   : > { %16032 = vmatpush1.bf16.msra.mxu1 %v17115_v23  ;;  %15377 = vmatprep.subr.bf16.mxu0 %v17122_v39  ;;  %v17145_v23 = vcombine.low %v1938_v51, %v1942_v0  ;;  %v17147_v39 = vcombine.low %v1939_v3, %v1943_v49  ;;  %v1970_v0 = vld [vmem:[%s19760_s9 + $0x990] sm:$0xff]  ;;  %v1971_v3 = vld [vmem:[%s19760_s9 + $0x998] sm:$0xff] }
 0x5d6   : > { %16033 = vmatprep.subr.bf16.mxu1 %v17124_v32  ;;  %v17154_v32 = vcombine.high %v1946_v60, %v1950_v36  ;;  %v1975_v49 = vld [vmem:[%s19760_s9 + $0x9b8] sm:$0xff] }
 0x5d8   : > { %15378 = vmatpush1.bf16.msra.mxu0 %v17121_v31  ;;  %v17153_v31 = vcombine.low %v1946_v60, %v1950_v36  ;;  %v1978_v60 = vld [vmem:[%s19760_s9 + $0x9d0] sm:$0xff] }
 0x5d9   : > { %16034 = vmatpush1.bf16.msra.mxu1 %v17123_v21  ;;  %15388 = vmatprep.subr.bf16.mxu0 %v17130_v58  ;;  %v17162_v58 = vcombine.high %v1954_v46, %v1958_v2  ;;  %v1982_v36 = vld [vmem:[%s19760_s9 + $0x9f0] sm:$0xff] }
 0x5da   : > { %16044 = vmatprep.subr.bf16.mxu1 %v17132_v62  ;;  %v17164_v62 = vcombine.high %v1955_v35, %v1959_v12  ;;  %v1986_v46 = vld [vmem:[%s19760_s9 + $0xa10] sm:$0xff] }
 0x5db   : > { %15380 = vmatmul.mubr.bf16.vlgmr.msra.gmra.mrb[36].mxu0 %v20126_v24  ;;  %v1990_v2 = vld [vmem:[%s19760_s9 + $0xa30] sm:$0xff] }
 0x5dc   : > { %16036 = vmatmul.mubr.bf16.vlgmr.msra.gmra.mrb[36].mxu1 %v20126_v24  ;;  %15389 = vmatpush1.bf16.msra.mxu0 %v17129_v48  ;;  %v1951_v24 = vld [vmem:[%s19760_s9 + $0x8f8] sm:$0xff] }
 0x5dd   : > { %15420 = vmatprep.mubr.bf16.mxu0 %v20132_v7  ;;  %16045 = vmatpush1.bf16.msra.mxu1 %v17131_v50  ;;  %v17155_v21 = vcombine.low %v1947_v10, %v1951_v24  ;;  %v1963_v48 = vld [vmem:[%s19760_s9 + $0x958] sm:$0xff]  ;;  %v17163_v50 = vcombine.low %v1955_v35, %v1959_v12 }
 0x5de   : > { %16076 = vmatprep.mubr.bf16.mxu1 %v20132_v7  ;;  %15390 = vmatprep.subr.bf16.mxu0 %v17138_v37  ;;  %v17156_v7 = vcombine.high %v1947_v10, %v1951_v24  ;;  %v17170_v37 = vcombine.high %v1962_v63, %v1966_v59  ;;  %v17172_v51 = vcombine.high %v1963_v48, %v1967_v45  ;;  %v1979_v10 = vld [vmem:[%s19760_s9 + $0x9d8] sm:$0xff] }
 0x5df   : > { %16046 = vmatprep.subr.bf16.mxu1 %v17140_v4  ;;  %v1974_v4 = vld [vmem:[%s19760_s9 + $0x9b0] sm:$0xff]  ;;  %v1983_v24 = vld [vmem:[%s19760_s9 + $0x9f8] sm:$0xff] }
 0x5e0   : > { %15391 = vmatpush1.bf16.msra.mxu0 %v17137_v26  ;;  %v17169_v26 = vcombine.low %v1962_v63, %v1966_v59  ;;  %v1987_v35 = vld [vmem:[%s19760_s9 + $0xa18] sm:$0xff]  ;;  %v1994_v63 = vld [vmem:[%s19760_s9 + $0xa50] sm:$0xff] }
 0x5e1   : > { %16047 = vmatpush1.bf16.msra.mxu1 %v17139_v17  ;;  %15392 = vmatprep.subr.bf16.mxu0 %v17146_v6  ;;  %v17171_v17 = vcombine.low %v1963_v48, %v1967_v45  ;;  %v17178_v6 = vcombine.high %v1970_v0, %v1974_v4  ;;  %v1991_v12 = vld [vmem:[%s19760_s9 + $0xa38] sm:$0xff]  ;;  %v1998_v59 = vld [vmem:[%s19760_s9 + $0xa70] sm:$0xff] }
 0x5e2   : > { %16048 = vmatprep.subr.bf16.mxu1 %v17148_v57  ;;  %v17180_v57 = vcombine.high %v1971_v3, %v1975_v49  ;;  %v1995_v48 = vld [vmem:[%s19760_s9 + $0xa58] sm:$0xff] }
 0x5e3   : > { %v1999_v45 = vld [vmem:[%s19760_s9 + $0xa78] sm:$0xff] }
 0x5e4   : > { %15393 = vmatpush1.bf16.msra.mxu0 %v17145_v23  ;;  %v17177_v23 = vcombine.low %v1970_v0, %v1974_v4  ;;  %v2002_v0 = vld [vmem:[%s19760_s9 + $0xa90] sm:$0xff] }
 0x5e5   : > { %16049 = vmatpush1.bf16.msra.mxu1 %v17147_v39  ;;  %15394 = vmatprep.subr.bf16.mxu0 %v17154_v32  ;;  %v17179_v39 = vcombine.low %v1971_v3, %v1975_v49  ;;  %v17186_v32 = vcombine.high %v1978_v60, %v1982_v36  ;;  %v2006_v4 = vld [vmem:[%s19760_s9 + $0xab0] sm:$0xff]  ;;  %v2003_v3 = vld [vmem:[%s19760_s9 + $0xa98] sm:$0xff] }
 0x5e6   : > { %16050 = vmatprep.subr.bf16.mxu1 %v17156_v7  ;;  %v17188_v7 = vcombine.high %v1979_v10, %v1983_v24  ;;  %v2007_v49 = vld [vmem:[%s19760_s9 + $0xab8] sm:$0xff] }
 0x5e8   : > { %15395 = vmatpush1.bf16.msra.mxu0 %v17153_v31  ;;  %v17185_v31 = vcombine.low %v1978_v60, %v1982_v36  ;;  %v2010_v60 = vld [vmem:[%s19760_s9 + $0xad0] sm:$0xff] }
 0x5e9   : > { %16051 = vmatpush1.bf16.msra.mxu1 %v17155_v21  ;;  %15396 = vmatprep.subr.bf16.mxu0 %v17162_v58  ;;  %v17187_v21 = vcombine.low %v1979_v10, %v1983_v24  ;;  %v17194_v58 = vcombine.high %v1986_v46, %v1990_v2  ;;  %v2014_v36 = vld [vmem:[%s19760_s9 + $0xaf0] sm:$0xff]  ;;  %v2011_v10 = vld [vmem:[%s19760_s9 + $0xad8] sm:$0xff] }
 0x5ea   : > { %16052 = vmatprep.subr.bf16.mxu1 %v17164_v62  ;;  %v17196_v62 = vcombine.high %v1987_v35, %v1991_v12  ;;  %v2015_v24 = vld [vmem:[%s19760_s9 + $0xaf8] sm:$0xff] }
 0x5ec   : > { %15397 = vmatpush1.bf16.msra.mxu0 %v17161_v43  ;;  %v17193_v43 = vcombine.low %v1986_v46, %v1990_v2  ;;  %v2018_v46 = vld [vmem:[%s19760_s9 + $0xb10] sm:$0xff] }
 0x5ed   : > { %16053 = vmatpush1.bf16.msra.mxu1 %v17163_v50  ;;  %15398 = vmatprep.subr.bf16.mxu0 %v17170_v37  ;;  %v17195_v50 = vcombine.low %v1987_v35, %v1991_v12  ;;  %v17202_v37 = vcombine.high %v1994_v63, %v1998_v59  ;;  %v2022_v2 = vld [vmem:[%s19760_s9 + $0xb30] sm:$0xff]  ;;  %v2019_v35 = vld [vmem:[%s19760_s9 + $0xb18] sm:$0xff] }
 0x5ee   : > { %16054 = vmatprep.subr.bf16.mxu1 %v17172_v51  ;;  %v17204_v51 = vcombine.high %v1995_v48, %v1999_v45  ;;  %v2023_v12 = vld [vmem:[%s19760_s9 + $0xb38] sm:$0xff] }
 0x5f0   : > { %15399 = vmatpush1.bf16.msra.mxu0 %v17169_v26  ;;  %v17201_v26 = vcombine.low %v1994_v63, %v1998_v59  ;;  %v2026_v63 = vld [vmem:[%s19760_s9 + $0xb50] sm:$0xff] }
 0x5f1   : > { %16055 = vmatpush1.bf16.msra.mxu1 %v17171_v17  ;;  %15400 = vmatprep.subr.bf16.mxu0 %v17178_v6  ;;  %v17203_v17 = vcombine.low %v1995_v48, %v1999_v45  ;;  %v17210_v6 = vcombine.high %v2002_v0, %v2006_v4  ;;  %v2030_v59 = vld [vmem:[%s19760_s9 + $0xb70] sm:$0xff]  ;;  %v2027_v48 = vld [vmem:[%s19760_s9 + $0xb58] sm:$0xff] }
 0x5f2   : > { %16056 = vmatprep.subr.bf16.mxu1 %v17180_v57  ;;  %v17212_v57 = vcombine.high %v2003_v3, %v2007_v49  ;;  %v2031_v45 = vld [vmem:[%s19760_s9 + $0xb78] sm:$0xff] }
 0x5f4   : > { %15401 = vmatpush1.bf16.msra.mxu0 %v17177_v23  ;;  %v17209_v23 = vcombine.low %v2002_v0, %v2006_v4  ;;  %v2034_v0 = vld [vmem:[%s19760_s9 + $0xb90] sm:$0xff] }
 0x5f5   : > { %16057 = vmatpush1.bf16.msra.mxu1 %v17179_v39  ;;  %15402 = vmatprep.subr.bf16.mxu0 %v17186_v32  ;;  %v17211_v39 = vcombine.low %v2003_v3, %v2007_v49  ;;  %v17218_v32 = vcombine.high %v2010_v60, %v2014_v36  ;;  %v2038_v4 = vld [vmem:[%s19760_s9 + $0xbb0] sm:$0xff]  ;;  %v2035_v3 = vld [vmem:[%s19760_s9 + $0xb98] sm:$0xff] }
 0x5f6   : > { %16058 = vmatprep.subr.bf16.mxu1 %v17188_v7  ;;  %v17220_v7 = vcombine.high %v2011_v10, %v2015_v24  ;;  %v2039_v49 = vld [vmem:[%s19760_s9 + $0xbb8] sm:$0xff] }
 0x5f8   : > { %15403 = vmatpush1.bf16.msra.mxu0 %v17185_v31  ;;  %v17217_v31 = vcombine.low %v2010_v60, %v2014_v36  ;;  %v2042_v60 = vld [vmem:[%s19760_s9 + $0xbd0] sm:$0xff] }
 0x5f9   : > { %16059 = vmatpush1.bf16.msra.mxu1 %v17187_v21  ;;  %15404 = vmatprep.subr.bf16.mxu0 %v17194_v58  ;;  %v17219_v21 = vcombine.low %v2011_v10, %v2015_v24  ;;  %v17226_v58 = vcombine.high %v2018_v46, %v2022_v2  ;;  %v2046_v36 = vld [vmem:[%s19760_s9 + $0xbf0] sm:$0xff]  ;;  %v2043_v10 = vld [vmem:[%s19760_s9 + $0xbd8] sm:$0xff] }
 0x5fa   : > { %16060 = vmatprep.subr.bf16.mxu1 %v17196_v62  ;;  %v17228_v62 = vcombine.high %v2019_v35, %v2023_v12  ;;  %v2047_v24 = vld [vmem:[%s19760_s9 + $0xbf8] sm:$0xff] }
 0x5fc   : > { %15405 = vmatpush1.bf16.msra.mxu0 %v17193_v43  ;;  %v17225_v43 = vcombine.low %v2018_v46, %v2022_v2  ;;  %v2050_v46 = vld [vmem:[%s19760_s9 + $0xc10] sm:$0xff] }
 0x5fd   : > { %16061 = vmatpush1.bf16.msra.mxu1 %v17195_v50  ;;  %15406 = vmatprep.subr.bf16.mxu0 %v17202_v37  ;;  %v17227_v50 = vcombine.low %v2019_v35, %v2023_v12  ;;  %v17234_v37 = vcombine.high %v2026_v63, %v2030_v59  ;;  %v2054_v2 = vld [vmem:[%s19760_s9 + $0xc30] sm:$0xff]  ;;  %v2051_v35 = vld [vmem:[%s19760_s9 + $0xc18] sm:$0xff] }
 0x5fe   : > { %16062 = vmatprep.subr.bf16.mxu1 %v17204_v51  ;;  %v17236_v51 = vcombine.high %v2027_v48, %v2031_v45  ;;  %v2055_v12 = vld [vmem:[%s19760_s9 + $0xc38] sm:$0xff] }
 0x600   : > { %15407 = vmatpush1.bf16.msra.mxu0 %v17201_v26  ;;  %v17233_v26 = vcombine.low %v2026_v63, %v2030_v59  ;;  %v2058_v63 = vld [vmem:[%s19760_s9 + $0xc50] sm:$0xff] }
 0x601   : > { %16063 = vmatpush1.bf16.msra.mxu1 %v17203_v17  ;;  %15408 = vmatprep.subr.bf16.mxu0 %v17210_v6  ;;  %v17235_v17 = vcombine.low %v2027_v48, %v2031_v45  ;;  %v17242_v6 = vcombine.high %v2034_v0, %v2038_v4  ;;  %v2062_v59 = vld [vmem:[%s19760_s9 + $0xc70] sm:$0xff]  ;;  %v17257_v48 = vcombine.low %v2050_v46, %v2054_v2  ;;  %v2059_v45 = vld [vmem:[%s19760_s9 + $0xc58] sm:$0xff] }
 0x602   : > { %16064 = vmatprep.subr.bf16.mxu1 %v17212_v57  ;;  %v17244_v57 = vcombine.high %v2035_v3, %v2039_v49 }
 0x604   : > { %15409 = vmatpush1.bf16.msra.mxu0 %v17209_v23  ;;  %v17241_v23 = vcombine.low %v2034_v0, %v2038_v4  ;;  %v2070_v0 = vld [vmem:[%s19760_s9 + $0xcb0] sm:$0xff] }
 0x605   : > { %16065 = vmatpush1.bf16.msra.mxu1 %v17211_v39  ;;  %15410 = vmatprep.subr.bf16.mxu0 %v17218_v32  ;;  %v17243_v39 = vcombine.low %v2035_v3, %v2039_v49  ;;  %v17250_v32 = vcombine.high %v2042_v60, %v2046_v36  ;;  %v2067_v3 = vld [vmem:[%s19760_s9 + $0xc98] sm:$0xff] }
 0x606   : > { %16066 = vmatprep.subr.bf16.mxu1 %v17220_v7  ;;  %v17252_v7 = vcombine.high %v2043_v10, %v2047_v24  ;;  %v2071_v49 = vld [vmem:[%s19760_s9 + $0xcb8] sm:$0xff] }
 0x608   : > { %15411 = vmatpush1.bf16.msra.mxu0 %v17217_v31  ;;  %v17249_v31 = vcombine.low %v2042_v60, %v2046_v36  ;;  %v2074_v60 = vld [vmem:[%s19760_s9 + $0xcd0] sm:$0xff] }
 0x609   : > { %16067 = vmatpush1.bf16.msra.mxu1 %v17219_v21  ;;  %15412 = vmatprep.subr.bf16.mxu0 %v17226_v58  ;;  %v17251_v21 = vcombine.low %v2043_v10, %v2047_v24  ;;  %v17258_v58 = vcombine.high %v2050_v46, %v2054_v2  ;;  %v2078_v36 = vld [vmem:[%s19760_s9 + $0xcf0] sm:$0xff]  ;;  %v2079_v10 = vld [vmem:[%s19760_s9 + $0xcf8] sm:$0xff] }
 0x60a   : > { %16068 = vmatprep.subr.bf16.mxu1 %v17228_v62  ;;  %v17260_v62 = vcombine.high %v2051_v35, %v2055_v12  ;;  %v2083_v46 = vld [vmem:[%s19760_s9 + $0xd18] sm:$0xff] }
 0x60b   : > { %v2087_v2 = vld [vmem:[%s19760_s9 + $0xd38] sm:$0xff] }
 0x60c   : > { %15413 = vmatpush1.bf16.msra.mxu0 %v17225_v43  ;;  %v2063_v43 = vld [vmem:[%s19760_s9 + $0xc78] sm:$0xff] }
 0x60d   : > { %16069 = vmatpush1.bf16.msra.mxu1 %v17227_v50  ;;  %15414 = vmatprep.subr.bf16.mxu0 %v17234_v37  ;;  %v17259_v50 = vcombine.low %v2051_v35, %v2055_v12  ;;  %v17266_v37 = vcombine.high %v2058_v63, %v2062_v59  ;;  %v17268_v4 = vcombine.high %v2059_v45, %v2063_v43 }
 0x60e   : > { %16070 = vmatprep.subr.bf16.mxu1 %v17236_v51  ;;  %v2066_v51 = vld [vmem:[%s19760_s9 + $0xc90] sm:$0xff]  ;;  %v17281_v35 = vcombine.low %v2074_v60, %v2078_v36 }
 0x60f   : > { %v17273_v24 = vcombine.low %v2066_v51, %v2070_v0 }
 0x610   : > { %15415 = vmatpush1.bf16.msra.mxu0 %v17233_v26  ;;  %v17265_v26 = vcombine.low %v2058_v63, %v2062_v59  ;;  %v2091_v63 = vld [vmem:[%s19760_s9 + $0xd58] sm:$0xff] }
 0x611   : > { %16071 = vmatpush1.bf16.msra.mxu1 %v17235_v17  ;;  %15416 = vmatprep.subr.bf16.mxu0 %v17242_v6  ;;  %v17267_v17 = vcombine.low %v2059_v45, %v2063_v43  ;;  %v17274_v6 = vcombine.high %v2066_v51, %v2070_v0  ;;  %v2095_v59 = vld [vmem:[%s19760_s9 + $0xd78] sm:$0xff]  ;;  %v3712_v45 = vld [vmem:[%s21447_s1] sm:$0xff]  ;;  %v17291_v43 = vcombine.low %v2083_v46, %v2087_v2  ;;  %v2098_v51 = vld [vmem:[%s19760_s9 + $0xd90] sm:$0xff] }
 0x612   : > { %16072 = vmatprep.subr.bf16.mxu1 %v17244_v57  ;;  %v17276_v57 = vcombine.high %v2067_v3, %v2071_v49  ;;  %v2102_v0 = vld [vmem:[%s19760_s9 + $0xdb0] sm:$0xff] }
 0x614   : > { %15417 = vmatpush1.bf16.msra.mxu0 %v17241_v23  ;;  %v17275_v23 = vcombine.low %v2067_v3, %v2071_v49  ;;  %v2099_v3 = vld [vmem:[%s19760_s9 + $0xd98] sm:$0xff] }
 0x615   : > { %16073 = vmatpush1.bf16.msra.mxu1 %v17243_v39  ;;  %15418 = vmatprep.subr.bf16.mxu0 %v17250_v32  ;;  %v17282_v39 = vcombine.high %v2074_v60, %v2078_v36  ;;  %v2082_v32 = vld [vmem:[%s19760_s9 + $0xd10] sm:$0xff]  ;;  %v2103_v49 = vld [vmem:[%s19760_s9 + $0xdb8] sm:$0xff] }
 0x616   : > { %16074 = vmatprep.subr.bf16.mxu1 %v17252_v7  ;;  %v2086_v7 = vld [vmem:[%s19760_s9 + $0xd30] sm:$0xff] }
 0x617   : > { %v22434_v60 = vld [vmem:[#allocation19_spill] sm:$0xff] }
 0x618   : > { %15419 = vmatpush1.bf16.msra.mxu0 %v17249_v31  ;;  %v17290_v31 = vcombine.high %v2082_v32, %v2086_v7  ;;  %v3729_v36 = vrot.slane %v3712_v45, %v22434_v60 }
 0x619   : > { %16075 = vmatpush1.bf16.msra.mxu1 %v17251_v21  ;;  %15429 = vmatprep.subr.bf16.mxu0 %v17258_v58  ;;  %v17292_v21 = vcombine.high %v2083_v46, %v2087_v2  ;;  %v2090_v58 = vld [vmem:[%s19760_s9 + $0xd50] sm:$0xff]  ;;  %v2107_v46 = vld [vmem:[%s19760_s9 + $0xdd8] sm:$0xff] }
 0x61a   : > { %16085 = vmatprep.subr.bf16.mxu1 %v17260_v62  ;;  %v2094_v62 = vld [vmem:[%s19760_s9 + $0xd70] sm:$0xff] }
 0x61b   : > { %15421 = vmatmul.mubr.bf16.vlgmr.msra.gmra.mrb[36].mxu0 %v20204_v61 }
 0x61c   : > { %16077 = vmatmul.mubr.bf16.vlgmr.msra.gmra.mrb[36].mxu1 %v20204_v61  ;;  %15430 = vmatpush1.bf16.msra.mxu0 %v17257_v48  ;;  %v2075_v61 = vld [vmem:[%s19760_s9 + $0xcd8] sm:$0xff]  ;;  %v17289_v48 = vcombine.low %v2082_v32, %v2086_v7 }
 0x61d   : > { %15461 = vmatprep.mubr.bf16.mxu0 %v20206_v41  ;;  %16086 = vmatpush1.bf16.msra.mxu1 %v17259_v50  ;;  %v17283_v12 = vcombine.low %v2075_v61, %v2079_v10  ;;  %v17298_v50 = vcombine.high %v2090_v58, %v2094_v62 }
 0x61e   : > { %16117 = vmatprep.mubr.bf16.mxu1 %v20206_v41  ;;  %15431 = vmatprep.subr.bf16.mxu0 %v17266_v37  ;;  %v17284_v41 = vcombine.high %v2075_v61, %v2079_v10  ;;  %v17300_v37 = vcombine.high %v2091_v63, %v2095_v59  ;;  %v17299_v61 = vcombine.low %v2091_v63, %v2095_v59 }
 0x61f   : > { %16087 = vmatprep.subr.bf16.mxu1 %v17268_v4  ;;  %v3717_v4 = vrot.slane %v3712_v45, %v19903_v16  ;;  %v17306_v10 = vcombine.high %v2098_v51, %v2102_v0 }
 0x620   : > { %15432 = vmatpush1.bf16.msra.mxu0 %v17265_v26  ;;  %v22433_v26 = vld [vmem:[#allocation21_spill] sm:$0xff] }
 0x621   : > { %16088 = vmatpush1.bf16.msra.mxu1 %v17267_v17  ;;  %15433 = vmatprep.subr.bf16.mxu0 %v17274_v6  ;;  %v3725_v17 = vrot.slane %v3712_v45, %v22433_v26  ;;  %v3721_v6 = vrot.slane %v3712_v45, %v19908_v18  ;;  %v2111_v18 = vld [vmem:[%s19760_s9 + $0xdf8] sm:$0xff]  ;;  %v2114_v26 = vld [vmem:[%s19760_s9 + $0xe10] sm:$0xff] }
 0x622   : > { %16089 = vmatprep.subr.bf16.mxu1 %v17276_v57  ;;  %v17297_v57 = vcombine.low %v2090_v58, %v2094_v62 }
 0x624   : > { %15434 = vmatpush1.bf16.msra.mxu0 %v17273_v24  ;;  %v17308_v24 = vcombine.high %v2099_v3, %v2103_v49 }
 0x625   : > { %16090 = vmatpush1.bf16.msra.mxu1 %v17275_v23  ;;  %15435 = vmatprep.subr.bf16.mxu0 %v17282_v39  ;;  %v2106_v23 = vld [vmem:[%s19760_s9 + $0xdd0] sm:$0xff] }
 0x626   : > { %16091 = vmatprep.subr.bf16.mxu1 %v17284_v41  ;;  %v2110_v39 = vld [vmem:[%s19760_s9 + $0xdf0] sm:$0xff] }
 0x627   : > { %v17314_v45 = vcombine.high %v2106_v23, %v2110_v39 }
 0x628   : > { %15436 = vmatpush1.bf16.msra.mxu0 %v17281_v35 }
 0x629   : > { %16092 = vmatpush1.bf16.msra.mxu1 %v17283_v12  ;;  %15437 = vmatprep.subr.bf16.mxu0 %v17290_v31 }
 0x62a   : > { %16093 = vmatprep.subr.bf16.mxu1 %v17292_v21  ;;  %v17305_v21 = vcombine.low %v2098_v51, %v2102_v0  ;;  %v2115_v0 = vld [vmem:[%s19760_s9 + $0xe18] sm:$0xff] }
 0x62c   : > { %15438 = vmatpush1.bf16.msra.mxu0 %v17289_v48  ;;  %v17307_v48 = vcombine.low %v2099_v3, %v2103_v49  ;;  %v2119_v3 = vld [vmem:[%s19760_s9 + $0xe38] sm:$0xff]  ;;  %v17313_v49 = vcombine.low %v2106_v23, %v2110_v39 }
 0x62d   : > { %16094 = vmatpush1.bf16.msra.mxu1 %v17291_v43  ;;  %15439 = vmatprep.subr.bf16.mxu0 %v17298_v50  ;;  %v17324_v60 = vcombine.high %v2115_v0, %v2119_v3  ;;  %v17323_v23 = vcombine.low %v2115_v0, %v2119_v3 }
 0x62e   : > { %v14643_v16 = vpop.f32.mrb[32].mxu0  ;;  %16095 = vmatprep.subr.bf16.mxu1 %v17300_v37 }
 0x62f   : > { %v18925_v41 = vadd.f32 %v14643_v16, %v3717_v4  ;;  %v15299_v32 = vpop.f32.mrb[32].mxu1  ;;  %v14645_v7 = vpop.f32.mrb[33].mxu0  ;;  %v17316_v4 = vcombine.high %v2107_v46, %v2111_v18  ;;  %v2127_v16 = vld [vmem:[%s19760_s9 + $0xe78] sm:$0xff] }
 0x630   : > { %v18927_v2 = vadd.f32 %v15299_v32, %v3725_v17  ;;  %v18926_v35 = vadd.f32 %v14645_v7, %v3721_v6  ;;  %v15301_v12 = vpop.f32.mrb[33].mxu1  ;;  %v14647_v31 = vpop.f32.mrb[34].mxu0  ;;  %15440 = vmatpush1.bf16.msra.mxu0 %v17297_v57  ;;  %v2118_v17 = vld [vmem:[%s19760_s9 + $0xe30] sm:$0xff]  ;;  %v17315_v6 = vcombine.low %v2107_v46, %v2111_v18  ;;  %v2131_v46 = vld [vmem:[%s19760_s9 + $0xe98] sm:$0xff] }
 0x631   : > { %v16618_v58 = vmax.f32 %v18925_v41, 0.0  ;;  %v18928_v62 = vadd.f32 %v15301_v12, %v3729_v36  ;;  %v15303_v63 = vpop.f32.mrb[34].mxu1  ;;  %16096 = vmatpush1.bf16.msra.mxu1 %v17299_v61  ;;  %v14648_v59 = vpop.f32.mrb[35].mxu0  ;;  %15441 = vmatprep.subr.bf16.mxu0 %v17306_v10  ;;  %v17322_v57 = vcombine.high %v2114_v26, %v2118_v17  ;;  %v2122_v36 = vld [vmem:[%s19760_s9 + $0xe50] sm:$0xff]  ;;  %v2123_v10 = vld [vmem:[%s19760_s9 + $0xe58] sm:$0xff] }
 0x632   : > { %v16620_v43 = vmax.f32 %v18927_v2, 0.0  ;;  %v16619_v50 = vmax.f32 %v18926_v35, 0.0  ;;  %v15304_v37 = vpop.f32.mrb[35].mxu1  ;;  %16097 = vmatprep.subr.bf16.mxu1 %v17308_v24  ;;  %v2126_v61 = vld [vmem:[%s19760_s9 + $0xe70] sm:$0xff]  ;;  %v17321_v24 = vcombine.low %v2114_v26, %v2118_v17  ;;  %v17332_v41 = vcombine.high %v2123_v10, %v2127_v16  ;;  %v2135_v18 = vld [vmem:[%s19760_s9 + $0xeb8] sm:$0xff] }
 0x633   : > { %16626 = vst [vmem:[%s21467_s6] sm:$0xff] %v16618_v58  ;;  %v16621_v51 = vmax.f32 %v18928_v62, 0.0  ;;  %v17330_v39 = vcombine.high %v2122_v36, %v2126_v61  ;;  %v2130_v32 = vld [vmem:[%s19760_s9 + $0xe90] sm:$0xff]  ;;  %v17329_v2 = vcombine.low %v2122_v36, %v2126_v61  ;;  %v17331_v35 = vcombine.low %v2123_v10, %v2127_v16  ;;  %v2139_v62 = vld [vmem:[%s19760_s9 + $0xed8] sm:$0xff] }
 0x634   : > { %16628 = vst [vmem:[%s21467_s6 + $0x10] sm:$0xff] %v16620_v43  ;;  %16627 = vst [vmem:[%s21467_s6 + $0x8] sm:$0xff] %v16619_v50  ;;  %15442 = vmatpush1.bf16.msra.mxu0 %v17305_v21  ;;  %v2134_v7 = vld [vmem:[%s19760_s9 + $0xeb0] sm:$0xff]  ;;  %v17340_v31 = vcombine.high %v2131_v46, %v2135_v18  ;;  %v2143_v63 = vld [vmem:[%s19760_s9 + $0xef8] sm:$0xff] }
 0x635   : > { %16629 = vst [vmem:[%s21467_s6 + $0x18] sm:$0xff] %v16621_v51  ;;  %16098 = vmatpush1.bf16.msra.mxu1 %v17307_v48  ;;  %15443 = vmatprep.subr.bf16.mxu0 %v17314_v45  ;;  %v17338_v12 = vcombine.high %v2130_v32, %v2134_v7  ;;  %v2138_v21 = vld [vmem:[%s19760_s9 + $0xed0] sm:$0xff]  ;;  %v17337_v59 = vcombine.low %v2130_v32, %v2134_v7  ;;  %v2151_v26 = vld [vmem:[%s19760_s9 + $0xf38] sm:$0xff] }
 0x636   : > { %16099 = vmatprep.subr.bf16.mxu1 %v17316_v4  ;;  %v2142_v58 = vld [vmem:[%s19760_s9 + $0xef0] sm:$0xff]  ;;  %v17339_v48 = vcombine.low %v2131_v46, %v2135_v18  ;;  %v17348_v43 = vcombine.high %v2139_v62, %v2143_v63  ;;  %v2147_v4 = vld [vmem:[%s19760_s9 + $0xf18] sm:$0xff]  ;;  %v17347_v51 = vcombine.low %v2139_v62, %v2143_v63 }
 0x637   : > { %v17346_v45 = vcombine.high %v2138_v21, %v2142_v58  ;;  %v2146_v50 = vld [vmem:[%s19760_s9 + $0xf10] sm:$0xff]  ;;  %v17345_v17 = vcombine.low %v2138_v21, %v2142_v58  ;;  %v17356_v3 = vcombine.high %v2147_v4, %v2151_v26  ;;  %v17355_v61 = vcombine.low %v2147_v4, %v2151_v26 }
 0x638   : > { %15444 = vmatpush1.bf16.msra.mxu0 %v17313_v49  ;;  %v2150_v37 = vld [vmem:[%s19760_s9 + $0xf30] sm:$0xff] }
 0x639   : > { %16100 = vmatpush1.bf16.msra.mxu1 %v17315_v6  ;;  %15445 = vmatprep.subr.bf16.mxu0 %v17322_v57  ;;  %v17354_v0 = vcombine.high %v2146_v50, %v2150_v37  ;;  %v2154_v49 = vld [vmem:[%s19760_s9 + $0xf50] sm:$0xff]  ;;  %v2155_v57 = vld [vmem:[%s19760_s9 + $0xf58] sm:$0xff]  ;;  %v17353_v36 = vcombine.low %v2146_v50, %v2150_v37 }
 0x63a   : > { %16101 = vmatprep.subr.bf16.mxu1 %v17324_v60  ;;  %v2158_v6 = vld [vmem:[%s19760_s9 + $0xf70] sm:$0xff]  ;;  %v2159_v60 = vld [vmem:[%s19760_s9 + $0xf78] sm:$0xff] }
 0x63b   : > { %v17362_v10 = vcombine.high %v2154_v49, %v2158_v6  ;;  %v17364_v16 = vcombine.high %v2155_v57, %v2159_v60  ;;  %v17361_v32 = vcombine.low %v2154_v49, %v2158_v6  ;;  %v17363_v7 = vcombine.low %v2155_v57, %v2159_v60  ;;  %v2191_v49 = vld [vmem:[%s19760_s9 + $0x1078] sm:$0xff]  ;;  %v2194_v60 = vld [vmem:[%s19760_s9 + $0x1090] sm:$0xff] }
 0x63c   : > { %15446 = vmatpush1.bf16.msra.mxu0 %v17321_v24  ;;  %v2162_v24 = vld [vmem:[%s19760_s9 + $0xf90] sm:$0xff] }
 0x63d   : > { %16102 = vmatpush1.bf16.msra.mxu1 %v17323_v23  ;;  %15447 = vmatprep.subr.bf16.mxu0 %v17330_v39  ;;  %v2166_v23 = vld [vmem:[%s19760_s9 + $0xfb0] sm:$0xff]  ;;  %v2163_v39 = vld [vmem:[%s19760_s9 + $0xf98] sm:$0xff] }
 0x63e   : > { %16103 = vmatprep.subr.bf16.mxu1 %v17332_v41  ;;  %v2167_v41 = vld [vmem:[%s19760_s9 + $0xfb8] sm:$0xff]  ;;  %v17370_v46 = vcombine.high %v2162_v24, %v2166_v23  ;;  %v17369_v21 = vcombine.low %v2162_v24, %v2166_v23 }
 0x63f   : > { %v17372_v18 = vcombine.high %v2163_v39, %v2167_v41  ;;  %v17371_v58 = vcombine.low %v2163_v39, %v2167_v41 }
 0x640   : > { %15448 = vmatpush1.bf16.msra.mxu0 %v17329_v2  ;;  %v2170_v2 = vld [vmem:[%s19760_s9 + $0xfd0] sm:$0xff] }
 0x641   : > { %16104 = vmatpush1.bf16.msra.mxu1 %v17331_v35  ;;  %15449 = vmatprep.subr.bf16.mxu0 %v17338_v12  ;;  %v2174_v35 = vld [vmem:[%s19760_s9 + $0xff0] sm:$0xff]  ;;  %v2171_v12 = vld [vmem:[%s19760_s9 + $0xfd8] sm:$0xff] }
 0x642   : > { %16105 = vmatprep.subr.bf16.mxu1 %v17340_v31  ;;  %v2175_v31 = vld [vmem:[%s19760_s9 + $0xff8] sm:$0xff]  ;;  %v17378_v62 = vcombine.high %v2170_v2, %v2174_v35  ;;  %v17377_v50 = vcombine.low %v2170_v2, %v2174_v35 }
 0x643   : > { %v17380_v63 = vcombine.high %v2171_v12, %v2175_v31  ;;  %v17379_v37 = vcombine.low %v2171_v12, %v2175_v31  ;;  %v2210_v12 = vld [vmem:[%s19760_s9 + $0x1110] sm:$0xff] }
 0x644   : > { %15450 = vmatpush1.bf16.msra.mxu0 %v17337_v59  ;;  %v2178_v59 = vld [vmem:[%s19760_s9 + $0x1010] sm:$0xff] }
 0x645   : > { %16106 = vmatpush1.bf16.msra.mxu1 %v17339_v48  ;;  %15451 = vmatprep.subr.bf16.mxu0 %v17346_v45  ;;  %v2182_v48 = vld [vmem:[%s19760_s9 + $0x1030] sm:$0xff]  ;;  %v2179_v45 = vld [vmem:[%s19760_s9 + $0x1018] sm:$0xff] }
 0x646   : > { %16107 = vmatprep.subr.bf16.mxu1 %v17348_v43  ;;  %v2183_v43 = vld [vmem:[%s19760_s9 + $0x1038] sm:$0xff]  ;;  %v17386_v4 = vcombine.high %v2178_v59, %v2182_v48  ;;  %v2214_v31 = vld [vmem:[%s19760_s9 + $0x1130] sm:$0xff] }
 0x647   : > { %v17388_v26 = vcombine.high %v2179_v45, %v2183_v43  ;;  %v17387_v6 = vcombine.low %v2179_v45, %v2183_v43  ;;  %v2218_v45 = vld [vmem:[%s19760_s9 + $0x1150] sm:$0xff] }
 0x648   : > { %15452 = vmatpush1.bf16.msra.mxu0 %v17345_v17  ;;  %v2186_v17 = vld [vmem:[%s19760_s9 + $0x1050] sm:$0xff] }
 0x649   : > { %16108 = vmatpush1.bf16.msra.mxu1 %v17347_v51  ;;  %15453 = vmatprep.subr.bf16.mxu0 %v17354_v0  ;;  %v2190_v51 = vld [vmem:[%s19760_s9 + $0x1070] sm:$0xff]  ;;  %v17385_v0 = vcombine.low %v2178_v59, %v2182_v48  ;;  %v17418_v59 = vcombine.high %v2210_v12, %v2214_v31 }
 0x64a   : > { %16109 = vmatprep.subr.bf16.mxu1 %v17356_v3  ;;  %v2187_v3 = vld [vmem:[%s19760_s9 + $0x1058] sm:$0xff]  ;;  %v17394_v57 = vcombine.high %v2186_v17, %v2190_v51  ;;  %v17393_v24 = vcombine.low %v2186_v17, %v2190_v51  ;;  %v2222_v43 = vld [vmem:[%s19760_s9 + $0x1170] sm:$0xff] }
 0x64b   : > { %v17395_v23 = vcombine.low %v2187_v3, %v2191_v49  ;;  %v17426_v17 = vcombine.high %v2218_v45, %v2222_v43 }
 0x64c   : > { %15454 = vmatpush1.bf16.msra.mxu0 %v17353_v36  ;;  %v2198_v36 = vld [vmem:[%s19760_s9 + $0x10b0] sm:$0xff] }
 0x64d   : > { %16110 = vmatpush1.bf16.msra.mxu1 %v17355_v61  ;;  %15455 = vmatprep.subr.bf16.mxu0 %v17362_v10  ;;  %v17396_v61 = vcombine.high %v2187_v3, %v2191_v49  ;;  %v2195_v10 = vld [vmem:[%s19760_s9 + $0x1098] sm:$0xff]  ;;  %v17402_v39 = vcombine.high %v2194_v60, %v2198_v36  ;;  %v2230_v3 = vld [vmem:[%s19760_s9 + $0x11b0] sm:$0xff] }
 0x64e   : > { %16111 = vmatprep.subr.bf16.mxu1 %v17364_v16  ;;  %v2199_v16 = vld [vmem:[%s19760_s9 + $0x10b8] sm:$0xff] }
 0x64f   : > { %v17404_v41 = vcombine.high %v2195_v10, %v2199_v16  ;;  %v17403_v2 = vcombine.low %v2195_v10, %v2199_v16  ;;  %v2227_v49 = vld [vmem:[%s19760_s9 + $0x1198] sm:$0xff]  ;;  %v2234_v10 = vld [vmem:[%s19760_s9 + $0x11d0] sm:$0xff] }
 0x650   : > { %15456 = vmatpush1.bf16.msra.mxu0 %v17361_v32  ;;  %v2202_v32 = vld [vmem:[%s19760_s9 + $0x10d0] sm:$0xff] }
 0x651   : > { %16112 = vmatpush1.bf16.msra.mxu1 %v17363_v7  ;;  %15457 = vmatprep.subr.bf16.mxu0 %v17370_v46  ;;  %v2206_v7 = vld [vmem:[%s19760_s9 + $0x10f0] sm:$0xff]  ;;  %v2203_v46 = vld [vmem:[%s19760_s9 + $0x10d8] sm:$0xff] }
 0x652   : > { %16113 = vmatprep.subr.bf16.mxu1 %v17372_v18  ;;  %v17401_v18 = vcombine.low %v2194_v60, %v2198_v36  ;;  %v17410_v35 = vcombine.high %v2202_v32, %v2206_v7  ;;  %v2238_v16 = vld [vmem:[%s19760_s9 + $0x11f0] sm:$0xff] }
 0x654   : > { %15458 = vmatpush1.bf16.msra.mxu0 %v17369_v21  ;;  %v2211_v21 = vld [vmem:[%s19760_s9 + $0x1118] sm:$0xff] }
 0x655   : > { %16114 = vmatpush1.bf16.msra.mxu1 %v17371_v58  ;;  %15459 = vmatprep.subr.bf16.mxu0 %v17378_v62  ;;  %v2215_v58 = vld [vmem:[%s19760_s9 + $0x1138] sm:$0xff]  ;;  %v17409_v62 = vcombine.low %v2202_v32, %v2206_v7  ;;  %v17442_v32 = vcombine.high %v2234_v10, %v2238_v16 }
 0x656   : > { %16115 = vmatprep.subr.bf16.mxu1 %v17380_v63  ;;  %v17420_v48 = vcombine.high %v2211_v21, %v2215_v58 }
 0x658   : > { %15460 = vmatpush1.bf16.msra.mxu0 %v17377_v50  ;;  %v2219_v50 = vld [vmem:[%s19760_s9 + $0x1158] sm:$0xff] }
 0x659   : > { %16116 = vmatpush1.bf16.msra.mxu1 %v17379_v37  ;;  %15470 = vmatprep.subr.bf16.mxu0 %v17386_v4  ;;  %v2223_v37 = vld [vmem:[%s19760_s9 + $0x1178] sm:$0xff]  ;;  %v17417_v4 = vcombine.low %v2210_v12, %v2214_v31 }
 0x65a   : > { %16126 = vmatprep.subr.bf16.mxu1 %v17388_v26  ;;  %v17419_v26 = vcombine.low %v2211_v21, %v2215_v58  ;;  %v17428_v51 = vcombine.high %v2219_v50, %v2223_v37  ;;  %v17427_v60 = vcombine.low %v2219_v50, %v2223_v37  ;;  %v2250_v21 = vld [vmem:[%s19760_s9 + $0x1250] sm:$0xff] }
 0x65b   : > { %15462 = vmatmul.mubr.bf16.vlgmr.msra.gmra.mrb[36].mxu0 %v20283_v38  ;;  %v2254_v58 = vld [vmem:[%s19760_s9 + $0x1270] sm:$0xff] }
 0x65c   : > { %16118 = vmatmul.mubr.bf16.vlgmr.msra.gmra.mrb[36].mxu1 %v20283_v38  ;;  %15471 = vmatpush1.bf16.msra.mxu0 %v17385_v0  ;;  %v2207_v38 = vld [vmem:[%s19760_s9 + $0x10f8] sm:$0xff]  ;;  %v2226_v0 = vld [vmem:[%s19760_s9 + $0x1190] sm:$0xff] }
 0x65d   : > { %15502 = vmatprep.mubr.bf16.mxu0 %v20287_v56  ;;  %16127 = vmatpush1.bf16.msra.mxu1 %v17387_v6  ;;  %v17411_v63 = vcombine.low %v2203_v46, %v2207_v38  ;;  %v2231_v6 = vld [vmem:[%s19760_s9 + $0x11b8] sm:$0xff]  ;;  %v17434_v36 = vcombine.high %v2226_v0, %v2230_v3  ;;  %v2258_v50 = vld [vmem:[%s19760_s9 + $0x1290] sm:$0xff] }
 0x65e   : > { %16158 = vmatprep.mubr.bf16.mxu1 %v20287_v56  ;;  %15472 = vmatprep.subr.bf16.mxu0 %v17394_v57  ;;  %v17412_v56 = vcombine.high %v2203_v46, %v2207_v38  ;;  %v17425_v57 = vcombine.low %v2218_v45, %v2222_v43  ;;  %v2242_v46 = vld [vmem:[%s19760_s9 + $0x1210] sm:$0xff]  ;;  %v17458_v45 = vcombine.high %v2250_v21, %v2254_v58 }
 0x65f   : > { %16128 = vmatprep.subr.bf16.mxu1 %v17396_v61  ;;  %v17436_v61 = vcombine.high %v2227_v49, %v2231_v6  ;;  %v2246_v38 = vld [vmem:[%s19760_s9 + $0x1230] sm:$0xff] }
 0x660   : > { %15473 = vmatpush1.bf16.msra.mxu0 %v17393_v24  ;;  %v2235_v24 = vld [vmem:[%s19760_s9 + $0x11d8] sm:$0xff]  ;;  %v17450_v12 = vcombine.high %v2242_v46, %v2246_v38  ;;  %v2262_v37 = vld [vmem:[%s19760_s9 + $0x12b0] sm:$0xff] }
 0x661   : > { %16129 = vmatpush1.bf16.msra.mxu1 %v17395_v23  ;;  %15474 = vmatprep.subr.bf16.mxu0 %v17402_v39  ;;  %v2239_v23 = vld [vmem:[%s19760_s9 + $0x11f8] sm:$0xff]  ;;  %v17433_v39 = vcombine.low %v2226_v0, %v2230_v3  ;;  %v17466_v0 = vcombine.high %v2258_v50, %v2262_v37 }
 0x662   : > { %16130 = vmatprep.subr.bf16.mxu1 %v17404_v41  ;;  %v17435_v41 = vcombine.low %v2227_v49, %v2231_v6  ;;  %v17444_v7 = vcombine.high %v2235_v24, %v2239_v23  ;;  %v2266_v49 = vld [vmem:[%s19760_s9 + $0x12d0] sm:$0xff] }
 0x663   : > { %v2270_v6 = vld [vmem:[%s19760_s9 + $0x12f0] sm:$0xff] }
 0x664   : > { %15475 = vmatpush1.bf16.msra.mxu0 %v17401_v18  ;;  %v2243_v18 = vld [vmem:[%s19760_s9 + $0x1218] sm:$0xff] }
 0x665   : > { %16131 = vmatpush1.bf16.msra.mxu1 %v17403_v2  ;;  %15476 = vmatprep.subr.bf16.mxu0 %v17410_v35  ;;  %v2247_v2 = vld [vmem:[%s19760_s9 + $0x1238] sm:$0xff]  ;;  %v17441_v35 = vcombine.low %v2234_v10, %v2238_v16  ;;  %v17474_v10 = vcombine.high %v2266_v49, %v2270_v6 }
 0x666   : > { %16132 = vmatprep.subr.bf16.mxu1 %v17412_v56  ;;  %v17443_v56 = vcombine.low %v2235_v24, %v2239_v23  ;;  %v17452_v31 = vcombine.high %v2243_v18, %v2247_v2  ;;  %v2274_v24 = vld [vmem:[%s19760_s9 + $0x1310] sm:$0xff] }
 0x667   : > { %v2278_v23 = vld [vmem:[%s19760_s9 + $0x1330] sm:$0xff] }
 0x668   : > { %15477 = vmatpush1.bf16.msra.mxu0 %v17409_v62  ;;  %v2251_v62 = vld [vmem:[%s19760_s9 + $0x1258] sm:$0xff] }
 0x669   : > { %16133 = vmatpush1.bf16.msra.mxu1 %v17411_v63  ;;  %15478 = vmatprep.subr.bf16.mxu0 %v17418_v59  ;;  %v2255_v63 = vld [vmem:[%s19760_s9 + $0x1278] sm:$0xff]  ;;  %v17449_v59 = vcombine.low %v2242_v46, %v2246_v38  ;;  %v17482_v46 = vcombine.high %v2274_v24, %v2278_v23 }
 0x66a   : > { %16134 = vmatprep.subr.bf16.mxu1 %v17420_v48  ;;  %v17451_v48 = vcombine.low %v2243_v18, %v2247_v2  ;;  %v17460_v43 = vcombine.high %v2251_v62, %v2255_v63  ;;  %v2282_v18 = vld [vmem:[%s19760_s9 + $0x1350] sm:$0xff] }
 0x66b   : > { %v2286_v2 = vld [vmem:[%s19760_s9 + $0x1370] sm:$0xff] }
 0x66c   : > { %15479 = vmatpush1.bf16.msra.mxu0 %v17417_v4  ;;  %v2259_v4 = vld [vmem:[%s19760_s9 + $0x1298] sm:$0xff] }
 0x66d   : > { %16135 = vmatpush1.bf16.msra.mxu1 %v17419_v26  ;;  %15480 = vmatprep.subr.bf16.mxu0 %v17426_v17  ;;  %v2263_v26 = vld [vmem:[%s19760_s9 + $0x12b8] sm:$0xff]  ;;  %v17457_v17 = vcombine.low %v2250_v21, %v2254_v58  ;;  %v17490_v21 = vcombine.high %v2282_v18, %v2286_v2 }
 0x66e   : > { %16136 = vmatprep.subr.bf16.mxu1 %v17428_v51  ;;  %v17459_v51 = vcombine.low %v2251_v62, %v2255_v63  ;;  %v17468_v3 = vcombine.high %v2259_v4, %v2263_v26  ;;  %v2290_v62 = vld [vmem:[%s19760_s9 + $0x1390] sm:$0xff] }
 0x66f   : > { %v2294_v63 = vld [vmem:[%s19760_s9 + $0x13b0] sm:$0xff] }
 0x670   : > { %15481 = vmatpush1.bf16.msra.mxu0 %v17425_v57  ;;  %v2267_v57 = vld [vmem:[%s19760_s9 + $0x12d8] sm:$0xff] }
 0x671   : > { %16137 = vmatpush1.bf16.msra.mxu1 %v17427_v60  ;;  %15482 = vmatprep.subr.bf16.mxu0 %v17434_v36  ;;  %v2271_v60 = vld [vmem:[%s19760_s9 + $0x12f8] sm:$0xff]  ;;  %v17465_v36 = vcombine.low %v2258_v50, %v2262_v37  ;;  %v17498_v50 = vcombine.high %v2290_v62, %v2294_v63 }
 0x672   : > { %16138 = vmatprep.subr.bf16.mxu1 %v17436_v61  ;;  %v17467_v61 = vcombine.low %v2259_v4, %v2263_v26  ;;  %v17476_v16 = vcombine.high %v2267_v57, %v2271_v60  ;;  %v2298_v4 = vld [vmem:[%s19760_s9 + $0x13d0] sm:$0xff] }
 0x673   : > { %v2302_v26 = vld [vmem:[%s19760_s9 + $0x13f0] sm:$0xff] }
 0x674   : > { %15483 = vmatpush1.bf16.msra.mxu0 %v17433_v39  ;;  %v2275_v39 = vld [vmem:[%s19760_s9 + $0x1318] sm:$0xff] }
 0x675   : > { %16139 = vmatpush1.bf16.msra.mxu1 %v17435_v41  ;;  %15484 = vmatprep.subr.bf16.mxu0 %v17442_v32  ;;  %v2279_v41 = vld [vmem:[%s19760_s9 + $0x1338] sm:$0xff]  ;;  %v17473_v32 = vcombine.low %v2266_v49, %v2270_v6  ;;  %v17506_v49 = vcombine.high %v2298_v4, %v2302_v26 }
 0x676   : > { %16140 = vmatprep.subr.bf16.mxu1 %v17444_v7  ;;  %v17475_v7 = vcombine.low %v2267_v57, %v2271_v60  ;;  %v17484_v38 = vcombine.high %v2275_v39, %v2279_v41  ;;  %v2306_v57 = vld [vmem:[%s19760_s9 + $0x1410] sm:$0xff] }
 0x677   : > { %v2310_v60 = vld [vmem:[%s19760_s9 + $0x1430] sm:$0xff] }
 0x678   : > { %15485 = vmatpush1.bf16.msra.mxu0 %v17441_v35  ;;  %v2283_v35 = vld [vmem:[%s19760_s9 + $0x1358] sm:$0xff] }
 0x679   : > { %16141 = vmatpush1.bf16.msra.mxu1 %v17443_v56  ;;  %15486 = vmatprep.subr.bf16.mxu0 %v17450_v12  ;;  %v2287_v56 = vld [vmem:[%s19760_s9 + $0x1378] sm:$0xff]  ;;  %v17481_v12 = vcombine.low %v2274_v24, %v2278_v23  ;;  %v17514_v24 = vcombine.high %v2306_v57, %v2310_v60 }
 0x67a   : > { %16142 = vmatprep.subr.bf16.mxu1 %v17452_v31  ;;  %v17483_v31 = vcombine.low %v2275_v39, %v2279_v41  ;;  %v17492_v58 = vcombine.high %v2283_v35, %v2287_v56  ;;  %v2314_v39 = vld [vmem:[%s19760_s9 + $0x1450] sm:$0xff] }
 0x67b   : > { %v2318_v41 = vld [vmem:[%s19760_s9 + $0x1470] sm:$0xff] }
 0x67c   : > { %15487 = vmatpush1.bf16.msra.mxu0 %v17449_v59  ;;  %v2291_v59 = vld [vmem:[%s19760_s9 + $0x1398] sm:$0xff] }
 0x67d   : > { %16143 = vmatpush1.bf16.msra.mxu1 %v17451_v48  ;;  %15488 = vmatprep.subr.bf16.mxu0 %v17458_v45  ;;  %v2295_v48 = vld [vmem:[%s19760_s9 + $0x13b8] sm:$0xff]  ;;  %v17489_v45 = vcombine.low %v2282_v18, %v2286_v2  ;;  %v17522_v18 = vcombine.high %v2314_v39, %v2318_v41  ;;  %v2322_v2 = vld [vmem:[%s19760_s9 + $0x1490] sm:$0xff] }
 0x67e   : > { %16144 = vmatprep.subr.bf16.mxu1 %v17460_v43  ;;  %v17491_v43 = vcombine.low %v2283_v35, %v2287_v56  ;;  %v17500_v37 = vcombine.high %v2291_v59, %v2295_v48  ;;  %v2326_v35 = vld [vmem:[%s19760_s9 + $0x14b0] sm:$0xff] }
 0x680   : > { %15489 = vmatpush1.bf16.msra.mxu0 %v17457_v17  ;;  %v2299_v17 = vld [vmem:[%s19760_s9 + $0x13d8] sm:$0xff] }
 0x681   : > { %16145 = vmatpush1.bf16.msra.mxu1 %v17459_v51  ;;  %15490 = vmatprep.subr.bf16.mxu0 %v17466_v0  ;;  %v2303_v51 = vld [vmem:[%s19760_s9 + $0x13f8] sm:$0xff]  ;;  %v17497_v0 = vcombine.low %v2290_v62, %v2294_v63  ;;  %v17530_v62 = vcombine.high %v2322_v2, %v2326_v35 }
 0x682   : > { %16146 = vmatprep.subr.bf16.mxu1 %v17468_v3  ;;  %v17499_v3 = vcombine.low %v2291_v59, %v2295_v48  ;;  %v17508_v6 = vcombine.high %v2299_v17, %v2303_v51  ;;  %v2330_v59 = vld [vmem:[%s19760_s9 + $0x14d0] sm:$0xff] }
 0x683   : > { %v2334_v48 = vld [vmem:[%s19760_s9 + $0x14f0] sm:$0xff] }
 0x684   : > { %15491 = vmatpush1.bf16.msra.mxu0 %v17465_v36  ;;  %v2307_v36 = vld [vmem:[%s19760_s9 + $0x1418] sm:$0xff] }
 0x685   : > { %16147 = vmatpush1.bf16.msra.mxu1 %v17467_v61  ;;  %15492 = vmatprep.subr.bf16.mxu0 %v17474_v10  ;;  %v2311_v61 = vld [vmem:[%s19760_s9 + $0x1438] sm:$0xff]  ;;  %v17505_v10 = vcombine.low %v2298_v4, %v2302_v26  ;;  %v2338_v4 = vld [vmem:[%s19760_s9 + $0x1510] sm:$0xff] }
 0x686   : > { %16148 = vmatprep.subr.bf16.mxu1 %v17476_v16  ;;  %v17507_v16 = vcombine.low %v2299_v17, %v2303_v51  ;;  %v17516_v23 = vcombine.high %v2307_v36, %v2311_v61  ;;  %v2342_v26 = vld [vmem:[%s19760_s9 + $0x1530] sm:$0xff]  ;;  %v2339_v17 = vld [vmem:[%s19760_s9 + $0x1518] sm:$0xff] }
 0x687   : > { %v2343_v51 = vld [vmem:[%s19760_s9 + $0x1538] sm:$0xff] }
 0x688   : > { %15493 = vmatpush1.bf16.msra.mxu0 %v17473_v32  ;;  %v17513_v32 = vcombine.low %v2306_v57, %v2310_v60  ;;  %v2346_v57 = vld [vmem:[%s19760_s9 + $0x1550] sm:$0xff] }
 0x689   : > { %16149 = vmatpush1.bf16.msra.mxu1 %v17475_v7  ;;  %15494 = vmatprep.subr.bf16.mxu0 %v17482_v46  ;;  %v2315_v7 = vld [vmem:[%s19760_s9 + $0x1458] sm:$0xff]  ;;  %v2350_v60 = vld [vmem:[%s19760_s9 + $0x1570] sm:$0xff] }
 0x68a   : > { %16150 = vmatprep.subr.bf16.mxu1 %v17484_v38  ;;  %v2319_v46 = vld [vmem:[%s19760_s9 + $0x1478] sm:$0xff]  ;;  %v17515_v38 = vcombine.low %v2307_v36, %v2311_v61 }
 0x68b   : > { %v17524_v56 = vcombine.high %v2315_v7, %v2319_v46  ;;  %v2347_v36 = vld [vmem:[%s19760_s9 + $0x1558] sm:$0xff] }
 0x68c   : > { %15495 = vmatpush1.bf16.msra.mxu0 %v17481_v12  ;;  %v2323_v12 = vld [vmem:[%s19760_s9 + $0x1498] sm:$0xff] }
 0x68d   : > { %16151 = vmatpush1.bf16.msra.mxu1 %v17483_v31  ;;  %15496 = vmatprep.subr.bf16.mxu0 %v17490_v21  ;;  %v2327_v31 = vld [vmem:[%s19760_s9 + $0x14b8] sm:$0xff]  ;;  %v17521_v21 = vcombine.low %v2314_v39, %v2318_v41  ;;  %v2354_v39 = vld [vmem:[%s19760_s9 + $0x1590] sm:$0xff] }
 0x68e   : > { %16152 = vmatprep.subr.bf16.mxu1 %v17492_v58  ;;  %v17523_v58 = vcombine.low %v2315_v7, %v2319_v46  ;;  %v17532_v63 = vcombine.high %v2323_v12, %v2327_v31  ;;  %v2351_v61 = vld [vmem:[%s19760_s9 + $0x1578] sm:$0xff]  ;;  %v2358_v41 = vld [vmem:[%s19760_s9 + $0x15b0] sm:$0xff]  ;;  %v17553_v46 = vcombine.low %v2346_v57, %v2350_v60 }
 0x68f   : > { %v2359_v7 = vld [vmem:[%s19760_s9 + $0x15b8] sm:$0xff] }
 0x690   : > { %15497 = vmatpush1.bf16.msra.mxu0 %v17489_v45  ;;  %v2331_v45 = vld [vmem:[%s19760_s9 + $0x14d8] sm:$0xff] }
 0x691   : > { %16153 = vmatpush1.bf16.msra.mxu1 %v17491_v43  ;;  %15498 = vmatprep.subr.bf16.mxu0 %v17498_v50  ;;  %v17529_v43 = vcombine.low %v2322_v2, %v2326_v35  ;;  %v17531_v50 = vcombine.low %v2323_v12, %v2327_v31  ;;  %v2362_v35 = vld [vmem:[%s19760_s9 + $0x15d0] sm:$0xff]  ;;  %v2363_v12 = vld [vmem:[%s19760_s9 + $0x15d8] sm:$0xff] }
 0x692   : > { %16154 = vmatprep.subr.bf16.mxu1 %v17500_v37  ;;  %v17538_v37 = vcombine.high %v2330_v59, %v2334_v48  ;;  %v2367_v31 = vld [vmem:[%s19760_s9 + $0x15f8] sm:$0xff] }
 0x694   : > { %15499 = vmatpush1.bf16.msra.mxu0 %v17497_v0  ;;  %v17537_v0 = vcombine.low %v2330_v59, %v2334_v48  ;;  %v2370_v59 = vld [vmem:[%s19760_s9 + $0x1610] sm:$0xff] }
 0x695   : > { %16155 = vmatpush1.bf16.msra.mxu1 %v17499_v3  ;;  %15500 = vmatprep.subr.bf16.mxu0 %v17506_v49  ;;  %v17546_v49 = vcombine.high %v2338_v4, %v2342_v26  ;;  %v2374_v48 = vld [vmem:[%s19760_s9 + $0x1630] sm:$0xff] }
 0x696   : > { %16156 = vmatprep.subr.bf16.mxu1 %v17508_v6  ;;  %v17548_v6 = vcombine.high %v2339_v17, %v2343_v51 }
 0x698   : > { %15501 = vmatpush1.bf16.msra.mxu0 %v17505_v10  ;;  %v17545_v10 = vcombine.low %v2338_v4, %v2342_v26  ;;  %v2378_v4 = vld [vmem:[%s19760_s9 + $0x1650] sm:$0xff] }
 0x699   : > { %16157 = vmatpush1.bf16.msra.mxu1 %v17507_v16  ;;  %15511 = vmatprep.subr.bf16.mxu0 %v17514_v24  ;;  %v17547_v16 = vcombine.low %v2339_v17, %v2343_v51  ;;  %v17554_v24 = vcombine.high %v2346_v57, %v2350_v60  ;;  %v2382_v26 = vld [vmem:[%s19760_s9 + $0x1670] sm:$0xff]  ;;  %v2379_v17 = vld [vmem:[%s19760_s9 + $0x1658] sm:$0xff] }
 0x69a   : > { %16167 = vmatprep.subr.bf16.mxu1 %v17516_v23  ;;  %v17556_v23 = vcombine.high %v2347_v36, %v2351_v61  ;;  %v2383_v51 = vld [vmem:[%s19760_s9 + $0x1678] sm:$0xff]  ;;  %v2386_v57 = vld [vmem:[%s19760_s9 + $0x1690] sm:$0xff] }
 0x69b   : > { %15503 = vmatmul.mubr.bf16.vlgmr.msra.gmra.mrb[36].mxu0 %v20361_v27  ;;  %v2390_v60 = vld [vmem:[%s19760_s9 + $0x16b0] sm:$0xff] }
 0x69c   : > { %16159 = vmatmul.mubr.bf16.vlgmr.msra.gmra.mrb[36].mxu1 %v20361_v27  ;;  %15512 = vmatpush1.bf16.msra.mxu0 %v17513_v32  ;;  %v2335_v27 = vld [vmem:[%s19760_s9 + $0x14f8] sm:$0xff] }
 0x69d   : > { %15543 = vmatprep.mubr.bf16.mxu0 %v20365_v30  ;;  %16168 = vmatpush1.bf16.msra.mxu1 %v17515_v38  ;;  %v17539_v3 = vcombine.low %v2331_v45, %v2335_v27  ;;  %v2355_v32 = vld [vmem:[%s19760_s9 + $0x1598] sm:$0xff]  ;;  %v17555_v38 = vcombine.low %v2347_v36, %v2351_v61 }
 0x69e   : > { %16199 = vmatprep.mubr.bf16.mxu1 %v20365_v30  ;;  %15513 = vmatprep.subr.bf16.mxu0 %v17522_v18  ;;  %v17540_v30 = vcombine.high %v2331_v45, %v2335_v27  ;;  %v17562_v18 = vcombine.high %v2354_v39, %v2358_v41  ;;  %v17564_v2 = vcombine.high %v2355_v32, %v2359_v7  ;;  %v2371_v45 = vld [vmem:[%s19760_s9 + $0x1618] sm:$0xff] }
 0x69f   : > { %16169 = vmatprep.subr.bf16.mxu1 %v17524_v56  ;;  %v2366_v56 = vld [vmem:[%s19760_s9 + $0x15f0] sm:$0xff]  ;;  %v2375_v27 = vld [vmem:[%s19760_s9 + $0x1638] sm:$0xff] }
 0x6a0   : > { %15514 = vmatpush1.bf16.msra.mxu0 %v17521_v21  ;;  %v17561_v21 = vcombine.low %v2354_v39, %v2358_v41  ;;  %v2387_v36 = vld [vmem:[%s19760_s9 + $0x1698] sm:$0xff]  ;;  %v2394_v39 = vld [vmem:[%s19760_s9 + $0x16d0] sm:$0xff] }
 0x6a1   : > { %16170 = vmatpush1.bf16.msra.mxu1 %v17523_v58  ;;  %15515 = vmatprep.subr.bf16.mxu0 %v17530_v62  ;;  %v17563_v58 = vcombine.low %v2355_v32, %v2359_v7  ;;  %v17570_v62 = vcombine.high %v2362_v35, %v2366_v56  ;;  %v2391_v61 = vld [vmem:[%s19760_s9 + $0x16b8] sm:$0xff]  ;;  %v2398_v41 = vld [vmem:[%s19760_s9 + $0x16f0] sm:$0xff] }
 0x6a2   : > { %16171 = vmatprep.subr.bf16.mxu1 %v17532_v63  ;;  %v17572_v63 = vcombine.high %v2363_v12, %v2367_v31  ;;  %v2395_v32 = vld [vmem:[%s19760_s9 + $0x16d8] sm:$0xff] }
 0x6a3   : > { %v2399_v7 = vld [vmem:[%s19760_s9 + $0x16f8] sm:$0xff] }
 0x6a4   : > { %15516 = vmatpush1.bf16.msra.mxu0 %v17529_v43  ;;  %v17569_v43 = vcombine.low %v2362_v35, %v2366_v56  ;;  %v2402_v35 = vld [vmem:[%s19760_s9 + $0x1710] sm:$0xff] }
 0x6a5   : > { %16172 = vmatpush1.bf16.msra.mxu1 %v17531_v50  ;;  %15517 = vmatprep.subr.bf16.mxu0 %v17538_v37  ;;  %v17571_v50 = vcombine.low %v2363_v12, %v2367_v31  ;;  %v17578_v37 = vcombine.high %v2370_v59, %v2374_v48  ;;  %v2406_v56 = vld [vmem:[%s19760_s9 + $0x1730] sm:$0xff]  ;;  %v2403_v12 = vld [vmem:[%s19760_s9 + $0x1718] sm:$0xff] }
 0x6a6   : > { %16173 = vmatprep.subr.bf16.mxu1 %v17540_v30  ;;  %v17580_v30 = vcombine.high %v2371_v45, %v2375_v27  ;;  %v2407_v31 = vld [vmem:[%s19760_s9 + $0x1738] sm:$0xff] }
 0x6a8   : > { %15518 = vmatpush1.bf16.msra.mxu0 %v17537_v0  ;;  %v17577_v0 = vcombine.low %v2370_v59, %v2374_v48  ;;  %v2410_v59 = vld [vmem:[%s19760_s9 + $0x1750] sm:$0xff] }
 0x6a9   : > { %16174 = vmatpush1.bf16.msra.mxu1 %v17539_v3  ;;  %15519 = vmatprep.subr.bf16.mxu0 %v17546_v49  ;;  %v17579_v3 = vcombine.low %v2371_v45, %v2375_v27  ;;  %v17586_v49 = vcombine.high %v2378_v4, %v2382_v26  ;;  %v2414_v48 = vld [vmem:[%s19760_s9 + $0x1770] sm:$0xff]  ;;  %v2411_v45 = vld [vmem:[%s19760_s9 + $0x1758] sm:$0xff] }
 0x6aa   : > { %16175 = vmatprep.subr.bf16.mxu1 %v17548_v6  ;;  %v17588_v6 = vcombine.high %v2379_v17, %v2383_v51  ;;  %v2415_v27 = vld [vmem:[%s19760_s9 + $0x1778] sm:$0xff] }
 0x6ac   : > { %15520 = vmatpush1.bf16.msra.mxu0 %v17545_v10  ;;  %v17585_v10 = vcombine.low %v2378_v4, %v2382_v26  ;;  %v2418_v4 = vld [vmem:[%s19760_s9 + $0x1790] sm:$0xff] }
 0x6ad   : > { %16176 = vmatpush1.bf16.msra.mxu1 %v17547_v16  ;;  %15521 = vmatprep.subr.bf16.mxu0 %v17554_v24  ;;  %v17587_v16 = vcombine.low %v2379_v17, %v2383_v51  ;;  %v17594_v24 = vcombine.high %v2386_v57, %v2390_v60  ;;  %v2422_v26 = vld [vmem:[%s19760_s9 + $0x17b0] sm:$0xff]  ;;  %v2419_v17 = vld [vmem:[%s19760_s9 + $0x1798] sm:$0xff] }
 0x6ae   : > { %16177 = vmatprep.subr.bf16.mxu1 %v17556_v23  ;;  %v17596_v23 = vcombine.high %v2387_v36, %v2391_v61  ;;  %v2423_v51 = vld [vmem:[%s19760_s9 + $0x17b8] sm:$0xff] }
 0x6b0   : > { %15522 = vmatpush1.bf16.msra.mxu0 %v17553_v46  ;;  %v17593_v46 = vcombine.low %v2386_v57, %v2390_v60  ;;  %v2426_v57 = vld [vmem:[%s19760_s9 + $0x17d0] sm:$0xff] }
 0x6b1   : > { %16178 = vmatpush1.bf16.msra.mxu1 %v17555_v38  ;;  %15523 = vmatprep.subr.bf16.mxu0 %v17562_v18  ;;  %v17595_v38 = vcombine.low %v2387_v36, %v2391_v61  ;;  %v17602_v18 = vcombine.high %v2394_v39, %v2398_v41  ;;  %v2430_v60 = vld [vmem:[%s19760_s9 + $0x17f0] sm:$0xff]  ;;  %v2427_v36 = vld [vmem:[%s19760_s9 + $0x17d8] sm:$0xff] }
 0x6b2   : > { %16179 = vmatprep.subr.bf16.mxu1 %v17564_v2  ;;  %v17604_v2 = vcombine.high %v2395_v32, %v2399_v7  ;;  %v2431_v61 = vld [vmem:[%s19760_s9 + $0x17f8] sm:$0xff] }
 0x6b4   : > { %15524 = vmatpush1.bf16.msra.mxu0 %v17561_v21  ;;  %v17601_v21 = vcombine.low %v2394_v39, %v2398_v41  ;;  %v2434_v39 = vld [vmem:[%s19760_s9 + $0x1810] sm:$0xff] }
 0x6b5   : > { %16180 = vmatpush1.bf16.msra.mxu1 %v17563_v58  ;;  %15525 = vmatprep.subr.bf16.mxu0 %v17570_v62  ;;  %v17603_v58 = vcombine.low %v2395_v32, %v2399_v7  ;;  %v17610_v62 = vcombine.high %v2402_v35, %v2406_v56  ;;  %v2438_v41 = vld [vmem:[%s19760_s9 + $0x1830] sm:$0xff]  ;;  %v2435_v32 = vld [vmem:[%s19760_s9 + $0x1818] sm:$0xff] }
 0x6b6   : > { %16181 = vmatprep.subr.bf16.mxu1 %v17572_v63  ;;  %v17612_v63 = vcombine.high %v2403_v12, %v2407_v31  ;;  %v2439_v7 = vld [vmem:[%s19760_s9 + $0x1838] sm:$0xff] }
 0x6b8   : > { %15526 = vmatpush1.bf16.msra.mxu0 %v17569_v43  ;;  %v17609_v43 = vcombine.low %v2402_v35, %v2406_v56  ;;  %v2442_v35 = vld [vmem:[%s19760_s9 + $0x1850] sm:$0xff] }
 0x6b9   : > { %16182 = vmatpush1.bf16.msra.mxu1 %v17571_v50  ;;  %15527 = vmatprep.subr.bf16.mxu0 %v17578_v37  ;;  %v17611_v50 = vcombine.low %v2403_v12, %v2407_v31  ;;  %v17618_v37 = vcombine.high %v2410_v59, %v2414_v48  ;;  %v2446_v56 = vld [vmem:[%s19760_s9 + $0x1870] sm:$0xff]  ;;  %v17641_v12 = vcombine.low %v2434_v39, %v2438_v41  ;;  %v2443_v31 = vld [vmem:[%s19760_s9 + $0x1858] sm:$0xff] }
 0x6ba   : > { %16183 = vmatprep.subr.bf16.mxu1 %v17580_v30  ;;  %v17620_v30 = vcombine.high %v2411_v45, %v2415_v27 }
 0x6bc   : > { %15528 = vmatpush1.bf16.msra.mxu0 %v17577_v0  ;;  %v17617_v0 = vcombine.low %v2410_v59, %v2414_v48  ;;  %v2454_v59 = vld [vmem:[%s19760_s9 + $0x18b0] sm:$0xff] }
 0x6bd   : > { %16184 = vmatpush1.bf16.msra.mxu1 %v17579_v3  ;;  %15529 = vmatprep.subr.bf16.mxu0 %v17586_v49  ;;  %v17619_v3 = vcombine.low %v2411_v45, %v2415_v27  ;;  %v17626_v49 = vcombine.high %v2418_v4, %v2422_v26  ;;  %v2451_v45 = vld [vmem:[%s19760_s9 + $0x1898] sm:$0xff] }
 0x6be   : > { %16185 = vmatprep.subr.bf16.mxu1 %v17588_v6  ;;  %v17628_v6 = vcombine.high %v2419_v17, %v2423_v51  ;;  %v2455_v27 = vld [vmem:[%s19760_s9 + $0x18b8] sm:$0xff] }
 0x6c0   : > { %15530 = vmatpush1.bf16.msra.mxu0 %v17585_v10  ;;  %v17625_v10 = vcombine.low %v2418_v4, %v2422_v26  ;;  %v2458_v4 = vld [vmem:[%s19760_s9 + $0x18d0] sm:$0xff] }
 0x6c1   : > { %16186 = vmatpush1.bf16.msra.mxu1 %v17587_v16  ;;  %15531 = vmatprep.subr.bf16.mxu0 %v17594_v24  ;;  %v17627_v16 = vcombine.low %v2419_v17, %v2423_v51  ;;  %v17634_v24 = vcombine.high %v2426_v57, %v2430_v60  ;;  %v2462_v26 = vld [vmem:[%s19760_s9 + $0x18f0] sm:$0xff]  ;;  %v2459_v17 = vld [vmem:[%s19760_s9 + $0x18d8] sm:$0xff] }
 0x6c2   : > { %16187 = vmatprep.subr.bf16.mxu1 %v17596_v23  ;;  %v17636_v23 = vcombine.high %v2427_v36, %v2431_v61 }
 0x6c4   : > { %15532 = vmatpush1.bf16.msra.mxu0 %v17593_v46  ;;  %v17633_v46 = vcombine.low %v2426_v57, %v2430_v60  ;;  %v2467_v57 = vld [vmem:[%s19760_s9 + $0x1918] sm:$0xff] }
 0x6c5   : > { %16188 = vmatpush1.bf16.msra.mxu1 %v17595_v38  ;;  %15533 = vmatprep.subr.bf16.mxu0 %v17602_v18  ;;  %v17635_v38 = vcombine.low %v2427_v36, %v2431_v61  ;;  %v17642_v18 = vcombine.high %v2434_v39, %v2438_v41  ;;  %v2471_v60 = vld [vmem:[%s19760_s9 + $0x1938] sm:$0xff]  ;;  %v17665_v36 = vcombine.low %v2458_v4, %v2462_v26 }
 0x6c6   : > { %16189 = vmatprep.subr.bf16.mxu1 %v17604_v2  ;;  %v17644_v2 = vcombine.high %v2435_v32, %v2439_v7  ;;  %v2475_v39 = vld [vmem:[%s19760_s9 + $0x1958] sm:$0xff] }
 0x6c7   : > { %v2479_v41 = vld [vmem:[%s19760_s9 + $0x1978] sm:$0xff] }
 0x6c8   : > { %15534 = vmatpush1.bf16.msra.mxu0 %v17601_v21  ;;  %v2447_v21 = vld [vmem:[%s19760_s9 + $0x1878] sm:$0xff] }
 0x6c9   : > { %16190 = vmatpush1.bf16.msra.mxu1 %v17603_v58  ;;  %15535 = vmatprep.subr.bf16.mxu0 %v17610_v62  ;;  %v17643_v58 = vcombine.low %v2435_v32, %v2439_v7  ;;  %v17650_v62 = vcombine.high %v2442_v35, %v2446_v56  ;;  %v17652_v48 = vcombine.high %v2443_v31, %v2447_v21 }
 0x6ca   : > { %16191 = vmatprep.subr.bf16.mxu1 %v17612_v63  ;;  %v2450_v63 = vld [vmem:[%s19760_s9 + $0x1890] sm:$0xff]  ;;  %v17675_v7 = vcombine.low %v2467_v57, %v2471_v60 }
 0x6cb   : > { %v17657_v51 = vcombine.low %v2450_v63, %v2454_v59 }
 0x6cc   : > { %15536 = vmatpush1.bf16.msra.mxu0 %v17609_v43  ;;  %v17649_v43 = vcombine.low %v2442_v35, %v2446_v56  ;;  %v2483_v35 = vld [vmem:[%s19760_s9 + $0x1998] sm:$0xff] }
 0x6cd   : > { %16192 = vmatpush1.bf16.msra.mxu1 %v17611_v50  ;;  %15537 = vmatprep.subr.bf16.mxu0 %v17618_v37  ;;  %v17651_v50 = vcombine.low %v2443_v31, %v2447_v21  ;;  %v17658_v37 = vcombine.high %v2450_v63, %v2454_v59  ;;  %v2487_v56 = vld [vmem:[%s19760_s9 + $0x19b8] sm:$0xff]  ;;  %v17683_v31 = vcombine.low %v2475_v39, %v2479_v41  ;;  %v2494_v63 = vld [vmem:[%s19760_s9 + $0x19f0] sm:$0xff] }
 0x6ce   : > { %16193 = vmatprep.subr.bf16.mxu1 %v17620_v30  ;;  %v17660_v30 = vcombine.high %v2451_v45, %v2455_v27  ;;  %v2491_v59 = vld [vmem:[%s19760_s9 + $0x19d8] sm:$0xff] }
 0x6d0   : > { %15538 = vmatpush1.bf16.msra.mxu0 %v17617_v0  ;;  %v17659_v0 = vcombine.low %v2451_v45, %v2455_v27  ;;  %v17691_v27 = vcombine.low %v2483_v35, %v2487_v56 }
 0x6d1   : > { %16194 = vmatpush1.bf16.msra.mxu1 %v17619_v3  ;;  %15539 = vmatprep.subr.bf16.mxu0 %v17626_v49  ;;  %v17666_v3 = vcombine.high %v2458_v4, %v2462_v26  ;;  %v2466_v49 = vld [vmem:[%s19760_s9 + $0x1910] sm:$0xff]  ;;  %v2499_v4 = vld [vmem:[%s19760_s9 + $0x1a18] sm:$0xff] }
 0x6d2   : > { %16195 = vmatprep.subr.bf16.mxu1 %v17628_v6  ;;  %v2470_v6 = vld [vmem:[%s19760_s9 + $0x1930] sm:$0xff]  ;;  %v2503_v26 = vld [vmem:[%s19760_s9 + $0x1a38] sm:$0xff] }
 0x6d3   : > { %v17673_v32 = vcombine.low %v2466_v49, %v2470_v6 }
 0x6d4   : > { %15540 = vmatpush1.bf16.msra.mxu0 %v17625_v10  ;;  %v17674_v10 = vcombine.high %v2466_v49, %v2470_v6  ;;  %v2507_v49 = vld [vmem:[%s19760_s9 + $0x1a58] sm:$0xff] }
 0x6d5   : > { %16196 = vmatpush1.bf16.msra.mxu1 %v17627_v16  ;;  %15541 = vmatprep.subr.bf16.mxu0 %v17634_v24  ;;  %v17676_v16 = vcombine.high %v2467_v57, %v2471_v60  ;;  %v2474_v24 = vld [vmem:[%s19760_s9 + $0x1950] sm:$0xff]  ;;  %v2511_v6 = vld [vmem:[%s19760_s9 + $0x1a78] sm:$0xff]  ;;  %v17707_v60 = vcombine.low %v2499_v4, %v2503_v26 }
 0x6d6   : > { %16197 = vmatprep.subr.bf16.mxu1 %v17636_v23  ;;  %v2478_v23 = vld [vmem:[%s19760_s9 + $0x1970] sm:$0xff] }
 0x6d8   : > { %15542 = vmatpush1.bf16.msra.mxu0 %v17633_v46  ;;  %v17682_v46 = vcombine.high %v2474_v24, %v2478_v23 }
 0x6d9   : > { %16198 = vmatpush1.bf16.msra.mxu1 %v17635_v38  ;;  %15552 = vmatprep.subr.bf16.mxu0 %v17642_v18  ;;  %v17684_v38 = vcombine.high %v2475_v39, %v2479_v41  ;;  %v2482_v18 = vld [vmem:[%s19760_s9 + $0x1990] sm:$0xff]  ;;  %v17715_v41 = vcombine.low %v2507_v49, %v2511_v6 }
 0x6da   : > { %16208 = vmatprep.subr.bf16.mxu1 %v17644_v2  ;;  %v2486_v2 = vld [vmem:[%s19760_s9 + $0x19b0] sm:$0xff] }
 0x6db   : > { %15544 = vmatmul.mubr.bf16.vlgmr.msra.gmra.mrb[36].mxu0 %v20439_v22  ;;  %v17690_v21 = vcombine.high %v2482_v18, %v2486_v2  ;;  %v17689_v45 = vcombine.low %v2482_v18, %v2486_v2  ;;  %v2523_v18 = vld [vmem:[%s19760_s9 + $0x1ad8] sm:$0xff] }
 0x6dc   : > { %16200 = vmatmul.mubr.bf16.vlgmr.msra.gmra.mrb[36].mxu1 %v20439_v22  ;;  %15553 = vmatpush1.bf16.msra.mxu0 %v17641_v12  ;;  %v2463_v22 = vld [vmem:[%s19760_s9 + $0x18f8] sm:$0xff]  ;;  %v17681_v12 = vcombine.low %v2474_v24, %v2478_v23 }
 0x6dd   : > { %15584 = vmatprep.mubr.bf16.mxu0 %v20443_v1  ;;  %16209 = vmatpush1.bf16.msra.mxu1 %v17643_v58  ;;  %v17667_v61 = vcombine.low %v2459_v17, %v2463_v22  ;;  %v17692_v58 = vcombine.high %v2483_v35, %v2487_v56  ;;  %v2515_v24 = vld [vmem:[%s19760_s9 + $0x1a98] sm:$0xff] }
 0x6de   : > { %16240 = vmatprep.mubr.bf16.mxu1 %v20443_v1  ;;  %15554 = vmatprep.subr.bf16.mxu0 %v17650_v62  ;;  %v17668_v1 = vcombine.high %v2459_v17, %v2463_v22  ;;  %v2490_v62 = vld [vmem:[%s19760_s9 + $0x19d0] sm:$0xff]  ;;  %v2519_v23 = vld [vmem:[%s19760_s9 + $0x1ab8] sm:$0xff] }
 0x6df   : > { %16210 = vmatprep.subr.bf16.mxu1 %v17652_v48  ;;  %v2495_v48 = vld [vmem:[%s19760_s9 + $0x19f8] sm:$0xff]  ;;  %v17697_v17 = vcombine.low %v2490_v62, %v2494_v63  ;;  %v17723_v56 = vcombine.low %v2515_v24, %v2519_v23 }
 0x6e0   : > { %15555 = vmatpush1.bf16.msra.mxu0 %v17649_v43  ;;  %v17698_v43 = vcombine.high %v2490_v62, %v2494_v63  ;;  %v17699_v22 = vcombine.low %v2491_v59, %v2495_v48  ;;  %v2527_v2 = vld [vmem:[%s19760_s9 + $0x1af8] sm:$0xff] }
 0x6e1   : > { %16211 = vmatpush1.bf16.msra.mxu1 %v17651_v50  ;;  %15556 = vmatprep.subr.bf16.mxu0 %v17658_v37  ;;  %v17700_v50 = vcombine.high %v2491_v59, %v2495_v48  ;;  %v2498_v37 = vld [vmem:[%s19760_s9 + $0x1a10] sm:$0xff]  ;;  %v2531_v62 = vld [vmem:[%s19760_s9 + $0x1b18] sm:$0xff]  ;;  %v17731_v48 = vcombine.low %v2523_v18, %v2527_v2 }
 0x6e2   : > { %16212 = vmatprep.subr.bf16.mxu1 %v17660_v30  ;;  %v2502_v30 = vld [vmem:[%s19760_s9 + $0x1a30] sm:$0xff]  ;;  %v2535_v63 = vld [vmem:[%s19760_s9 + $0x1b38] sm:$0xff] }
 0x6e3   : > { %v17705_v57 = vcombine.low %v2498_v37, %v2502_v30 }
 0x6e4   : > { %15557 = vmatpush1.bf16.msra.mxu0 %v17657_v51  ;;  %v17706_v51 = vcombine.high %v2498_v37, %v2502_v30  ;;  %v2539_v37 = vld [vmem:[%s19760_s9 + $0x1b58] sm:$0xff] }
 0x6e5   : > { %16213 = vmatpush1.bf16.msra.mxu1 %v17659_v0  ;;  %15558 = vmatprep.subr.bf16.mxu0 %v17666_v3  ;;  %v17708_v0 = vcombine.high %v2499_v4, %v2503_v26  ;;  %v2506_v3 = vld [vmem:[%s19760_s9 + $0x1a50] sm:$0xff]  ;;  %v2543_v30 = vld [vmem:[%s19760_s9 + $0x1b78] sm:$0xff]  ;;  %v17739_v26 = vcombine.low %v2531_v62, %v2535_v63 }
 0x6e6   : > { %16214 = vmatprep.subr.bf16.mxu1 %v17668_v1  ;;  %v2510_v1 = vld [vmem:[%s19760_s9 + $0x1a70] sm:$0xff] }
 0x6e7   : > { %v17713_v39 = vcombine.low %v2506_v3, %v2510_v1 }
 0x6e8   : > { %15559 = vmatpush1.bf16.msra.mxu0 %v17665_v36  ;;  %v17714_v36 = vcombine.high %v2506_v3, %v2510_v1  ;;  %v2547_v3 = vld [vmem:[%s19760_s9 + $0x1b98] sm:$0xff] }
 0x6e9   : > { %16215 = vmatpush1.bf16.msra.mxu1 %v17667_v61  ;;  %15560 = vmatprep.subr.bf16.mxu0 %v17674_v10  ;;  %v17716_v61 = vcombine.high %v2507_v49, %v2511_v6  ;;  %v2514_v10 = vld [vmem:[%s19760_s9 + $0x1a90] sm:$0xff]  ;;  %v2551_v1 = vld [vmem:[%s19760_s9 + $0x1bb8] sm:$0xff]  ;;  %v17747_v6 = vcombine.low %v2539_v37, %v2543_v30 }
 0x6ea   : > { %16216 = vmatprep.subr.bf16.mxu1 %v17676_v16  ;;  %v2518_v16 = vld [vmem:[%s19760_s9 + $0x1ab0] sm:$0xff] }
 0x6eb   : > { %v17721_v35 = vcombine.low %v2514_v10, %v2518_v16 }
 0x6ec   : > { %15561 = vmatpush1.bf16.msra.mxu0 %v17673_v32  ;;  %v17722_v32 = vcombine.high %v2514_v10, %v2518_v16  ;;  %v2555_v10 = vld [vmem:[%s19760_s9 + $0x1bd8] sm:$0xff] }
 0x6ed   : > { %16217 = vmatpush1.bf16.msra.mxu1 %v17675_v7  ;;  %15562 = vmatprep.subr.bf16.mxu0 %v17682_v46  ;;  %v17724_v7 = vcombine.high %v2515_v24, %v2519_v23  ;;  %v2522_v46 = vld [vmem:[%s19760_s9 + $0x1ad0] sm:$0xff]  ;;  %v2559_v16 = vld [vmem:[%s19760_s9 + $0x1bf8] sm:$0xff]  ;;  %v17755_v23 = vcombine.low %v2547_v3, %v2551_v1 }
 0x6ee   : > { %16218 = vmatprep.subr.bf16.mxu1 %v17684_v38  ;;  %v2526_v38 = vld [vmem:[%s19760_s9 + $0x1af0] sm:$0xff] }
 0x6ef   : > { %v17729_v59 = vcombine.low %v2522_v46, %v2526_v38 }
 0x6f0   : > { %15563 = vmatpush1.bf16.msra.mxu0 %v17681_v12  ;;  %v17730_v12 = vcombine.high %v2522_v46, %v2526_v38  ;;  %v2563_v46 = vld [vmem:[%s19760_s9 + $0x1c18] sm:$0xff] }
 0x6f1   : > { %16219 = vmatpush1.bf16.msra.mxu1 %v17683_v31  ;;  %15564 = vmatprep.subr.bf16.mxu0 %v17690_v21  ;;  %v17732_v31 = vcombine.high %v2523_v18, %v2527_v2  ;;  %v2530_v21 = vld [vmem:[%s19760_s9 + $0x1b10] sm:$0xff]  ;;  %v2567_v38 = vld [vmem:[%s19760_s9 + $0x1c38] sm:$0xff]  ;;  %v17763_v2 = vcombine.low %v2555_v10, %v2559_v16 }
 0x6f2   : > { %16220 = vmatprep.subr.bf16.mxu1 %v17692_v58  ;;  %v2534_v58 = vld [vmem:[%s19760_s9 + $0x1b30] sm:$0xff] }
 0x6f3   : > { %v17737_v4 = vcombine.low %v2530_v21, %v2534_v58 }
 0x6f4   : > { %15565 = vmatpush1.bf16.msra.mxu0 %v17689_v45  ;;  %v17738_v45 = vcombine.high %v2530_v21, %v2534_v58  ;;  %v2571_v58 = vld [vmem:[%s19760_s9 + $0x1c58] sm:$0xff] }
 0x6f5   : > { %16221 = vmatpush1.bf16.msra.mxu1 %v17691_v27  ;;  %15566 = vmatprep.subr.bf16.mxu0 %v17698_v43  ;;  %v17740_v27 = vcombine.high %v2531_v62, %v2535_v63  ;;  %v2538_v43 = vld [vmem:[%s19760_s9 + $0x1b50] sm:$0xff]  ;;  %v2575_v62 = vld [vmem:[%s19760_s9 + $0x1c78] sm:$0xff]  ;;  %v17771_v63 = vcombine.low %v2563_v46, %v2567_v38 }
 0x6f6   : > { %16222 = vmatprep.subr.bf16.mxu1 %v17700_v50  ;;  %v2542_v50 = vld [vmem:[%s19760_s9 + $0x1b70] sm:$0xff] }
 0x6f7   : > { %v17745_v49 = vcombine.low %v2538_v43, %v2542_v50 }
 0x6f8   : > { %15567 = vmatpush1.bf16.msra.mxu0 %v17697_v17  ;;  %v17746_v17 = vcombine.high %v2538_v43, %v2542_v50  ;;  %v2579_v43 = vld [vmem:[%s19760_s9 + $0x1c98] sm:$0xff] }
 0x6f9   : > { %16223 = vmatpush1.bf16.msra.mxu1 %v17699_v22  ;;  %15568 = vmatprep.subr.bf16.mxu0 %v17706_v51  ;;  %v17748_v22 = vcombine.high %v2539_v37, %v2543_v30  ;;  %v2546_v51 = vld [vmem:[%s19760_s9 + $0x1b90] sm:$0xff]  ;;  %v2583_v50 = vld [vmem:[%s19760_s9 + $0x1cb8] sm:$0xff]  ;;  %v17779_v30 = vcombine.low %v2571_v58, %v2575_v62 }
 0x6fa   : > { %16224 = vmatprep.subr.bf16.mxu1 %v17708_v0  ;;  %v2550_v0 = vld [vmem:[%s19760_s9 + $0x1bb0] sm:$0xff] }
 0x6fb   : > { %v17753_v24 = vcombine.low %v2546_v51, %v2550_v0 }
 0x6fc   : > { %15569 = vmatpush1.bf16.msra.mxu0 %v17705_v57  ;;  %v17754_v57 = vcombine.high %v2546_v51, %v2550_v0  ;;  %v2587_v51 = vld [vmem:[%s19760_s9 + $0x1cd8] sm:$0xff] }
 0x6fd   : > { %16225 = vmatpush1.bf16.msra.mxu1 %v17707_v60  ;;  %15570 = vmatprep.subr.bf16.mxu0 %v17714_v36  ;;  %v17756_v60 = vcombine.high %v2547_v3, %v2551_v1  ;;  %v2554_v36 = vld [vmem:[%s19760_s9 + $0x1bd0] sm:$0xff]  ;;  %v17787_v3 = vcombine.low %v2579_v43, %v2583_v50 }
 0x6fe   : > { %16226 = vmatprep.subr.bf16.mxu1 %v17716_v61  ;;  %v2558_v61 = vld [vmem:[%s19760_s9 + $0x1bf0] sm:$0xff] }
 0x6ff   : > { %v17761_v18 = vcombine.low %v2554_v36, %v2558_v61 }
 0x700   : > { %15571 = vmatpush1.bf16.msra.mxu0 %v17713_v39  ;;  %v17762_v39 = vcombine.high %v2554_v36, %v2558_v61 }
 0x701   : > { %16227 = vmatpush1.bf16.msra.mxu1 %v17715_v41  ;;  %15572 = vmatprep.subr.bf16.mxu0 %v17722_v32  ;;  %v17764_v41 = vcombine.high %v2555_v10, %v2559_v16  ;;  %v2562_v32 = vld [vmem:[%s19760_s9 + $0x1c10] sm:$0xff] }
 0x702   : > { %16228 = vmatprep.subr.bf16.mxu1 %v17724_v7  ;;  %v2566_v7 = vld [vmem:[%s19760_s9 + $0x1c30] sm:$0xff] }
 0x703   : > { %v17769_v21 = vcombine.low %v2562_v32, %v2566_v7 }
 0x704   : > { %15573 = vmatpush1.bf16.msra.mxu0 %v17721_v35  ;;  %v17770_v35 = vcombine.high %v2562_v32, %v2566_v7 }
 0x705   : > { %16229 = vmatpush1.bf16.msra.mxu1 %v17723_v56  ;;  %15574 = vmatprep.subr.bf16.mxu0 %v17730_v12  ;;  %v17772_v56 = vcombine.high %v2563_v46, %v2567_v38  ;;  %v2570_v12 = vld [vmem:[%s19760_s9 + $0x1c50] sm:$0xff] }
 0x706   : > { %16230 = vmatprep.subr.bf16.mxu1 %v17732_v31  ;;  %v2574_v31 = vld [vmem:[%s19760_s9 + $0x1c70] sm:$0xff] }
 0x707   : > { %v17777_v37 = vcombine.low %v2570_v12, %v2574_v31 }
 0x708   : > { %15575 = vmatpush1.bf16.msra.mxu0 %v17729_v59  ;;  %v17778_v59 = vcombine.high %v2570_v12, %v2574_v31 }
 0x709   : > { %16231 = vmatpush1.bf16.msra.mxu1 %v17731_v48  ;;  %15576 = vmatprep.subr.bf16.mxu0 %v17738_v45  ;;  %v2578_v48 = vld [vmem:[%s19760_s9 + $0x1c90] sm:$0xff] }
 0x70a   : > { %16232 = vmatprep.subr.bf16.mxu1 %v17740_v27  ;;  %v2582_v45 = vld [vmem:[%s19760_s9 + $0x1cb0] sm:$0xff]  ;;  %v17780_v27 = vcombine.high %v2571_v58, %v2575_v62 }
 0x70b   : > { %v17785_v0 = vcombine.low %v2578_v48, %v2582_v45  ;;  %v2618_v62 = vld [vmem:[%s19760_s9 + $0x1dd0] sm:$0xff] }
 0x70c   : > { %15577 = vmatpush1.bf16.msra.mxu0 %v17737_v4  ;;  %v17786_v4 = vcombine.high %v2578_v48, %v2582_v45  ;;  %v2623_v48 = vld [vmem:[%s19760_s9 + $0x1df8] sm:$0xff] }
 0x70d   : > { %16233 = vmatpush1.bf16.msra.mxu1 %v17739_v26  ;;  %15578 = vmatprep.subr.bf16.mxu0 %v17746_v17  ;;  %v17788_v26 = vcombine.high %v2579_v43, %v2583_v50  ;;  %v2586_v17 = vld [vmem:[%s19760_s9 + $0x1cd0] sm:$0xff] }
 0x70e   : > { %16234 = vmatprep.subr.bf16.mxu1 %v17748_v22  ;;  %v2590_v22 = vld [vmem:[%s19760_s9 + $0x1cf0] sm:$0xff] }
 0x70f   : > { %v17794_v1 = vcombine.high %v2586_v17, %v2590_v22  ;;  %v17793_v36 = vcombine.low %v2586_v17, %v2590_v22 }
 0x710   : > { %15579 = vmatpush1.bf16.msra.mxu0 %v17745_v49  ;;  %v2594_v49 = vld [vmem:[%s19760_s9 + $0x1d10] sm:$0xff] }
 0x711   : > { %16235 = vmatpush1.bf16.msra.mxu1 %v17747_v6  ;;  %15580 = vmatprep.subr.bf16.mxu0 %v17754_v57  ;;  %v2598_v6 = vld [vmem:[%s19760_s9 + $0x1d30] sm:$0xff]  ;;  %v2595_v57 = vld [vmem:[%s19760_s9 + $0x1d18] sm:$0xff] }
 0x712   : > { %16236 = vmatprep.subr.bf16.mxu1 %v17756_v60  ;;  %v2599_v60 = vld [vmem:[%s19760_s9 + $0x1d38] sm:$0xff]  ;;  %v17802_v10 = vcombine.high %v2594_v49, %v2598_v6  ;;  %v17801_v32 = vcombine.low %v2594_v49, %v2598_v6 }
 0x713   : > { %v17804_v16 = vcombine.high %v2595_v57, %v2599_v60  ;;  %v17803_v7 = vcombine.low %v2595_v57, %v2599_v60 }
 0x714   : > { %15581 = vmatpush1.bf16.msra.mxu0 %v17753_v24  ;;  %v2602_v24 = vld [vmem:[%s19760_s9 + $0x1d50] sm:$0xff] }
 0x715   : > { %16237 = vmatpush1.bf16.msra.mxu1 %v17755_v23  ;;  %15582 = vmatprep.subr.bf16.mxu0 %v17762_v39  ;;  %v2606_v23 = vld [vmem:[%s19760_s9 + $0x1d70] sm:$0xff]  ;;  %v2603_v39 = vld [vmem:[%s19760_s9 + $0x1d58] sm:$0xff] }
 0x716   : > { %16238 = vmatprep.subr.bf16.mxu1 %v17764_v41  ;;  %v2607_v41 = vld [vmem:[%s19760_s9 + $0x1d78] sm:$0xff]  ;;  %v17810_v46 = vcombine.high %v2602_v24, %v2606_v23  ;;  %v17809_v12 = vcombine.low %v2602_v24, %v2606_v23 }
 0x717   : > { %v17812_v38 = vcombine.high %v2603_v39, %v2607_v41  ;;  %v17811_v31 = vcombine.low %v2603_v39, %v2607_v41 }
 0x718   : > { %15583 = vmatpush1.bf16.msra.mxu0 %v17761_v18  ;;  %v2610_v18 = vld [vmem:[%s19760_s9 + $0x1d90] sm:$0xff] }
 0x719   : > { %16239 = vmatpush1.bf16.msra.mxu1 %v17763_v2  ;;  %15593 = vmatprep.subr.bf16.mxu0 %v17770_v35  ;;  %v2614_v2 = vld [vmem:[%s19760_s9 + $0x1db0] sm:$0xff]  ;;  %v2611_v35 = vld [vmem:[%s19760_s9 + $0x1d98] sm:$0xff] }
 0x71a   : > { %16249 = vmatprep.subr.bf16.mxu1 %v17772_v56  ;;  %v2615_v56 = vld [vmem:[%s19760_s9 + $0x1db8] sm:$0xff]  ;;  %v17817_v45 = vcombine.low %v2610_v18, %v2614_v2 }
 0x71b   : > { %15585 = vmatmul.mubr.bf16.vlgmr.msra.gmra.mrb[36].mxu0 %v20517_v13  ;;  %v17820_v58 = vcombine.high %v2611_v35, %v2615_v56 }
 0x71c   : > { %16241 = vmatmul.mubr.bf16.vlgmr.msra.gmra.mrb[36].mxu1 %v20517_v13  ;;  %15594 = vmatpush1.bf16.msra.mxu0 %v17769_v21  ;;  %v2591_v13 = vld [vmem:[%s19760_s9 + $0x1cf8] sm:$0xff]  ;;  %v17818_v21 = vcombine.high %v2610_v18, %v2614_v2 }
 0x71d   : > { %15625 = vmatprep.mubr.bf16.mxu0 %v20521_v28  ;;  %16250 = vmatpush1.bf16.msra.mxu1 %v17771_v63  ;;  %v17795_v61 = vcombine.low %v2587_v51, %v2591_v13  ;;  %v2622_v63 = vld [vmem:[%s19760_s9 + $0x1df0] sm:$0xff] }
 0x71e   : > { %16281 = vmatprep.mubr.bf16.mxu1 %v20521_v28  ;;  %15595 = vmatprep.subr.bf16.mxu0 %v17778_v59  ;;  %v17796_v28 = vcombine.high %v2587_v51, %v2591_v13  ;;  %v2619_v59 = vld [vmem:[%s19760_s9 + $0x1dd8] sm:$0xff]  ;;  %v17826_v43 = vcombine.high %v2618_v62, %v2622_v63  ;;  %v17825_v17 = vcombine.low %v2618_v62, %v2622_v63 }
 0x71f   : > { %16251 = vmatprep.subr.bf16.mxu1 %v17780_v27  ;;  %v17819_v27 = vcombine.low %v2611_v35, %v2615_v56  ;;  %v17828_v50 = vcombine.high %v2619_v59, %v2623_v48  ;;  %v17827_v22 = vcombine.low %v2619_v59, %v2623_v48 }
 0x720   : > { %15596 = vmatpush1.bf16.msra.mxu0 %v17777_v37  ;;  %v2626_v37 = vld [vmem:[%s19760_s9 + $0x1e10] sm:$0xff] }
 0x721   : > { %16252 = vmatpush1.bf16.msra.mxu1 %v17779_v30  ;;  %15597 = vmatprep.subr.bf16.mxu0 %v17786_v4  ;;  %v2630_v30 = vld [vmem:[%s19760_s9 + $0x1e30] sm:$0xff]  ;;  %v2627_v4 = vld [vmem:[%s19760_s9 + $0x1e18] sm:$0xff] }
 0x722   : > { %16253 = vmatprep.subr.bf16.mxu1 %v17788_v26  ;;  %v2631_v26 = vld [vmem:[%s19760_s9 + $0x1e38] sm:$0xff]  ;;  %v17834_v51 = vcombine.high %v2626_v37, %v2630_v30  ;;  %v17833_v49 = vcombine.low %v2626_v37, %v2630_v30 }
 0x723   : > { %v17836_v13 = vcombine.high %v2627_v4, %v2631_v26  ;;  %v17835_v6 = vcombine.low %v2627_v4, %v2631_v26 }
 0x724   : > { %15598 = vmatpush1.bf16.msra.mxu0 %v17785_v0  ;;  %v2634_v0 = vld [vmem:[%s19760_s9 + $0x1e50] sm:$0xff] }
 0x725   : > { %16254 = vmatpush1.bf16.msra.mxu1 %v17787_v3  ;;  %15599 = vmatprep.subr.bf16.mxu0 %v17794_v1  ;;  %v2638_v3 = vld [vmem:[%s19760_s9 + $0x1e70] sm:$0xff]  ;;  %v2635_v1 = vld [vmem:[%s19760_s9 + $0x1e58] sm:$0xff] }
 0x726   : > { %16255 = vmatprep.subr.bf16.mxu1 %v17796_v28  ;;  %v2639_v28 = vld [vmem:[%s19760_s9 + $0x1e78] sm:$0xff]  ;;  %v17842_v57 = vcombine.high %v2634_v0, %v2638_v3  ;;  %v17841_v24 = vcombine.low %v2634_v0, %v2638_v3 }
 0x727   : > { %v17844_v60 = vcombine.high %v2635_v1, %v2639_v28  ;;  %v17843_v23 = vcombine.low %v2635_v1, %v2639_v28 }
 0x728   : > { %15600 = vmatpush1.bf16.msra.mxu0 %v17793_v36  ;;  %v2642_v36 = vld [vmem:[%s19760_s9 + $0x1e90] sm:$0xff] }
 0x729   : > { %16256 = vmatpush1.bf16.msra.mxu1 %v17795_v61  ;;  %15601 = vmatprep.subr.bf16.mxu0 %v17802_v10  ;;  %v2646_v61 = vld [vmem:[%s19760_s9 + $0x1eb0] sm:$0xff]  ;;  %v2643_v10 = vld [vmem:[%s19760_s9 + $0x1e98] sm:$0xff] }
 0x72a   : > { %16257 = vmatprep.subr.bf16.mxu1 %v17804_v16  ;;  %v2647_v16 = vld [vmem:[%s19760_s9 + $0x1eb8] sm:$0xff]  ;;  %v17850_v39 = vcombine.high %v2642_v36, %v2646_v61  ;;  %v17849_v18 = vcombine.low %v2642_v36, %v2646_v61 }
 0x72b   : > { %v17852_v41 = vcombine.high %v2643_v10, %v2647_v16  ;;  %v17851_v2 = vcombine.low %v2643_v10, %v2647_v16 }
 0x72c   : > { %15602 = vmatpush1.bf16.msra.mxu0 %v17801_v32  ;;  %v2650_v32 = vld [vmem:[%s19760_s9 + $0x1ed0] sm:$0xff] }
 0x72d   : > { %16258 = vmatpush1.bf16.msra.mxu1 %v17803_v7  ;;  %15603 = vmatprep.subr.bf16.mxu0 %v17810_v46  ;;  %v2654_v7 = vld [vmem:[%s19760_s9 + $0x1ef0] sm:$0xff]  ;;  %v2651_v46 = vld [vmem:[%s19760_s9 + $0x1ed8] sm:$0xff] }
 0x72e   : > { %16259 = vmatprep.subr.bf16.mxu1 %v17812_v38  ;;  %v2655_v38 = vld [vmem:[%s19760_s9 + $0x1ef8] sm:$0xff]  ;;  %v17858_v35 = vcombine.high %v2650_v32, %v2654_v7  ;;  %v17857_v62 = vcombine.low %v2650_v32, %v2654_v7 }
 0x72f   : > { %v17860_v56 = vcombine.high %v2651_v46, %v2655_v38  ;;  %v17859_v63 = vcombine.low %v2651_v46, %v2655_v38 }
 0x730   : > { %15604 = vmatpush1.bf16.msra.mxu0 %v17809_v12  ;;  %v2658_v12 = vld [vmem:[%s19760_s9 + $0x1f10] sm:$0xff] }
 0x731   : > { %16260 = vmatpush1.bf16.msra.mxu1 %v17811_v31  ;;  %15605 = vmatprep.subr.bf16.mxu0 %v17818_v21  ;;  %v2662_v31 = vld [vmem:[%s19760_s9 + $0x1f30] sm:$0xff]  ;;  %v2659_v21 = vld [vmem:[%s19760_s9 + $0x1f18] sm:$0xff] }
 0x732   : > { %16261 = vmatprep.subr.bf16.mxu1 %v17820_v58  ;;  %v2663_v58 = vld [vmem:[%s19760_s9 + $0x1f38] sm:$0xff]  ;;  %v17866_v59 = vcombine.high %v2658_v12, %v2662_v31  ;;  %v17865_v37 = vcombine.low %v2658_v12, %v2662_v31 }
 0x733   : > { %v17868_v48 = vcombine.high %v2659_v21, %v2663_v58  ;;  %v17867_v30 = vcombine.low %v2659_v21, %v2663_v58  ;;  %v2703_v12 = vld [vmem:[%s19760_s9 + $0x2078] sm:$0xff]  ;;  %v2706_v58 = vld [vmem:[%s19760_s9 + $0x2090] sm:$0xff] }
 0x734   : > { %15606 = vmatpush1.bf16.msra.mxu0 %v17817_v45  ;;  %v2666_v45 = vld [vmem:[%s19760_s9 + $0x1f50] sm:$0xff] }
 0x735   : > { %16262 = vmatpush1.bf16.msra.mxu1 %v17819_v27  ;;  %15607 = vmatprep.subr.bf16.mxu0 %v17826_v43  ;;  %v2670_v27 = vld [vmem:[%s19760_s9 + $0x1f70] sm:$0xff]  ;;  %v2667_v43 = vld [vmem:[%s19760_s9 + $0x1f58] sm:$0xff] }
 0x736   : > { %16263 = vmatprep.subr.bf16.mxu1 %v17828_v50  ;;  %v2671_v50 = vld [vmem:[%s19760_s9 + $0x1f78] sm:$0xff]  ;;  %v17874_v4 = vcombine.high %v2666_v45, %v2670_v27  ;;  %v17873_v0 = vcombine.low %v2666_v45, %v2670_v27 }
 0x737   : > { %v17876_v26 = vcombine.high %v2667_v43, %v2671_v50  ;;  %v17875_v3 = vcombine.low %v2667_v43, %v2671_v50 }
 0x738   : > { %15608 = vmatpush1.bf16.msra.mxu0 %v17825_v17  ;;  %v2674_v17 = vld [vmem:[%s19760_s9 + $0x1f90] sm:$0xff] }
 0x739   : > { %16264 = vmatpush1.bf16.msra.mxu1 %v17827_v22  ;;  %15609 = vmatprep.subr.bf16.mxu0 %v17834_v51  ;;  %v2678_v22 = vld [vmem:[%s19760_s9 + $0x1fb0] sm:$0xff]  ;;  %v2675_v51 = vld [vmem:[%s19760_s9 + $0x1f98] sm:$0xff] }
 0x73a   : > { %16265 = vmatprep.subr.bf16.mxu1 %v17836_v13  ;;  %v2679_v13 = vld [vmem:[%s19760_s9 + $0x1fb8] sm:$0xff]  ;;  %v17882_v1 = vcombine.high %v2674_v17, %v2678_v22  ;;  %v17881_v36 = vcombine.low %v2674_v17, %v2678_v22 }
 0x73b   : > { %v17884_v28 = vcombine.high %v2675_v51, %v2679_v13  ;;  %v17883_v61 = vcombine.low %v2675_v51, %v2679_v13  ;;  %v2722_v51 = vld [vmem:[%s19760_s9 + $0x2110] sm:$0xff] }
 0x73c   : > { %15610 = vmatpush1.bf16.msra.mxu0 %v17833_v49  ;;  %v2682_v49 = vld [vmem:[%s19760_s9 + $0x1fd0] sm:$0xff] }
 0x73d   : > { %16266 = vmatpush1.bf16.msra.mxu1 %v17835_v6  ;;  %15611 = vmatprep.subr.bf16.mxu0 %v17842_v57  ;;  %v2686_v6 = vld [vmem:[%s19760_s9 + $0x1ff0] sm:$0xff]  ;;  %v2683_v57 = vld [vmem:[%s19760_s9 + $0x1fd8] sm:$0xff] }
 0x73e   : > { %16267 = vmatprep.subr.bf16.mxu1 %v17844_v60  ;;  %v2687_v60 = vld [vmem:[%s19760_s9 + $0x1ff8] sm:$0xff]  ;;  %v17890_v10 = vcombine.high %v2682_v49, %v2686_v6  ;;  %v17889_v32 = vcombine.low %v2682_v49, %v2686_v6  ;;  %v2726_v13 = vld [vmem:[%s19760_s9 + $0x2130] sm:$0xff] }
 0x73f   : > { %v17892_v16 = vcombine.high %v2683_v57, %v2687_v60  ;;  %v17891_v7 = vcombine.low %v2683_v57, %v2687_v60  ;;  %v17930_v49 = vcombine.high %v2722_v51, %v2726_v13  ;;  %v2730_v57 = vld [vmem:[%s19760_s9 + $0x2150] sm:$0xff] }
 0x740   : > { %15612 = vmatpush1.bf16.msra.mxu0 %v17841_v24  ;;  %v2690_v24 = vld [vmem:[%s19760_s9 + $0x2010] sm:$0xff] }
 0x741   : > { %16268 = vmatpush1.bf16.msra.mxu1 %v17843_v23  ;;  %15613 = vmatprep.subr.bf16.mxu0 %v17850_v39  ;;  %v2694_v23 = vld [vmem:[%s19760_s9 + $0x2030] sm:$0xff]  ;;  %v2691_v39 = vld [vmem:[%s19760_s9 + $0x2018] sm:$0xff] }
 0x742   : > { %16269 = vmatprep.subr.bf16.mxu1 %v17852_v41  ;;  %v2695_v41 = vld [vmem:[%s19760_s9 + $0x2038] sm:$0xff]  ;;  %v17898_v46 = vcombine.high %v2690_v24, %v2694_v23  ;;  %v2734_v60 = vld [vmem:[%s19760_s9 + $0x2170] sm:$0xff] }
 0x743   : > { %v17900_v38 = vcombine.high %v2691_v39, %v2695_v41  ;;  %v17899_v31 = vcombine.low %v2691_v39, %v2695_v41  ;;  %v2738_v39 = vld [vmem:[%s19760_s9 + $0x2190] sm:$0xff] }
 0x744   : > { %15614 = vmatpush1.bf16.msra.mxu0 %v17849_v18  ;;  %v2698_v18 = vld [vmem:[%s19760_s9 + $0x2050] sm:$0xff] }
 0x745   : > { %16270 = vmatpush1.bf16.msra.mxu1 %v17851_v2  ;;  %15615 = vmatprep.subr.bf16.mxu0 %v17858_v35  ;;  %v2702_v2 = vld [vmem:[%s19760_s9 + $0x2070] sm:$0xff]  ;;  %v17897_v35 = vcombine.low %v2690_v24, %v2694_v23  ;;  %v17938_v24 = vcombine.high %v2730_v57, %v2734_v60 }
 0x746   : > { %16271 = vmatprep.subr.bf16.mxu1 %v17860_v56  ;;  %v2699_v56 = vld [vmem:[%s19760_s9 + $0x2058] sm:$0xff]  ;;  %v17906_v21 = vcombine.high %v2698_v18, %v2702_v2  ;;  %v17905_v45 = vcombine.low %v2698_v18, %v2702_v2  ;;  %v2742_v41 = vld [vmem:[%s19760_s9 + $0x21b0] sm:$0xff] }
 0x747   : > { %v17907_v27 = vcombine.low %v2699_v56, %v2703_v12  ;;  %v17946_v18 = vcombine.high %v2738_v39, %v2742_v41 }
 0x748   : > { %15616 = vmatpush1.bf16.msra.mxu0 %v17857_v62  ;;  %v2710_v62 = vld [vmem:[%s19760_s9 + $0x20b0] sm:$0xff] }
 0x749   : > { %16272 = vmatpush1.bf16.msra.mxu1 %v17859_v63  ;;  %15617 = vmatprep.subr.bf16.mxu0 %v17866_v59  ;;  %v17908_v63 = vcombine.high %v2699_v56, %v2703_v12  ;;  %v2707_v59 = vld [vmem:[%s19760_s9 + $0x2098] sm:$0xff]  ;;  %v17914_v43 = vcombine.high %v2706_v58, %v2710_v62  ;;  %v2750_v56 = vld [vmem:[%s19760_s9 + $0x21f0] sm:$0xff] }
 0x74a   : > { %16273 = vmatprep.subr.bf16.mxu1 %v17868_v48  ;;  %v2711_v48 = vld [vmem:[%s19760_s9 + $0x20b8] sm:$0xff] }
 0x74b   : > { %v17916_v50 = vcombine.high %v2707_v59, %v2711_v48  ;;  %v17915_v17 = vcombine.low %v2707_v59, %v2711_v48  ;;  %v2747_v12 = vld [vmem:[%s19760_s9 + $0x21d8] sm:$0xff]  ;;  %v2754_v59 = vld [vmem:[%s19760_s9 + $0x2210] sm:$0xff] }
 0x74c   : > { %15618 = vmatpush1.bf16.msra.mxu0 %v17865_v37  ;;  %v2714_v37 = vld [vmem:[%s19760_s9 + $0x20d0] sm:$0xff] }
 0x74d   : > { %16274 = vmatpush1.bf16.msra.mxu1 %v17867_v30  ;;  %15619 = vmatprep.subr.bf16.mxu0 %v17874_v4  ;;  %v2718_v30 = vld [vmem:[%s19760_s9 + $0x20f0] sm:$0xff]  ;;  %v2715_v4 = vld [vmem:[%s19760_s9 + $0x20d8] sm:$0xff] }
 0x74e   : > { %16275 = vmatprep.subr.bf16.mxu1 %v17876_v26  ;;  %v17913_v26 = vcombine.low %v2706_v58, %v2710_v62  ;;  %v17922_v22 = vcombine.high %v2714_v37, %v2718_v30  ;;  %v2758_v48 = vld [vmem:[%s19760_s9 + $0x2230] sm:$0xff] }
 0x750   : > { %15620 = vmatpush1.bf16.msra.mxu0 %v17873_v0  ;;  %v2723_v0 = vld [vmem:[%s19760_s9 + $0x2118] sm:$0xff] }
 0x751   : > { %16276 = vmatpush1.bf16.msra.mxu1 %v17875_v3  ;;  %15621 = vmatprep.subr.bf16.mxu0 %v17882_v1  ;;  %v2727_v3 = vld [vmem:[%s19760_s9 + $0x2138] sm:$0xff]  ;;  %v17921_v1 = vcombine.low %v2714_v37, %v2718_v30  ;;  %v17962_v37 = vcombine.high %v2754_v59, %v2758_v48 }
 0x752   : > { %16277 = vmatprep.subr.bf16.mxu1 %v17884_v28  ;;  %v17932_v6 = vcombine.high %v2723_v0, %v2727_v3 }
 0x754   : > { %15622 = vmatpush1.bf16.msra.mxu0 %v17881_v36  ;;  %v2731_v36 = vld [vmem:[%s19760_s9 + $0x2158] sm:$0xff] }
 0x755   : > { %16278 = vmatpush1.bf16.msra.mxu1 %v17883_v61  ;;  %15623 = vmatprep.subr.bf16.mxu0 %v17890_v10  ;;  %v2735_v61 = vld [vmem:[%s19760_s9 + $0x2178] sm:$0xff]  ;;  %v17929_v10 = vcombine.low %v2722_v51, %v2726_v13 }
 0x756   : > { %16279 = vmatprep.subr.bf16.mxu1 %v17892_v16  ;;  %v17931_v16 = vcombine.low %v2723_v0, %v2727_v3  ;;  %v17940_v23 = vcombine.high %v2731_v36, %v2735_v61  ;;  %v2770_v0 = vld [vmem:[%s19760_s9 + $0x2290] sm:$0xff] }
 0x757   : > { %v2774_v3 = vld [vmem:[%s19760_s9 + $0x22b0] sm:$0xff] }
 0x758   : > { %15624 = vmatpush1.bf16.msra.mxu0 %v17889_v32  ;;  %v2739_v32 = vld [vmem:[%s19760_s9 + $0x2198] sm:$0xff] }
 0x759   : > { %16280 = vmatpush1.bf16.msra.mxu1 %v17891_v7  ;;  %15634 = vmatprep.subr.bf16.mxu0 %v17898_v46  ;;  %v2743_v7 = vld [vmem:[%s19760_s9 + $0x21b8] sm:$0xff]  ;;  %v17937_v46 = vcombine.low %v2730_v57, %v2734_v60  ;;  %v17978_v57 = vcombine.high %v2770_v0, %v2774_v3 }
 0x75a   : > { %16290 = vmatprep.subr.bf16.mxu1 %v17900_v38  ;;  %v17939_v38 = vcombine.low %v2731_v36, %v2735_v61  ;;  %v17948_v2 = vcombine.high %v2739_v32, %v2743_v7  ;;  %v17947_v58 = vcombine.low %v2739_v32, %v2743_v7  ;;  %v2778_v36 = vld [vmem:[%s19760_s9 + $0x22d0] sm:$0xff] }
 0x75b   : > { %15626 = vmatmul.mubr.bf16.vlgmr.msra.gmra.mrb[36].mxu0 %v20597_v15  ;;  %v2782_v61 = vld [vmem:[%s19760_s9 + $0x22f0] sm:$0xff] }
 0x75c   : > { %16282 = vmatmul.mubr.bf16.vlgmr.msra.gmra.mrb[36].mxu1 %v20597_v15  ;;  %15635 = vmatpush1.bf16.msra.mxu0 %v17897_v35  ;;  %v2719_v15 = vld [vmem:[%s19760_s9 + $0x20f8] sm:$0xff]  ;;  %v2746_v35 = vld [vmem:[%s19760_s9 + $0x21d0] sm:$0xff] }
 0x75d   : > { %15666 = vmatprep.mubr.bf16.mxu0 %v20601_v25  ;;  %16291 = vmatpush1.bf16.msra.mxu1 %v17899_v31  ;;  %v17923_v28 = vcombine.low %v2715_v4, %v2719_v15  ;;  %v2751_v31 = vld [vmem:[%s19760_s9 + $0x21f8] sm:$0xff]  ;;  %v17954_v62 = vcombine.high %v2746_v35, %v2750_v56  ;;  %v2786_v32 = vld [vmem:[%s19760_s9 + $0x2310] sm:$0xff] }
 0x75e   : > { %16322 = vmatprep.mubr.bf16.mxu1 %v20601_v25  ;;  %15636 = vmatprep.subr.bf16.mxu0 %v17906_v21  ;;  %v17924_v25 = vcombine.high %v2715_v4, %v2719_v15  ;;  %v17945_v21 = vcombine.low %v2738_v39, %v2742_v41  ;;  %v2762_v4 = vld [vmem:[%s19760_s9 + $0x2250] sm:$0xff]  ;;  %v17986_v39 = vcombine.high %v2778_v36, %v2782_v61 }
 0x75f   : > { %16292 = vmatprep.subr.bf16.mxu1 %v17908_v63  ;;  %v17956_v63 = vcombine.high %v2747_v12, %v2751_v31  ;;  %v2766_v15 = vld [vmem:[%s19760_s9 + $0x2270] sm:$0xff] }
 0x760   : > { %15637 = vmatpush1.bf16.msra.mxu0 %v17905_v45  ;;  %v2755_v45 = vld [vmem:[%s19760_s9 + $0x2218] sm:$0xff]  ;;  %v17970_v51 = vcombine.high %v2762_v4, %v2766_v15  ;;  %v2790_v7 = vld [vmem:[%s19760_s9 + $0x2330] sm:$0xff] }
 0x761   : > { %16293 = vmatpush1.bf16.msra.mxu1 %v17907_v27  ;;  %15638 = vmatprep.subr.bf16.mxu0 %v17914_v43  ;;  %v2759_v27 = vld [vmem:[%s19760_s9 + $0x2238] sm:$0xff]  ;;  %v17953_v43 = vcombine.low %v2746_v35, %v2750_v56  ;;  %v17994_v35 = vcombine.high %v2786_v32, %v2790_v7 }
 0x762   : > { %16294 = vmatprep.subr.bf16.mxu1 %v17916_v50  ;;  %v17955_v50 = vcombine.low %v2747_v12, %v2751_v31  ;;  %v17964_v30 = vcombine.high %v2755_v45, %v2759_v27  ;;  %v2794_v12 = vld [vmem:[%s19760_s9 + $0x2350] sm:$0xff] }
 0x763   : > { %v2798_v31 = vld [vmem:[%s19760_s9 + $0x2370] sm:$0xff] }
 0x764   : > { %15639 = vmatpush1.bf16.msra.mxu0 %v17913_v26  ;;  %v2763_v26 = vld [vmem:[%s19760_s9 + $0x2258] sm:$0xff] }
 0x765   : > { %16295 = vmatpush1.bf16.msra.mxu1 %v17915_v17  ;;  %15640 = vmatprep.subr.bf16.mxu0 %v17922_v22  ;;  %v2767_v17 = vld [vmem:[%s19760_s9 + $0x2278] sm:$0xff]  ;;  %v17961_v22 = vcombine.low %v2754_v59, %v2758_v48  ;;  %v18002_v59 = vcombine.high %v2794_v12, %v2798_v31 }
 0x766   : > { %16296 = vmatprep.subr.bf16.mxu1 %v17924_v25  ;;  %v17963_v25 = vcombine.low %v2755_v45, %v2759_v27  ;;  %v17972_v13 = vcombine.high %v2763_v26, %v2767_v17  ;;  %v2802_v45 = vld [vmem:[%s19760_s9 + $0x2390] sm:$0xff] }
 0x767   : > { %v2806_v27 = vld [vmem:[%s19760_s9 + $0x23b0] sm:$0xff] }
 0x768   : > { %15641 = vmatpush1.bf16.msra.mxu0 %v17921_v1  ;;  %v2771_v1 = vld [vmem:[%s19760_s9 + $0x2298] sm:$0xff] }
 0x769   : > { %16297 = vmatpush1.bf16.msra.mxu1 %v17923_v28  ;;  %15642 = vmatprep.subr.bf16.mxu0 %v17930_v49  ;;  %v2775_v28 = vld [vmem:[%s19760_s9 + $0x22b8] sm:$0xff]  ;;  %v17969_v49 = vcombine.low %v2762_v4, %v2766_v15  ;;  %v18010_v4 = vcombine.high %v2802_v45, %v2806_v27 }
 0x76a   : > { %16298 = vmatprep.subr.bf16.mxu1 %v17932_v6  ;;  %v17971_v6 = vcombine.low %v2763_v26, %v2767_v17  ;;  %v17980_v60 = vcombine.high %v2771_v1, %v2775_v28  ;;  %v2810_v26 = vld [vmem:[%s19760_s9 + $0x23d0] sm:$0xff] }
 0x76b   : > { %v2814_v17 = vld [vmem:[%s19760_s9 + $0x23f0] sm:$0xff] }
 0x76c   : > { %15643 = vmatpush1.bf16.msra.mxu0 %v17929_v10  ;;  %v2779_v10 = vld [vmem:[%s19760_s9 + $0x22d8] sm:$0xff] }
 0x76d   : > { %16299 = vmatpush1.bf16.msra.mxu1 %v17931_v16  ;;  %15644 = vmatprep.subr.bf16.mxu0 %v17938_v24  ;;  %v2783_v16 = vld [vmem:[%s19760_s9 + $0x22f8] sm:$0xff]  ;;  %v17977_v24 = vcombine.low %v2770_v0, %v2774_v3  ;;  %v18018_v0 = vcombine.high %v2810_v26, %v2814_v17 }
 0x76e   : > { %16300 = vmatprep.subr.bf16.mxu1 %v17940_v23  ;;  %v17979_v23 = vcombine.low %v2771_v1, %v2775_v28  ;;  %v17988_v41 = vcombine.high %v2779_v10, %v2783_v16  ;;  %v2818_v1 = vld [vmem:[%s19760_s9 + $0x2410] sm:$0xff] }
 0x76f   : > { %v2822_v28 = vld [vmem:[%s19760_s9 + $0x2430] sm:$0xff] }
 0x770   : > { %15645 = vmatpush1.bf16.msra.mxu0 %v17937_v46  ;;  %v2787_v46 = vld [vmem:[%s19760_s9 + $0x2318] sm:$0xff] }
 0x771   : > { %16301 = vmatpush1.bf16.msra.mxu1 %v17939_v38  ;;  %15646 = vmatprep.subr.bf16.mxu0 %v17946_v18  ;;  %v2791_v38 = vld [vmem:[%s19760_s9 + $0x2338] sm:$0xff]  ;;  %v17985_v18 = vcombine.low %v2778_v36, %v2782_v61  ;;  %v18026_v36 = vcombine.high %v2818_v1, %v2822_v28 }
 0x772   : > { %16302 = vmatprep.subr.bf16.mxu1 %v17948_v2  ;;  %v17987_v2 = vcombine.low %v2779_v10, %v2783_v16  ;;  %v17996_v56 = vcombine.high %v2787_v46, %v2791_v38  ;;  %v2826_v10 = vld [vmem:[%s19760_s9 + $0x2450] sm:$0xff] }
 0x773   : > { %v2830_v16 = vld [vmem:[%s19760_s9 + $0x2470] sm:$0xff] }
 0x774   : > { %15647 = vmatpush1.bf16.msra.mxu0 %v17945_v21  ;;  %v2795_v21 = vld [vmem:[%s19760_s9 + $0x2358] sm:$0xff] }
 0x775   : > { %16303 = vmatpush1.bf16.msra.mxu1 %v17947_v58  ;;  %15648 = vmatprep.subr.bf16.mxu0 %v17954_v62  ;;  %v2799_v58 = vld [vmem:[%s19760_s9 + $0x2378] sm:$0xff]  ;;  %v17993_v62 = vcombine.low %v2786_v32, %v2790_v7  ;;  %v18034_v32 = vcombine.high %v2826_v10, %v2830_v16  ;;  %v2834_v7 = vld [vmem:[%s19760_s9 + $0x2490] sm:$0xff] }
 0x776   : > { %16304 = vmatprep.subr.bf16.mxu1 %v17956_v63  ;;  %v17995_v63 = vcombine.low %v2787_v46, %v2791_v38  ;;  %v18004_v48 = vcombine.high %v2795_v21, %v2799_v58  ;;  %v2838_v46 = vld [vmem:[%s19760_s9 + $0x24b0] sm:$0xff] }
 0x778   : > { %15649 = vmatpush1.bf16.msra.mxu0 %v17953_v43  ;;  %v2803_v43 = vld [vmem:[%s19760_s9 + $0x2398] sm:$0xff] }
 0x779   : > { %16305 = vmatpush1.bf16.msra.mxu1 %v17955_v50  ;;  %15650 = vmatprep.subr.bf16.mxu0 %v17962_v37  ;;  %v2807_v50 = vld [vmem:[%s19760_s9 + $0x23b8] sm:$0xff]  ;;  %v18001_v37 = vcombine.low %v2794_v12, %v2798_v31  ;;  %v18042_v12 = vcombine.high %v2834_v7, %v2838_v46 }
 0x77a   : > { %16306 = vmatprep.subr.bf16.mxu1 %v17964_v30  ;;  %v18003_v30 = vcombine.low %v2795_v21, %v2799_v58  ;;  %v18012_v15 = vcombine.high %v2803_v43, %v2807_v50  ;;  %v2842_v21 = vld [vmem:[%s19760_s9 + $0x24d0] sm:$0xff] }
 0x77b   : > { %v2846_v58 = vld [vmem:[%s19760_s9 + $0x24f0] sm:$0xff] }
 0x77c   : > { %15651 = vmatpush1.bf16.msra.mxu0 %v17961_v22  ;;  %v2811_v22 = vld [vmem:[%s19760_s9 + $0x23d8] sm:$0xff] }
 0x77d   : > { %16307 = vmatpush1.bf16.msra.mxu1 %v17963_v25  ;;  %15652 = vmatprep.subr.bf16.mxu0 %v17970_v51  ;;  %v2815_v25 = vld [vmem:[%s19760_s9 + $0x23f8] sm:$0xff]  ;;  %v18009_v51 = vcombine.low %v2802_v45, %v2806_v27  ;;  %v2850_v45 = vld [vmem:[%s19760_s9 + $0x2510] sm:$0xff] }
 0x77e   : > { %16308 = vmatprep.subr.bf16.mxu1 %v17972_v13  ;;  %v18011_v13 = vcombine.low %v2803_v43, %v2807_v50  ;;  %v18020_v3 = vcombine.high %v2811_v22, %v2815_v25  ;;  %v2854_v27 = vld [vmem:[%s19760_s9 + $0x2530] sm:$0xff]  ;;  %v2851_v43 = vld [vmem:[%s19760_s9 + $0x2518] sm:$0xff] }
 0x77f   : > { %v2855_v50 = vld [vmem:[%s19760_s9 + $0x2538] sm:$0xff] }
 0x780   : > { %15653 = vmatpush1.bf16.msra.mxu0 %v17969_v49  ;;  %v2819_v49 = vld [vmem:[%s19760_s9 + $0x2418] sm:$0xff] }
 0x781   : > { %16309 = vmatpush1.bf16.msra.mxu1 %v17971_v6  ;;  %15654 = vmatprep.subr.bf16.mxu0 %v17978_v57  ;;  %v2823_v6 = vld [vmem:[%s19760_s9 + $0x2438] sm:$0xff]  ;;  %v18017_v57 = vcombine.low %v2810_v26, %v2814_v17  ;;  %v2858_v26 = vld [vmem:[%s19760_s9 + $0x2550] sm:$0xff] }
 0x782   : > { %16310 = vmatprep.subr.bf16.mxu1 %v17980_v60  ;;  %v18019_v60 = vcombine.low %v2811_v22, %v2815_v25  ;;  %v18028_v61 = vcombine.high %v2819_v49, %v2823_v6  ;;  %v2862_v17 = vld [vmem:[%s19760_s9 + $0x2570] sm:$0xff]  ;;  %v2859_v22 = vld [vmem:[%s19760_s9 + $0x2558] sm:$0xff] }
 0x783   : > { %v2863_v25 = vld [vmem:[%s19760_s9 + $0x2578] sm:$0xff] }
 0x784   : > { %15655 = vmatpush1.bf16.msra.mxu0 %v17977_v24  ;;  %v18025_v24 = vcombine.low %v2818_v1, %v2822_v28  ;;  %v2866_v1 = vld [vmem:[%s19760_s9 + $0x2590] sm:$0xff] }
 0x785   : > { %16311 = vmatpush1.bf16.msra.mxu1 %v17979_v23  ;;  %15656 = vmatprep.subr.bf16.mxu0 %v17986_v39  ;;  %v2827_v23 = vld [vmem:[%s19760_s9 + $0x2458] sm:$0xff]  ;;  %v2870_v28 = vld [vmem:[%s19760_s9 + $0x25b0] sm:$0xff] }
 0x786   : > { %16312 = vmatprep.subr.bf16.mxu1 %v17988_v41  ;;  %v2831_v39 = vld [vmem:[%s19760_s9 + $0x2478] sm:$0xff]  ;;  %v18027_v41 = vcombine.low %v2819_v49, %v2823_v6 }
 0x787   : > { %v18036_v38 = vcombine.high %v2827_v23, %v2831_v39  ;;  %v2867_v49 = vld [vmem:[%s19760_s9 + $0x2598] sm:$0xff] }
 0x788   : > { %15657 = vmatpush1.bf16.msra.mxu0 %v17985_v18  ;;  %v2835_v18 = vld [vmem:[%s19760_s9 + $0x2498] sm:$0xff] }
 0x789   : > { %16313 = vmatpush1.bf16.msra.mxu1 %v17987_v2  ;;  %15658 = vmatprep.subr.bf16.mxu0 %v17994_v35  ;;  %v2839_v2 = vld [vmem:[%s19760_s9 + $0x24b8] sm:$0xff]  ;;  %v18033_v35 = vcombine.low %v2826_v10, %v2830_v16  ;;  %v2874_v10 = vld [vmem:[%s19760_s9 + $0x25d0] sm:$0xff] }
 0x78a   : > { %16314 = vmatprep.subr.bf16.mxu1 %v17996_v56  ;;  %v18035_v56 = vcombine.low %v2827_v23, %v2831_v39  ;;  %v18044_v31 = vcombine.high %v2835_v18, %v2839_v2  ;;  %v2871_v6 = vld [vmem:[%s19760_s9 + $0x25b8] sm:$0xff]  ;;  %v2878_v16 = vld [vmem:[%s19760_s9 + $0x25f0] sm:$0xff]  ;;  %v18073_v39 = vcombine.low %v2866_v1, %v2870_v28 }
 0x78b   : > { %v2879_v23 = vld [vmem:[%s19760_s9 + $0x25f8] sm:$0xff] }
 0x78c   : > { %15659 = vmatpush1.bf16.msra.mxu0 %v17993_v62  ;;  %v2843_v62 = vld [vmem:[%s19760_s9 + $0x24d8] sm:$0xff] }
 0x78d   : > { %16315 = vmatpush1.bf16.msra.mxu1 %v17995_v63  ;;  %15660 = vmatprep.subr.bf16.mxu0 %v18002_v59  ;;  %v18041_v63 = vcombine.low %v2834_v7, %v2838_v46  ;;  %v18043_v59 = vcombine.low %v2835_v18, %v2839_v2  ;;  %v2882_v46 = vld [vmem:[%s19760_s9 + $0x2610] sm:$0xff]  ;;  %v2883_v18 = vld [vmem:[%s19760_s9 + $0x2618] sm:$0xff] }
 0x78e   : > { %16316 = vmatprep.subr.bf16.mxu1 %v18004_v48  ;;  %v18050_v48 = vcombine.high %v2842_v21, %v2846_v58  ;;  %v2887_v2 = vld [vmem:[%s19760_s9 + $0x2638] sm:$0xff] }
 0x790   : > { %15661 = vmatpush1.bf16.msra.mxu0 %v18001_v37  ;;  %v18049_v37 = vcombine.low %v2842_v21, %v2846_v58  ;;  %v2890_v21 = vld [vmem:[%s19760_s9 + $0x2650] sm:$0xff] }
 0x791   : > { %16317 = vmatpush1.bf16.msra.mxu1 %v18003_v30  ;;  %15662 = vmatprep.subr.bf16.mxu0 %v18010_v4  ;;  %v18058_v4 = vcombine.high %v2850_v45, %v2854_v27  ;;  %v2894_v58 = vld [vmem:[%s19760_s9 + $0x2670] sm:$0xff] }
 0x792   : > { %16318 = vmatprep.subr.bf16.mxu1 %v18012_v15  ;;  %v18060_v15 = vcombine.high %v2851_v43, %v2855_v50 }
 0x794   : > { %15663 = vmatpush1.bf16.msra.mxu0 %v18009_v51  ;;  %v18057_v51 = vcombine.low %v2850_v45, %v2854_v27  ;;  %v2898_v45 = vld [vmem:[%s19760_s9 + $0x2690] sm:$0xff] }
 0x795   : > { %16319 = vmatpush1.bf16.msra.mxu1 %v18011_v13  ;;  %15664 = vmatprep.subr.bf16.mxu0 %v18018_v0  ;;  %v18059_v13 = vcombine.low %v2851_v43, %v2855_v50  ;;  %v18066_v0 = vcombine.high %v2858_v26, %v2862_v17  ;;  %v2902_v27 = vld [vmem:[%s19760_s9 + $0x26b0] sm:$0xff]  ;;  %v2899_v43 = vld [vmem:[%s19760_s9 + $0x2698] sm:$0xff] }
 0x796   : > { %16320 = vmatprep.subr.bf16.mxu1 %v18020_v3  ;;  %v18068_v3 = vcombine.high %v2859_v22, %v2863_v25  ;;  %v2903_v50 = vld [vmem:[%s19760_s9 + $0x26b8] sm:$0xff] }
 0x798   : > { %15665 = vmatpush1.bf16.msra.mxu0 %v18017_v57  ;;  %v18065_v57 = vcombine.low %v2858_v26, %v2862_v17  ;;  %v2906_v26 = vld [vmem:[%s19760_s9 + $0x26d0] sm:$0xff] }
 0x799   : > { %16321 = vmatpush1.bf16.msra.mxu1 %v18019_v60  ;;  %15675 = vmatprep.subr.bf16.mxu0 %v18026_v36  ;;  %v18067_v60 = vcombine.low %v2859_v22, %v2863_v25  ;;  %v18074_v36 = vcombine.high %v2866_v1, %v2870_v28  ;;  %v2910_v17 = vld [vmem:[%s19760_s9 + $0x26f0] sm:$0xff]  ;;  %v2907_v22 = vld [vmem:[%s19760_s9 + $0x26d8] sm:$0xff] }
 0x79a   : > { %16331 = vmatprep.subr.bf16.mxu1 %v18028_v61  ;;  %v18076_v61 = vcombine.high %v2867_v49, %v2871_v6  ;;  %v2911_v25 = vld [vmem:[%s19760_s9 + $0x26f8] sm:$0xff]  ;;  %v2914_v1 = vld [vmem:[%s19760_s9 + $0x2710] sm:$0xff] }
 0x79b   : > { %15667 = vmatmul.mubr.bf16.vlgmr.msra.gmra.mrb[36].mxu0 %v20675_v42  ;;  %v2918_v28 = vld [vmem:[%s19760_s9 + $0x2730] sm:$0xff] }
 0x79c   : > { %16323 = vmatmul.mubr.bf16.vlgmr.msra.gmra.mrb[36].mxu1 %v20675_v42  ;;  %15676 = vmatpush1.bf16.msra.mxu0 %v18025_v24  ;;  %v2847_v42 = vld [vmem:[%s19760_s9 + $0x24f8] sm:$0xff] }
 0x79d   : > { %15707 = vmatprep.mubr.bf16.mxu0 %v20679_v9  ;;  %16332 = vmatpush1.bf16.msra.mxu1 %v18027_v41  ;;  %v18051_v30 = vcombine.low %v2843_v62, %v2847_v42  ;;  %v2875_v24 = vld [vmem:[%s19760_s9 + $0x25d8] sm:$0xff]  ;;  %v18075_v41 = vcombine.low %v2867_v49, %v2871_v6 }
 0x79e   : > { %16363 = vmatprep.mubr.bf16.mxu1 %v20679_v9  ;;  %15677 = vmatprep.subr.bf16.mxu0 %v18034_v32  ;;  %v18052_v9 = vcombine.high %v2843_v62, %v2847_v42  ;;  %v18082_v32 = vcombine.high %v2874_v10, %v2878_v16  ;;  %v18084_v7 = vcombine.high %v2875_v24, %v2879_v23  ;;  %v2891_v62 = vld [vmem:[%s19760_s9 + $0x2658] sm:$0xff] }
 0x79f   : > { %16333 = vmatprep.subr.bf16.mxu1 %v18036_v38  ;;  %v2886_v38 = vld [vmem:[%s19760_s9 + $0x2630] sm:$0xff]  ;;  %v2895_v42 = vld [vmem:[%s19760_s9 + $0x2678] sm:$0xff] }
 0x7a0   : > { %15678 = vmatpush1.bf16.msra.mxu0 %v18033_v35  ;;  %v18081_v35 = vcombine.low %v2874_v10, %v2878_v16  ;;  %v2915_v49 = vld [vmem:[%s19760_s9 + $0x2718] sm:$0xff]  ;;  %v2922_v10 = vld [vmem:[%s19760_s9 + $0x2750] sm:$0xff] }
 0x7a1   : > { %16334 = vmatpush1.bf16.msra.mxu1 %v18035_v56  ;;  %15679 = vmatprep.subr.bf16.mxu0 %v18042_v12  ;;  %v18083_v56 = vcombine.low %v2875_v24, %v2879_v23  ;;  %v18090_v12 = vcombine.high %v2882_v46, %v2886_v38  ;;  %v2919_v6 = vld [vmem:[%s19760_s9 + $0x2738] sm:$0xff]  ;;  %v2926_v16 = vld [vmem:[%s19760_s9 + $0x2770] sm:$0xff] }
 0x7a2   : > { %16335 = vmatprep.subr.bf16.mxu1 %v18044_v31  ;;  %v18092_v31 = vcombine.high %v2883_v18, %v2887_v2  ;;  %v2923_v24 = vld [vmem:[%s19760_s9 + $0x2758] sm:$0xff] }
 0x7a3   : > { %v2927_v23 = vld [vmem:[%s19760_s9 + $0x2778] sm:$0xff] }
 0x7a4   : > { %15680 = vmatpush1.bf16.msra.mxu0 %v18041_v63  ;;  %v18089_v63 = vcombine.low %v2882_v46, %v2886_v38  ;;  %v2930_v46 = vld [vmem:[%s19760_s9 + $0x2790] sm:$0xff] }
 0x7a5   : > { %16336 = vmatpush1.bf16.msra.mxu1 %v18043_v59  ;;  %15681 = vmatprep.subr.bf16.mxu0 %v18050_v48  ;;  %v18091_v59 = vcombine.low %v2883_v18, %v2887_v2  ;;  %v18098_v48 = vcombine.high %v2890_v21, %v2894_v58  ;;  %v2934_v38 = vld [vmem:[%s19760_s9 + $0x27b0] sm:$0xff]  ;;  %v2931_v18 = vld [vmem:[%s19760_s9 + $0x2798] sm:$0xff] }
 0x7a6   : > { %16337 = vmatprep.subr.bf16.mxu1 %v18052_v9  ;;  %v18100_v9 = vcombine.high %v2891_v62, %v2895_v42  ;;  %v2935_v2 = vld [vmem:[%s19760_s9 + $0x27b8] sm:$0xff] }
 0x7a8   : > { %15682 = vmatpush1.bf16.msra.mxu0 %v18049_v37  ;;  %v18097_v37 = vcombine.low %v2890_v21, %v2894_v58  ;;  %v2938_v21 = vld [vmem:[%s19760_s9 + $0x27d0] sm:$0xff] }
 0x7a9   : > { %16338 = vmatpush1.bf16.msra.mxu1 %v18051_v30  ;;  %15683 = vmatprep.subr.bf16.mxu0 %v18058_v4  ;;  %v18099_v30 = vcombine.low %v2891_v62, %v2895_v42  ;;  %v18106_v4 = vcombine.high %v2898_v45, %v2902_v27  ;;  %v2942_v58 = vld [vmem:[%s19760_s9 + $0x27f0] sm:$0xff]  ;;  %v2939_v62 = vld [vmem:[%s19760_s9 + $0x27d8] sm:$0xff] }
 0x7aa   : > { %16339 = vmatprep.subr.bf16.mxu1 %v18060_v15  ;;  %v18108_v15 = vcombine.high %v2899_v43, %v2903_v50  ;;  %v2943_v42 = vld [vmem:[%s19760_s9 + $0x27f8] sm:$0xff] }
 0x7ac   : > { %15684 = vmatpush1.bf16.msra.mxu0 %v18057_v51  ;;  %v18105_v51 = vcombine.low %v2898_v45, %v2902_v27  ;;  %v2946_v45 = vld [vmem:[%s19760_s9 + $0x2810] sm:$0xff] }
 0x7ad   : > { %16340 = vmatpush1.bf16.msra.mxu1 %v18059_v13  ;;  %15685 = vmatprep.subr.bf16.mxu0 %v18066_v0  ;;  %v18107_v13 = vcombine.low %v2899_v43, %v2903_v50  ;;  %v18114_v0 = vcombine.high %v2906_v26, %v2910_v17  ;;  %v2950_v27 = vld [vmem:[%s19760_s9 + $0x2830] sm:$0xff]  ;;  %v2947_v43 = vld [vmem:[%s19760_s9 + $0x2818] sm:$0xff] }
 0x7ae   : > { %16341 = vmatprep.subr.bf16.mxu1 %v18068_v3  ;;  %v18116_v3 = vcombine.high %v2907_v22, %v2911_v25  ;;  %v2951_v50 = vld [vmem:[%s19760_s9 + $0x2838] sm:$0xff] }
 0x7b0   : > { %15686 = vmatpush1.bf16.msra.mxu0 %v18065_v57  ;;  %v18113_v57 = vcombine.low %v2906_v26, %v2910_v17  ;;  %v2954_v26 = vld [vmem:[%s19760_s9 + $0x2850] sm:$0xff] }
 0x7b1   : > { %16342 = vmatpush1.bf16.msra.mxu1 %v18067_v60  ;;  %15687 = vmatprep.subr.bf16.mxu0 %v18074_v36  ;;  %v18115_v60 = vcombine.low %v2907_v22, %v2911_v25  ;;  %v18122_v36 = vcombine.high %v2914_v1, %v2918_v28  ;;  %v2958_v17 = vld [vmem:[%s19760_s9 + $0x2870] sm:$0xff]  ;;  %v18153_v22 = vcombine.low %v2946_v45, %v2950_v27  ;;  %v2955_v25 = vld [vmem:[%s19760_s9 + $0x2858] sm:$0xff] }
 0x7b2   : > { %16343 = vmatprep.subr.bf16.mxu1 %v18076_v61  ;;  %v18124_v61 = vcombine.high %v2915_v49, %v2919_v6 }
 0x7b4   : > { %15688 = vmatpush1.bf16.msra.mxu0 %v18073_v39  ;;  %v18121_v39 = vcombine.low %v2914_v1, %v2918_v28  ;;  %v2966_v1 = vld [vmem:[%s19760_s9 + $0x28b0] sm:$0xff] }
 0x7b5   : > { %16344 = vmatpush1.bf16.msra.mxu1 %v18075_v41  ;;  %15689 = vmatprep.subr.bf16.mxu0 %v18082_v32  ;;  %v18123_v41 = vcombine.low %v2915_v49, %v2919_v6  ;;  %v18130_v32 = vcombine.high %v2922_v10, %v2926_v16  ;;  %v2963_v49 = vld [vmem:[%s19760_s9 + $0x2898] sm:$0xff] }
 0x7b6   : > { %16345 = vmatprep.subr.bf16.mxu1 %v18084_v7  ;;  %v18132_v7 = vcombine.high %v2923_v24, %v2927_v23  ;;  %v2967_v6 = vld [vmem:[%s19760_s9 + $0x28b8] sm:$0xff] }
 0x7b8   : > { %15690 = vmatpush1.bf16.msra.mxu0 %v18081_v35  ;;  %v18129_v35 = vcombine.low %v2922_v10, %v2926_v16  ;;  %v2970_v10 = vld [vmem:[%s19760_s9 + $0x28d0] sm:$0xff] }
 0x7b9   : > { %16346 = vmatpush1.bf16.msra.mxu1 %v18083_v56  ;;  %15691 = vmatprep.subr.bf16.mxu0 %v18090_v12  ;;  %v18131_v56 = vcombine.low %v2923_v24, %v2927_v23  ;;  %v18138_v12 = vcombine.high %v2930_v46, %v2934_v38  ;;  %v2974_v16 = vld [vmem:[%s19760_s9 + $0x28f0] sm:$0xff]  ;;  %v2971_v24 = vld [vmem:[%s19760_s9 + $0x28d8] sm:$0xff] }
 0x7ba   : > { %16347 = vmatprep.subr.bf16.mxu1 %v18092_v31  ;;  %v18140_v31 = vcombine.high %v2931_v18, %v2935_v2 }
 0x7bc   : > { %15692 = vmatpush1.bf16.msra.mxu0 %v18089_v63  ;;  %v18137_v63 = vcombine.low %v2930_v46, %v2934_v38  ;;  %v2979_v46 = vld [vmem:[%s19760_s9 + $0x2918] sm:$0xff] }
 0x7bd   : > { %16348 = vmatpush1.bf16.msra.mxu1 %v18091_v59  ;;  %15693 = vmatprep.subr.bf16.mxu0 %v18098_v48  ;;  %v18139_v59 = vcombine.low %v2931_v18, %v2935_v2  ;;  %v18146_v48 = vcombine.high %v2938_v21, %v2942_v58  ;;  %v2983_v38 = vld [vmem:[%s19760_s9 + $0x2938] sm:$0xff]  ;;  %v18177_v18 = vcombine.low %v2970_v10, %v2974_v16 }
 0x7be   : > { %16349 = vmatprep.subr.bf16.mxu1 %v18100_v9  ;;  %v18148_v9 = vcombine.high %v2939_v62, %v2943_v42 }
 0x7c0   : > { %15694 = vmatpush1.bf16.msra.mxu0 %v18097_v37  ;;  %v18145_v37 = vcombine.low %v2938_v21, %v2942_v58  ;;  %v2987_v21 = vld [vmem:[%s19760_s9 + $0x2958] sm:$0xff] }
 0x7c1   : > { %16350 = vmatpush1.bf16.msra.mxu1 %v18099_v30  ;;  %15695 = vmatprep.subr.bf16.mxu0 %v18106_v4  ;;  %v18147_v30 = vcombine.low %v2939_v62, %v2943_v42  ;;  %v18154_v4 = vcombine.high %v2946_v45, %v2950_v27  ;;  %v2991_v58 = vld [vmem:[%s19760_s9 + $0x2978] sm:$0xff]  ;;  %v18187_v42 = vcombine.low %v2979_v46, %v2983_v38 }
 0x7c2   : > { %16351 = vmatprep.subr.bf16.mxu1 %v18108_v15  ;;  %v18156_v15 = vcombine.high %v2947_v43, %v2951_v50  ;;  %v2995_v45 = vld [vmem:[%s19760_s9 + $0x2998] sm:$0xff] }
 0x7c3   : > { %v2999_v27 = vld [vmem:[%s19760_s9 + $0x29b8] sm:$0xff] }
 0x7c4   : > { %15696 = vmatpush1.bf16.msra.mxu0 %v18105_v51  ;;  %v2959_v51 = vld [vmem:[%s19760_s9 + $0x2878] sm:$0xff] }
 0x7c5   : > { %16352 = vmatpush1.bf16.msra.mxu1 %v18107_v13  ;;  %15697 = vmatprep.subr.bf16.mxu0 %v18114_v0  ;;  %v18155_v13 = vcombine.low %v2947_v43, %v2951_v50  ;;  %v18162_v0 = vcombine.high %v2954_v26, %v2958_v17  ;;  %v18164_v28 = vcombine.high %v2955_v25, %v2959_v51 }
 0x7c6   : > { %16353 = vmatprep.subr.bf16.mxu1 %v18116_v3  ;;  %v2962_v3 = vld [vmem:[%s19760_s9 + $0x2890] sm:$0xff]  ;;  %v18195_v50 = vcombine.low %v2987_v21, %v2991_v58 }
 0x7c7   : > { %v18169_v23 = vcombine.low %v2962_v3, %v2966_v1 }
 0x7c8   : > { %15698 = vmatpush1.bf16.msra.mxu0 %v18113_v57  ;;  %v18161_v57 = vcombine.low %v2954_v26, %v2958_v17  ;;  %v3003_v26 = vld [vmem:[%s19760_s9 + $0x29d8] sm:$0xff] }
 0x7c9   : > { %16354 = vmatpush1.bf16.msra.mxu1 %v18115_v60  ;;  %15699 = vmatprep.subr.bf16.mxu0 %v18122_v36  ;;  %v18163_v60 = vcombine.low %v2955_v25, %v2959_v51  ;;  %v18170_v36 = vcombine.high %v2962_v3, %v2966_v1  ;;  %v3007_v17 = vld [vmem:[%s19760_s9 + $0x29f8] sm:$0xff]  ;;  %v18203_v25 = vcombine.low %v2995_v45, %v2999_v27  ;;  %v3014_v3 = vld [vmem:[%s19760_s9 + $0x2a30] sm:$0xff] }
 0x7ca   : > { %16355 = vmatprep.subr.bf16.mxu1 %v18124_v61  ;;  %v18172_v61 = vcombine.high %v2963_v49, %v2967_v6  ;;  %v3011_v1 = vld [vmem:[%s19760_s9 + $0x2a18] sm:$0xff] }
 0x7cc   : > { %15700 = vmatpush1.bf16.msra.mxu0 %v18121_v39  ;;  %v18171_v39 = vcombine.low %v2963_v49, %v2967_v6  ;;  %v18211_v6 = vcombine.low %v3003_v26, %v3007_v17 }
 0x7cd   : > { %16356 = vmatpush1.bf16.msra.mxu1 %v18123_v41  ;;  %15701 = vmatprep.subr.bf16.mxu0 %v18130_v32  ;;  %v18178_v41 = vcombine.high %v2970_v10, %v2974_v16  ;;  %v2978_v32 = vld [vmem:[%s19760_s9 + $0x2910] sm:$0xff]  ;;  %v3019_v10 = vld [vmem:[%s19760_s9 + $0x2a58] sm:$0xff] }
 0x7ce   : > { %16357 = vmatprep.subr.bf16.mxu1 %v18132_v7  ;;  %v2982_v7 = vld [vmem:[%s19760_s9 + $0x2930] sm:$0xff]  ;;  %v3023_v16 = vld [vmem:[%s19760_s9 + $0x2a78] sm:$0xff] }
 0x7cf   : > { %v18185_v62 = vcombine.low %v2978_v32, %v2982_v7 }
 0x7d0   : > { %15702 = vmatpush1.bf16.msra.mxu0 %v18129_v35  ;;  %v18186_v35 = vcombine.high %v2978_v32, %v2982_v7  ;;  %v3027_v32 = vld [vmem:[%s19760_s9 + $0x2a98] sm:$0xff] }
 0x7d1   : > { %16358 = vmatpush1.bf16.msra.mxu1 %v18131_v56  ;;  %15703 = vmatprep.subr.bf16.mxu0 %v18138_v12  ;;  %v18188_v56 = vcombine.high %v2979_v46, %v2983_v38  ;;  %v2986_v12 = vld [vmem:[%s19760_s9 + $0x2950] sm:$0xff]  ;;  %v3031_v7 = vld [vmem:[%s19760_s9 + $0x2ab8] sm:$0xff]  ;;  %v18227_v38 = vcombine.low %v3019_v10, %v3023_v16 }
 0x7d2   : > { %16359 = vmatprep.subr.bf16.mxu1 %v18140_v31  ;;  %v2990_v31 = vld [vmem:[%s19760_s9 + $0x2970] sm:$0xff] }
 0x7d3   : > { %v18193_v43 = vcombine.low %v2986_v12, %v2990_v31 }
 0x7d4   : > { %15704 = vmatpush1.bf16.msra.mxu0 %v18137_v63  ;;  %v18194_v63 = vcombine.high %v2986_v12, %v2990_v31  ;;  %v3035_v12 = vld [vmem:[%s19760_s9 + $0x2ad8] sm:$0xff] }
 0x7d5   : > { %16360 = vmatpush1.bf16.msra.mxu1 %v18139_v59  ;;  %15705 = vmatprep.subr.bf16.mxu0 %v18146_v48  ;;  %v18196_v59 = vcombine.high %v2987_v21, %v2991_v58  ;;  %v2994_v48 = vld [vmem:[%s19760_s9 + $0x2990] sm:$0xff]  ;;  %v3039_v31 = vld [vmem:[%s19760_s9 + $0x2af8] sm:$0xff]  ;;  %v18235_v58 = vcombine.low %v3027_v32, %v3031_v7 }
 0x7d6   : > { %16361 = vmatprep.subr.bf16.mxu1 %v18148_v9  ;;  %v2998_v9 = vld [vmem:[%s19760_s9 + $0x29b0] sm:$0xff] }
 0x7d8   : > { %15706 = vmatpush1.bf16.msra.mxu0 %v18145_v37  ;;  %v18202_v37 = vcombine.high %v2994_v48, %v2998_v9 }
 0x7d9   : > { %16362 = vmatpush1.bf16.msra.mxu1 %v18147_v30  ;;  %15716 = vmatprep.subr.bf16.mxu0 %v18154_v4  ;;  %v18204_v30 = vcombine.high %v2995_v45, %v2999_v27  ;;  %v3002_v4 = vld [vmem:[%s19760_s9 + $0x29d0] sm:$0xff]  ;;  %v18243_v27 = vcombine.low %v3035_v12, %v3039_v31 }
 0x7da   : > { %16372 = vmatprep.subr.bf16.mxu1 %v18156_v15  ;;  %v3006_v15 = vld [vmem:[%s19760_s9 + $0x29f0] sm:$0xff] }
 0x7db   : > { %15708 = vmatmul.mubr.bf16.vlgmr.msra.gmra.mrb[36].mxu0 %v20753_v53  ;;  %v18210_v51 = vcombine.high %v3002_v4, %v3006_v15  ;;  %v18209_v49 = vcombine.low %v3002_v4, %v3006_v15  ;;  %v3051_v4 = vld [vmem:[%s19760_s9 + $0x2b58] sm:$0xff] }
 0x7dc   : > { %16364 = vmatmul.mubr.bf16.vlgmr.msra.gmra.mrb[36].mxu1 %v20753_v53  ;;  %15717 = vmatpush1.bf16.msra.mxu0 %v18153_v22  ;;  %v2975_v53 = vld [vmem:[%s19760_s9 + $0x28f8] sm:$0xff]  ;;  %v18201_v22 = vcombine.low %v2994_v48, %v2998_v9 }
 0x7dd   : > { %15748 = vmatprep.mubr.bf16.mxu0 %v20757_v11  ;;  %16373 = vmatpush1.bf16.msra.mxu1 %v18155_v13  ;;  %v18179_v2 = vcombine.low %v2971_v24, %v2975_v53  ;;  %v18212_v13 = vcombine.high %v3003_v26, %v3007_v17  ;;  %v3043_v48 = vld [vmem:[%s19760_s9 + $0x2b18] sm:$0xff] }
 0x7de   : > { %16404 = vmatprep.mubr.bf16.mxu1 %v20757_v11  ;;  %15718 = vmatprep.subr.bf16.mxu0 %v18162_v0  ;;  %v18180_v11 = vcombine.high %v2971_v24, %v2975_v53  ;;  %v3010_v0 = vld [vmem:[%s19760_s9 + $0x2a10] sm:$0xff]  ;;  %v3047_v9 = vld [vmem:[%s19760_s9 + $0x2b38] sm:$0xff] }
 0x7df   : > { %16374 = vmatprep.subr.bf16.mxu1 %v18164_v28  ;;  %v3015_v28 = vld [vmem:[%s19760_s9 + $0x2a38] sm:$0xff]  ;;  %v18217_v24 = vcombine.low %v3010_v0, %v3014_v3  ;;  %v18251_v17 = vcombine.low %v3043_v48, %v3047_v9 }
 0x7e0   : > { %15719 = vmatpush1.bf16.msra.mxu0 %v18161_v57  ;;  %v18218_v57 = vcombine.high %v3010_v0, %v3014_v3  ;;  %v18219_v53 = vcombine.low %v3011_v1, %v3015_v28  ;;  %v3055_v15 = vld [vmem:[%s19760_s9 + $0x2b78] sm:$0xff] }
 0x7e1   : > { %16375 = vmatpush1.bf16.msra.mxu1 %v18163_v60  ;;  %15720 = vmatprep.subr.bf16.mxu0 %v18170_v36  ;;  %v18220_v60 = vcombine.high %v3011_v1, %v3015_v28  ;;  %v3018_v36 = vld [vmem:[%s19760_s9 + $0x2a50] sm:$0xff]  ;;  %v3059_v0 = vld [vmem:[%s19760_s9 + $0x2b98] sm:$0xff]  ;;  %v18259_v28 = vcombine.low %v3051_v4, %v3055_v15 }
 0x7e2   : > { %16376 = vmatprep.subr.bf16.mxu1 %v18172_v61  ;;  %v3022_v61 = vld [vmem:[%s19760_s9 + $0x2a70] sm:$0xff]  ;;  %v3063_v3 = vld [vmem:[%s19760_s9 + $0x2bb8] sm:$0xff] }
 0x7e3   : > { %v18225_v46 = vcombine.low %v3018_v36, %v3022_v61 }
 0x7e4   : > { %15721 = vmatpush1.bf16.msra.mxu0 %v18169_v23  ;;  %v18226_v23 = vcombine.high %v3018_v36, %v3022_v61  ;;  %v3067_v36 = vld [vmem:[%s19760_s9 + $0x2bd8] sm:$0xff] }
 0x7e5   : > { %16377 = vmatpush1.bf16.msra.mxu1 %v18171_v39  ;;  %15722 = vmatprep.subr.bf16.mxu0 %v18178_v41  ;;  %v18228_v39 = vcombine.high %v3019_v10, %v3023_v16  ;;  %v3026_v41 = vld [vmem:[%s19760_s9 + $0x2a90] sm:$0xff]  ;;  %v3071_v61 = vld [vmem:[%s19760_s9 + $0x2bf8] sm:$0xff]  ;;  %v18267_v16 = vcombine.low %v3059_v0, %v3063_v3 }
 0x7e6   : > { %16378 = vmatprep.subr.bf16.mxu1 %v18180_v11  ;;  %v3030_v11 = vld [vmem:[%s19760_s9 + $0x2ab0] sm:$0xff] }
 0x7e7   : > { %v18233_v21 = vcombine.low %v3026_v41, %v3030_v11 }
 0x7e8   : > { %15723 = vmatpush1.bf16.msra.mxu0 %v18177_v18  ;;  %v18234_v18 = vcombine.high %v3026_v41, %v3030_v11  ;;  %v3075_v41 = vld [vmem:[%s19760_s9 + $0x2c18] sm:$0xff] }
 0x7e9   : > { %16379 = vmatpush1.bf16.msra.mxu1 %v18179_v2  ;;  %15724 = vmatprep.subr.bf16.mxu0 %v18186_v35  ;;  %v18236_v2 = vcombine.high %v3027_v32, %v3031_v7  ;;  %v3034_v35 = vld [vmem:[%s19760_s9 + $0x2ad0] sm:$0xff]  ;;  %v3079_v11 = vld [vmem:[%s19760_s9 + $0x2c38] sm:$0xff]  ;;  %v18275_v7 = vcombine.low %v3067_v36, %v3071_v61 }
 0x7ea   : > { %16380 = vmatprep.subr.bf16.mxu1 %v18188_v56  ;;  %v3038_v56 = vld [vmem:[%s19760_s9 + $0x2af0] sm:$0xff] }
 0x7eb   : > { %v18241_v45 = vcombine.low %v3034_v35, %v3038_v56 }
 0x7ec   : > { %15725 = vmatpush1.bf16.msra.mxu0 %v18185_v62  ;;  %v18242_v62 = vcombine.high %v3034_v35, %v3038_v56  ;;  %v3083_v56 = vld [vmem:[%s19760_s9 + $0x2c58] sm:$0xff] }
 0x7ed   : > { %16381 = vmatpush1.bf16.msra.mxu1 %v18187_v42  ;;  %15726 = vmatprep.subr.bf16.mxu0 %v18194_v63  ;;  %v18244_v42 = vcombine.high %v3035_v12, %v3039_v31  ;;  %v3042_v63 = vld [vmem:[%s19760_s9 + $0x2b10] sm:$0xff]  ;;  %v3087_v12 = vld [vmem:[%s19760_s9 + $0x2c78] sm:$0xff]  ;;  %v18283_v31 = vcombine.low %v3075_v41, %v3079_v11 }
 0x7ee   : > { %16382 = vmatprep.subr.bf16.mxu1 %v18196_v59  ;;  %v3046_v59 = vld [vmem:[%s19760_s9 + $0x2b30] sm:$0xff] }
 0x7ef   : > { %v18249_v26 = vcombine.low %v3042_v63, %v3046_v59 }
 0x7f0   : > { %15727 = vmatpush1.bf16.msra.mxu0 %v18193_v43  ;;  %v18250_v43 = vcombine.high %v3042_v63, %v3046_v59  ;;  %v3091_v63 = vld [vmem:[%s19760_s9 + $0x2c98] sm:$0xff] }
 0x7f1   : > { %16383 = vmatpush1.bf16.msra.mxu1 %v18195_v50  ;;  %15728 = vmatprep.subr.bf16.mxu0 %v18202_v37  ;;  %v18252_v50 = vcombine.high %v3043_v48, %v3047_v9  ;;  %v3050_v37 = vld [vmem:[%s19760_s9 + $0x2b50] sm:$0xff]  ;;  %v3095_v59 = vld [vmem:[%s19760_s9 + $0x2cb8] sm:$0xff]  ;;  %v18291_v9 = vcombine.low %v3083_v56, %v3087_v12 }
 0x7f2   : > { %16384 = vmatprep.subr.bf16.mxu1 %v18204_v30  ;;  %v3054_v30 = vld [vmem:[%s19760_s9 + $0x2b70] sm:$0xff] }
 0x7f3   : > { %v18257_v1 = vcombine.low %v3050_v37, %v3054_v30 }
 0x7f4   : > { %15729 = vmatpush1.bf16.msra.mxu0 %v18201_v22  ;;  %v18258_v22 = vcombine.high %v3050_v37, %v3054_v30  ;;  %v3099_v37 = vld [vmem:[%s19760_s9 + $0x2cd8] sm:$0xff] }
 0x7f5   : > { %16385 = vmatpush1.bf16.msra.mxu1 %v18203_v25  ;;  %15730 = vmatprep.subr.bf16.mxu0 %v18210_v51  ;;  %v18260_v25 = vcombine.high %v3051_v4, %v3055_v15  ;;  %v3058_v51 = vld [vmem:[%s19760_s9 + $0x2b90] sm:$0xff]  ;;  %v18299_v4 = vcombine.low %v3091_v63, %v3095_v59 }
 0x7f6   : > { %16386 = vmatprep.subr.bf16.mxu1 %v18212_v13  ;;  %v3062_v13 = vld [vmem:[%s19760_s9 + $0x2bb0] sm:$0xff] }
 0x7f7   : > { %v18265_v10 = vcombine.low %v3058_v51, %v3062_v13 }
 0x7f8   : > { %15731 = vmatpush1.bf16.msra.mxu0 %v18209_v49  ;;  %v18266_v49 = vcombine.high %v3058_v51, %v3062_v13 }
 0x7f9   : > { %16387 = vmatpush1.bf16.msra.mxu1 %v18211_v6  ;;  %15732 = vmatprep.subr.bf16.mxu0 %v18218_v57  ;;  %v18268_v6 = vcombine.high %v3059_v0, %v3063_v3  ;;  %v3066_v57 = vld [vmem:[%s19760_s9 + $0x2bd0] sm:$0xff] }
 0x7fa   : > { %16388 = vmatprep.subr.bf16.mxu1 %v18220_v60  ;;  %v3070_v60 = vld [vmem:[%s19760_s9 + $0x2bf0] sm:$0xff] }
 0x7fb   : > { %v18273_v32 = vcombine.low %v3066_v57, %v3070_v60 }
 0x7fc   : > { %15733 = vmatpush1.bf16.msra.mxu0 %v18217_v24  ;;  %v18274_v24 = vcombine.high %v3066_v57, %v3070_v60 }
 0x7fd   : > { %16389 = vmatpush1.bf16.msra.mxu1 %v18219_v53  ;;  %15734 = vmatprep.subr.bf16.mxu0 %v18226_v23  ;;  %v18276_v53 = vcombine.high %v3067_v36, %v3071_v61  ;;  %v3074_v23 = vld [vmem:[%s19760_s9 + $0x2c10] sm:$0xff] }
 0x7fe   : > { %16390 = vmatprep.subr.bf16.mxu1 %v18228_v39  ;;  %v3078_v39 = vld [vmem:[%s19760_s9 + $0x2c30] sm:$0xff] }
 0x7ff   : > { %v18281_v35 = vcombine.low %v3074_v23, %v3078_v39 }
 0x800   : > { %15735 = vmatpush1.bf16.msra.mxu0 %v18225_v46  ;;  %v18282_v46 = vcombine.high %v3074_v23, %v3078_v39 }
 0x801   : > { %16391 = vmatpush1.bf16.msra.mxu1 %v18227_v38  ;;  %15736 = vmatprep.subr.bf16.mxu0 %v18234_v18  ;;  %v18284_v38 = vcombine.high %v3075_v41, %v3079_v11  ;;  %v3082_v18 = vld [vmem:[%s19760_s9 + $0x2c50] sm:$0xff] }
 0x802   : > { %16392 = vmatprep.subr.bf16.mxu1 %v18236_v2  ;;  %v3086_v2 = vld [vmem:[%s19760_s9 + $0x2c70] sm:$0xff] }
 0x803   : > { %v18289_v48 = vcombine.low %v3082_v18, %v3086_v2 }
 0x804   : > { %15737 = vmatpush1.bf16.msra.mxu0 %v18233_v21  ;;  %v18290_v21 = vcombine.high %v3082_v18, %v3086_v2 }
 0x805   : > { %16393 = vmatpush1.bf16.msra.mxu1 %v18235_v58  ;;  %15738 = vmatprep.subr.bf16.mxu0 %v18242_v62  ;;  %v3090_v58 = vld [vmem:[%s19760_s9 + $0x2c90] sm:$0xff] }
 0x806   : > { %16394 = vmatprep.subr.bf16.mxu1 %v18244_v42  ;;  %v3094_v62 = vld [vmem:[%s19760_s9 + $0x2cb0] sm:$0xff]  ;;  %v18292_v42 = vcombine.high %v3083_v56, %v3087_v12 }
 0x807   : > { %v18297_v30 = vcombine.low %v3090_v58, %v3094_v62  ;;  %v3138_v12 = vld [vmem:[%s19760_s9 + $0x2e10] sm:$0xff] }
 0x808   : > { %15739 = vmatpush1.bf16.msra.mxu0 %v18241_v45  ;;  %v18298_v45 = vcombine.high %v3090_v58, %v3094_v62  ;;  %v3143_v58 = vld [vmem:[%s19760_s9 + $0x2e38] sm:$0xff] }
 0x809   : > { %16395 = vmatpush1.bf16.msra.mxu1 %v18243_v27  ;;  %15740 = vmatprep.subr.bf16.mxu0 %v18250_v43  ;;  %v18300_v27 = vcombine.high %v3091_v63, %v3095_v59  ;;  %v3098_v43 = vld [vmem:[%s19760_s9 + $0x2cd0] sm:$0xff] }
 0x80a   : > { %16396 = vmatprep.subr.bf16.mxu1 %v18252_v50  ;;  %v3102_v50 = vld [vmem:[%s19760_s9 + $0x2cf0] sm:$0xff] }
 0x80b   : > { %v18306_v15 = vcombine.high %v3098_v43, %v3102_v50  ;;  %v18305_v51 = vcombine.low %v3098_v43, %v3102_v50 }
 0x80c   : > { %15741 = vmatpush1.bf16.msra.mxu0 %v18249_v26  ;;  %v3106_v26 = vld [vmem:[%s19760_s9 + $0x2d10] sm:$0xff] }
 0x80d   : > { %16397 = vmatpush1.bf16.msra.mxu1 %v18251_v17  ;;  %15742 = vmatprep.subr.bf16.mxu0 %v18258_v22  ;;  %v3110_v17 = vld [vmem:[%s19760_s9 + $0x2d30] sm:$0xff]  ;;  %v3107_v22 = vld [vmem:[%s19760_s9 + $0x2d18] sm:$0xff] }
 0x80e   : > { %16398 = vmatprep.subr.bf16.mxu1 %v18260_v25  ;;  %v3111_v25 = vld [vmem:[%s19760_s9 + $0x2d38] sm:$0xff]  ;;  %v18314_v0 = vcombine.high %v3106_v26, %v3110_v17  ;;  %v18313_v57 = vcombine.low %v3106_v26, %v3110_v17 }
 0x80f   : > { %v18316_v3 = vcombine.high %v3107_v22, %v3111_v25  ;;  %v18315_v60 = vcombine.low %v3107_v22, %v3111_v25 }
 0x810   : > { %15743 = vmatpush1.bf16.msra.mxu0 %v18257_v1  ;;  %v3114_v1 = vld [vmem:[%s19760_s9 + $0x2d50] sm:$0xff] }
 0x811   : > { %16399 = vmatpush1.bf16.msra.mxu1 %v18259_v28  ;;  %15744 = vmatprep.subr.bf16.mxu0 %v18266_v49  ;;  %v3118_v28 = vld [vmem:[%s19760_s9 + $0x2d70] sm:$0xff]  ;;  %v3115_v49 = vld [vmem:[%s19760_s9 + $0x2d58] sm:$0xff] }
 0x812   : > { %16400 = vmatprep.subr.bf16.mxu1 %v18268_v6  ;;  %v3119_v6 = vld [vmem:[%s19760_s9 + $0x2d78] sm:$0xff]  ;;  %v18322_v36 = vcombine.high %v3114_v1, %v3118_v28  ;;  %v18321_v23 = vcombine.low %v3114_v1, %v3118_v28 }
 0x813   : > { %v18324_v61 = vcombine.high %v3115_v49, %v3119_v6  ;;  %v18323_v39 = vcombine.low %v3115_v49, %v3119_v6 }
 0x814   : > { %15745 = vmatpush1.bf16.msra.mxu0 %v18265_v10  ;;  %v3122_v10 = vld [vmem:[%s19760_s9 + $0x2d90] sm:$0xff] }
 0x815   : > { %16401 = vmatpush1.bf16.msra.mxu1 %v18267_v16  ;;  %15746 = vmatprep.subr.bf16.mxu0 %v18274_v24  ;;  %v3126_v16 = vld [vmem:[%s19760_s9 + $0x2db0] sm:$0xff]  ;;  %v3123_v24 = vld [vmem:[%s19760_s9 + $0x2d98] sm:$0xff] }
 0x816   : > { %16402 = vmatprep.subr.bf16.mxu1 %v18276_v53  ;;  %v3127_v53 = vld [vmem:[%s19760_s9 + $0x2db8] sm:$0xff]  ;;  %v18330_v41 = vcombine.high %v3122_v10, %v3126_v16  ;;  %v18329_v18 = vcombine.low %v3122_v10, %v3126_v16 }
 0x817   : > { %v18332_v11 = vcombine.high %v3123_v24, %v3127_v53  ;;  %v18331_v2 = vcombine.low %v3123_v24, %v3127_v53 }
 0x818   : > { %15747 = vmatpush1.bf16.msra.mxu0 %v18273_v32  ;;  %v3130_v32 = vld [vmem:[%s19760_s9 + $0x2dd0] sm:$0xff] }
 0x819   : > { %16403 = vmatpush1.bf16.msra.mxu1 %v18275_v7  ;;  %15757 = vmatprep.subr.bf16.mxu0 %v18282_v46  ;;  %v3134_v7 = vld [vmem:[%s19760_s9 + $0x2df0] sm:$0xff]  ;;  %v3131_v46 = vld [vmem:[%s19760_s9 + $0x2dd8] sm:$0xff] }
 0x81a   : > { %16413 = vmatprep.subr.bf16.mxu1 %v18284_v38  ;;  %v3135_v38 = vld [vmem:[%s19760_s9 + $0x2df8] sm:$0xff]  ;;  %v18337_v62 = vcombine.low %v3130_v32, %v3134_v7 }
 0x81b   : > { %15749 = vmatmul.mubr.bf16.vlgmr.msra.gmra.mrb[36].mxu0 %v20831_v44  ;;  %v18340_v56 = vcombine.high %v3131_v46, %v3135_v38 }
 0x81c   : > { %16405 = vmatmul.mubr.bf16.vlgmr.msra.gmra.mrb[36].mxu1 %v20831_v44  ;;  %15758 = vmatpush1.bf16.msra.mxu0 %v18281_v35  ;;  %v3103_v44 = vld [vmem:[%s19760_s9 + $0x2cf8] sm:$0xff]  ;;  %v18338_v35 = vcombine.high %v3130_v32, %v3134_v7 }
 0x81d   : > { %15789 = vmatprep.mubr.bf16.mxu0 %v20835_v54  ;;  %16414 = vmatpush1.bf16.msra.mxu1 %v18283_v31  ;;  %v18307_v13 = vcombine.low %v3099_v37, %v3103_v44  ;;  %v3142_v31 = vld [vmem:[%s19760_s9 + $0x2e30] sm:$0xff] }
 0x81e   : > { %16445 = vmatprep.mubr.bf16.mxu1 %v20835_v54  ;;  %15759 = vmatprep.subr.bf16.mxu0 %v18290_v21  ;;  %v18308_v54 = vcombine.high %v3099_v37, %v3103_v44  ;;  %v3139_v21 = vld [vmem:[%s19760_s9 + $0x2e18] sm:$0xff]  ;;  %v18346_v63 = vcombine.high %v3138_v12, %v3142_v31  ;;  %v18345_v43 = vcombine.low %v3138_v12, %v3142_v31 }
 0x81f   : > { %16415 = vmatprep.subr.bf16.mxu1 %v18292_v42  ;;  %v18339_v42 = vcombine.low %v3131_v46, %v3135_v38  ;;  %v18348_v59 = vcombine.high %v3139_v21, %v3143_v58  ;;  %v18347_v50 = vcombine.low %v3139_v21, %v3143_v58 }
 0x820   : > { %15760 = vmatpush1.bf16.msra.mxu0 %v18289_v48  ;;  %v3146_v48 = vld [vmem:[%s19760_s9 + $0x2e50] sm:$0xff] }
 0x821   : > { %16416 = vmatpush1.bf16.msra.mxu1 %v18291_v9  ;;  %15761 = vmatprep.subr.bf16.mxu0 %v18298_v45  ;;  %v3150_v9 = vld [vmem:[%s19760_s9 + $0x2e70] sm:$0xff]  ;;  %v3147_v45 = vld [vmem:[%s19760_s9 + $0x2e58] sm:$0xff] }
 0x822   : > { %16417 = vmatprep.subr.bf16.mxu1 %v18300_v27  ;;  %v3151_v27 = vld [vmem:[%s19760_s9 + $0x2e78] sm:$0xff]  ;;  %v18354_v37 = vcombine.high %v3146_v48, %v3150_v9  ;;  %v18353_v26 = vcombine.low %v3146_v48, %v3150_v9 }
 0x823   : > { %v18356_v44 = vcombine.high %v3147_v45, %v3151_v27  ;;  %v18355_v17 = vcombine.low %v3147_v45, %v3151_v27 }
 0x824   : > { %15762 = vmatpush1.bf16.msra.mxu0 %v18297_v30  ;;  %v3154_v30 = vld [vmem:[%s19760_s9 + $0x2e90] sm:$0xff] }
 0x825   : > { %16418 = vmatpush1.bf16.msra.mxu1 %v18299_v4  ;;  %15763 = vmatprep.subr.bf16.mxu0 %v18306_v15  ;;  %v3158_v4 = vld [vmem:[%s19760_s9 + $0x2eb0] sm:$0xff]  ;;  %v3155_v15 = vld [vmem:[%s19760_s9 + $0x2e98] sm:$0xff] }
 0x826   : > { %16419 = vmatprep.subr.bf16.mxu1 %v18308_v54  ;;  %v3159_v54 = vld [vmem:[%s19760_s9 + $0x2eb8] sm:$0xff]  ;;  %v18362_v22 = vcombine.high %v3154_v30, %v3158_v4  ;;  %v18361_v1 = vcombine.low %v3154_v30, %v3158_v4 }
 0x827   : > { %v18364_v25 = vcombine.high %v3155_v15, %v3159_v54  ;;  %v18363_v28 = vcombine.low %v3155_v15, %v3159_v54 }
 0x828   : > { %15764 = vmatpush1.bf16.msra.mxu0 %v18305_v51  ;;  %v3162_v51 = vld [vmem:[%s19760_s9 + $0x2ed0] sm:$0xff] }
 0x829   : > { %16420 = vmatpush1.bf16.msra.mxu1 %v18307_v13  ;;  %15765 = vmatprep.subr.bf16.mxu0 %v18314_v0  ;;  %v3166_v13 = vld [vmem:[%s19760_s9 + $0x2ef0] sm:$0xff]  ;;  %v3163_v0 = vld [vmem:[%s19760_s9 + $0x2ed8] sm:$0xff] }
 0x82a   : > { %16421 = vmatprep.subr.bf16.mxu1 %v18316_v3  ;;  %v3167_v3 = vld [vmem:[%s19760_s9 + $0x2ef8] sm:$0xff]  ;;  %v18370_v49 = vcombine.high %v3162_v51, %v3166_v13  ;;  %v18369_v10 = vcombine.low %v3162_v51, %v3166_v13 }
 0x82b   : > { %v18372_v6 = vcombine.high %v3163_v0, %v3167_v3  ;;  %v18371_v16 = vcombine.low %v3163_v0, %v3167_v3  ;;  %v3215_v51 = vld [vmem:[%s19760_s9 + $0x3078] sm:$0xff]  ;;  %v3218_v3 = vld [vmem:[%s19760_s9 + $0x3090] sm:$0xff] }
 0x82c   : > { %15766 = vmatpush1.bf16.msra.mxu0 %v18313_v57  ;;  %v3170_v57 = vld [vmem:[%s19760_s9 + $0x2f10] sm:$0xff] }
 0x82d   : > { %16422 = vmatpush1.bf16.msra.mxu1 %v18315_v60  ;;  %15767 = vmatprep.subr.bf16.mxu0 %v18322_v36  ;;  %v3174_v60 = vld [vmem:[%s19760_s9 + $0x2f30] sm:$0xff]  ;;  %v3171_v36 = vld [vmem:[%s19760_s9 + $0x2f18] sm:$0xff] }
 0x82e   : > { %16423 = vmatprep.subr.bf16.mxu1 %v18324_v61  ;;  %v3175_v61 = vld [vmem:[%s19760_s9 + $0x2f38] sm:$0xff]  ;;  %v18378_v24 = vcombine.high %v3170_v57, %v3174_v60  ;;  %v18377_v32 = vcombine.low %v3170_v57, %v3174_v60 }
 0x82f   : > { %v18380_v53 = vcombine.high %v3171_v36, %v3175_v61  ;;  %v18379_v7 = vcombine.low %v3171_v36, %v3175_v61 }
 0x830   : > { %15768 = vmatpush1.bf16.msra.mxu0 %v18321_v23  ;;  %v3178_v23 = vld [vmem:[%s19760_s9 + $0x2f50] sm:$0xff] }
 0x831   : > { %16424 = vmatpush1.bf16.msra.mxu1 %v18323_v39  ;;  %15769 = vmatprep.subr.bf16.mxu0 %v18330_v41  ;;  %v3182_v39 = vld [vmem:[%s19760_s9 + $0x2f70] sm:$0xff]  ;;  %v3179_v41 = vld [vmem:[%s19760_s9 + $0x2f58] sm:$0xff] }
 0x832   : > { %16425 = vmatprep.subr.bf16.mxu1 %v18332_v11  ;;  %v3183_v11 = vld [vmem:[%s19760_s9 + $0x2f78] sm:$0xff]  ;;  %v18386_v46 = vcombine.high %v3178_v23, %v3182_v39  ;;  %v18385_v12 = vcombine.low %v3178_v23, %v3182_v39 }
 0x833   : > { %v18388_v38 = vcombine.high %v3179_v41, %v3183_v11  ;;  %v18387_v31 = vcombine.low %v3179_v41, %v3183_v11  ;;  %v3234_v41 = vld [vmem:[%s19760_s9 + $0x3110] sm:$0xff] }
 0x834   : > { %15770 = vmatpush1.bf16.msra.mxu0 %v18329_v18  ;;  %v3186_v18 = vld [vmem:[%s19760_s9 + $0x2f90] sm:$0xff] }
 0x835   : > { %16426 = vmatpush1.bf16.msra.mxu1 %v18331_v2  ;;  %15771 = vmatprep.subr.bf16.mxu0 %v18338_v35  ;;  %v3190_v2 = vld [vmem:[%s19760_s9 + $0x2fb0] sm:$0xff]  ;;  %v3187_v35 = vld [vmem:[%s19760_s9 + $0x2f98] sm:$0xff] }
 0x836   : > { %16427 = vmatprep.subr.bf16.mxu1 %v18340_v56  ;;  %v3191_v56 = vld [vmem:[%s19760_s9 + $0x2fb8] sm:$0xff]  ;;  %v18394_v21 = vcombine.high %v3186_v18, %v3190_v2  ;;  %v18393_v48 = vcombine.low %v3186_v18, %v3190_v2  ;;  %v3238_v11 = vld [vmem:[%s19760_s9 + $0x3130] sm:$0xff] }
 0x837   : > { %v18396_v58 = vcombine.high %v3187_v35, %v3191_v56  ;;  %v18395_v9 = vcombine.low %v3187_v35, %v3191_v56  ;;  %v18442_v18 = vcombine.high %v3234_v41, %v3238_v11  ;;  %v3242_v35 = vld [vmem:[%s19760_s9 + $0x3150] sm:$0xff] }
 0x838   : > { %15772 = vmatpush1.bf16.msra.mxu0 %v18337_v62  ;;  %v3194_v62 = vld [vmem:[%s19760_s9 + $0x2fd0] sm:$0xff] }
 0x839   : > { %16428 = vmatpush1.bf16.msra.mxu1 %v18339_v42  ;;  %15773 = vmatprep.subr.bf16.mxu0 %v18346_v63  ;;  %v3198_v42 = vld [vmem:[%s19760_s9 + $0x2ff0] sm:$0xff]  ;;  %v3195_v63 = vld [vmem:[%s19760_s9 + $0x2fd8] sm:$0xff] }
 0x83a   : > { %16429 = vmatprep.subr.bf16.mxu1 %v18348_v59  ;;  %v3199_v59 = vld [vmem:[%s19760_s9 + $0x2ff8] sm:$0xff]  ;;  %v18402_v45 = vcombine.high %v3194_v62, %v3198_v42  ;;  %v18401_v30 = vcombine.low %v3194_v62, %v3198_v42  ;;  %v3246_v56 = vld [vmem:[%s19760_s9 + $0x3170] sm:$0xff] }
 0x83b   : > { %v18404_v27 = vcombine.high %v3195_v63, %v3199_v59  ;;  %v18403_v4 = vcombine.low %v3195_v63, %v3199_v59  ;;  %v18450_v62 = vcombine.high %v3242_v35, %v3246_v56  ;;  %v3250_v63 = vld [vmem:[%s19760_s9 + $0x3190] sm:$0xff] }
 0x83c   : > { %15774 = vmatpush1.bf16.msra.mxu0 %v18345_v43  ;;  %v3202_v43 = vld [vmem:[%s19760_s9 + $0x3010] sm:$0xff] }
 0x83d   : > { %16430 = vmatpush1.bf16.msra.mxu1 %v18347_v50  ;;  %15775 = vmatprep.subr.bf16.mxu0 %v18354_v37  ;;  %v3206_v50 = vld [vmem:[%s19760_s9 + $0x3030] sm:$0xff]  ;;  %v3203_v37 = vld [vmem:[%s19760_s9 + $0x3018] sm:$0xff] }
 0x83e   : > { %16431 = vmatprep.subr.bf16.mxu1 %v18356_v44  ;;  %v3207_v44 = vld [vmem:[%s19760_s9 + $0x3038] sm:$0xff]  ;;  %v18410_v15 = vcombine.high %v3202_v43, %v3206_v50  ;;  %v3254_v59 = vld [vmem:[%s19760_s9 + $0x31b0] sm:$0xff] }
 0x83f   : > { %v18412_v54 = vcombine.high %v3203_v37, %v3207_v44  ;;  %v18411_v13 = vcombine.low %v3203_v37, %v3207_v44  ;;  %v3258_v37 = vld [vmem:[%s19760_s9 + $0x31d0] sm:$0xff] }
 0x840   : > { %15776 = vmatpush1.bf16.msra.mxu0 %v18353_v26  ;;  %v3210_v26 = vld [vmem:[%s19760_s9 + $0x3050] sm:$0xff] }
 0x841   : > { %16432 = vmatpush1.bf16.msra.mxu1 %v18355_v17  ;;  %15777 = vmatprep.subr.bf16.mxu0 %v18362_v22  ;;  %v3214_v17 = vld [vmem:[%s19760_s9 + $0x3070] sm:$0xff]  ;;  %v18409_v22 = vcombine.low %v3202_v43, %v3206_v50  ;;  %v18458_v43 = vcombine.high %v3250_v63, %v3254_v59 }
 0x842   : > { %16433 = vmatprep.subr.bf16.mxu1 %v18364_v25  ;;  %v3211_v25 = vld [vmem:[%s19760_s9 + $0x3058] sm:$0xff]  ;;  %v18418_v0 = vcombine.high %v3210_v26, %v3214_v17  ;;  %v18417_v57 = vcombine.low %v3210_v26, %v3214_v17  ;;  %v3262_v44 = vld [vmem:[%s19760_s9 + $0x31f0] sm:$0xff] }
 0x843   : > { %v18419_v60 = vcombine.low %v3211_v25, %v3215_v51  ;;  %v18466_v26 = vcombine.high %v3258_v37, %v3262_v44 }
 0x844   : > { %15778 = vmatpush1.bf16.msra.mxu0 %v18361_v1  ;;  %v3222_v1 = vld [vmem:[%s19760_s9 + $0x30b0] sm:$0xff] }
 0x845   : > { %16434 = vmatpush1.bf16.msra.mxu1 %v18363_v28  ;;  %15779 = vmatprep.subr.bf16.mxu0 %v18370_v49  ;;  %v18420_v28 = vcombine.high %v3211_v25, %v3215_v51  ;;  %v3219_v49 = vld [vmem:[%s19760_s9 + $0x3098] sm:$0xff]  ;;  %v18426_v36 = vcombine.high %v3218_v3, %v3222_v1  ;;  %v3270_v25 = vld [vmem:[%s19760_s9 + $0x3230] sm:$0xff] }
 0x846   : > { %16435 = vmatprep.subr.bf16.mxu1 %v18372_v6  ;;  %v3223_v6 = vld [vmem:[%s19760_s9 + $0x30b8] sm:$0xff] }
 0x847   : > { %v18428_v61 = vcombine.high %v3219_v49, %v3223_v6  ;;  %v18427_v23 = vcombine.low %v3219_v49, %v3223_v6  ;;  %v3267_v51 = vld [vmem:[%s19760_s9 + $0x3218] sm:$0xff]  ;;  %v3274_v49 = vld [vmem:[%s19760_s9 + $0x3250] sm:$0xff] }
 0x848   : > { %15780 = vmatpush1.bf16.msra.mxu0 %v18369_v10  ;;  %v3226_v10 = vld [vmem:[%s19760_s9 + $0x30d0] sm:$0xff] }
 0x849   : > { %16436 = vmatpush1.bf16.msra.mxu1 %v18371_v16  ;;  %15781 = vmatprep.subr.bf16.mxu0 %v18378_v24  ;;  %v3230_v16 = vld [vmem:[%s19760_s9 + $0x30f0] sm:$0xff]  ;;  %v3227_v24 = vld [vmem:[%s19760_s9 + $0x30d8] sm:$0xff] }
 0x84a   : > { %16437 = vmatprep.subr.bf16.mxu1 %v18380_v53  ;;  %v18425_v53 = vcombine.low %v3218_v3, %v3222_v1  ;;  %v18434_v39 = vcombine.high %v3226_v10, %v3230_v16  ;;  %v3278_v6 = vld [vmem:[%s19760_s9 + $0x3270] sm:$0xff] }
 0x84c   : > { %15782 = vmatpush1.bf16.msra.mxu0 %v18377_v32  ;;  %v3235_v32 = vld [vmem:[%s19760_s9 + $0x3118] sm:$0xff] }
 0x84d   : > { %16438 = vmatpush1.bf16.msra.mxu1 %v18379_v7  ;;  %15783 = vmatprep.subr.bf16.mxu0 %v18386_v46  ;;  %v3239_v7 = vld [vmem:[%s19760_s9 + $0x3138] sm:$0xff]  ;;  %v18433_v46 = vcombine.low %v3226_v10, %v3230_v16  ;;  %v18482_v10 = vcombine.high %v3274_v49, %v3278_v6 }
 0x84e   : > { %16439 = vmatprep.subr.bf16.mxu1 %v18388_v38  ;;  %v18444_v2 = vcombine.high %v3235_v32, %v3239_v7 }
 0x850   : > { %15784 = vmatpush1.bf16.msra.mxu0 %v18385_v12  ;;  %v3243_v12 = vld [vmem:[%s19760_s9 + $0x3158] sm:$0xff] }
 0x851   : > { %16440 = vmatpush1.bf16.msra.mxu1 %v18387_v31  ;;  %15785 = vmatprep.subr.bf16.mxu0 %v18394_v21  ;;  %v3247_v31 = vld [vmem:[%s19760_s9 + $0x3178] sm:$0xff]  ;;  %v18441_v21 = vcombine.low %v3234_v41, %v3238_v11 }
 0x852   : > { %16441 = vmatprep.subr.bf16.mxu1 %v18396_v58  ;;  %v18443_v58 = vcombine.low %v3235_v32, %v3239_v7  ;;  %v18452_v42 = vcombine.high %v3243_v12, %v3247_v31  ;;  %v3290_v32 = vld [vmem:[%s19760_s9 + $0x32d0] sm:$0xff] }
 0x853   : > { %v3294_v7 = vld [vmem:[%s19760_s9 + $0x32f0] sm:$0xff] }
 0x854   : > { %15786 = vmatpush1.bf16.msra.mxu0 %v18393_v48  ;;  %v3251_v48 = vld [vmem:[%s19760_s9 + $0x3198] sm:$0xff] }
 0x855   : > { %16442 = vmatpush1.bf16.msra.mxu1 %v18395_v9  ;;  %15787 = vmatprep.subr.bf16.mxu0 %v18402_v45  ;;  %v3255_v9 = vld [vmem:[%s19760_s9 + $0x31b8] sm:$0xff]  ;;  %v18449_v45 = vcombine.low %v3242_v35, %v3246_v56  ;;  %v18498_v35 = vcombine.high %v3290_v32, %v3294_v7 }
 0x856   : > { %16443 = vmatprep.subr.bf16.mxu1 %v18404_v27  ;;  %v18451_v27 = vcombine.low %v3243_v12, %v3247_v31  ;;  %v18460_v50 = vcombine.high %v3251_v48, %v3255_v9  ;;  %v3298_v12 = vld [vmem:[%s19760_s9 + $0x3310] sm:$0xff] }
 0x857   : > { %v3302_v31 = vld [vmem:[%s19760_s9 + $0x3330] sm:$0xff] }
 0x858   : > { %15788 = vmatpush1.bf16.msra.mxu0 %v18401_v30  ;;  %v3259_v30 = vld [vmem:[%s19760_s9 + $0x31d8] sm:$0xff] }
 0x859   : > { %16444 = vmatpush1.bf16.msra.mxu1 %v18403_v4  ;;  %15798 = vmatprep.subr.bf16.mxu0 %v18410_v15  ;;  %v3263_v4 = vld [vmem:[%s19760_s9 + $0x31f8] sm:$0xff]  ;;  %v18457_v15 = vcombine.low %v3250_v63, %v3254_v59  ;;  %v18506_v63 = vcombine.high %v3298_v12, %v3302_v31 }
 0x85a   : > { %16454 = vmatprep.subr.bf16.mxu1 %v18412_v54  ;;  %v18459_v54 = vcombine.low %v3251_v48, %v3255_v9  ;;  %v18468_v17 = vcombine.high %v3259_v30, %v3263_v4  ;;  %v18467_v3 = vcombine.low %v3259_v30, %v3263_v4  ;;  %v3306_v48 = vld [vmem:[%s19760_s9 + $0x3350] sm:$0xff] }
 0x85b   : > { %15790 = vmatmul.mubr.bf16.vlgmr.msra.gmra.mrb[36].mxu0 %v20911_v29  ;;  %v3310_v9 = vld [vmem:[%s19760_s9 + $0x3370] sm:$0xff] }
 0x85c   : > { %16446 = vmatmul.mubr.bf16.vlgmr.msra.gmra.mrb[36].mxu1 %v20911_v29  ;;  %15799 = vmatpush1.bf16.msra.mxu0 %v18409_v22  ;;  %v3231_v29 = vld [vmem:[%s19760_s9 + $0x30f8] sm:$0xff]  ;;  %v3266_v22 = vld [vmem:[%s19760_s9 + $0x3210] sm:$0xff] }
 0x85d   : > { %15830 = vmatprep.mubr.bf16.mxu0 %v20915_v20  ;;  %16455 = vmatpush1.bf16.msra.mxu1 %v18411_v13  ;;  %v18435_v38 = vcombine.low %v3227_v24, %v3231_v29  ;;  %v3271_v13 = vld [vmem:[%s19760_s9 + $0x3238] sm:$0xff]  ;;  %v18474_v1 = vcombine.high %v3266_v22, %v3270_v25  ;;  %v3314_v30 = vld [vmem:[%s19760_s9 + $0x3390] sm:$0xff] }
 0x85e   : > { %16486 = vmatprep.mubr.bf16.mxu1 %v20915_v20  ;;  %15800 = vmatprep.subr.bf16.mxu0 %v18418_v0  ;;  %v18436_v20 = vcombine.high %v3227_v24, %v3231_v29  ;;  %v18465_v0 = vcombine.low %v3258_v37, %v3262_v44  ;;  %v3282_v24 = vld [vmem:[%s19760_s9 + $0x3290] sm:$0xff]  ;;  %v18514_v37 = vcombine.high %v3306_v48, %v3310_v9 }
 0x85f   : > { %16456 = vmatprep.subr.bf16.mxu1 %v18420_v28  ;;  %v18476_v28 = vcombine.high %v3267_v51, %v3271_v13  ;;  %v3286_v29 = vld [vmem:[%s19760_s9 + $0x32b0] sm:$0xff] }
 0x860   : > { %15801 = vmatpush1.bf16.msra.mxu0 %v18417_v57  ;;  %v3275_v57 = vld [vmem:[%s19760_s9 + $0x3258] sm:$0xff]  ;;  %v18490_v41 = vcombine.high %v3282_v24, %v3286_v29  ;;  %v3318_v4 = vld [vmem:[%s19760_s9 + $0x33b0] sm:$0xff] }
 0x861   : > { %16457 = vmatpush1.bf16.msra.mxu1 %v18419_v60  ;;  %15802 = vmatprep.subr.bf16.mxu0 %v18426_v36  ;;  %v3279_v60 = vld [vmem:[%s19760_s9 + $0x3278] sm:$0xff]  ;;  %v18473_v36 = vcombine.low %v3266_v22, %v3270_v25  ;;  %v18522_v22 = vcombine.high %v3314_v30, %v3318_v4 }
 0x862   : > { %16458 = vmatprep.subr.bf16.mxu1 %v18428_v61  ;;  %v18475_v61 = vcombine.low %v3267_v51, %v3271_v13  ;;  %v18484_v16 = vcombine.high %v3275_v57, %v3279_v60  ;;  %v3322_v51 = vld [vmem:[%s19760_s9 + $0x33d0] sm:$0xff] }
 0x863   : > { %v3326_v13 = vld [vmem:[%s19760_s9 + $0x33f0] sm:$0xff] }
 0x864   : > { %15803 = vmatpush1.bf16.msra.mxu0 %v18425_v53  ;;  %v3283_v53 = vld [vmem:[%s19760_s9 + $0x3298] sm:$0xff] }
 0x865   : > { %16459 = vmatpush1.bf16.msra.mxu1 %v18427_v23  ;;  %15804 = vmatprep.subr.bf16.mxu0 %v18434_v39  ;;  %v3287_v23 = vld [vmem:[%s19760_s9 + $0x32b8] sm:$0xff]  ;;  %v18481_v39 = vcombine.low %v3274_v49, %v3278_v6  ;;  %v18530_v49 = vcombine.high %v3322_v51, %v3326_v13 }
 0x866   : > { %16460 = vmatprep.subr.bf16.mxu1 %v18436_v20  ;;  %v18483_v20 = vcombine.low %v3275_v57, %v3279_v60  ;;  %v18492_v11 = vcombine.high %v3283_v53, %v3287_v23  ;;  %v3330_v57 = vld [vmem:[%s19760_s9 + $0x3410] sm:$0xff] }
 0x867   : > { %v3334_v60 = vld [vmem:[%s19760_s9 + $0x3430] sm:$0xff] }
 0x868   : > { %15805 = vmatpush1.bf16.msra.mxu0 %v18433_v46  ;;  %v3291_v46 = vld [vmem:[%s19760_s9 + $0x32d8] sm:$0xff] }
 0x869   : > { %16461 = vmatpush1.bf16.msra.mxu1 %v18435_v38  ;;  %15806 = vmatprep.subr.bf16.mxu0 %v18442_v18  ;;  %v3295_v38 = vld [vmem:[%s19760_s9 + $0x32f8] sm:$0xff]  ;;  %v18489_v18 = vcombine.low %v3282_v24, %v3286_v29  ;;  %v18538_v24 = vcombine.high %v3330_v57, %v3334_v60 }
 0x86a   : > { %16462 = vmatprep.subr.bf16.mxu1 %v18444_v2  ;;  %v18491_v2 = vcombine.low %v3283_v53, %v3287_v23  ;;  %v18500_v56 = vcombine.high %v3291_v46, %v3295_v38  ;;  %v3338_v53 = vld [vmem:[%s19760_s9 + $0x3450] sm:$0xff] }
 0x86b   : > { %v3342_v23 = vld [vmem:[%s19760_s9 + $0x3470] sm:$0xff] }
 0x86c   : > { %15807 = vmatpush1.bf16.msra.mxu0 %v18441_v21  ;;  %v3299_v21 = vld [vmem:[%s19760_s9 + $0x3318] sm:$0xff] }
 0x86d   : > { %16463 = vmatpush1.bf16.msra.mxu1 %v18443_v58  ;;  %15808 = vmatprep.subr.bf16.mxu0 %v18450_v62  ;;  %v3303_v58 = vld [vmem:[%s19760_s9 + $0x3338] sm:$0xff]  ;;  %v18497_v62 = vcombine.low %v3290_v32, %v3294_v7  ;;  %v18546_v32 = vcombine.high %v3338_v53, %v3342_v23  ;;  %v3346_v7 = vld [vmem:[%s19760_s9 + $0x3490] sm:$0xff] }
 0x86e   : > { %16464 = vmatprep.subr.bf16.mxu1 %v18452_v42  ;;  %v18499_v42 = vcombine.low %v3291_v46, %v3295_v38  ;;  %v18508_v59 = vcombine.high %v3299_v21, %v3303_v58  ;;  %v3350_v46 = vld [vmem:[%s19760_s9 + $0x34b0] sm:$0xff] }
 0x870   : > { %15809 = vmatpush1.bf16.msra.mxu0 %v18449_v45  ;;  %v3307_v45 = vld [vmem:[%s19760_s9 + $0x3358] sm:$0xff] }
 0x871   : > { %16465 = vmatpush1.bf16.msra.mxu1 %v18451_v27  ;;  %15810 = vmatprep.subr.bf16.mxu0 %v18458_v43  ;;  %v3311_v27 = vld [vmem:[%s19760_s9 + $0x3378] sm:$0xff]  ;;  %v18505_v43 = vcombine.low %v3298_v12, %v3302_v31  ;;  %v18554_v12 = vcombine.high %v3346_v7, %v3350_v46 }
 0x872   : > { %16466 = vmatprep.subr.bf16.mxu1 %v18460_v50  ;;  %v18507_v50 = vcombine.low %v3299_v21, %v3303_v58  ;;  %v18516_v44 = vcombine.high %v3307_v45, %v3311_v27  ;;  %v3354_v21 = vld [vmem:[%s19760_s9 + $0x34d0] sm:$0xff] }
 0x873   : > { %v3358_v58 = vld [vmem:[%s19760_s9 + $0x34f0] sm:$0xff] }
 0x874   : > { %15811 = vmatpush1.bf16.msra.mxu0 %v18457_v15  ;;  %v3315_v15 = vld [vmem:[%s19760_s9 + $0x3398] sm:$0xff] }
 0x875   : > { %16467 = vmatpush1.bf16.msra.mxu1 %v18459_v54  ;;  %15812 = vmatprep.subr.bf16.mxu0 %v18466_v26  ;;  %v3319_v54 = vld [vmem:[%s19760_s9 + $0x33b8] sm:$0xff]  ;;  %v18513_v26 = vcombine.low %v3306_v48, %v3310_v9  ;;  %v3362_v48 = vld [vmem:[%s19760_s9 + $0x3510] sm:$0xff] }
 0x876   : > { %16468 = vmatprep.subr.bf16.mxu1 %v18468_v17  ;;  %v18515_v17 = vcombine.low %v3307_v45, %v3311_v27  ;;  %v18524_v25 = vcombine.high %v3315_v15, %v3319_v54  ;;  %v3366_v9 = vld [vmem:[%s19760_s9 + $0x3530] sm:$0xff]  ;;  %v3363_v45 = vld [vmem:[%s19760_s9 + $0x3518] sm:$0xff] }
 0x877   : > { %v3367_v27 = vld [vmem:[%s19760_s9 + $0x3538] sm:$0xff] }
 0x878   : > { %15813 = vmatpush1.bf16.msra.mxu0 %v18465_v0  ;;  %v3323_v0 = vld [vmem:[%s19760_s9 + $0x33d8] sm:$0xff] }
 0x879   : > { %16469 = vmatpush1.bf16.msra.mxu1 %v18467_v3  ;;  %15814 = vmatprep.subr.bf16.mxu0 %v18474_v1  ;;  %v3327_v3 = vld [vmem:[%s19760_s9 + $0x33f8] sm:$0xff]  ;;  %v18521_v1 = vcombine.low %v3314_v30, %v3318_v4  ;;  %v3370_v30 = vld [vmem:[%s19760_s9 + $0x3550] sm:$0xff] }
 0x87a   : > { %16470 = vmatprep.subr.bf16.mxu1 %v18476_v28  ;;  %v18523_v28 = vcombine.low %v3315_v15, %v3319_v54  ;;  %v18532_v6 = vcombine.high %v3323_v0, %v3327_v3  ;;  %v3374_v4 = vld [vmem:[%s19760_s9 + $0x3570] sm:$0xff]  ;;  %v3371_v15 = vld [vmem:[%s19760_s9 + $0x3558] sm:$0xff] }
 0x87b   : > { %v3375_v54 = vld [vmem:[%s19760_s9 + $0x3578] sm:$0xff] }
 0x87c   : > { %15815 = vmatpush1.bf16.msra.mxu0 %v18473_v36  ;;  %v3331_v36 = vld [vmem:[%s19760_s9 + $0x3418] sm:$0xff] }
 0x87d   : > { %16471 = vmatpush1.bf16.msra.mxu1 %v18475_v61  ;;  %15816 = vmatprep.subr.bf16.mxu0 %v18482_v10  ;;  %v3335_v61 = vld [vmem:[%s19760_s9 + $0x3438] sm:$0xff]  ;;  %v18529_v10 = vcombine.low %v3322_v51, %v3326_v13  ;;  %v3378_v51 = vld [vmem:[%s19760_s9 + $0x3590] sm:$0xff] }
 0x87e   : > { %16472 = vmatprep.subr.bf16.mxu1 %v18484_v16  ;;  %v18531_v16 = vcombine.low %v3323_v0, %v3327_v3  ;;  %v18540_v29 = vcombine.high %v3331_v36, %v3335_v61  ;;  %v3382_v13 = vld [vmem:[%s19760_s9 + $0x35b0] sm:$0xff]  ;;  %v3379_v0 = vld [vmem:[%s19760_s9 + $0x3598] sm:$0xff] }
 0x87f   : > { %v3383_v3 = vld [vmem:[%s19760_s9 + $0x35b8] sm:$0xff] }
 0x880   : > { %15817 = vmatpush1.bf16.msra.mxu0 %v18481_v39  ;;  %v18537_v39 = vcombine.low %v3330_v57, %v3334_v60  ;;  %v3386_v57 = vld [vmem:[%s19760_s9 + $0x35d0] sm:$0xff] }
 0x881   : > { %16473 = vmatpush1.bf16.msra.mxu1 %v18483_v20  ;;  %15818 = vmatprep.subr.bf16.mxu0 %v18490_v41  ;;  %v3339_v20 = vld [vmem:[%s19760_s9 + $0x3458] sm:$0xff]  ;;  %v3390_v60 = vld [vmem:[%s19760_s9 + $0x35f0] sm:$0xff] }
 0x882   : > { %16474 = vmatprep.subr.bf16.mxu1 %v18492_v11  ;;  %v3343_v41 = vld [vmem:[%s19760_s9 + $0x3478] sm:$0xff]  ;;  %v18539_v11 = vcombine.low %v3331_v36, %v3335_v61 }
 0x883   : > { %v18548_v38 = vcombine.high %v3339_v20, %v3343_v41  ;;  %v3387_v36 = vld [vmem:[%s19760_s9 + $0x35d8] sm:$0xff] }
 0x884   : > { %15819 = vmatpush1.bf16.msra.mxu0 %v18489_v18  ;;  %v3347_v18 = vld [vmem:[%s19760_s9 + $0x3498] sm:$0xff] }
 0x885   : > { %16475 = vmatpush1.bf16.msra.mxu1 %v18491_v2  ;;  %15820 = vmatprep.subr.bf16.mxu0 %v18498_v35  ;;  %v3351_v2 = vld [vmem:[%s19760_s9 + $0x34b8] sm:$0xff]  ;;  %v18545_v35 = vcombine.low %v3338_v53, %v3342_v23  ;;  %v3394_v53 = vld [vmem:[%s19760_s9 + $0x3610] sm:$0xff] }
 0x886   : > { %16476 = vmatprep.subr.bf16.mxu1 %v18500_v56  ;;  %v18547_v56 = vcombine.low %v3339_v20, %v3343_v41  ;;  %v18556_v31 = vcombine.high %v3347_v18, %v3351_v2  ;;  %v3391_v61 = vld [vmem:[%s19760_s9 + $0x35f8] sm:$0xff]  ;;  %v3398_v23 = vld [vmem:[%s19760_s9 + $0x3630] sm:$0xff]  ;;  %v18593_v41 = vcombine.low %v3386_v57, %v3390_v60 }
 0x887   : > { %v3399_v20 = vld [vmem:[%s19760_s9 + $0x3638] sm:$0xff] }
 0x888   : > { %15821 = vmatpush1.bf16.msra.mxu0 %v18497_v62  ;;  %v3355_v62 = vld [vmem:[%s19760_s9 + $0x34d8] sm:$0xff] }
 0x889   : > { %16477 = vmatpush1.bf16.msra.mxu1 %v18499_v42  ;;  %15822 = vmatprep.subr.bf16.mxu0 %v18506_v63  ;;  %v18553_v42 = vcombine.low %v3346_v7, %v3350_v46  ;;  %v18555_v63 = vcombine.low %v3347_v18, %v3351_v2  ;;  %v3402_v46 = vld [vmem:[%s19760_s9 + $0x3650] sm:$0xff]  ;;  %v3403_v18 = vld [vmem:[%s19760_s9 + $0x3658] sm:$0xff] }
 0x88a   : > { %16478 = vmatprep.subr.bf16.mxu1 %v18508_v59  ;;  %v18562_v59 = vcombine.high %v3354_v21, %v3358_v58  ;;  %v3407_v2 = vld [vmem:[%s19760_s9 + $0x3678] sm:$0xff] }
 0x88c   : > { %15823 = vmatpush1.bf16.msra.mxu0 %v18505_v43  ;;  %v18561_v43 = vcombine.low %v3354_v21, %v3358_v58  ;;  %v3410_v21 = vld [vmem:[%s19760_s9 + $0x3690] sm:$0xff] }
 0x88d   : > { %16479 = vmatpush1.bf16.msra.mxu1 %v18507_v50  ;;  %15824 = vmatprep.subr.bf16.mxu0 %v18514_v37  ;;  %v18570_v37 = vcombine.high %v3362_v48, %v3366_v9  ;;  %v3414_v58 = vld [vmem:[%s19760_s9 + $0x36b0] sm:$0xff] }
 0x88e   : > { %16480 = vmatprep.subr.bf16.mxu1 %v18516_v44  ;;  %v18572_v44 = vcombine.high %v3363_v45, %v3367_v27 }
 0x890   : > { %15825 = vmatpush1.bf16.msra.mxu0 %v18513_v26  ;;  %v18569_v26 = vcombine.low %v3362_v48, %v3366_v9  ;;  %v3418_v48 = vld [vmem:[%s19760_s9 + $0x36d0] sm:$0xff] }
 0x891   : > { %16481 = vmatpush1.bf16.msra.mxu1 %v18515_v17  ;;  %15826 = vmatprep.subr.bf16.mxu0 %v18522_v22  ;;  %v18571_v17 = vcombine.low %v3363_v45, %v3367_v27  ;;  %v18578_v22 = vcombine.high %v3370_v30, %v3374_v4  ;;  %v3422_v9 = vld [vmem:[%s19760_s9 + $0x36f0] sm:$0xff]  ;;  %v3419_v45 = vld [vmem:[%s19760_s9 + $0x36d8] sm:$0xff] }
 0x892   : > { %16482 = vmatprep.subr.bf16.mxu1 %v18524_v25  ;;  %v18580_v25 = vcombine.high %v3371_v15, %v3375_v54  ;;  %v3423_v27 = vld [vmem:[%s19760_s9 + $0x36f8] sm:$0xff] }
 0x894   : > { %15827 = vmatpush1.bf16.msra.mxu0 %v18521_v1  ;;  %v18577_v1 = vcombine.low %v3370_v30, %v3374_v4  ;;  %v3426_v30 = vld [vmem:[%s19760_s9 + $0x3710] sm:$0xff] }
 0x895   : > { %16483 = vmatpush1.bf16.msra.mxu1 %v18523_v28  ;;  %15828 = vmatprep.subr.bf16.mxu0 %v18530_v49  ;;  %v18579_v28 = vcombine.low %v3371_v15, %v3375_v54  ;;  %v18586_v49 = vcombine.high %v3378_v51, %v3382_v13  ;;  %v3430_v4 = vld [vmem:[%s19760_s9 + $0x3730] sm:$0xff]  ;;  %v3427_v15 = vld [vmem:[%s19760_s9 + $0x3718] sm:$0xff] }
 0x896   : > { %16484 = vmatprep.subr.bf16.mxu1 %v18532_v6  ;;  %v18588_v6 = vcombine.high %v3379_v0, %v3383_v3  ;;  %v3431_v54 = vld [vmem:[%s19760_s9 + $0x3738] sm:$0xff] }
 0x898   : > { %15829 = vmatpush1.bf16.msra.mxu0 %v18529_v10  ;;  %v18585_v10 = vcombine.low %v3378_v51, %v3382_v13  ;;  %v3434_v51 = vld [vmem:[%s19760_s9 + $0x3750] sm:$0xff] }
 0x899   : > { %16485 = vmatpush1.bf16.msra.mxu1 %v18531_v16  ;;  %15839 = vmatprep.subr.bf16.mxu0 %v18538_v24  ;;  %v18587_v16 = vcombine.low %v3379_v0, %v3383_v3  ;;  %v18594_v24 = vcombine.high %v3386_v57, %v3390_v60  ;;  %v3438_v13 = vld [vmem:[%s19760_s9 + $0x3770] sm:$0xff]  ;;  %v3435_v0 = vld [vmem:[%s19760_s9 + $0x3758] sm:$0xff] }
 0x89a   : > { %16495 = vmatprep.subr.bf16.mxu1 %v18540_v29  ;;  %v18596_v29 = vcombine.high %v3387_v36, %v3391_v61  ;;  %v3439_v3 = vld [vmem:[%s19760_s9 + $0x3778] sm:$0xff]  ;;  %v3442_v57 = vld [vmem:[%s19760_s9 + $0x3790] sm:$0xff] }
 0x89b   : > { %15831 = vmatmul.mubr.bf16.vlgmr.msra.gmra.mrb[36].mxu0 %v20989_v5  ;;  %v3446_v60 = vld [vmem:[%s19760_s9 + $0x37b0] sm:$0xff] }
 0x89c   : > { %16487 = vmatmul.mubr.bf16.vlgmr.msra.gmra.mrb[36].mxu1 %v20989_v5  ;;  %15840 = vmatpush1.bf16.msra.mxu0 %v18537_v39  ;;  %v3359_v5 = vld [vmem:[%s19760_s9 + $0x34f8] sm:$0xff] }
 0x89d   : > { %15871 = vmatprep.mubr.bf16.mxu0 %v20993_v55  ;;  %16496 = vmatpush1.bf16.msra.mxu1 %v18539_v11  ;;  %v18563_v50 = vcombine.low %v3355_v62, %v3359_v5  ;;  %v3395_v39 = vld [vmem:[%s19760_s9 + $0x3618] sm:$0xff]  ;;  %v18595_v11 = vcombine.low %v3387_v36, %v3391_v61 }
 0x89e   : > { %16527 = vmatprep.mubr.bf16.mxu1 %v20993_v55  ;;  %15841 = vmatprep.subr.bf16.mxu0 %v18546_v32  ;;  %v18564_v55 = vcombine.high %v3355_v62, %v3359_v5  ;;  %v18602_v32 = vcombine.high %v3394_v53, %v3398_v23  ;;  %v18604_v7 = vcombine.high %v3395_v39, %v3399_v20  ;;  %v3411_v62 = vld [vmem:[%s19760_s9 + $0x3698] sm:$0xff] }
 0x89f   : > { %16497 = vmatprep.subr.bf16.mxu1 %v18548_v38  ;;  %v3406_v38 = vld [vmem:[%s19760_s9 + $0x3670] sm:$0xff]  ;;  %v3415_v5 = vld [vmem:[%s19760_s9 + $0x36b8] sm:$0xff] }
 0x8a0   : > { %15842 = vmatpush1.bf16.msra.mxu0 %v18545_v35  ;;  %v18601_v35 = vcombine.low %v3394_v53, %v3398_v23  ;;  %v3443_v36 = vld [vmem:[%s19760_s9 + $0x3798] sm:$0xff]  ;;  %v3450_v53 = vld [vmem:[%s19760_s9 + $0x37d0] sm:$0xff] }
 0x8a1   : > { %16498 = vmatpush1.bf16.msra.mxu1 %v18547_v56  ;;  %15843 = vmatprep.subr.bf16.mxu0 %v18554_v12  ;;  %v18603_v56 = vcombine.low %v3395_v39, %v3399_v20  ;;  %v18610_v12 = vcombine.high %v3402_v46, %v3406_v38  ;;  %v3447_v61 = vld [vmem:[%s19760_s9 + $0x37b8] sm:$0xff]  ;;  %v3454_v23 = vld [vmem:[%s19760_s9 + $0x37f0] sm:$0xff] }
 0x8a2   : > { %16499 = vmatprep.subr.bf16.mxu1 %v18556_v31  ;;  %v18612_v31 = vcombine.high %v3403_v18, %v3407_v2  ;;  %v3451_v39 = vld [vmem:[%s19760_s9 + $0x37d8] sm:$0xff] }
 0x8a3   : > { %v3455_v20 = vld [vmem:[%s19760_s9 + $0x37f8] sm:$0xff] }
 0x8a4   : > { %15844 = vmatpush1.bf16.msra.mxu0 %v18553_v42  ;;  %v18609_v42 = vcombine.low %v3402_v46, %v3406_v38  ;;  %v3458_v46 = vld [vmem:[%s19760_s9 + $0x3810] sm:$0xff] }
 0x8a5   : > { %16500 = vmatpush1.bf16.msra.mxu1 %v18555_v63  ;;  %15845 = vmatprep.subr.bf16.mxu0 %v18562_v59  ;;  %v18611_v63 = vcombine.low %v3403_v18, %v3407_v2  ;;  %v18618_v59 = vcombine.high %v3410_v21, %v3414_v58  ;;  %v3462_v38 = vld [vmem:[%s19760_s9 + $0x3830] sm:$0xff]  ;;  %v3459_v18 = vld [vmem:[%s19760_s9 + $0x3818] sm:$0xff] }
 0x8a6   : > { %16501 = vmatprep.subr.bf16.mxu1 %v18564_v55  ;;  %v18620_v55 = vcombine.high %v3411_v62, %v3415_v5  ;;  %v3463_v2 = vld [vmem:[%s19760_s9 + $0x3838] sm:$0xff] }
 0x8a8   : > { %15846 = vmatpush1.bf16.msra.mxu0 %v18561_v43  ;;  %v18617_v43 = vcombine.low %v3410_v21, %v3414_v58  ;;  %v3466_v21 = vld [vmem:[%s19760_s9 + $0x3850] sm:$0xff] }
 0x8a9   : > { %16502 = vmatpush1.bf16.msra.mxu1 %v18563_v50  ;;  %15847 = vmatprep.subr.bf16.mxu0 %v18570_v37  ;;  %v18619_v50 = vcombine.low %v3411_v62, %v3415_v5  ;;  %v18626_v37 = vcombine.high %v3418_v48, %v3422_v9  ;;  %v3470_v58 = vld [vmem:[%s19760_s9 + $0x3870] sm:$0xff]  ;;  %v18665_v62 = vcombine.low %v3458_v46, %v3462_v38  ;;  %v3467_v5 = vld [vmem:[%s19760_s9 + $0x3858] sm:$0xff] }
 0x8aa   : > { %16503 = vmatprep.subr.bf16.mxu1 %v18572_v44  ;;  %v18628_v44 = vcombine.high %v3419_v45, %v3423_v27 }
 0x8ac   : > { %15848 = vmatpush1.bf16.msra.mxu0 %v18569_v26  ;;  %v18625_v26 = vcombine.low %v3418_v48, %v3422_v9  ;;  %v3478_v48 = vld [vmem:[%s19760_s9 + $0x38b0] sm:$0xff] }
 0x8ad   : > { %16504 = vmatpush1.bf16.msra.mxu1 %v18571_v17  ;;  %15849 = vmatprep.subr.bf16.mxu0 %v18578_v22  ;;  %v18627_v17 = vcombine.low %v3419_v45, %v3423_v27  ;;  %v18634_v22 = vcombine.high %v3426_v30, %v3430_v4  ;;  %v3475_v45 = vld [vmem:[%s19760_s9 + $0x3898] sm:$0xff] }
 0x8ae   : > { %16505 = vmatprep.subr.bf16.mxu1 %v18580_v25  ;;  %v18636_v25 = vcombine.high %v3427_v15, %v3431_v54  ;;  %v3479_v27 = vld [vmem:[%s19760_s9 + $0x38b8] sm:$0xff] }
 0x8b0   : > { %15850 = vmatpush1.bf16.msra.mxu0 %v18577_v1  ;;  %v18633_v1 = vcombine.low %v3426_v30, %v3430_v4  ;;  %v3482_v30 = vld [vmem:[%s19760_s9 + $0x38d0] sm:$0xff] }
 0x8b1   : > { %16506 = vmatpush1.bf16.msra.mxu1 %v18579_v28  ;;  %15851 = vmatprep.subr.bf16.mxu0 %v18586_v49  ;;  %v18635_v28 = vcombine.low %v3427_v15, %v3431_v54  ;;  %v18642_v49 = vcombine.high %v3434_v51, %v3438_v13  ;;  %v3486_v4 = vld [vmem:[%s19760_s9 + $0x38f0] sm:$0xff]  ;;  %v3483_v15 = vld [vmem:[%s19760_s9 + $0x38d8] sm:$0xff] }
 0x8b2   : > { %16507 = vmatprep.subr.bf16.mxu1 %v18588_v6  ;;  %v18644_v6 = vcombine.high %v3435_v0, %v3439_v3 }
 0x8b4   : > { %15852 = vmatpush1.bf16.msra.mxu0 %v18585_v10  ;;  %v18641_v10 = vcombine.low %v3434_v51, %v3438_v13  ;;  %v3491_v51 = vld [vmem:[%s19760_s9 + $0x3918] sm:$0xff] }
 0x8b5   : > { %16508 = vmatpush1.bf16.msra.mxu1 %v18587_v16  ;;  %15853 = vmatprep.subr.bf16.mxu0 %v18594_v24  ;;  %v18643_v16 = vcombine.low %v3435_v0, %v3439_v3  ;;  %v18650_v24 = vcombine.high %v3442_v57, %v3446_v60  ;;  %v3495_v13 = vld [vmem:[%s19760_s9 + $0x3938] sm:$0xff]  ;;  %v18689_v0 = vcombine.low %v3482_v30, %v3486_v4 }
 0x8b6   : > { %16509 = vmatprep.subr.bf16.mxu1 %v18596_v29  ;;  %v18652_v29 = vcombine.high %v3443_v36, %v3447_v61 }
 0x8b8   : > { %15854 = vmatpush1.bf16.msra.mxu0 %v18593_v41  ;;  %v18649_v41 = vcombine.low %v3442_v57, %v3446_v60  ;;  %v3499_v57 = vld [vmem:[%s19760_s9 + $0x3958] sm:$0xff] }
 0x8b9   : > { %16510 = vmatpush1.bf16.msra.mxu1 %v18595_v11  ;;  %15855 = vmatprep.subr.bf16.mxu0 %v18602_v32  ;;  %v18651_v11 = vcombine.low %v3443_v36, %v3447_v61  ;;  %v18658_v32 = vcombine.high %v3450_v53, %v3454_v23  ;;  %v3503_v60 = vld [vmem:[%s19760_s9 + $0x3978] sm:$0xff]  ;;  %v18699_v61 = vcombine.low %v3491_v51, %v3495_v13 }
 0x8ba   : > { %16511 = vmatprep.subr.bf16.mxu1 %v18604_v7  ;;  %v18660_v7 = vcombine.high %v3451_v39, %v3455_v20 }
 0x8bc   : > { %15856 = vmatpush1.bf16.msra.mxu0 %v18601_v35  ;;  %v18657_v35 = vcombine.low %v3450_v53, %v3454_v23  ;;  %v3507_v53 = vld [vmem:[%s19760_s9 + $0x3998] sm:$0xff] }
 0x8bd   : > { %16512 = vmatpush1.bf16.msra.mxu1 %v18603_v56  ;;  %15857 = vmatprep.subr.bf16.mxu0 %v18610_v12  ;;  %v18659_v56 = vcombine.low %v3451_v39, %v3455_v20  ;;  %v18666_v12 = vcombine.high %v3458_v46, %v3462_v38  ;;  %v3511_v23 = vld [vmem:[%s19760_s9 + $0x39b8] sm:$0xff]  ;;  %v18707_v20 = vcombine.low %v3499_v57, %v3503_v60 }
 0x8be   : > { %16513 = vmatprep.subr.bf16.mxu1 %v18612_v31  ;;  %v18668_v31 = vcombine.high %v3459_v18, %v3463_v2  ;;  %v3515_v46 = vld [vmem:[%s19760_s9 + $0x39d8] sm:$0xff] }
 0x8bf   : > { %v3519_v38 = vld [vmem:[%s19760_s9 + $0x39f8] sm:$0xff] }
 0x8c0   : > { %15858 = vmatpush1.bf16.msra.mxu0 %v18609_v42  ;;  %v3471_v42 = vld [vmem:[%s19760_s9 + $0x3878] sm:$0xff] }
 0x8c1   : > { %16514 = vmatpush1.bf16.msra.mxu1 %v18611_v63  ;;  %15859 = vmatprep.subr.bf16.mxu0 %v18618_v59  ;;  %v18667_v63 = vcombine.low %v3459_v18, %v3463_v2  ;;  %v18674_v59 = vcombine.high %v3466_v21, %v3470_v58  ;;  %v18676_v9 = vcombine.high %v3467_v5, %v3471_v42 }
 0x8c2   : > { %16515 = vmatprep.subr.bf16.mxu1 %v18620_v55  ;;  %v3474_v55 = vld [vmem:[%s19760_s9 + $0x3890] sm:$0xff]  ;;  %v18715_v2 = vcombine.low %v3507_v53, %v3511_v23 }
 0x8c3   : > { %v18681_v54 = vcombine.low %v3474_v55, %v3478_v48 }
 0x8c4   : > { %15860 = vmatpush1.bf16.msra.mxu0 %v18617_v43  ;;  %v18673_v43 = vcombine.low %v3466_v21, %v3470_v58  ;;  %v3523_v21 = vld [vmem:[%s19760_s9 + $0x3a18] sm:$0xff] }
 0x8c5   : > { %16516 = vmatpush1.bf16.msra.mxu1 %v18619_v50  ;;  %15861 = vmatprep.subr.bf16.mxu0 %v18626_v37  ;;  %v18675_v50 = vcombine.low %v3467_v5, %v3471_v42  ;;  %v18682_v37 = vcombine.high %v3474_v55, %v3478_v48  ;;  %v3527_v58 = vld [vmem:[%s19760_s9 + $0x3a38] sm:$0xff]  ;;  %v18723_v5 = vcombine.low %v3515_v46, %v3519_v38  ;;  %v3534_v55 = vld [vmem:[%s19760_s9 + $0x3a70] sm:$0xff] }
 0x8c6   : > { %16517 = vmatprep.subr.bf16.mxu1 %v18628_v44  ;;  %v18684_v44 = vcombine.high %v3475_v45, %v3479_v27  ;;  %v3531_v48 = vld [vmem:[%s19760_s9 + $0x3a58] sm:$0xff] }
 0x8c8   : > { %15862 = vmatpush1.bf16.msra.mxu0 %v18625_v26  ;;  %v18683_v26 = vcombine.low %v3475_v45, %v3479_v27  ;;  %v18731_v27 = vcombine.low %v3523_v21, %v3527_v58 }
 0x8c9   : > { %16518 = vmatpush1.bf16.msra.mxu1 %v18627_v17  ;;  %15863 = vmatprep.subr.bf16.mxu0 %v18634_v22  ;;  %v18690_v17 = vcombine.high %v3482_v30, %v3486_v4  ;;  %v3490_v22 = vld [vmem:[%s19760_s9 + $0x3910] sm:$0xff]  ;;  %v3539_v30 = vld [vmem:[%s19760_s9 + $0x3a98] sm:$0xff] }
 0x8ca   : > { %16519 = vmatprep.subr.bf16.mxu1 %v18636_v25  ;;  %v3494_v25 = vld [vmem:[%s19760_s9 + $0x3930] sm:$0xff]  ;;  %v3543_v4 = vld [vmem:[%s19760_s9 + $0x3ab8] sm:$0xff] }
 0x8cb   : > { %v18697_v36 = vcombine.low %v3490_v22, %v3494_v25 }
 0x8cc   : > { %15864 = vmatpush1.bf16.msra.mxu0 %v18633_v1  ;;  %v18698_v1 = vcombine.high %v3490_v22, %v3494_v25  ;;  %v3547_v22 = vld [vmem:[%s19760_s9 + $0x3ad8] sm:$0xff] }
 0x8cd   : > { %16520 = vmatpush1.bf16.msra.mxu1 %v18635_v28  ;;  %15865 = vmatprep.subr.bf16.mxu0 %v18642_v49  ;;  %v18700_v28 = vcombine.high %v3491_v51, %v3495_v13  ;;  %v3498_v49 = vld [vmem:[%s19760_s9 + $0x3950] sm:$0xff]  ;;  %v3551_v25 = vld [vmem:[%s19760_s9 + $0x3af8] sm:$0xff]  ;;  %v18747_v13 = vcombine.low %v3539_v30, %v3543_v4 }
 0x8ce   : > { %16521 = vmatprep.subr.bf16.mxu1 %v18644_v6  ;;  %v3502_v6 = vld [vmem:[%s19760_s9 + $0x3970] sm:$0xff] }
 0x8cf   : > { %v18705_v39 = vcombine.low %v3498_v49, %v3502_v6 }
 0x8d0   : > { %15866 = vmatpush1.bf16.msra.mxu0 %v18641_v10  ;;  %v18706_v10 = vcombine.high %v3498_v49, %v3502_v6  ;;  %v3555_v49 = vld [vmem:[%s19760_s9 + $0x3b18] sm:$0xff] }
 0x8d1   : > { %16522 = vmatpush1.bf16.msra.mxu1 %v18643_v16  ;;  %15867 = vmatprep.subr.bf16.mxu0 %v18650_v24  ;;  %v18708_v16 = vcombine.high %v3499_v57, %v3503_v60  ;;  %v3506_v24 = vld [vmem:[%s19760_s9 + $0x3990] sm:$0xff]  ;;  %v3559_v6 = vld [vmem:[%s19760_s9 + $0x3b38] sm:$0xff]  ;;  %v18755_v60 = vcombine.low %v3547_v22, %v3551_v25 }
 0x8d2   : > { %16523 = vmatprep.subr.bf16.mxu1 %v18652_v29  ;;  %v3510_v29 = vld [vmem:[%s19760_s9 + $0x39b0] sm:$0xff] }
 0x8d3   : > { %v18713_v18 = vcombine.low %v3506_v24, %v3510_v29 }
 0x8d4   : > { %15868 = vmatpush1.bf16.msra.mxu0 %v18649_v41  ;;  %v18714_v41 = vcombine.high %v3506_v24, %v3510_v29  ;;  %v3563_v24 = vld [vmem:[%s19760_s9 + $0x3b58] sm:$0xff] }
 0x8d5   : > { %16524 = vmatpush1.bf16.msra.mxu1 %v18651_v11  ;;  %15869 = vmatprep.subr.bf16.mxu0 %v18658_v32  ;;  %v18716_v11 = vcombine.high %v3507_v53, %v3511_v23  ;;  %v3514_v32 = vld [vmem:[%s19760_s9 + $0x39d0] sm:$0xff]  ;;  %v3567_v29 = vld [vmem:[%s19760_s9 + $0x3b78] sm:$0xff]  ;;  %v18763_v23 = vcombine.low %v3555_v49, %v3559_v6 }
 0x8d6   : > { %16525 = vmatprep.subr.bf16.mxu1 %v18660_v7  ;;  %v3518_v7 = vld [vmem:[%s19760_s9 + $0x39f0] sm:$0xff] }
 0x8d8   : > { %15870 = vmatpush1.bf16.msra.mxu0 %v18657_v35  ;;  %v18722_v35 = vcombine.high %v3514_v32, %v3518_v7 }
 0x8d9   : > { %16526 = vmatpush1.bf16.msra.mxu1 %v18659_v56  ;;  %15880 = vmatprep.subr.bf16.mxu0 %v18666_v12  ;;  %v18724_v56 = vcombine.high %v3515_v46, %v3519_v38  ;;  %v3522_v12 = vld [vmem:[%s19760_s9 + $0x3a10] sm:$0xff]  ;;  %v18771_v38 = vcombine.low %v3563_v24, %v3567_v29 }
 0x8da   : > { %16536 = vmatprep.subr.bf16.mxu1 %v18668_v31  ;;  %v3526_v31 = vld [vmem:[%s19760_s9 + $0x3a30] sm:$0xff] }
 0x8db   : > { %15872 = vmatmul.mubr.bf16.vlgmr.msra.gmra.mrb[36].mxu0 %v21067_v40  ;;  %v18730_v42 = vcombine.high %v3522_v12, %v3526_v31  ;;  %v18729_v45 = vcombine.low %v3522_v12, %v3526_v31  ;;  %v3579_v12 = vld [vmem:[%s19760_s9 + $0x3bd8] sm:$0xff] }
 0x8dc   : > { %16528 = vmatmul.mubr.bf16.vlgmr.msra.gmra.mrb[36].mxu1 %v21067_v40  ;;  %15881 = vmatpush1.bf16.msra.mxu0 %v18665_v62  ;;  %v3487_v40 = vld [vmem:[%s19760_s9 + $0x38f8] sm:$0xff]  ;;  %v18721_v62 = vcombine.low %v3514_v32, %v3518_v7 }
 0x8dd   : > { %15912 = vmatprep.mubr.bf16.mxu0 %v21071_v19  ;;  %16537 = vmatpush1.bf16.msra.mxu1 %v18667_v63  ;;  %v18691_v3 = vcombine.low %v3483_v15, %v3487_v40  ;;  %v18732_v63 = vcombine.high %v3523_v21, %v3527_v58  ;;  %v3571_v32 = vld [vmem:[%s19760_s9 + $0x3b98] sm:$0xff] }
 0x8de   : > { %16568 = vmatprep.mubr.bf16.mxu1 %v21071_v19  ;;  %15882 = vmatprep.subr.bf16.mxu0 %v18674_v59  ;;  %v18692_v19 = vcombine.high %v3483_v15, %v3487_v40  ;;  %v3530_v59 = vld [vmem:[%s19760_s9 + $0x3a50] sm:$0xff]  ;;  %v3575_v7 = vld [vmem:[%s19760_s9 + $0x3bb8] sm:$0xff] }
 0x8df   : > { %16538 = vmatprep.subr.bf16.mxu1 %v18676_v9  ;;  %v3535_v9 = vld [vmem:[%s19760_s9 + $0x3a78] sm:$0xff]  ;;  %v18737_v15 = vcombine.low %v3530_v59, %v3534_v55  ;;  %v18779_v58 = vcombine.low %v3571_v32, %v3575_v7 }
 0x8e0   : > { %15883 = vmatpush1.bf16.msra.mxu0 %v18673_v43  ;;  %v18738_v43 = vcombine.high %v3530_v59, %v3534_v55  ;;  %v18739_v40 = vcombine.low %v3531_v48, %v3535_v9  ;;  %v3583_v31 = vld [vmem:[%s19760_s9 + $0x3bf8] sm:$0xff] }
 0x8e1   : > { %16539 = vmatpush1.bf16.msra.mxu1 %v18675_v50  ;;  %15884 = vmatprep.subr.bf16.mxu0 %v18682_v37  ;;  %v18740_v50 = vcombine.high %v3531_v48, %v3535_v9  ;;  %v3538_v37 = vld [vmem:[%s19760_s9 + $0x3a90] sm:$0xff]  ;;  %v3587_v59 = vld [vmem:[%s19760_s9 + $0x3c18] sm:$0xff]  ;;  %v18787_v9 = vcombine.low %v3579_v12, %v3583_v31 }
 0x8e2   : > { %16540 = vmatprep.subr.bf16.mxu1 %v18684_v44  ;;  %v3542_v44 = vld [vmem:[%s19760_s9 + $0x3ab0] sm:$0xff]  ;;  %v3591_v55 = vld [vmem:[%s19760_s9 + $0x3c38] sm:$0xff] }
 0x8e3   : > { %v18745_v51 = vcombine.low %v3538_v37, %v3542_v44 }
 0x8e4   : > { %15885 = vmatpush1.bf16.msra.mxu0 %v18681_v54  ;;  %v18746_v54 = vcombine.high %v3538_v37, %v3542_v44  ;;  %v3595_v44 = vld [vmem:[%s19760_s9 + $0x3c58] sm:$0xff] }
 0x8e5   : > { %16541 = vmatpush1.bf16.msra.mxu1 %v18683_v26  ;;  %15886 = vmatprep.subr.bf16.mxu0 %v18690_v17  ;;  %v18748_v26 = vcombine.high %v3539_v30, %v3543_v4  ;;  %v3546_v17 = vld [vmem:[%s19760_s9 + $0x3ad0] sm:$0xff]  ;;  %v3599_v30 = vld [vmem:[%s19760_s9 + $0x3c78] sm:$0xff]  ;;  %v18795_v4 = vcombine.low %v3587_v59, %v3591_v55 }
 0x8e6   : > { %16542 = vmatprep.subr.bf16.mxu1 %v18692_v19  ;;  %v3550_v19 = vld [vmem:[%s19760_s9 + $0x3af0] sm:$0xff] }
 0x8e7   : > { %v18753_v57 = vcombine.low %v3546_v17, %v3550_v19 }
 0x8e8   : > { %15887 = vmatpush1.bf16.msra.mxu0 %v18689_v0  ;;  %v18754_v0 = vcombine.high %v3546_v17, %v3550_v19  ;;  %v3603_v17 = vld [vmem:[%s19760_s9 + $0x3c98] sm:$0xff] }
 0x8e9   : > { %16543 = vmatpush1.bf16.msra.mxu1 %v18691_v3  ;;  %15888 = vmatprep.subr.bf16.mxu0 %v18698_v1  ;;  %v18756_v3 = vcombine.high %v3547_v22, %v3551_v25  ;;  %v3554_v1 = vld [vmem:[%s19760_s9 + $0x3b10] sm:$0xff]  ;;  %v3607_v19 = vld [vmem:[%s19760_s9 + $0x3cb8] sm:$0xff]  ;;  %v18803_v25 = vcombine.low %v3595_v44, %v3599_v30 }
 0x8ea   : > { %16544 = vmatprep.subr.bf16.mxu1 %v18700_v28  ;;  %v3558_v28 = vld [vmem:[%s19760_s9 + $0x3b30] sm:$0xff] }
 0x8eb   : > { %v18761_v53 = vcombine.low %v3554_v1, %v3558_v28 }
 0x8ec   : > { %15889 = vmatpush1.bf16.msra.mxu0 %v18697_v36  ;;  %v18762_v36 = vcombine.high %v3554_v1, %v3558_v28  ;;  %v3611_v1 = vld [vmem:[%s19760_s9 + $0x3cd8] sm:$0xff] }
 0x8ed   : > { %16545 = vmatpush1.bf16.msra.mxu1 %v18699_v61  ;;  %15890 = vmatprep.subr.bf16.mxu0 %v18706_v10  ;;  %v18764_v61 = vcombine.high %v3555_v49, %v3559_v6  ;;  %v3562_v10 = vld [vmem:[%s19760_s9 + $0x3b50] sm:$0xff]  ;;  %v18811_v49 = vcombine.low %v3603_v17, %v3607_v19 }
 0x8ee   : > { %16546 = vmatprep.subr.bf16.mxu1 %v18708_v16  ;;  %v3566_v16 = vld [vmem:[%s19760_s9 + $0x3b70] sm:$0xff] }
 0x8ef   : > { %v18769_v46 = vcombine.low %v3562_v10, %v3566_v16 }
 0x8f0   : > { %15891 = vmatpush1.bf16.msra.mxu0 %v18705_v39  ;;  %v18770_v39 = vcombine.high %v3562_v10, %v3566_v16 }
 0x8f1   : > { %16547 = vmatpush1.bf16.msra.mxu1 %v18707_v20  ;;  %15892 = vmatprep.subr.bf16.mxu0 %v18714_v41  ;;  %v18772_v20 = vcombine.high %v3563_v24, %v3567_v29  ;;  %v3570_v41 = vld [vmem:[%s19760_s9 + $0x3b90] sm:$0xff] }
 0x8f2   : > { %16548 = vmatprep.subr.bf16.mxu1 %v18716_v11  ;;  %v3574_v11 = vld [vmem:[%s19760_s9 + $0x3bb0] sm:$0xff] }
 0x8f3   : > { %v18777_v21 = vcombine.low %v3570_v41, %v3574_v11 }
 0x8f4   : > { %15893 = vmatpush1.bf16.msra.mxu0 %v18713_v18  ;;  %v18778_v18 = vcombine.high %v3570_v41, %v3574_v11 }
 0x8f5   : > { %16549 = vmatpush1.bf16.msra.mxu1 %v18715_v2  ;;  %15894 = vmatprep.subr.bf16.mxu0 %v18722_v35  ;;  %v18780_v2 = vcombine.high %v3571_v32, %v3575_v7  ;;  %v3578_v35 = vld [vmem:[%s19760_s9 + $0x3bd0] sm:$0xff] }
 0x8f6   : > { %16550 = vmatprep.subr.bf16.mxu1 %v18724_v56  ;;  %v3582_v56 = vld [vmem:[%s19760_s9 + $0x3bf0] sm:$0xff] }
 0x8f7   : > { %v18785_v48 = vcombine.low %v3578_v35, %v3582_v56 }
 0x8f8   : > { %15895 = vmatpush1.bf16.msra.mxu0 %v18721_v62  ;;  %v18786_v62 = vcombine.high %v3578_v35, %v3582_v56 }
 0x8f9   : > { %16551 = vmatpush1.bf16.msra.mxu1 %v18723_v5  ;;  %15896 = vmatprep.subr.bf16.mxu0 %v18730_v42  ;;  %v18788_v5 = vcombine.high %v3579_v12, %v3583_v31  ;;  %v3586_v42 = vld [vmem:[%s19760_s9 + $0x3c10] sm:$0xff] }
 0x8fa   : > { %16552 = vmatprep.subr.bf16.mxu1 %v18732_v63  ;;  %v3590_v63 = vld [vmem:[%s19760_s9 + $0x3c30] sm:$0xff] }
 0x8fb   : > { %v18793_v37 = vcombine.low %v3586_v42, %v3590_v63 }
 0x8fc   : > { %15897 = vmatpush1.bf16.msra.mxu0 %v18729_v45  ;;  %v18794_v45 = vcombine.high %v3586_v42, %v3590_v63 }
 0x8fd   : > { %16553 = vmatpush1.bf16.msra.mxu1 %v18731_v27  ;;  %15898 = vmatprep.subr.bf16.mxu0 %v18738_v43  ;;  %v18796_v27 = vcombine.high %v3587_v59, %v3591_v55  ;;  %v3594_v43 = vld [vmem:[%s19760_s9 + $0x3c50] sm:$0xff] }
 0x8fe   : > { %16554 = vmatprep.subr.bf16.mxu1 %v18740_v50  ;;  %v3598_v50 = vld [vmem:[%s19760_s9 + $0x3c70] sm:$0xff] }
 0x8ff   : > { %v18801_v22 = vcombine.low %v3594_v43, %v3598_v50 }
 0x900   : > { %15899 = vmatpush1.bf16.msra.mxu0 %v18737_v15  ;;  %v18802_v15 = vcombine.high %v3594_v43, %v3598_v50 }
 0x901   : > { %16555 = vmatpush1.bf16.msra.mxu1 %v18739_v40  ;;  %15900 = vmatprep.subr.bf16.mxu0 %v18746_v54  ;;  %v3602_v40 = vld [vmem:[%s19760_s9 + $0x3c90] sm:$0xff] }
 0x902   : > { %16556 = vmatprep.subr.bf16.mxu1 %v18748_v26  ;;  %v3606_v54 = vld [vmem:[%s19760_s9 + $0x3cb0] sm:$0xff]  ;;  %v18804_v26 = vcombine.high %v3595_v44, %v3599_v30 }
 0x903   : > { %v18809_v28 = vcombine.low %v3602_v40, %v3606_v54  ;;  %v3658_v30 = vld [vmem:[%s19760_s9 + $0x3e50] sm:$0xff] }
 0x904   : > { %15901 = vmatpush1.bf16.msra.mxu0 %v18745_v51  ;;  %v18810_v51 = vcombine.high %v3602_v40, %v3606_v54  ;;  %v3663_v40 = vld [vmem:[%s19760_s9 + $0x3e78] sm:$0xff] }
 0x905   : > { %16557 = vmatpush1.bf16.msra.mxu1 %v18747_v13  ;;  %15902 = vmatprep.subr.bf16.mxu0 %v18754_v0  ;;  %v18812_v13 = vcombine.high %v3603_v17, %v3607_v19  ;;  %v3610_v0 = vld [vmem:[%s19760_s9 + $0x3cd0] sm:$0xff] }
 0x906   : > { %16558 = vmatprep.subr.bf16.mxu1 %v18756_v3  ;;  %v3614_v3 = vld [vmem:[%s19760_s9 + $0x3cf0] sm:$0xff] }
 0x907   : > { %v18818_v6 = vcombine.high %v3610_v0, %v3614_v3  ;;  %v18817_v10 = vcombine.low %v3610_v0, %v3614_v3 }
 0x908   : > { %15903 = vmatpush1.bf16.msra.mxu0 %v18753_v57  ;;  %v3618_v57 = vld [vmem:[%s19760_s9 + $0x3d10] sm:$0xff] }
 0x909   : > { %16559 = vmatpush1.bf16.msra.mxu1 %v18755_v60  ;;  %15904 = vmatprep.subr.bf16.mxu0 %v18762_v36  ;;  %v3622_v60 = vld [vmem:[%s19760_s9 + $0x3d30] sm:$0xff]  ;;  %v3619_v36 = vld [vmem:[%s19760_s9 + $0x3d18] sm:$0xff] }
 0x90a   : > { %16560 = vmatprep.subr.bf16.mxu1 %v18764_v61  ;;  %v3623_v61 = vld [vmem:[%s19760_s9 + $0x3d38] sm:$0xff]  ;;  %v18826_v24 = vcombine.high %v3618_v57, %v3622_v60  ;;  %v18825_v41 = vcombine.low %v3618_v57, %v3622_v60 }
 0x90b   : > { %v18828_v29 = vcombine.high %v3619_v36, %v3623_v61  ;;  %v18827_v11 = vcombine.low %v3619_v36, %v3623_v61 }
 0x90c   : > { %15905 = vmatpush1.bf16.msra.mxu0 %v18761_v53  ;;  %v3626_v53 = vld [vmem:[%s19760_s9 + $0x3d50] sm:$0xff] }
 0x90d   : > { %16561 = vmatpush1.bf16.msra.mxu1 %v18763_v23  ;;  %15906 = vmatprep.subr.bf16.mxu0 %v18770_v39  ;;  %v3630_v23 = vld [vmem:[%s19760_s9 + $0x3d70] sm:$0xff]  ;;  %v3627_v39 = vld [vmem:[%s19760_s9 + $0x3d58] sm:$0xff] }
 0x90e   : > { %16562 = vmatprep.subr.bf16.mxu1 %v18772_v20  ;;  %v3631_v20 = vld [vmem:[%s19760_s9 + $0x3d78] sm:$0xff]  ;;  %v18834_v32 = vcombine.high %v3626_v53, %v3630_v23  ;;  %v18833_v35 = vcombine.low %v3626_v53, %v3630_v23 }
 0x90f   : > { %v18836_v7 = vcombine.high %v3627_v39, %v3631_v20  ;;  %v18835_v56 = vcombine.low %v3627_v39, %v3631_v20 }
 0x910   : > { %15907 = vmatpush1.bf16.msra.mxu0 %v18769_v46  ;;  %v3634_v46 = vld [vmem:[%s19760_s9 + $0x3d90] sm:$0xff] }
 0x911   : > { %16563 = vmatpush1.bf16.msra.mxu1 %v18771_v38  ;;  %15908 = vmatprep.subr.bf16.mxu0 %v18778_v18  ;;  %v3638_v38 = vld [vmem:[%s19760_s9 + $0x3db0] sm:$0xff]  ;;  %v3635_v18 = vld [vmem:[%s19760_s9 + $0x3d98] sm:$0xff] }
 0x912   : > { %16564 = vmatprep.subr.bf16.mxu1 %v18780_v2  ;;  %v3639_v2 = vld [vmem:[%s19760_s9 + $0x3db8] sm:$0xff]  ;;  %v18842_v12 = vcombine.high %v3634_v46, %v3638_v38  ;;  %v18841_v42 = vcombine.low %v3634_v46, %v3638_v38 }
 0x913   : > { %v18844_v31 = vcombine.high %v3635_v18, %v3639_v2  ;;  %v18843_v63 = vcombine.low %v3635_v18, %v3639_v2 }
 0x914   : > { %15909 = vmatpush1.bf16.msra.mxu0 %v18777_v21  ;;  %v3642_v21 = vld [vmem:[%s19760_s9 + $0x3dd0] sm:$0xff] }
 0x915   : > { %16565 = vmatpush1.bf16.msra.mxu1 %v18779_v58  ;;  %15910 = vmatprep.subr.bf16.mxu0 %v18786_v62  ;;  %v3646_v58 = vld [vmem:[%s19760_s9 + $0x3df0] sm:$0xff]  ;;  %v3643_v62 = vld [vmem:[%s19760_s9 + $0x3dd8] sm:$0xff] }
 0x916   : > { %16566 = vmatprep.subr.bf16.mxu1 %v18788_v5  ;;  %v3647_v5 = vld [vmem:[%s19760_s9 + $0x3df8] sm:$0xff]  ;;  %v18850_v59 = vcombine.high %v3642_v21, %v3646_v58  ;;  %v18849_v43 = vcombine.low %v3642_v21, %v3646_v58 }
 0x917   : > { %v18852_v55 = vcombine.high %v3643_v62, %v3647_v5  ;;  %v18851_v50 = vcombine.low %v3643_v62, %v3647_v5 }
 0x918   : > { %15911 = vmatpush1.bf16.msra.mxu0 %v18785_v48  ;;  %v3650_v48 = vld [vmem:[%s19760_s9 + $0x3e10] sm:$0xff] }
 0x919   : > { %16567 = vmatpush1.bf16.msra.mxu1 %v18787_v9  ;;  %15921 = vmatprep.subr.bf16.mxu0 %v18794_v45  ;;  %v3654_v9 = vld [vmem:[%s19760_s9 + $0x3e30] sm:$0xff]  ;;  %v3651_v45 = vld [vmem:[%s19760_s9 + $0x3e18] sm:$0xff] }
 0x91a   : > { %16577 = vmatprep.subr.bf16.mxu1 %v18796_v27  ;;  %v3655_v27 = vld [vmem:[%s19760_s9 + $0x3e38] sm:$0xff]  ;;  %v18857_v54 = vcombine.low %v3650_v48, %v3654_v9 }
 0x91b   : > { %15913 = vmatmul.mubr.bf16.vlgmr.msra.gmra.mrb[36].mxu0 %v21145_v14  ;;  %v18860_v44 = vcombine.high %v3651_v45, %v3655_v27 }
 0x91c   : > { %16569 = vmatmul.mubr.bf16.vlgmr.msra.gmra.mrb[36].mxu1 %v21145_v14  ;;  %15922 = vmatpush1.bf16.msra.mxu0 %v18793_v37  ;;  %v3615_v14 = vld [vmem:[%s19760_s9 + $0x3cf8] sm:$0xff]  ;;  %v18858_v37 = vcombine.high %v3650_v48, %v3654_v9 }
 0x91d   : > { %15953 = vmatprep.mubr.bf16.mxu0 %v21149_v33  ;;  %16578 = vmatpush1.bf16.msra.mxu1 %v18795_v4  ;;  %v18819_v16 = vcombine.low %v3611_v1, %v3615_v14  ;;  %v3662_v4 = vld [vmem:[%s19760_s9 + $0x3e70] sm:$0xff] }
 0x91e   : > { %16609 = vmatprep.mubr.bf16.mxu1 %v21149_v33  ;;  %15923 = vmatprep.subr.bf16.mxu0 %v18802_v15  ;;  %v18820_v33 = vcombine.high %v3611_v1, %v3615_v14  ;;  %v3659_v15 = vld [vmem:[%s19760_s9 + $0x3e58] sm:$0xff]  ;;  %v18866_v17 = vcombine.high %v3658_v30, %v3662_v4  ;;  %v18865_v0 = vcombine.low %v3658_v30, %v3662_v4  ;;  %v22435_v4 = vld [vmem:[#allocation22_spill] sm:$0xff] }
 0x91f   : > { %16579 = vmatprep.subr.bf16.mxu1 %v18804_v26  ;;  %v18859_v26 = vcombine.low %v3651_v45, %v3655_v27  ;;  %v18868_v19 = vcombine.high %v3659_v15, %v3663_v40  ;;  %v18867_v3 = vcombine.low %v3659_v15, %v3663_v40 }
 0x920   : > { %15924 = vmatpush1.bf16.msra.mxu0 %v18801_v22  ;;  %v3666_v22 = vld [vmem:[%s19760_s9 + $0x3e90] sm:$0xff] }
 0x921   : > { %16580 = vmatpush1.bf16.msra.mxu1 %v18803_v25  ;;  %15925 = vmatprep.subr.bf16.mxu0 %v18810_v51  ;;  %v3670_v25 = vld [vmem:[%s19760_s9 + $0x3eb0] sm:$0xff]  ;;  %v3667_v51 = vld [vmem:[%s19760_s9 + $0x3e98] sm:$0xff] }
 0x922   : > { %16581 = vmatprep.subr.bf16.mxu1 %v18812_v13  ;;  %v3671_v13 = vld [vmem:[%s19760_s9 + $0x3eb8] sm:$0xff]  ;;  %v18874_v1 = vcombine.high %v3666_v22, %v3670_v25  ;;  %v18873_v57 = vcombine.low %v3666_v22, %v3670_v25 }
 0x923   : > { %v18876_v14 = vcombine.high %v3667_v51, %v3671_v13  ;;  %v18875_v60 = vcombine.low %v3667_v51, %v3671_v13 }
 0x924   : > { %15926 = vmatpush1.bf16.msra.mxu0 %v18809_v28  ;;  %v3674_v28 = vld [vmem:[%s19760_s9 + $0x3ed0] sm:$0xff] }
 0x925   : > { %16582 = vmatpush1.bf16.msra.mxu1 %v18811_v49  ;;  %15927 = vmatprep.subr.bf16.mxu0 %v18818_v6  ;;  %v3678_v49 = vld [vmem:[%s19760_s9 + $0x3ef0] sm:$0xff]  ;;  %v3675_v6 = vld [vmem:[%s19760_s9 + $0x3ed8] sm:$0xff] }
 0x926   : > { %16583 = vmatprep.subr.bf16.mxu1 %v18820_v33  ;;  %v3679_v33 = vld [vmem:[%s19760_s9 + $0x3ef8] sm:$0xff]  ;;  %v18882_v36 = vcombine.high %v3674_v28, %v3678_v49  ;;  %v18881_v53 = vcombine.low %v3674_v28, %v3678_v49 }
 0x927   : > { %v18884_v61 = vcombine.high %v3675_v6, %v3679_v33  ;;  %v18883_v23 = vcombine.low %v3675_v6, %v3679_v33 }
 0x928   : > { %15928 = vmatpush1.bf16.msra.mxu0 %v18817_v10  ;;  %v3682_v10 = vld [vmem:[%s19760_s9 + $0x3f10] sm:$0xff] }
 0x929   : > { %16584 = vmatpush1.bf16.msra.mxu1 %v18819_v16  ;;  %15929 = vmatprep.subr.bf16.mxu0 %v18826_v24  ;;  %v3686_v16 = vld [vmem:[%s19760_s9 + $0x3f30] sm:$0xff]  ;;  %v3683_v24 = vld [vmem:[%s19760_s9 + $0x3f18] sm:$0xff] }
 0x92a   : > { %16585 = vmatprep.subr.bf16.mxu1 %v18828_v29  ;;  %v3687_v29 = vld [vmem:[%s19760_s9 + $0x3f38] sm:$0xff]  ;;  %v18890_v39 = vcombine.high %v3682_v10, %v3686_v16  ;;  %v18889_v46 = vcombine.low %v3682_v10, %v3686_v16 }
 0x92b   : > { %v18892_v20 = vcombine.high %v3683_v24, %v3687_v29  ;;  %v18891_v38 = vcombine.low %v3683_v24, %v3687_v29 }
 0x92c   : > { %15930 = vmatpush1.bf16.msra.mxu0 %v18825_v41  ;;  %v3690_v41 = vld [vmem:[%s19760_s9 + $0x3f50] sm:$0xff] }
 0x92d   : > { %16586 = vmatpush1.bf16.msra.mxu1 %v18827_v11  ;;  %15931 = vmatprep.subr.bf16.mxu0 %v18834_v32  ;;  %v3694_v11 = vld [vmem:[%s19760_s9 + $0x3f70] sm:$0xff]  ;;  %v3691_v32 = vld [vmem:[%s19760_s9 + $0x3f58] sm:$0xff] }
 0x92e   : > { %16587 = vmatprep.subr.bf16.mxu1 %v18836_v7  ;;  %v3695_v7 = vld [vmem:[%s19760_s9 + $0x3f78] sm:$0xff]  ;;  %v18898_v18 = vcombine.high %v3690_v41, %v3694_v11  ;;  %v18897_v21 = vcombine.low %v3690_v41, %v3694_v11 }
 0x92f   : > { %v18900_v2 = vcombine.high %v3691_v32, %v3695_v7  ;;  %v18899_v58 = vcombine.low %v3691_v32, %v3695_v7 }
 0x930   : > { %15932 = vmatpush1.bf16.msra.mxu0 %v18833_v35  ;;  %v3698_v35 = vld [vmem:[%s19760_s9 + $0x3f90] sm:$0xff] }
 0x931   : > { %16588 = vmatpush1.bf16.msra.mxu1 %v18835_v56  ;;  %15933 = vmatprep.subr.bf16.mxu0 %v18842_v12  ;;  %v3702_v56 = vld [vmem:[%s19760_s9 + $0x3fb0] sm:$0xff]  ;;  %v3699_v12 = vld [vmem:[%s19760_s9 + $0x3f98] sm:$0xff] }
 0x932   : > { %16589 = vmatprep.subr.bf16.mxu1 %v18844_v31  ;;  %v3703_v31 = vld [vmem:[%s19760_s9 + $0x3fb8] sm:$0xff]  ;;  %v18906_v62 = vcombine.high %v3698_v35, %v3702_v56  ;;  %v18905_v48 = vcombine.low %v3698_v35, %v3702_v56 }
 0x933   : > { %v18908_v5 = vcombine.high %v3699_v12, %v3703_v31  ;;  %v18907_v9 = vcombine.low %v3699_v12, %v3703_v31 }
 0x934   : > { %15934 = vmatpush1.bf16.msra.mxu0 %v18841_v42  ;;  %v3706_v42 = vld [vmem:[%s19760_s9 + $0x3fd0] sm:$0xff] }
 0x935   : > { %16590 = vmatpush1.bf16.msra.mxu1 %v18843_v63  ;;  %15935 = vmatprep.subr.bf16.mxu0 %v18850_v59  ;;  %v3710_v63 = vld [vmem:[%s19760_s9 + $0x3ff0] sm:$0xff]  ;;  %v3707_v59 = vld [vmem:[%s19760_s9 + $0x3fd8] sm:$0xff] }
 0x936   : > { %16591 = vmatprep.subr.bf16.mxu1 %v18852_v55  ;;  %v3711_v55 = vld [vmem:[%s19760_s9 + $0x3ff8] sm:$0xff]  ;;  %v18914_v45 = vcombine.high %v3706_v42, %v3710_v63 }
 0x937   : > { %v18916_v27 = vcombine.high %v3707_v59, %v3711_v55 }
 0x938   : > { %15936 = vmatpush1.bf16.msra.mxu0 %v18849_v43  ;;  %v18913_v43 = vcombine.low %v3706_v42, %v3710_v63 }
 0x939   : > { %16592 = vmatpush1.bf16.msra.mxu1 %v18851_v50  ;;  %15937 = vmatprep.subr.bf16.mxu0 %v18858_v37  ;;  %v18915_v50 = vcombine.low %v3707_v59, %v3711_v55  ;;  %v19265_v37 = vld [vmem:[%s21447_s1] sm:$0xff] }
 0x93a   : > { %16593 = vmatprep.subr.bf16.mxu1 %v18860_v44  ;;  %v3733_v44 = vrot.slane %v19265_v37, %v19977_v34  ;;  %v3741_v30 = vrot.slane %v19265_v37, %v19991_v47  ;;  %v3737_v15 = vrot.slane %v19265_v37, %v22435_v4  ;;  %v3745_v40 = vrot.slane %v19265_v37, %v19996_v52 }
 0x93c   : > { %15938 = vmatpush1.bf16.msra.mxu0 %v18857_v54 }
 0x93d   : > { %16594 = vmatpush1.bf16.msra.mxu1 %v18859_v26  ;;  %15939 = vmatprep.subr.bf16.mxu0 %v18866_v17 }
 0x93e   : > { %16595 = vmatprep.subr.bf16.mxu1 %v18868_v19 }
 0x940   : > { %15940 = vmatpush1.bf16.msra.mxu0 %v18865_v0 }
 0x941   : > { %16596 = vmatpush1.bf16.msra.mxu1 %v18867_v3  ;;  %15941 = vmatprep.subr.bf16.mxu0 %v18874_v1 }
 0x942   : > { %16597 = vmatprep.subr.bf16.mxu1 %v18876_v14 }
 0x944   : > { %15942 = vmatpush1.bf16.msra.mxu0 %v18873_v57 }
 0x945   : > { %16598 = vmatpush1.bf16.msra.mxu1 %v18875_v60  ;;  %15943 = vmatprep.subr.bf16.mxu0 %v18882_v36 }
 0x946   : > { %16599 = vmatprep.subr.bf16.mxu1 %v18884_v61 }
 0x948   : > { %15944 = vmatpush1.bf16.msra.mxu0 %v18881_v53 }
 0x949   : > { %16600 = vmatpush1.bf16.msra.mxu1 %v18883_v23  ;;  %15945 = vmatprep.subr.bf16.mxu0 %v18890_v39 }
 0x94a   : > { %16601 = vmatprep.subr.bf16.mxu1 %v18892_v20 }
 0x94c   : > { %15946 = vmatpush1.bf16.msra.mxu0 %v18889_v46 }
 0x94d   : > { %16602 = vmatpush1.bf16.msra.mxu1 %v18891_v38  ;;  %15947 = vmatprep.subr.bf16.mxu0 %v18898_v18 }
 0x94e   : > { %16603 = vmatprep.subr.bf16.mxu1 %v18900_v2 }
 0x950   : > { %15948 = vmatpush1.bf16.msra.mxu0 %v18897_v21 }
 0x951   : > { %16604 = vmatpush1.bf16.msra.mxu1 %v18899_v58  ;;  %15949 = vmatprep.subr.bf16.mxu0 %v18906_v62 }
 0x952   : > { %16605 = vmatprep.subr.bf16.mxu1 %v18908_v5 }
 0x954   : > { %15950 = vmatpush1.bf16.msra.mxu0 %v18905_v48 }
 0x955   : > { %16606 = vmatpush1.bf16.msra.mxu1 %v18907_v9  ;;  %15951 = vmatprep.subr.bf16.mxu0 %v18914_v45 }
 0x956   : > { %16607 = vmatprep.subr.bf16.mxu1 %v18916_v27 }
 0x958   : > { %15952 = vmatpush1.bf16.msra.mxu0 %v18913_v43 }
 0x959   : > { %16608 = vmatpush1.bf16.msra.mxu1 %v18915_v50 }
 0x95b   : > { %15954 = vmatmul.mubr.bf16.vlgmr.msra.gmra.mrb[36].mxu0 %v21220_v8 }
 0x95c   : > { %16610 = vmatmul.mubr.bf16.vlgmr.msra.gmra.mrb[36].mxu1 %v21220_v8 }
 0xa2e   : > { %v15955_v54 = vpop.f32.mrb[36].mxu0 }
 0xa2f   : > { %v18929_v26 = vadd.f32 %v15955_v54, %v3733_v44  ;;  %v16611_v17 = vpop.f32.mrb[36].mxu1  ;;  %v15957_v19 = vpop.f32.mrb[37].mxu0 }
 0xa30   : > { %v18931_v22 = vadd.f32 %v16611_v17, %v3741_v30  ;;  %v18930_v25 = vadd.f32 %v15957_v19, %v3737_v15  ;;  %v16613_v51 = vpop.f32.mrb[37].mxu1  ;;  %v15959_v8 = vpop.f32.mrb[38].mxu0 }
 0xa31   : > { %v16622_v34 = vmax.f32 %v18929_v26, 0.0  ;;  %v18932_v47 = vadd.f32 %v16613_v51, %v3745_v40  ;;  %v16615_v13 = vpop.f32.mrb[38].mxu1  ;;  %v15960_v52 = vpop.f32.mrb[39].mxu0 }
 0xa32   : > { %v16624_v0 = vmax.f32 %v18931_v22, 0.0  ;;  %v16623_v3 = vmax.f32 %v18930_v25, 0.0  ;;  %v16616_v1 = vpop.f32.mrb[39].mxu1 }
 0xa33   : > { %16630 = vst [vmem:[%s21467_s6 + $0x20] sm:$0xff] %v16622_v34  ;;  %v16625_v14 = vmax.f32 %v18932_v47, 0.0 }
 0xa34   : > { %16632 = vst [vmem:[%s21467_s6 + $0x30] sm:$0xff] %v16624_v0  ;;  %16631 = vst [vmem:[%s21467_s6 + $0x28] sm:$0xff] %v16623_v3 }
 0xa35   : > { %16633 = vst [vmem:[%s21467_s6 + $0x38] sm:$0xff] %v16625_v14 }
 0xa36   : > { %19423 = shalt.err (!%p19420_p6)
}
 0xa37   : > { %s19424_s28 = scalar_lea.hbm %s22332_s14, 1024  ;;  %s19428_s15 = scalar_lea.hbm %s22384_s5, 2048 }
 0xa38   : > { %p19425_p1 = scmp.ne.s32.totalorder %s22332_s14, %s19424_s28  ;;  %p19429_p11 = scmp.lt.u32.totalorder %s22332_s14, %s22384_s5 }
 0xa39   : > { %p19430_p13 = scmp.lt.u32.totalorder %s19428_s15, %s19424_s28  ;;  %p19432_p7 = scmp.lt.u32.totalorder %s19424_s28, %s22332_s14 }
 0xa3a   : > { %p19426_p0 = pnand %p19425_p1, %p22436_p9 }
 0xa3b   : > { %p19431_p3 = por %p19430_p13, %p19429_p11 }
 0xa3c   : > { %p19427_p5 = pneg %p19426_p0 }
 0xa3d   : > { %p19433_p12 = por %p19432_p7, %p19431_p3 }
 0xa3f   : > { %p19434_p8 = pnand %p19433_p12, %p19427_p5 }
 0xa41   : > { %19437 = shalt.err (!%p19434_p8)
}
 0xa42   : > { %19189 = dma.vmem_to_hbm [thread:$0]  (%p22436_p9), %s22334_s12, 1024, %s22332_s14, %s16635_s22  }
 0xa43 PF: > { %s22437_s17 = sld [smem:[#allocation18_spill]]  ;;  %s16661_s9 = sand.u32 1, %s19472_s18  }
 0xa44   : > { %p22439_p2 = scmp.ge.s32.totalorder %s19484_s21, 2  ;;  %s16662_s29 = scalar_lea.sflag [#allocation4], %s16661_s9 }
 0xa49   : > { %p22438_p10 = scmp.ne.s32.totalorder %s22437_s17, 0 }
 0xa4b   : > { %p19209_p4 = pnand %p22439_p2, %p22438_p10 }
 0xa4d   : > { %19467 = dma.done.wait (!%p19209_p4), %s16662_s29, 1024  }
 0xa4e   : > { %19469 = vsyncadd (!%p19209_p4), %s16662_s29, 4294966272  ;;  %s22440_s21 = sld [smem:[#allocation16_spill]]  ;;  %s22441_s1 = sld [smem:[#allocation17_spill]] }
 0xa4f   : > { %s22442_s18 = smov %s19476_s19  ;;  %s22443_s19 = smov %s19480_s20 }
 0xa54   : > { %p20_p6 = scmp.ge.s32.totalorder %s22440_s21, 4   ;;  %s22444_s20 = smov %s22441_s1 }
 0xa56   :  { %22 = sbr.rel (!%p20_p6) target bundleno = 10 (0xa), region = 109 }
 0xa5d   :  { %16667 = vsyncpa [#allocation3], 1 }
 0xa5e   :  { %16669 = vsyncpa [#allocation3 + $0x1], 1 }
 0xa5f   :  { %16670 = vsyncpa [#allocation6], 1 }
 0xa60   :  { %16671 = vsyncpa [#allocation9], 1 }
 0xa61   :  { %16673 = vsyncpa [#allocation9 + $0x1], 1 }
 0xa62   :  { %16674 = vsyncpa [#allocation4], 1 }
 0xa63   :  { %16676 = vsyncpa [#allocation4 + $0x1], 1 }

</bundles_post_ra>
